<compile_context>
chip_gen: v6e
topology: v6e:2x2x1
jax: 0.10.0
libtpu: 0.0.40
codegen_flags: <defaults>
</compile_context>

<pallas_src>
import functools

import jax
import jax.numpy as jnp
import numpy as np
from jax import lax
from jax.experimental import pallas as pl
from jax.experimental.pallas import tpu as pltpu


def _round_up(v, m):
    return ((v + m - 1) // m) * m


# --------------------------------------------------------------------------- #
# Pallas kernel: one image per grid step.  Computes
#   relu( bn2(conv2( relu(bn1(conv1(x))) )) + shortcut(x) )
# on a flattened, zero-padded slab of shape ((H+4)*Wp, C).
# --------------------------------------------------------------------------- #
def _basic_block_kernel(*refs, H, W, Wp, Cmid, Cout, has_proj, fold1, fold2):
    if has_proj:
        (x_ref, w1_ref, s1_ref, b1_ref, w2_ref, s2_ref, b2_ref,
         wsc_ref, ssc_ref, bsc_ref, out_ref, acc_ref, y1_ref) = refs
    else:
        (x_ref, w1_ref, s1_ref, b1_ref, w2_ref, s2_ref, b2_ref,
         out_ref, acc_ref, y1_ref) = refs
        wsc_ref = ssc_ref = bsc_ref = None

    L = H * Wp                 # flat rows of the output band
    LS = (H + 2) * Wp          # band + one halo row above/below (folded source)
    band0 = 2 * Wp             # flat offset of the band inside the (H+4)*Wp slab

    def conv3x3(slab_f32, w_ref, fold_all):
        # slab_f32: ((H+4)*Wp, C) f32 value with zero halo rows / pad columns.
        # dj taps folded into K by concatenating the slab with its +-1
        # row-shifted copies (done ONCE per conv); the di shift is an ALIGNED
        # slice of the folded source at a multiple of Wp (Wp multiple of 16).
        base = Wp                                            # one halo row above band
        left = slab_f32[base - 1:base - 1 + LS, :]
        center = slab_f32[base:base + LS, :]
        right = slab_f32[base + 1:base + 1 + LS, :]
        s = jnp.concatenate([left, center, right], axis=1)   # (LS, 3C)
        if fold_all:
            # all 9 taps in one matmul: K = 9*C (<= 128 so v5e-safe as well)
            src = jnp.concatenate(
                [s[0:L, :], s[Wp:Wp + L, :], s[2 * Wp:2 * Wp + L, :]], axis=1)
            acc_ref[...] = jnp.dot(src.astype(jnp.bfloat16), w_ref[...],
                                   preferred_element_type=jnp.float32)
        else:
            sb = s.astype(jnp.bfloat16)
            acc_ref[...] = jnp.dot(sb[0:L, :], w_ref[0],
                                   preferred_element_type=jnp.float32)
            acc_ref[...] += jnp.dot(sb[Wp:Wp + L, :], w_ref[1],
                                    preferred_element_type=jnp.float32)
            acc_ref[...] += jnp.dot(sb[2 * Wp:2 * Wp + L, :], w_ref[2],
                                    preferred_element_type=jnp.float32)

    # interior-column keep-mask, generated in-kernel (no HBM mask input).
    col = lax.broadcasted_iota(jnp.int32, (L, Cmid), 0) % Wp
    keep = jnp.logical_and(col >= 1, col <= W)

    # ---- conv1 + bn1 + relu (f32 epilogue), zero the padding columns ----
    conv3x3(x_ref[0].astype(jnp.float32), w1_ref, fold1)
    y1 = jnp.maximum(acc_ref[...] * s1_ref[...] + b1_ref[...], 0.0)
    y1 = jnp.where(keep, y1, 0.0)

    # y1 slab with zero 2-row halo so conv2 sees proper zero padding; only the
    # halo rows are re-zeroed (cheap, safe with "parallel" batch semantics).
    y1_ref[pl.ds(0, band0), :] = jnp.zeros((band0, Cmid), jnp.float32)
    y1_ref[pl.ds(band0 + L, band0), :] = jnp.zeros((band0, Cmid), jnp.float32)
    y1_ref[pl.ds(band0, L), :] = y1

    # ---- conv2 + bn2 ----
    conv3x3(y1_ref[...], w2_ref, fold2)
    y2 = acc_ref[...] * s2_ref[...] + b2_ref[...]

    # ---- shortcut (1x1 conv + BN, or identity) + residual add + relu ----
    x_band = x_ref[0][band0:band0 + L, :]                    # (L, Cin) bf16, aligned
    if has_proj:
        zsc = jnp.dot(x_band, wsc_ref[...], preferred_element_type=jnp.float32)
        sc = zsc * ssc_ref[...] + bsc_ref[...]
    else:
        sc = x_band.astype(jnp.float32)                      # Cin == Cout here
    out_ref[0, :, :] = jnp.maximum(y2 + sc, 0.0).astype(jnp.bfloat16)


# --------------------------------------------------------------------------- #
# Wrapper: NCHW <-> flattened-NHWC glue, bf16 casts, pallas_call plumbing.
# --------------------------------------------------------------------------- #
def basic_block_forward(x_nchw, params, *, stride=1):
    # TODO(synk): stride > 1 path (strided tap gather) not implemented.
    assert stride == 1, "this Pallas kernel implements the stride=1 configuration"

    N, Cin, H, W = x_nchw.shape
    w1, w2 = params["w1"], params["w2"]
    Cmid, Cout = w1.shape[-1], w2.shape[-1]
    assert Cmid == Cout, "BasicBlock conv2 maps planes -> planes"
    has_proj = (stride != 1) or (Cin != Cout)

    Wp = _round_up(W + 2, 16)          # padded width, bf16 sublane aligned
    P2 = (H + 4) * Wp                  # flat slab rows: 2-row halo top/bottom
    L = H * Wp                         # flat rows of the output band

    # fold all 9 taps into K only when it fits v5e's 128-wide MXU contraction;
    # otherwise fold just the 3 width taps (K = 3*C, 3 matmuls per conv).
    fold1 = (9 * Cin) <= 128
    fold2 = (9 * Cmid) <= 128

    # NHWC, zero pad: 2 rows top/bottom, 1 col left, (Wp - W - 1) cols right.
    x = jnp.transpose(x_nchw, (0, 2, 3, 1)).astype(jnp.float32)
    xpad = jnp.pad(x, ((0, 0), (2, 2), (1, Wp - W - 1), (0, 0)))
    xflat = xpad.reshape(N, P2, Cin).astype(jnp.bfloat16)

    def fold_weights(w, cin, cout, fold_all):
        # (3, 3, cin, cout) -> (9*cin, cout) or (3, 3*cin, cout); the (di, dj,
        # cin) row order matches the kernel's folded source-column order.
        if fold_all:
            return w.reshape(9 * cin, cout).astype(jnp.bfloat16)
        return w.reshape(3, 3 * cin, cout).astype(jnp.bfloat16)

    w1f = fold_weights(w1, Cin, Cmid, fold1)
    w2f = fold_weights(w2, Cmid, Cout, fold2)
    s1 = params["bn1_scale"].astype(jnp.float32)[None, :]
    b1 = params["bn1_bias"].astype(jnp.float32)[None, :]
    s2 = params["bn2_scale"].astype(jnp.float32)[None, :]
    b2 = params["bn2_bias"].astype(jnp.float32)[None, :]

    def full_spec(shape):
        if len(shape) == 2:
            return pl.BlockSpec(shape, lambda n: (0, 0))
        return pl.BlockSpec(shape, lambda n: (0, 0, 0))

    inputs = [xflat, w1f, s1, b1, w2f, s2, b2]
    in_specs = [
        pl.BlockSpec((1, P2, Cin), lambda n: (n, 0, 0)),     # x slab (per image)
        full_spec(w1f.shape),                                # w1 (folded)
        full_spec(s1.shape), full_spec(b1.shape),            # bn1
        full_spec(w2f.shape),                                # w2 (folded)
        full_spec(s2.shape), full_spec(b2.shape),            # bn2
    ]
    if has_proj:   # only DMA projection weights when they exist
        wsc = params["wsc"].astype(jnp.bfloat16)
        ssc = params["bnsc_scale"].astype(jnp.float32)[None, :]
        bsc = params["bnsc_bias"].astype(jnp.float32)[None, :]
        inputs += [wsc, ssc, bsc]
        in_specs += [full_spec(wsc.shape), full_spec(ssc.shape),
                     full_spec(bsc.shape)]

    kernel = functools.partial(
        _basic_block_kernel, H=H, W=W, Wp=Wp, Cmid=Cmid, Cout=Cout,
        has_proj=has_proj, fold1=fold1, fold2=fold2)

    grid_spec = pltpu.PrefetchScalarGridSpec(
        num_scalar_prefetch=0,
        grid=(N,),
        in_specs=in_specs,
        out_specs=pl.BlockSpec((1, L, Cout), lambda n: (n, 0, 0)),
        scratch_shapes=[pltpu.VMEM((L, Cout), jnp.float32),    # conv accumulator
                        pltpu.VMEM((P2, Cmid), jnp.float32)],  # y1 slab w/ halo
    )

    out_flat = pl.pallas_call(
        kernel,
        out_shape=jax.ShapeDtypeStruct((N, L, Cout), jnp.bfloat16),
        grid_spec=grid_spec,
        compiler_params=pltpu.CompilerParams(
            dimension_semantics=("parallel",),     # shard batch across v7x cores
            vmem_limit_bytes=48 * 1024 * 1024),
    )(*inputs)

    # TODO(synk): for realistic ResNet shapes add a row-band grid axis (halo via
    # index_map), fold several images into the matmul M per step, emit a
    # lane-dense packed output for Cout < 128, and keep the surrounding network
    # NHWC/bf16 so the transpose/pad glue below disappears.
    out = out_flat.reshape(N, H, Wp, Cout)[:, :, 1:W + 1, :]
    return jnp.transpose(out, (0, 3, 1, 2))        # NCHW, bf16


# --------------------------------------------------------------------------- #
# Deterministic synthetic parameters (BN folded to eval-mode scale/bias).
# --------------------------------------------------------------------------- #
def _fold_bn(gamma, beta, mean, var, eps=1e-5):
    scale = gamma / jnp.sqrt(var + eps)
    return scale, beta - mean * scale


def init_params(key, in_planes, planes, stride=1):
    keys = jax.random.split(key, 6)

    def conv_w(k, kh, kw, cin, cout):
        fan_in = kh * kw * cin
        return jax.random.normal(k, (kh, kw, cin, cout), jnp.float32) / np.sqrt(fan_in)

    def bn(k, c):
        kg, kb, km, kv = jax.random.split(k, 4)
        gamma = 1.0 + 0.1 * jax.random.normal(kg, (c,), jnp.float32)
        beta = 0.1 * jax.random.normal(kb, (c,), jnp.float32)
        mean = 0.1 * jax.random.normal(km, (c,), jnp.float32)
        var = jnp.abs(1.0 + 0.1 * jax.random.normal(kv, (c,), jnp.float32))
        return _fold_bn(gamma, beta, mean, var)

    p = {}
    p["w1"] = conv_w(keys[0], 3, 3, in_planes, planes)
    p["bn1_scale"], p["bn1_bias"] = bn(keys[1], planes)
    p["w2"] = conv_w(keys[2], 3, 3, planes, planes)
    p["bn2_scale"], p["bn2_bias"] = bn(keys[3], planes)
    if stride != 1 or in_planes != planes:
        p["wsc"] = conv_w(keys[4], 1, 1, in_planes, planes)[0, 0]    # (Cin, Cout)
        p["bnsc_scale"], p["bnsc_bias"] = bn(keys[5], planes)
    return p


# --------------------------------------------------------------------------- #
# Pure-JAX reference mirroring the kernel's bf16-input / f32-accumulate math.
# --------------------------------------------------------------------------- #
def _ref_forward(x_nchw, params, in_planes, planes, stride=1):
    x = jnp.transpose(x_nchw, (0, 2, 3, 1)).astype(jnp.float32)

    def conv(v, w, s):
        return lax.conv_general_dilated(
            v.astype(jnp.bfloat16), w.astype(jnp.bfloat16), (s, s), "SAME",
            dimension_numbers=("NHWC", "HWIO", "NHWC"),
            preferred_element_type=jnp.float32)

    y = jnp.maximum(conv(x, params["w1"], stride) * params["bn1_scale"]
                    + params["bn1_bias"], 0.0)
    y = conv(y, params["w2"], 1) * params["bn2_scale"] + params["bn2_bias"]
    if stride != 1 or in_planes != planes:
        sc = (conv(x, params["wsc"][None, None], stride) * params["bnsc_scale"]
              + params["bnsc_bias"])
    else:
        sc = x.astype(jnp.bfloat16).astype(jnp.float32)
    out = jnp.maximum(y + sc, 0.0).astype(jnp.bfloat16)   # kernel emits bf16
    return jnp.transpose(out, (0, 3, 1, 2))


if __name__ == "__main__":
    key = jax.random.PRNGKey(0)
    N, H, W = 2, 16, 16
    # covers: {9-tap K-fold, 3-tap K-fold} x {projection, identity} shortcuts
    for in_planes, planes in [(4, 8), (8, 8), (16, 16), (16, 32)]:
        kx, kp, key = jax.random.split(key, 3)
        x = jax.random.normal(kx, (N, in_planes, H, W), jnp.float32)   # NCHW
        params = init_params(kp, in_planes, planes, stride=1)

        out = jax.block_until_ready(basic_block_forward(x, params, stride=1))
        ref = _ref_forward(x, params, in_planes, planes, stride=1)
        # bf16 matmul path: tolerance covers accumulation-order + bf16 rounding.
        np.testing.assert_allclose(np.asarray(out.astype(jnp.float32)),
                                   np.asarray(ref.astype(jnp.float32)),
                                   rtol=1e-2, atol=1e-2)
    print("KERNEL_OK")
</pallas_src>

<mosaic_0001>
module attributes {stable_mosaic.version = 11 : i64} {
  func.func @_basic_block_kernel(%arg0: i32, %arg1: memref<1x640x4xbf16, #tpu.memory_space<vmem>>, %arg2: memref<36x8xbf16, #tpu.memory_space<vmem>>, %arg3: memref<1x8xf32, #tpu.memory_space<vmem>>, %arg4: memref<1x8xf32, #tpu.memory_space<vmem>>, %arg5: memref<72x8xbf16, #tpu.memory_space<vmem>>, %arg6: memref<1x8xf32, #tpu.memory_space<vmem>>, %arg7: memref<1x8xf32, #tpu.memory_space<vmem>>, %arg8: memref<4x8xbf16, #tpu.memory_space<vmem>>, %arg9: memref<1x8xf32, #tpu.memory_space<vmem>>, %arg10: memref<1x8xf32, #tpu.memory_space<vmem>>, %arg11: memref<1x512x8xbf16, #tpu.memory_space<vmem>>, %arg12: memref<512x8xf32, #tpu.memory_space<vmem>>, %arg13: memref<640x8xf32, #tpu.memory_space<vmem>>) attributes {dimension_semantics = [#tpu.dimension_semantics<parallel>], iteration_bounds = array<i64: 2>, scalar_prefetch = 0 : i64, scratch_operands = 2 : i64, tpu.core_type = #tpu.core_type<tc>, window_params = [{transform_indices = @transform_0, window_bounds = array<i64: 1, 640, 4>}, {pipeline_mode = #tpu.pipeline_mode<synchronous>, transform_indices = @transform_1, window_bounds = array<i64: 36, 8>}, {pipeline_mode = #tpu.pipeline_mode<synchronous>, transform_indices = @transform_2, window_bounds = array<i64: 1, 8>}, {pipeline_mode = #tpu.pipeline_mode<synchronous>, transform_indices = @transform_3, window_bounds = array<i64: 1, 8>}, {pipeline_mode = #tpu.pipeline_mode<synchronous>, transform_indices = @transform_4, window_bounds = array<i64: 72, 8>}, {pipeline_mode = #tpu.pipeline_mode<synchronous>, transform_indices = @transform_5, window_bounds = array<i64: 1, 8>}, {pipeline_mode = #tpu.pipeline_mode<synchronous>, transform_indices = @transform_6, window_bounds = array<i64: 1, 8>}, {pipeline_mode = #tpu.pipeline_mode<synchronous>, transform_indices = @transform_7, window_bounds = array<i64: 4, 8>}, {pipeline_mode = #tpu.pipeline_mode<synchronous>, transform_indices = @transform_8, window_bounds = array<i64: 1, 8>}, {pipeline_mode = #tpu.pipeline_mode<synchronous>, transform_indices = @transform_9, window_bounds = array<i64: 1, 8>}, {transform_indices = @transform_10, window_bounds = array<i64: 1, 512, 8>}]} {
    %0 = tpu.iota {dimensions = array<i32: 0>} : vector<512x8xi32>
    %c32_i32 = arith.constant 32 : i32
    %c0_i32 = arith.constant 0 : i32
    %1 = arith.cmpi eq, %c32_i32, %c0_i32 : i32
    %c1_i32 = arith.constant 1 : i32
    %2 = arith.select %1, %c1_i32, %c32_i32 : i32
    %3 = vector.broadcast %2 : i32 to vector<512x8xi32>
    %4 = arith.remsi %0, %3 : vector<512x8xi32>
    %c0_i32_0 = arith.constant 0 : i32
    %5 = vector.broadcast %c0_i32_0 : i32 to vector<512x8xi32>
    %6 = arith.cmpi ne, %4, %5 : vector<512x8xi32>
    %c0_i32_1 = arith.constant 0 : i32
    %7 = vector.broadcast %c0_i32_1 : i32 to vector<512x8xi32>
    %8 = arith.cmpi slt, %4, %7 : vector<512x8xi32>
    %c0_i32_2 = arith.constant 0 : i32
    %9 = arith.cmpi slt, %2, %c0_i32_2 : i32
    %10 = vector.broadcast %9 : i1 to vector<512x8xi1>
    %11 = vector.broadcast %10 : vector<512x8xi1> to vector<512x8xi1>
    %12 = arith.xori %8, %11 : vector<512x8xi1>
    %13 = arith.andi %12, %6 : vector<512x8xi1>
    %14 = vector.broadcast %2 : i32 to vector<512x8xi32>
    %15 = arith.addi %4, %14 : vector<512x8xi32>
    %16 = arith.select %13, %15, %4 : vector<512x8xi1>, vector<512x8xi32>
    %c1_i32_3 = arith.constant 1 : i32
    %17 = vector.broadcast %c1_i32_3 : i32 to vector<512x8xi32>
    %18 = arith.cmpi sge, %16, %17 : vector<512x8xi32>
    %c16_i32 = arith.constant 16 : i32
    %19 = vector.broadcast %c16_i32 : i32 to vector<512x8xi32>
    %20 = arith.cmpi sle, %16, %19 : vector<512x8xi32>
    %21 = arith.andi %18, %20 : vector<512x8xi1>
    %c0 = arith.constant 0 : index
    %c0_4 = arith.constant 0 : index
    %c0_5 = arith.constant 0 : index
    %22 = vector.load %arg1[%c0, %c0_4, %c0_5] : memref<1x640x4xbf16, #tpu.memory_space<vmem>>, vector<1x640x4xbf16>
    %23 = vector.shape_cast %22 : vector<1x640x4xbf16> to vector<640x4xbf16>
    %24 = arith.extf %23 : vector<640x4xbf16> to vector<640x4xf32>
    %25 = vector.extract_strided_slice %24 {offsets = [31, 0], sizes = [576, 4], strides = [1, 1]} : vector<640x4xf32> to vector<576x4xf32>
    %26 = vector.extract_strided_slice %24 {offsets = [32, 0], sizes = [576, 4], strides = [1, 1]} : vector<640x4xf32> to vector<576x4xf32>
    %27 = vector.extract_strided_slice %24 {offsets = [33, 0], sizes = [576, 4], strides = [1, 1]} : vector<640x4xf32> to vector<576x4xf32>
    %28 = tpu.concatenate %25, %26, %27 in 1 : vector<576x4xf32>, vector<576x4xf32>, vector<576x4xf32> -> vector<576x12xf32>
    %29 = vector.extract_strided_slice %28 {offsets = [0, 0], sizes = [512, 12], strides = [1, 1]} : vector<576x12xf32> to vector<512x12xf32>
    %30 = vector.extract_strided_slice %28 {offsets = [32, 0], sizes = [512, 12], strides = [1, 1]} : vector<576x12xf32> to vector<512x12xf32>
    %31 = vector.extract_strided_slice %28 {offsets = [64, 0], sizes = [512, 12], strides = [1, 1]} : vector<576x12xf32> to vector<512x12xf32>
    %32 = tpu.concatenate %29, %30, %31 in 1 : vector<512x12xf32>, vector<512x12xf32>, vector<512x12xf32> -> vector<512x36xf32>
    %33 = arith.truncf %32 : vector<512x36xf32> to vector<512x36xbf16>
    %c0_6 = arith.constant 0 : index
    %c0_7 = arith.constant 0 : index
    %34 = vector.load %arg2[%c0_6, %c0_7] : memref<36x8xbf16, #tpu.memory_space<vmem>>, vector<36x8xbf16>
    %cst = arith.constant dense<0.000000e+00> : vector<512x8xf32>
    %35 = tpu.matmul %33, %34, %cst {dimension_numbers = #tpu.dot_dimension_numbers<[1], [0], [0], [1], [0, 0, 1, 1], [], []>} : vector<512x36xbf16>, vector<36x8xbf16>, vector<512x8xf32> -> vector<512x8xf32>
    %c0_8 = arith.constant 0 : index
    %c0_9 = arith.constant 0 : index
    %36 = vector.load %arg12[%c0_8, %c0_9] : memref<512x8xf32, #tpu.memory_space<vmem>>, vector<512x8xf32>
    tpu.vector_store %arg12[%c0_8, %c0_9], %35 {strides = array<i32>} : memref<512x8xf32, #tpu.memory_space<vmem>>, vector<512x8xf32>,
    %c0_10 = arith.constant 0 : index
    %c0_11 = arith.constant 0 : index
    %37 = vector.load %arg12[%c0_10, %c0_11] : memref<512x8xf32, #tpu.memory_space<vmem>>, vector<512x8xf32>
    %c0_12 = arith.constant 0 : index
    %c0_13 = arith.constant 0 : index
    %38 = vector.load %arg3[%c0_12, %c0_13] : memref<1x8xf32, #tpu.memory_space<vmem>>, vector<1x8xf32>
    %39 = vector.broadcast %38 : vector<1x8xf32> to vector<512x8xf32>
    %40 = arith.mulf %37, %39 : vector<512x8xf32>
    %c0_14 = arith.constant 0 : index
    %c0_15 = arith.constant 0 : index
    %41 = vector.load %arg4[%c0_14, %c0_15] : memref<1x8xf32, #tpu.memory_space<vmem>>, vector<1x8xf32>
    %42 = vector.broadcast %41 : vector<1x8xf32> to vector<512x8xf32>
    %43 = arith.addf %40, %42 : vector<512x8xf32>
    %cst_16 = arith.constant 0.000000e+00 : f32
    %44 = vector.broadcast %cst_16 : f32 to vector<512x8xf32>
    %45 = arith.maximumf %43, %44 : vector<512x8xf32>
    %cst_17 = arith.constant 0.000000e+00 : f32
    %46 = vector.broadcast %cst_17 : f32 to vector<512x8xf32>
    %47 = arith.select %21, %45, %46 : vector<512x8xi1>, vector<512x8xf32>
    %cst_18 = arith.constant 0.000000e+00 : f32
    %48 = vector.broadcast %cst_18 : f32 to vector<64x8xf32>
    %c0_19 = arith.constant 0 : index
    %c0_20 = arith.constant 0 : index
    %49 = vector.load %arg13[%c0_19, %c0_20] : memref<640x8xf32, #tpu.memory_space<vmem>>, vector<64x8xf32>
    tpu.vector_store %arg13[%c0_19, %c0_20], %48 {strides = array<i32>} : memref<640x8xf32, #tpu.memory_space<vmem>>, vector<64x8xf32>,
    %cst_21 = arith.constant 0.000000e+00 : f32
    %50 = vector.broadcast %cst_21 : f32 to vector<64x8xf32>
    %c576 = arith.constant 576 : index
    %c0_22 = arith.constant 0 : index
    %51 = vector.load %arg13[%c576, %c0_22] : memref<640x8xf32, #tpu.memory_space<vmem>>, vector<64x8xf32>
    tpu.vector_store %arg13[%c576, %c0_22], %50 {strides = array<i32>} : memref<640x8xf32, #tpu.memory_space<vmem>>, vector<64x8xf32>,
    %c64 = arith.constant 64 : index
    %c0_23 = arith.constant 0 : index
    %52 = vector.load %arg13[%c64, %c0_23] : memref<640x8xf32, #tpu.memory_space<vmem>>, vector<512x8xf32>
    tpu.vector_store %arg13[%c64, %c0_23], %47 {strides = array<i32>} : memref<640x8xf32, #tpu.memory_space<vmem>>, vector<512x8xf32>,
    %c0_24 = arith.constant 0 : index
    %c0_25 = arith.constant 0 : index
    %53 = vector.load %arg13[%c0_24, %c0_25] : memref<640x8xf32, #tpu.memory_space<vmem>>, vector<640x8xf32>
    %54 = vector.extract_strided_slice %53 {offsets = [31, 0], sizes = [576, 8], strides = [1, 1]} : vector<640x8xf32> to vector<576x8xf32>
    %55 = vector.extract_strided_slice %53 {offsets = [32, 0], sizes = [576, 8], strides = [1, 1]} : vector<640x8xf32> to vector<576x8xf32>
    %56 = vector.extract_strided_slice %53 {offsets = [33, 0], sizes = [576, 8], strides = [1, 1]} : vector<640x8xf32> to vector<576x8xf32>
    %57 = tpu.concatenate %54, %55, %56 in 1 : vector<576x8xf32>, vector<576x8xf32>, vector<576x8xf32> -> vector<576x24xf32>
    %58 = vector.extract_strided_slice %57 {offsets = [0, 0], sizes = [512, 24], strides = [1, 1]} : vector<576x24xf32> to vector<512x24xf32>
    %59 = vector.extract_strided_slice %57 {offsets = [32, 0], sizes = [512, 24], strides = [1, 1]} : vector<576x24xf32> to vector<512x24xf32>
    %60 = vector.extract_strided_slice %57 {offsets = [64, 0], sizes = [512, 24], strides = [1, 1]} : vector<576x24xf32> to vector<512x24xf32>
    %61 = tpu.concatenate %58, %59, %60 in 1 : vector<512x24xf32>, vector<512x24xf32>, vector<512x24xf32> -> vector<512x72xf32>
    %62 = arith.truncf %61 : vector<512x72xf32> to vector<512x72xbf16>
    %c0_26 = arith.constant 0 : index
    %c0_27 = arith.constant 0 : index
    %63 = vector.load %arg5[%c0_26, %c0_27] : memref<72x8xbf16, #tpu.memory_space<vmem>>, vector<72x8xbf16>
    %cst_28 = arith.constant dense<0.000000e+00> : vector<512x8xf32>
    %64 = tpu.matmul %62, %63, %cst_28 {dimension_numbers = #tpu.dot_dimension_numbers<[1], [0], [0], [1], [0, 0, 1, 1], [], []>} : vector<512x72xbf16>, vector<72x8xbf16>, vector<512x8xf32> -> vector<512x8xf32>
    %c0_29 = arith.constant 0 : index
    %c0_30 = arith.constant 0 : index
    %65 = vector.load %arg12[%c0_29, %c0_30] : memref<512x8xf32, #tpu.memory_space<vmem>>, vector<512x8xf32>
    tpu.vector_store %arg12[%c0_29, %c0_30], %64 {strides = array<i32>} : memref<512x8xf32, #tpu.memory_space<vmem>>, vector<512x8xf32>,
    %c0_31 = arith.constant 0 : index
    %c0_32 = arith.constant 0 : index
    %66 = vector.load %arg12[%c0_31, %c0_32] : memref<512x8xf32, #tpu.memory_space<vmem>>, vector<512x8xf32>
    %c0_33 = arith.constant 0 : index
    %c0_34 = arith.constant 0 : index
    %67 = vector.load %arg6[%c0_33, %c0_34] : memref<1x8xf32, #tpu.memory_space<vmem>>, vector<1x8xf32>
    %68 = vector.broadcast %67 : vector<1x8xf32> to vector<512x8xf32>
    %69 = arith.mulf %66, %68 : vector<512x8xf32>
    %c0_35 = arith.constant 0 : index
    %c0_36 = arith.constant 0 : index
    %70 = vector.load %arg7[%c0_35, %c0_36] : memref<1x8xf32, #tpu.memory_space<vmem>>, vector<1x8xf32>
    %71 = vector.broadcast %70 : vector<1x8xf32> to vector<512x8xf32>
    %72 = arith.addf %69, %71 : vector<512x8xf32>
    %c0_37 = arith.constant 0 : index
    %c0_38 = arith.constant 0 : index
    %c0_39 = arith.constant 0 : index
    %73 = vector.load %arg1[%c0_37, %c0_38, %c0_39] : memref<1x640x4xbf16, #tpu.memory_space<vmem>>, vector<1x640x4xbf16>
    %74 = vector.shape_cast %73 : vector<1x640x4xbf16> to vector<640x4xbf16>
    %75 = vector.extract_strided_slice %74 {offsets = [64, 0], sizes = [512, 4], strides = [1, 1]} : vector<640x4xbf16> to vector<512x4xbf16>
    %c0_40 = arith.constant 0 : index
    %c0_41 = arith.constant 0 : index
    %76 = vector.load %arg8[%c0_40, %c0_41] : memref<4x8xbf16, #tpu.memory_space<vmem>>, vector<4x8xbf16>
    %cst_42 = arith.constant dense<0.000000e+00> : vector<512x8xf32>
    %77 = tpu.matmul %75, %76, %cst_42 {dimension_numbers = #tpu.dot_dimension_numbers<[1], [0], [0], [1], [0, 0, 1, 1], [], []>} : vector<512x4xbf16>, vector<4x8xbf16>, vector<512x8xf32> -> vector<512x8xf32>
    %c0_43 = arith.constant 0 : index
    %c0_44 = arith.constant 0 : index
    %78 = vector.load %arg9[%c0_43, %c0_44] : memref<1x8xf32, #tpu.memory_space<vmem>>, vector<1x8xf32>
    %79 = vector.broadcast %78 : vector<1x8xf32> to vector<512x8xf32>
    %80 = arith.mulf %77, %79 : vector<512x8xf32>
    %c0_45 = arith.constant 0 : index
    %c0_46 = arith.constant 0 : index
    %81 = vector.load %arg10[%c0_45, %c0_46] : memref<1x8xf32, #tpu.memory_space<vmem>>, vector<1x8xf32>
    %82 = vector.broadcast %81 : vector<1x8xf32> to vector<512x8xf32>
    %83 = arith.addf %80, %82 : vector<512x8xf32>
    %84 = arith.addf %72, %83 : vector<512x8xf32>
    %cst_47 = arith.constant 0.000000e+00 : f32
    %85 = vector.broadcast %cst_47 : f32 to vector<512x8xf32>
    %86 = arith.maximumf %84, %85 : vector<512x8xf32>
    %87 = arith.truncf %86 : vector<512x8xf32> to vector<512x8xbf16>
    %c0_48 = arith.constant 0 : index
    %c0_49 = arith.constant 0 : index
    %c0_50 = arith.constant 0 : index
    %88 = vector.load %arg11[%c0_48, %c0_49, %c0_50] : memref<1x512x8xbf16, #tpu.memory_space<vmem>>, vector<1x512x8xbf16>
    %89 = vector.shape_cast %88 : vector<1x512x8xbf16> to vector<512x8xbf16>
    %90 = vector.shape_cast %87 : vector<512x8xbf16> to vector<1x512x8xbf16>
    tpu.vector_store %arg11[%c0_48, %c0_49, %c0_50], %90 {strides = array<i32>} : memref<1x512x8xbf16, #tpu.memory_space<vmem>>, vector<1x512x8xbf16>,
    return
  }
  func.func @transform_0(%arg0: i32) -> (i32, i32, i32) {
    %c0_i32 = arith.constant 0 : i32
    %c0_i32_0 = arith.constant 0 : i32
    %c0_i32_1 = arith.constant 0 : i32
    return %arg0, %c0_i32, %c0_i32_0 : i32, i32, i32
  }
  func.func @transform_1(%arg0: i32) -> (i32, i32) {
    %c0_i32 = arith.constant 0 : i32
    %c0_i32_0 = arith.constant 0 : i32
    %c0_i32_1 = arith.constant 0 : i32
    return %c0_i32, %c0_i32_0 : i32, i32
  }
  func.func @transform_2(%arg0: i32) -> (i32, i32) {
    %c0_i32 = arith.constant 0 : i32
    %c0_i32_0 = arith.constant 0 : i32
    %c0_i32_1 = arith.constant 0 : i32
    return %c0_i32, %c0_i32_0 : i32, i32
  }
  func.func @transform_3(%arg0: i32) -> (i32, i32) {
    %c0_i32 = arith.constant 0 : i32
    %c0_i32_0 = arith.constant 0 : i32
    %c0_i32_1 = arith.constant 0 : i32
    return %c0_i32, %c0_i32_0 : i32, i32
  }
  func.func @transform_4(%arg0: i32) -> (i32, i32) {
    %c0_i32 = arith.constant 0 : i32
    %c0_i32_0 = arith.constant 0 : i32
    %c0_i32_1 = arith.constant 0 : i32
    return %c0_i32, %c0_i32_0 : i32, i32
  }
  func.func @transform_5(%arg0: i32) -> (i32, i32) {
    %c0_i32 = arith.constant 0 : i32
    %c0_i32_0 = arith.constant 0 : i32
    %c0_i32_1 = arith.constant 0 : i32
    return %c0_i32, %c0_i32_0 : i32, i32
  }
  func.func @transform_6(%arg0: i32) -> (i32, i32) {
    %c0_i32 = arith.constant 0 : i32
    %c0_i32_0 = arith.constant 0 : i32
    %c0_i32_1 = arith.constant 0 : i32
    return %c0_i32, %c0_i32_0 : i32, i32
  }
  func.func @transform_7(%arg0: i32) -> (i32, i32) {
    %c0_i32 = arith.constant 0 : i32
    %c0_i32_0 = arith.constant 0 : i32
    %c0_i32_1 = arith.constant 0 : i32
    return %c0_i32, %c0_i32_0 : i32, i32
  }
  func.func @transform_8(%arg0: i32) -> (i32, i32) {
    %c0_i32 = arith.constant 0 : i32
    %c0_i32_0 = arith.constant 0 : i32
    %c0_i32_1 = arith.constant 0 : i32
    return %c0_i32, %c0_i32_0 : i32, i32
  }
  func.func @transform_9(%arg0: i32) -> (i32, i32) {
    %c0_i32 = arith.constant 0 : i32
    %c0_i32_0 = arith.constant 0 : i32
    %c0_i32_1 = arith.constant 0 : i32
    return %c0_i32, %c0_i32_0 : i32, i32
  }
  func.func @transform_10(%arg0: i32) -> (i32, i32, i32) {
    %c0_i32 = arith.constant 0 : i32
    %c0_i32_0 = arith.constant 0 : i32
    %c0_i32_1 = arith.constant 0 : i32
    return %arg0, %c0_i32, %c0_i32_0 : i32, i32, i32
  }
}

</mosaic_0001>

<bundles_post_ra>
// kernel: tpu_custom_call.1
= control target key start
LH: loop header
LB: loop body
LE: loop exit
PB: predicated region body
PF: predicated region fallthrough
CT: control target
= control target key end

     0   :  { %s10516_s13 = smov 0   ;;  %s14908_s0 = inlined_call_operand.vmem [shape: bf16[2,640,4], index: 0, kind: input, shape index: {}]   ;;  %s14909_s1 = inlined_call_operand.vmem [shape: bf16[36,8], index: 1, kind: input, shape index: {}]   ;;  %s14910_s2 = inlined_call_operand.vmem [shape: f32[1,8], index: 2, kind: input, shape index: {}]   ;;  %s14911_s3 = inlined_call_operand.vmem [shape: f32[1,8], index: 3, kind: input, shape index: {}]   ;;  %s14912_s4 = inlined_call_operand.vmem [shape: bf16[72,8], index: 4, kind: input, shape index: {}]   ;;  %s14913_s5 = inlined_call_operand.vmem [shape: f32[1,8], index: 5, kind: input, shape index: {}]   ;;  %s14914_s6 = inlined_call_operand.vmem [shape: f32[1,8], index: 6, kind: input, shape index: {}]   ;;  %s14915_s7 = inlined_call_operand.vmem [shape: bf16[4,8], index: 7, kind: input, shape index: {}]   ;;  %s14916_s8 = inlined_call_operand.vmem [shape: f32[1,8], index: 8, kind: input, shape index: {}]   ;;  %s14917_s9 = inlined_call_operand.vmem [shape: f32[1,8], index: 9, kind: input, shape index: {}]   ;;  %s14918_s10 = inlined_call_operand.vmem [shape: bf16[2,512,8], index: 10, kind: output, shape index: {}]  }
   0x1 LB: > { %s8186_s14 = sadd.s32 4294967295, %s10452_s13   ;;  %p8190_p0 = scmp.ge.s32.totalorder %s10452_s13, 1  ;;  %s10452_s13 = sphi %s10516_s13, %s20_s13  }
   0x2   : > { %p312_p1 = scmp.lt.s32.totalorder %s10452_s13, 3 }
   0x4   : > { %p313_p2 = pnand %p8190_p0, %p312_p1 }
   0x6   : > { %316 = sbr.rel (%p313_p2) target bundleno = 1409 (0x581), region = 60 }
   0xb   : > { %p350_p3 = scmp.lt.s32.totalorder %s8186_s14, 1  ;;  %vm1606_vm0 = vcmask 1046528   ;;  %s10454_s19 = smov 4   ;;  %vm1970_vm1 = vcmask 1045504   ;;  %vm2409_vm2 = vcmask 64512   ;;  %vm2335_vm3 = vcmask 31744  }
   0xc   : > { %s10455_s20 = smov 8   ;;  %s10457_s21 = smov 12   ;;  %vm3521_vm4 = vcmask 1041408   ;;  %vm2942_vm5 = vcmask 97280   ;;  %vm3008_vm6 = vcmask 195584   ;;  %vm3424_vm8 = vcmask 293888  }
   0xd   : > { %s15468_s14 = smov (!%p350_p3, %s8186_s14), 1  ;;  %s10458_s28 = smov 24   ;;  %vm3112_vm7 = vsmask.f32 4352 }
   0xe   : > { %s8972_s15 = smul.u32 320, %s15468_s14  ;;  %s10459_s29 = smov 16  }
   0xf   : > { %s10460_s22 = smov 48   ;;  %s8402_s25 = sshll.u32 %s15468_s14, 8 }
  0x10   : > { %s10530_s18 = scalar_lea.vmem %s14908_s0, %s8972_s15  ;;  %s14367_s27 = scalar_lea.vmem %s14918_s10, %s8402_s25 }
  0x11   : > { %v8612_v0 = vld [vmem:[%s10530_s18 + $0x18] sm:$0xff]   ;;  %v8613_v1 = vld [vmem:[%s10530_s18 + $0x20] sm:$0xff]   ;;  %v8611_v2 = vld [vmem:[%s10530_s18 + $0x10] sm:$0xff]  }
  0x12   : > { %v10535_v3 = vunpack.c.h.bf16 %v8612_v0  ;;  %v10537_v4 = vunpack.c.l.bf16 %v8613_v1  ;;  %v10539_v5 = vunpack.c.h.bf16 %v8613_v1  ;;  %v10541_v6 = vunpack.c.l.bf16 %v8612_v0  ;;  %v8614_v7 = vld [vmem:[%s10530_s18 + $0x28] sm:$0xff]   ;;  %v8615_v12 = vld [vmem:[%s10530_s18 + $0x30] sm:$0xff]   ;;  %v8616_v21 = vld [vmem:[%s10530_s18 + $0x38] sm:$0xff]  }
  0x13   : > { %v10544_v8 = vunpack.c.l.bf16 %v8611_v2  ;;  %v10546_v9 = vunpack.c.h.bf16 %v8611_v2  ;;  %v10548_v10 = vunpack.c.l.bf16 %v8614_v7  ;;  %v10550_v11 = vunpack.c.h.bf16 %v8614_v7  ;;  %v8617_v30 = vld [vmem:[%s10530_s18 + $0x40] sm:$0xff]   ;;  %v8618_v31 = vld [vmem:[%s10530_s18 + $0x48] sm:$0xff]   ;;  %v8619_v36 = vld [vmem:[%s10530_s18 + $0x50] sm:$0xff]  }
  0x14   : > { %15096 = vst [vmem:[#allocation4_spill] sm:$0xff] %v10541_v6  ;;  %v1612_v13 = vrot.slane %v10535_v3, 1  ;;  %v1614_v14 = vrot.slane %v10537_v4, 1  ;;  %v1616_v15 = vrot.slane %v10539_v5, 1  ;;  %v1610_v16 = vrot.slane %v10541_v6, 1  ;;  %v8620_v53 = vld [vmem:[%s10530_s18 + $0x58] sm:$0xff]  }
  0x15   : > { %15097 = vst [vmem:[#allocation5_spill] sm:$0xff] %v10544_v8  ;;  %15098 = vst [vmem:[#allocation6_spill] sm:$0xff] %v10546_v9  ;;  %v1607_v17 = vrot.slane %v10544_v8, 1  ;;  %v1608_v18 = vrot.slane %v10546_v9, 1  ;;  %v1618_v19 = vrot.slane %v10548_v10, 1  ;;  %v1620_v20 = vrot.slane %v10550_v11, 1 }
  0x16   : > { %v1615_v22 = vsel %vm1606_vm0, %v1612_v13, %v1614_v14  ;;  %v1617_v23 = vsel %vm1606_vm0, %v1614_v14, %v1616_v15  ;;  %v1613_v24 = vsel %vm1606_vm0, %v1610_v16, %v1612_v13  ;;  %v10565_v25 = vunpack.c.h.bf16 %v8615_v12  ;;  %v8621_v58 = vld [vmem:[%s10530_s18 + $0x60] sm:$0xff]   ;;  %v8622_v59 = vld [vmem:[%s10530_s18 + $0x68] sm:$0xff]   ;;  %v8623_v60 = vld [vmem:[%s10530_s18 + $0x70] sm:$0xff]  }
  0x17   : > { %v8998_v26 = vpack.i.bf16 %v1617_v23, %v1615_v22  ;;  %v1609_v27 = vsel %vm1606_vm0, %v1607_v17, %v1608_v18  ;;  %v1619_v28 = vsel %vm1606_vm0, %v1616_v15, %v1618_v19  ;;  %v1621_v29 = vsel %vm1606_vm0, %v1618_v19, %v1620_v20 }
  0x18   : > { %v8988_v32 = vpack.i.bf16 %v1609_v27, %v1607_v17  ;;  %v9003_v33 = vpack.i.bf16 %v1621_v29, %v1619_v28  ;;  %v1611_v34 = vsel %vm1606_vm0, %v1608_v18, %v1610_v16  ;;  %v10573_v35 = vunpack.c.l.bf16 %v8616_v21 }
  0x19   : > { %8999 = vrot.lane.b32.xlu1 %v8998_v26, %s10454_s19  ;;  %v8993_v37 = vpack.i.bf16 %v1613_v24, %v1611_v34  ;;  %v10577_v38 = vunpack.c.h.bf16 %v8616_v21  ;;  %v1624_v39 = vrot.slane %v10565_v25, 1  ;;  %v10580_v40 = vunpack.c.l.bf16 %v8615_v12  ;;  %v8624_v21 = vld [vmem:[%s10530_s18 + $0x78] sm:$0xff]  }
  0x1a   : > { %8989 = vrot.lane.b32.xlu0 %v8988_v32, %s10454_s19  ;;  %v1626_v41 = vrot.slane %v10573_v35, 1  ;;  %v10584_v42 = vunpack.c.h.bf16 %v8617_v30  ;;  %v10586_v43 = vunpack.c.l.bf16 %v8618_v31  ;;  %v10588_v44 = vunpack.c.h.bf16 %v8618_v31  ;;  %v8625_v31 = vld [vmem:[%s10530_s18 + $0x80] sm:$0xff]   ;;  %v8626_v32 = vld [vmem:[%s10530_s18 + $0x88] sm:$0xff]  }
  0x1b   : > { %v1628_v45 = vrot.slane %v10577_v38, 1  ;;  %v1622_v46 = vrot.slane %v10580_v40, 1  ;;  %v10592_v47 = vunpack.c.l.bf16 %v8617_v30  ;;  %v10594_v48 = vunpack.c.h.bf16 %v8619_v36 }
  0x1c   : > { %v1627_v49 = vsel %vm1606_vm0, %v1624_v39, %v1626_v41  ;;  %v1632_v50 = vrot.slane %v10584_v42, 1  ;;  %v1634_v51 = vrot.slane %v10586_v43, 1  ;;  %v1636_v52 = vrot.slane %v10588_v44, 1 }
  0x1d   : > { %9004 = vrot.lane.b32.xlu1 %v9003_v33, %s10454_s19  ;;  %v1629_v54 = vsel %vm1606_vm0, %v1626_v41, %v1628_v45  ;;  %v1623_v55 = vsel %vm1606_vm0, %v1620_v20, %v1622_v46  ;;  %v1625_v56 = vsel %vm1606_vm0, %v1622_v46, %v1624_v39  ;;  %v1630_v57 = vrot.slane %v10592_v47, 1  ;;  %v8627_v39 = vld [vmem:[%s10530_s18 + $0x90] sm:$0xff]  }
  0x1e   : > { %8994 = vrot.lane.b32.xlu0 %v8993_v37, %s10454_s19  ;;  %v9013_v61 = vpack.i.bf16 %v1629_v54, %v1627_v49  ;;  %v9008_v62 = vpack.i.bf16 %v1625_v56, %v1623_v55  ;;  %v1635_v63 = vsel %vm1606_vm0, %v1632_v50, %v1634_v51  ;;  %v1637_v0 = vsel %vm1606_vm0, %v1634_v51, %v1636_v52 }
  0x1f   : > { %v9023_v1 = vpack.i.bf16 %v1637_v0, %v1635_v63  ;;  %v1631_v2 = vsel %vm1606_vm0, %v1628_v45, %v1630_v57  ;;  %v1633_v7 = vsel %vm1606_vm0, %v1630_v57, %v1632_v50  ;;  %v10614_v12 = vunpack.c.l.bf16 %v8620_v53  ;;  %v8628_v63 = vld [vmem:[%s10530_s18 + $0x98] sm:$0xff]  }
  0x20   : > { %v9018_v13 = vpack.i.bf16 %v1633_v7, %v1631_v2  ;;  %v10616_v14 = vunpack.c.h.bf16 %v8620_v53  ;;  %v1640_v15 = vrot.slane %v10594_v48, 1  ;;  %v10619_v16 = vunpack.c.l.bf16 %v8619_v36 }
  0x21   : > { %9014 = vrot.lane.b32.xlu1 %v9013_v61, %s10454_s19  ;;  %v1642_v17 = vrot.slane %v10614_v12, 1  ;;  %v10623_v18 = vunpack.c.h.bf16 %v8621_v58  ;;  %v10625_v19 = vunpack.c.l.bf16 %v8622_v59  ;;  %v10627_v20 = vunpack.c.h.bf16 %v8622_v59 }
  0x22   : > { %9009 = vrot.lane.b32.xlu0 %v9008_v62, %s10454_s19  ;;  %v1644_v22 = vrot.slane %v10616_v14, 1  ;;  %v1638_v23 = vrot.slane %v10619_v16, 1  ;;  %v10633_v24 = vunpack.c.l.bf16 %v8621_v58  ;;  %v10635_v26 = vunpack.c.h.bf16 %v8623_v60 }
  0x23   : > { %v1643_v27 = vsel %vm1606_vm0, %v1640_v15, %v1642_v17  ;;  %v1648_v28 = vrot.slane %v10623_v18, 1  ;;  %v1650_v29 = vrot.slane %v10625_v19, 1  ;;  %v1652_v30 = vrot.slane %v10627_v20, 1 }
  0x24   : > { %v1645_v33 = vsel %vm1606_vm0, %v1642_v17, %v1644_v22  ;;  %v1639_v34 = vsel %vm1606_vm0, %v1636_v52, %v1638_v23  ;;  %v1641_v36 = vsel %vm1606_vm0, %v1638_v23, %v1640_v15  ;;  %v1646_v37 = vrot.slane %v10633_v24, 1 }
  0x25   : > { %9024 = vrot.lane.b32.xlu1 %v9023_v1, %s10454_s19  ;;  %v9033_v41 = vpack.i.bf16 %v1645_v33, %v1643_v27  ;;  %v9028_v45 = vpack.i.bf16 %v1641_v36, %v1639_v34  ;;  %v1651_v46 = vsel %vm1606_vm0, %v1648_v28, %v1650_v29  ;;  %v1653_v49 = vsel %vm1606_vm0, %v1650_v29, %v1652_v30 }
  0x26   : > { %9019 = vrot.lane.b32.xlu0 %v9018_v13, %s10454_s19  ;;  %v9043_v50 = vpack.i.bf16 %v1653_v49, %v1651_v46  ;;  %v1647_v51 = vsel %vm1606_vm0, %v1644_v22, %v1646_v37  ;;  %v1649_v52 = vsel %vm1606_vm0, %v1646_v37, %v1648_v28  ;;  %v10654_v53 = vunpack.c.l.bf16 %v8624_v21  ;;  %v8630_v22 = vld [vmem:[%s10530_s18 + $0xa8] sm:$0xff]  }
  0x27   : > { %v9038_v54 = vpack.i.bf16 %v1649_v52, %v1647_v51  ;;  %v10656_v55 = vunpack.c.h.bf16 %v8624_v21  ;;  %v1656_v56 = vrot.slane %v10635_v26, 1  ;;  %v10659_v57 = vunpack.c.l.bf16 %v8623_v60  ;;  %v8629_v21 = vld [vmem:[%s10530_s18 + $0xa0] sm:$0xff]  }
  0x28   : > { %v1658_v58 = vrot.slane %v10654_v53, 1  ;;  %v10662_v59 = vunpack.c.h.bf16 %v8625_v31  ;;  %v10664_v61 = vunpack.c.l.bf16 %v8626_v32  ;;  %v10666_v62 = vunpack.c.h.bf16 %v8626_v32 }
  0x29   : > { %9034 = vrot.lane.b32.xlu1 %v9033_v41, %s10454_s19  ;;  %v1660_v0 = vrot.slane %v10656_v55, 1  ;;  %v1654_v1 = vrot.slane %v10659_v57, 1  ;;  %v10672_v60 = vunpack.c.l.bf16 %v8625_v31  ;;  %v10674_v2 = vunpack.c.h.bf16 %v8627_v39  ;;  %v8631_v31 = vld [vmem:[%s10530_s18 + $0xb0] sm:$0xff]  }
  0x2a   : > { %15099 = vst [vmem:[#allocation7_spill] sm:$0xff] %v10662_v59  ;;  %15100 = vst [vmem:[#allocation8_spill] sm:$0xff] %v10664_v61  ;;  %9029 = vrot.lane.b32.xlu0 %v9028_v45, %s10454_s19  ;;  %v1659_v7 = vsel %vm1606_vm0, %v1656_v56, %v1658_v58  ;;  %v1664_v13 = vrot.slane %v10662_v59, 1  ;;  %v1666_v15 = vrot.slane %v10664_v61, 1  ;;  %v1668_v17 = vrot.slane %v10666_v62, 1 }
  0x2b   : > { %15101 = vst [vmem:[#allocation9_spill] sm:$0xff] %v10666_v62  ;;  %15102 = vst [vmem:[#allocation10_spill] sm:$0xff] %v10674_v2  ;;  %v1661_v23 = vsel %vm1606_vm0, %v1658_v58, %v1660_v0  ;;  %v1655_v27 = vsel %vm1606_vm0, %v1652_v30, %v1654_v1  ;;  %v1657_v28 = vsel %vm1606_vm0, %v1654_v1, %v1656_v56  ;;  %v1662_v29 = vrot.slane %v10672_v60, 1  ;;  %v8632_v1 = vld [vmem:[%s10530_s18 + $0xb8] sm:$0xff]  }
  0x2c   : > { %v9053_v32 = vpack.i.bf16 %v1661_v23, %v1659_v7  ;;  %v9048_v33 = vpack.i.bf16 %v1657_v28, %v1655_v27  ;;  %v1667_v34 = vsel %vm1606_vm0, %v1664_v13, %v1666_v15  ;;  %v1669_v36 = vsel %vm1606_vm0, %v1666_v15, %v1668_v17  ;;  %v8633_v27 = vld [vmem:[%s10530_s18 + $0xc0] sm:$0xff]   ;;  %v8634_v28 = vld [vmem:[%s10530_s18 + $0xc8] sm:$0xff]  }
  0x2d   : > { %9044 = vrot.lane.b32.xlu1 %v9043_v50, %s10454_s19  ;;  %v9063_v37 = vpack.i.bf16 %v1669_v36, %v1667_v34  ;;  %v1663_v41 = vsel %vm1606_vm0, %v1660_v0, %v1662_v29  ;;  %v1665_v45 = vsel %vm1606_vm0, %v1662_v29, %v1664_v13  ;;  %v10693_v30 = vunpack.c.l.bf16 %v8628_v63  ;;  %v8635_v36 = vld [vmem:[%s10530_s18 + $0xd0] sm:$0xff]  }
  0x2e   : > { %9039 = vrot.lane.b32.xlu0 %v9038_v54, %s10454_s19  ;;  %v9058_v46 = vpack.i.bf16 %v1665_v45, %v1663_v41  ;;  %v10696_v49 = vunpack.c.h.bf16 %v8628_v63  ;;  %v1672_v51 = vrot.slane %v10674_v2, 1  ;;  %v10699_v52 = vunpack.c.l.bf16 %v8627_v39 }
  0x2f   : > { %15103 = vst [vmem:[#allocation11_spill] sm:$0xff] %v10693_v30  ;;  %v1674_v50 = vrot.slane %v10693_v30, 1  ;;  %v10702_v56 = vunpack.c.h.bf16 %v8629_v21  ;;  %v10704_v58 = vunpack.c.l.bf16 %v8630_v22  ;;  %v10706_v0 = vunpack.c.h.bf16 %v8630_v22 }
  0x30   : > { %15104 = vst [vmem:[#allocation12_spill] sm:$0xff] %v10696_v49  ;;  %15105 = vst [vmem:[#allocation13_spill] sm:$0xff] %v10699_v52  ;;  %v1676_v54 = vrot.slane %v10696_v49, 1  ;;  %v1670_v63 = vrot.slane %v10699_v52, 1  ;;  %v10711_v7 = vunpack.c.l.bf16 %v8629_v21  ;;  %v10713_v13 = vunpack.c.h.bf16 %v8631_v31 }
  0x31   : > { %15106 = vst [vmem:[#allocation14_spill] sm:$0xff] %v10702_v56  ;;  %15107 = vst [vmem:[#allocation15_spill] sm:$0xff] %v10704_v58  ;;  %9054 = vrot.lane.b32.xlu1 %v9053_v32, %s10454_s19  ;;  %v1675_v39 = vsel %vm1606_vm0, %v1672_v51, %v1674_v50  ;;  %v1680_v15 = vrot.slane %v10702_v56, 1  ;;  %v1682_v23 = vrot.slane %v10704_v58, 1  ;;  %v1684_v22 = vrot.slane %v10706_v0, 1 }
  0x32   : > { %15108 = vst [vmem:[#allocation16_spill] sm:$0xff] %v10706_v0  ;;  %15109 = vst [vmem:[#allocation17_spill] sm:$0xff] %v10711_v7  ;;  %9049 = vrot.lane.b32.xlu0 %v9048_v33, %s10454_s19  ;;  %v1677_v29 = vsel %vm1606_vm0, %v1674_v50, %v1676_v54  ;;  %v1671_v21 = vsel %vm1606_vm0, %v1668_v17, %v1670_v63  ;;  %v1673_v34 = vsel %vm1606_vm0, %v1670_v63, %v1672_v51 }
  0x33   : > { %15110 = vst [vmem:[#allocation18_spill] sm:$0xff] %v10713_v13  ;;  %v1678_v32 = vrot.slane %v10711_v7, 1  ;;  %v9073_v41 = vpack.i.bf16 %v1677_v29, %v1675_v39  ;;  %v1683_v45 = vsel %vm1606_vm0, %v1680_v15, %v1682_v23  ;;  %v1685_v58 = vsel %vm1606_vm0, %v1682_v23, %v1684_v22 }
  0x34   : > { %v9068_v0 = vpack.i.bf16 %v1673_v34, %v1671_v21  ;;  %v9083_v30 = vpack.i.bf16 %v1685_v58, %v1683_v45  ;;  %v10731_v33 = vunpack.c.l.bf16 %v8632_v1  ;;  %v10735_v51 = vunpack.c.h.bf16 %v8632_v1 }
  0x35   : > { %v1679_v56 = vsel %vm1606_vm0, %v1676_v54, %v1678_v32  ;;  %9064 = vrot.lane.b32.xlu1 %v9063_v37, %s10454_s19  ;;  %v1681_v17 = vsel %vm1606_vm0, %v1678_v32, %v1680_v15  ;;  %v1688_v50 = vrot.slane %v10713_v13, 1  ;;  %v10738_v63 = vunpack.c.l.bf16 %v8631_v31  ;;  %v8636_v37 = vld [vmem:[%s10530_s18 + $0xd8] sm:$0xff]   ;;  %v8638_v13 = vld [vmem:[%s10530_s18 + $0xe8] sm:$0xff]  }
  0x36   : > { %15111 = vst [vmem:[#allocation19_spill] sm:$0xff] %v10731_v33  ;;  %15112 = vst [vmem:[#allocation20_spill] sm:$0xff] %v10735_v51  ;;  %9059 = vrot.lane.b32.xlu0 %v9058_v46, %s10454_s19  ;;  %v1690_v39 = vrot.slane %v10731_v33, 1  ;;  %v10742_v58 = vunpack.c.h.bf16 %v8633_v27  ;;  %v10744_v54 = vunpack.c.l.bf16 %v8634_v28  ;;  %v10746_v23 = vunpack.c.h.bf16 %v8634_v28  ;;  %v8637_v28 = vld [vmem:[%s10530_s18 + $0xe0] sm:$0xff]  }
  0x37   : > { %15113 = vst [vmem:[#allocation21_spill] sm:$0xff] %v10738_v63  ;;  %v1692_v1 = vrot.slane %v10735_v51, 1  ;;  %v1686_v15 = vrot.slane %v10738_v63, 1  ;;  %v10751_v29 = vunpack.c.l.bf16 %v8633_v27  ;;  %v10753_v31 = vunpack.c.h.bf16 %v8635_v36 }
  0x38   : > { %15114 = vst [vmem:[#allocation22_spill] sm:$0xff] %v10742_v58  ;;  %15115 = vst [vmem:[#allocation23_spill] sm:$0xff] %v10744_v54  ;;  %v1691_v46 = vsel %vm1606_vm0, %v1688_v50, %v1690_v39  ;;  %v1696_v21 = vrot.slane %v10742_v58, 1  ;;  %v1698_v34 = vrot.slane %v10744_v54, 1  ;;  %v1700_v32 = vrot.slane %v10746_v23, 1 }
  0x39   : > { %15116 = vst [vmem:[#allocation24_spill] sm:$0xff] %v10746_v23  ;;  %15117 = vst [vmem:[#allocation25_spill] sm:$0xff] %v10751_v29  ;;  %9074 = vrot.lane.b32.xlu1 %v9073_v41, %s10454_s19  ;;  %v1693_v45 = vsel %vm1606_vm0, %v1690_v39, %v1692_v1  ;;  %v1687_v33 = vsel %vm1606_vm0, %v1684_v22, %v1686_v15  ;;  %v1689_v27 = vsel %vm1606_vm0, %v1686_v15, %v1688_v50  ;;  %v8639_v15 = vld [vmem:[%s10530_s18 + $0xf0] sm:$0xff]  }
  0x3a   : > { %15118 = vst [vmem:[#allocation26_spill] sm:$0xff] %v10753_v31  ;;  %v1694_v51 = vrot.slane %v10751_v29, 1  ;;  %9069 = vrot.lane.b32.xlu0 %v9068_v0, %s10454_s19  ;;  %v9078_v58 = vpack.i.bf16 %v1681_v17, %v1679_v56  ;;  %v9093_v63 = vpack.i.bf16 %v1693_v45, %v1691_v46  ;;  %v9088_v54 = vpack.i.bf16 %v1689_v27, %v1687_v33  ;;  %v8640_v27 = vld [vmem:[%s10530_s18 + $0xf8] sm:$0xff]  }
  0x3b   : > { %v1699_v23 = vsel %vm1606_vm0, %v1696_v21, %v1698_v34  ;;  %v1701_v7 = vsel %vm1606_vm0, %v1698_v34, %v1700_v32  ;;  %v10769_v41 = vunpack.c.l.bf16 %v8636_v37  ;;  %v10772_v49 = vunpack.c.h.bf16 %v8636_v37 }
  0x3c   : > { %v1695_v39 = vsel %vm1606_vm0, %v1692_v1, %v1694_v51  ;;  %v1704_v22 = vrot.slane %v10753_v31, 1  ;;  %v10775_v50 = vunpack.c.l.bf16 %v8635_v36  ;;  %v10780_v0 = vunpack.c.h.bf16 %v8637_v28 }
  0x3d   : > { %15119 = vst [vmem:[#allocation27_spill] sm:$0xff] %v10769_v41  ;;  %15120 = vst [vmem:[#allocation28_spill] sm:$0xff] %v10772_v49  ;;  %9084 = vrot.lane.b32.xlu1 %v9083_v30, %s10454_s19  ;;  %v1706_v56 = vrot.slane %v10769_v41, 1  ;;  %v10782_v33 = vunpack.c.l.bf16 %v8638_v13  ;;  %v10784_v17 = vunpack.c.h.bf16 %v8638_v13  ;;  %v1697_v37 = vsel %vm1606_vm0, %v1694_v51, %v1696_v21 }
  0x3e   : > { %15121 = vst [vmem:[#allocation29_spill] sm:$0xff] %v10775_v50  ;;  %15122 = vst [vmem:[#allocation30_spill] sm:$0xff] %v10780_v0  ;;  %9079 = vrot.lane.b32.xlu0 %v9078_v58, %s10454_s19  ;;  %v1708_v36 = vrot.slane %v10772_v49, 1  ;;  %v1702_v1 = vrot.slane %v10775_v50, 1  ;;  %v10790_v46 = vunpack.c.l.bf16 %v8637_v28  ;;  %v1712_v30 = vrot.slane %v10780_v0, 1  ;;  %v8641_v49 = vld [vmem:[%s10530_s18 + $0x100] sm:$0xff]  }
  0x3f   : > { %15123 = vst [vmem:[#allocation31_spill] sm:$0xff] %v10782_v33  ;;  %15124 = vst [vmem:[#allocation32_spill] sm:$0xff] %v10784_v17  ;;  %v1714_v34 = vrot.slane %v10782_v33, 1  ;;  %v1716_v45 = vrot.slane %v10784_v17, 1  ;;  %v10795_v13 = vunpack.c.h.bf16 %v8639_v15  ;;  %v9103_v58 = vpack.i.bf16 %v1701_v7, %v1699_v23  ;;  %v8642_v0 = vld [vmem:[%s10530_s18 + $0x108] sm:$0xff]  }
  0x40   : > { %15125 = vst [vmem:[#allocation33_spill] sm:$0xff] %v10790_v46  ;;  %v9098_v51 = vpack.i.bf16 %v1697_v37, %v1695_v39  ;;  %v1707_v21 = vsel %vm1606_vm0, %v1704_v22, %v1706_v56  ;;  %v1709_v41 = vsel %vm1606_vm0, %v1706_v56, %v1708_v36  ;;  %v1703_v28 = vsel %vm1606_vm0, %v1700_v32, %v1702_v1 }
  0x41   : > { %15126 = vst [vmem:[#allocation34_spill] sm:$0xff] %v10795_v13  ;;  %9094 = vrot.lane.b32.xlu1 %v9093_v63, %s10454_s19  ;;  %v1705_v33 = vsel %vm1606_vm0, %v1702_v1, %v1704_v22  ;;  %v1715_v17 = vsel %vm1606_vm0, %v1712_v30, %v1714_v34  ;;  %v1710_v7 = vrot.slane %v10790_v46, 1  ;;  %v10808_v23 = vunpack.c.l.bf16 %v8640_v27  ;;  %v8643_v46 = vld [vmem:[%s10530_s18 + $0x110] sm:$0xff]  }
  0x42   : > { %9089 = vrot.lane.b32.xlu0 %v9088_v54, %s10454_s19  ;;  %v1717_v63 = vsel %vm1606_vm0, %v1714_v34, %v1716_v45  ;;  %v10811_v39 = vunpack.c.h.bf16 %v8640_v27  ;;  %v1720_v32 = vrot.slane %v10795_v13, 1  ;;  %v10814_v56 = vunpack.c.l.bf16 %v8639_v15  ;;  %v8644_v13 = vld [vmem:[%s10530_s18 + $0x118] sm:$0xff]  }
  0x43   : > { %15127 = vst [vmem:[#allocation35_spill] sm:$0xff] %v10808_v23  ;;  %v1722_v37 = vrot.slane %v10808_v23, 1  ;;  %v10817_v54 = vunpack.c.h.bf16 %v8641_v49  ;;  %v10819_v22 = vunpack.c.l.bf16 %v8642_v0  ;;  %v10821_v1 = vunpack.c.h.bf16 %v8642_v0 }
  0x44   : > { %15128 = vst [vmem:[#allocation36_spill] sm:$0xff] %v10811_v39  ;;  %15129 = vst [vmem:[#allocation37_spill] sm:$0xff] %v10814_v56  ;;  %v9113_v31 = vpack.i.bf16 %v1709_v41, %v1707_v21  ;;  %v1724_v34 = vrot.slane %v10811_v39, 1  ;;  %v1718_v27 = vrot.slane %v10814_v56, 1  ;;  %v10827_v50 = vunpack.c.l.bf16 %v8641_v49 }
  0x45   : > { %15130 = vst [vmem:[#allocation38_spill] sm:$0xff] %v10817_v54  ;;  %15131 = vst [vmem:[#allocation39_spill] sm:$0xff] %v10819_v22  ;;  %9104 = vrot.lane.b32.xlu1 %v9103_v58, %s10454_s19  ;;  %v9108_v15 = vpack.i.bf16 %v1705_v33, %v1703_v28  ;;  %v9123_v23 = vpack.i.bf16 %v1717_v63, %v1715_v17  ;;  %v1711_v29 = vsel %vm1606_vm0, %v1708_v36, %v1710_v7 }
  0x46   : > { %15132 = vst [vmem:[#allocation40_spill] sm:$0xff] %v10821_v1  ;;  %15133 = vst [vmem:[#allocation41_spill] sm:$0xff] %v10827_v50  ;;  %9099 = vrot.lane.b32.xlu0 %v9098_v51, %s10454_s19  ;;  %v1713_v0 = vsel %vm1606_vm0, %v1710_v7, %v1712_v30  ;;  %v1723_v61 = vsel %vm1606_vm0, %v1720_v32, %v1722_v37  ;;  %v10834_v41 = vunpack.c.h.bf16 %v8643_v46  ;;  %v1728_v49 = vrot.slane %v10817_v54, 1 }
  0x47   : > { %v1725_v58 = vsel %vm1606_vm0, %v1722_v37, %v1724_v34  ;;  %v1730_v21 = vrot.slane %v10819_v22, 1  ;;  %v1732_v33 = vrot.slane %v10821_v1, 1  ;;  %v1719_v17 = vsel %vm1606_vm0, %v1716_v45, %v1718_v27  ;;  %v8645_v37 = vld [vmem:[%s10530_s18 + $0x120] sm:$0xff]   ;;  %v8646_v22 = vld [vmem:[%s10530_s18 + $0x128] sm:$0xff]  }
  0x48   : > { %15134 = vst [vmem:[#allocation42_spill] sm:$0xff] %v10834_v41  ;;  %v1721_v36 = vsel %vm1606_vm0, %v1718_v27, %v1720_v32  ;;  %v1726_v30 = vrot.slane %v10827_v50, 1  ;;  %v10844_v51 = vunpack.c.l.bf16 %v8644_v13  ;;  %v9118_v28 = vpack.i.bf16 %v1713_v0, %v1711_v29 }
  0x49   : > { %9114 = vrot.lane.b32.xlu1 %v9113_v31, %s10454_s19  ;;  %v10847_v7 = vunpack.c.h.bf16 %v8644_v13  ;;  %v10849_v63 = vunpack.c.l.bf16 %v8643_v46  ;;  %v9133_v1 = vpack.i.bf16 %v1725_v58, %v1723_v61  ;;  %v9128_v54 = vpack.i.bf16 %v1721_v36, %v1719_v17 }
  0x4a   : > { %15135 = vst [vmem:[#allocation43_spill] sm:$0xff] %v10844_v51  ;;  %9109 = vrot.lane.b32.xlu0 %v9108_v15, %s10454_s19  ;;  %v1731_v31 = vsel %vm1606_vm0, %v1728_v49, %v1730_v21  ;;  %v1733_v45 = vsel %vm1606_vm0, %v1730_v21, %v1732_v33  ;;  %v1727_v32 = vsel %vm1606_vm0, %v1724_v34, %v1726_v30  ;;  %v1736_v29 = vrot.slane %v10834_v41, 1 }
  0x4b   : > { %15136 = vst [vmem:[#allocation44_spill] sm:$0xff] %v10847_v7  ;;  %15137 = vst [vmem:[#allocation45_spill] sm:$0xff] %v10849_v63  ;;  %v1729_v27 = vsel %vm1606_vm0, %v1726_v30, %v1728_v49  ;;  %v1738_v13 = vrot.slane %v10844_v51, 1  ;;  %v1740_v46 = vrot.slane %v10847_v7, 1  ;;  %v10862_v61 = vunpack.c.h.bf16 %v8645_v37 }
  0x4c   : > { %v10864_v15 = vunpack.c.l.bf16 %v8646_v22  ;;  %v10866_v0 = vunpack.c.h.bf16 %v8646_v22  ;;  %v10869_v58 = vunpack.c.l.bf16 %v8645_v37  ;;  %v9143_v34 = vpack.i.bf16 %v1733_v45, %v1731_v31 }
  0x4d   : > { %9124 = vrot.lane.b32.xlu1 %v9123_v23, %s10454_s19  ;;  %15138 = vst [vmem:[#allocation46_spill] sm:$0xff] %v10862_v61  ;;  %v1734_v23 = vrot.slane %v10849_v63, 1  ;;  %v9138_v49 = vpack.i.bf16 %v1729_v27, %v1727_v32  ;;  %v1739_v21 = vsel %vm1606_vm0, %v1736_v29, %v1738_v13  ;;  %v1741_v17 = vsel %vm1606_vm0, %v1738_v13, %v1740_v46 }
  0x4e   : > { %9119 = vrot.lane.b32.xlu0 %v9118_v28, %s10454_s19  ;;  %15139 = vst [vmem:[#allocation47_spill] sm:$0xff] %v10864_v15  ;;  %15140 = vst [vmem:[#allocation48_spill] sm:$0xff] %v10866_v0  ;;  %v1744_v36 = vrot.slane %v10862_v61, 1  ;;  %v1746_v30 = vrot.slane %v10864_v15, 1  ;;  %v1748_v22 = vrot.slane %v10866_v0, 1  ;;  %v9153_v31 = vpack.i.bf16 %v1741_v17, %v1739_v21 }
  0x4f   : > { %15141 = vst [vmem:[#allocation49_spill] sm:$0xff] %v10869_v58  ;;  %v1735_v28 = vsel %vm1606_vm0, %v1732_v33, %v1734_v23  ;;  %v1737_v37 = vsel %vm1606_vm0, %v1734_v23, %v1736_v29  ;;  %v1971_v45 = vrot.slane %v10544_v8, 2  ;;  %v1972_v13 = vrot.slane %v10546_v9, 2 }
  0x50   : > { %v1747_v32 = vsel %vm1606_vm0, %v1744_v36, %v1746_v30  ;;  %v1749_v27 = vsel %vm1606_vm0, %v1746_v30, %v1748_v22  ;;  %v1978_v21 = vrot.slane %v10537_v4, 2 }
  0x51   : > { %9134 = vrot.lane.b32.xlu1 %v9133_v1, %s10454_s19  ;;  %v1742_v1 = vrot.slane %v10869_v58, 1  ;;  %v9163_v23 = vpack.i.bf16 %v1749_v27, %v1747_v32  ;;  %v1973_v30 = vsel %vm1970_vm1, %v1971_v45, %v1972_v13  ;;  %v1988_v32 = vrot.slane %v10565_v25, 2 }
  0x52   : > { %9129 = vrot.lane.b32.xlu0 %v9128_v54, %s10454_s19  ;;  %v9148_v54 = vpack.i.bf16 %v1737_v37, %v1735_v28  ;;  %v1974_v28 = vrot.slane %v10541_v6, 2  ;;  %v9168_v37 = vpack.i.bf16 %v1973_v30, %v1971_v45  ;;  %v1994_v30 = vrot.slane %v10592_v47, 2 }
  0x53   : > { %v1743_v33 = vsel %vm1606_vm0, %v1740_v46, %v1742_v1  ;;  %v1745_v29 = vsel %vm1606_vm0, %v1742_v1, %v1744_v36  ;;  %v1984_v46 = vrot.slane %v10550_v11, 2  ;;  %v1986_v36 = vrot.slane %v10580_v40, 2 }
  0x54   : > { %v9158_v17 = vpack.i.bf16 %v1745_v29, %v1743_v33  ;;  %v1982_v33 = vrot.slane %v10548_v10, 2 }
  0x55   : > { %9144 = vrot.lane.b32.xlu1 %v9143_v34, %s10454_s19  ;;  %v1976_v34 = vrot.slane %v10535_v3, 2  ;;  %v1987_v9 = vsel %vm1970_vm1, %v1984_v46, %v1986_v36 }
  0x56   : > { %9139 = vrot.lane.b32.xlu0 %v9138_v49, %s10454_s19  ;;  %v1980_v49 = vrot.slane %v10539_v5, 2 }
  0x57   : > { %v1979_v1 = vsel %vm1970_vm1, %v1976_v34, %v1978_v21  ;;  %v1977_v27 = vsel %vm1970_vm1, %v1974_v28, %v1976_v34  ;;  %v1985_v34 = vsel %vm1970_vm1, %v1982_v33, %v1984_v46 }
  0x59   : > { %9154 = vrot.lane.b32.xlu1 %v9153_v31, %s10454_s19  ;;  %v1981_v31 = vsel %vm1970_vm1, %v1978_v21, %v1980_v49  ;;  %v1992_v21 = vrot.slane %v10577_v38, 2 }
  0x5a   : > { %9149 = vrot.lane.b32.xlu0 %v9148_v54, %s10454_s19  ;;  %v1975_v54 = vsel %vm1970_vm1, %v1972_v13, %v1974_v28  ;;  %v9178_v29 = vpack.i.bf16 %v1981_v31, %v1979_v1  ;;  %v1983_v13 = vsel %vm1970_vm1, %v1980_v49, %v1982_v33  ;;  %v1990_v28 = vrot.slane %v10573_v35, 2 }
  0x5b   : > { %v9173_v45 = vpack.i.bf16 %v1977_v27, %v1975_v54  ;;  %v2000_v31 = vrot.slane %v10588_v44, 2  ;;  %v2002_v54 = vrot.slane %v10619_v16, 2  ;;  %v2004_v27 = vrot.slane %v10594_v48, 2 }
  0x5c   : > { %v1991_v49 = vsel %vm1970_vm1, %v1988_v32, %v1990_v28  ;;  %v1993_v46 = vsel %vm1970_vm1, %v1990_v28, %v1992_v21  ;;  %v2006_v28 = vrot.slane %v10614_v12, 2 }
  0x5d   : > { %9164 = vrot.lane.b32.xlu1 %v9163_v23, %s10454_s19  ;;  %v1989_v23 = vsel %vm1970_vm1, %v1986_v36, %v1988_v32  ;;  %v1995_v36 = vsel %vm1970_vm1, %v1992_v21, %v1994_v30  ;;  %v2010_v32 = vrot.slane %v10633_v24, 2  ;;  %v2012_v21 = vrot.slane %v10623_v18, 2 }
  0x5e   : > { %9159 = vrot.lane.b32.xlu0 %v9158_v17, %s10454_s19  ;;  %v1996_v17 = vrot.slane %v10584_v42, 2  ;;  %v9188_v1 = vpack.i.bf16 %v1989_v23, %v1987_v9  ;;  %v1998_v9 = vrot.slane %v10586_v43, 2  ;;  %v2003_v23 = vsel %vm1970_vm1, %v2000_v31, %v2002_v54 }
  0x61   : > { %9169 = vrot.lane.b32.xlu1 %v9168_v37, %s10455_s20  ;;  %v9183_v37 = vpack.i.bf16 %v1985_v34, %v1983_v13  ;;  %v1999_v13 = vsel %vm1970_vm1, %v1996_v17, %v1998_v9  ;;  %v2001_v34 = vsel %vm1970_vm1, %v1998_v9, %v2000_v31  ;;  %v2007_v31 = vsel %vm1970_vm1, %v2004_v27, %v2006_v28 }
  0x62   : > { %1894 = vrot.lane.b32.xlu0 %v1748_v22, %s10454_s19  ;;  %v1997_v22 = vsel %vm1970_vm1, %v1994_v30, %v1996_v17  ;;  %v2008_v30 = vrot.slane %v10616_v14, 2  ;;  %v2013_v17 = vsel %vm1970_vm1, %v2010_v32, %v2012_v21  ;;  %v2014_v9 = vrot.slane %v10625_v19, 2 }
  0x63   : > { %v9198_v33 = vpack.i.bf16 %v1997_v22, %v1995_v36  ;;  %v2016_v36 = vrot.slane %v10627_v20, 2  ;;  %v9203_v22 = vpack.i.bf16 %v2001_v34, %v1999_v13  ;;  %v2028_v34 = vrot.slane %v10662_v59, 2  ;;  %v15145_v59 = vld [vmem:[#allocation14_spill] sm:$0xff] }
  0x65   : > { %9179 = vrot.lane.b32.xlu1 %v9178_v29, %s10455_s20  ;;  %v9193_v29 = vpack.i.bf16 %v1993_v46, %v1991_v49  ;;  %v2011_v49 = vsel %vm1970_vm1, %v2008_v30, %v2010_v32  ;;  %v2009_v46 = vsel %vm1970_vm1, %v2006_v28, %v2008_v30  ;;  %v2015_v30 = vsel %vm1970_vm1, %v2012_v21, %v2014_v9 }
  0x66   : > { %9174 = vrot.lane.b32.xlu0 %v9173_v45, %s10455_s20  ;;  %v2005_v45 = vsel %vm1970_vm1, %v2002_v54, %v2004_v27  ;;  %v2020_v54 = vrot.slane %v10635_v26, 2  ;;  %v9213_v27 = vpack.i.bf16 %v2009_v46, %v2007_v31  ;;  %v2017_v32 = vsel %vm1970_vm1, %v2014_v9, %v2016_v36 }
  0x67   : > { %v2022_v28 = vrot.slane %v10654_v53, 2  ;;  %v9223_v21 = vpack.i.bf16 %v2017_v32, %v2015_v30 }
  0x69   : > { %9189 = vrot.lane.b32.xlu1 %v9188_v1, %s10455_s20  ;;  %v9208_v1 = vpack.i.bf16 %v2005_v45, %v2003_v23  ;;  %v2026_v23 = vrot.slane %v10672_v60, 2  ;;  %v9218_v45 = vpack.i.bf16 %v2013_v17, %v2011_v49  ;;  %v2034_v49 = vrot.slane %v10699_v52, 2  ;;  %v15142_v17 = vld [vmem:[#allocation8_spill] sm:$0xff] }
  0x6a   : > { %9184 = vrot.lane.b32.xlu0 %v9183_v37, %s10455_s20  ;;  %v2018_v37 = vrot.slane %v10659_v57, 2  ;;  %v2030_v31 = vrot.slane %v15142_v17, 2 }
  0x6c   : > { %v2021_v13 = vsel %vm1970_vm1, %v2018_v37, %v2020_v54 }
  0x6d   : > { %9199 = vrot.lane.b32.xlu1 %v9198_v33, %s10455_s20  ;;  %v2024_v33 = vrot.slane %v10656_v55, 2 }
  0x6e   : > { %9194 = vrot.lane.b32.xlu0 %v9193_v29, %s10455_s20  ;;  %v2019_v29 = vsel %vm1970_vm1, %v2016_v36, %v2018_v37  ;;  %v2029_v37 = vsel %vm1970_vm1, %v2026_v23, %v2028_v34  ;;  %v2023_v36 = vsel %vm1970_vm1, %v2020_v54, %v2022_v28 }
  0x6f   : > { %v9228_v6 = vpack.i.bf16 %v2021_v13, %v2019_v29  ;;  %v2027_v8 = vsel %vm1970_vm1, %v2024_v33, %v2026_v23  ;;  %v2025_v46 = vsel %vm1970_vm1, %v2022_v28, %v2024_v33  ;;  %v15143_v29 = vld [vmem:[#allocation12_spill] sm:$0xff]  ;;  %v2044_v23 = vrot.slane %v15145_v59, 2 }
  0x70   : > { %v9238_v9 = vpack.i.bf16 %v2029_v37, %v2027_v8  ;;  %v2040_v13 = vrot.slane %v15143_v29, 2  ;;  %v9233_v54 = vpack.i.bf16 %v2025_v46, %v2023_v36  ;;  %v15146_v8 = vld [vmem:[#allocation11_spill] sm:$0xff]  ;;  %v15147_v59 = vld [vmem:[#allocation16_spill] sm:$0xff]  ;;  %v10456_v36 = vmov 0.0  }
  0x71   : > { %9209 = vrot.lane.b32.xlu1 %v9208_v1, %s10455_s20  ;;  %v2032_v1 = vrot.slane %v10666_v62, 2  ;;  %v15144_v62 = vld [vmem:[#allocation17_spill] sm:$0xff]  ;;  %v2038_v33 = vrot.slane %v15146_v8, 2  ;;  %v2048_v29 = vrot.slane %v15147_v59, 2  ;;  %4216 = vst.msk [vmem:[#allocation3 + $0x20] sm:$0xff] %vm2409_vm2, %v10456_v36  ;;  %4215 = vst.msk [vmem:[#allocation3 + $0x18] sm:$0xff] %vm2409_vm2, %v10456_v36 }
  0x72   : > { %9204 = vrot.lane.b32.xlu0 %v9203_v22, %s10455_s20  ;;  %v2036_v22 = vrot.slane %v10674_v2, 2  ;;  %4217 = vst.msk [vmem:[#allocation3 + $0x28] sm:$0xff] %vm2409_vm2, %v10456_v36  ;;  %4218 = vst.msk [vmem:[#allocation3 + $0x30] sm:$0xff] %vm2409_vm2, %v10456_v36  ;;  %v15153_v59 = vld [vmem:[#allocation22_spill] sm:$0xff] }
  0x73   : > { %v2035_v2 = vsel %vm1970_vm1, %v2032_v1, %v2034_v49  ;;  %v2033_v30 = vsel %vm1970_vm1, %v2030_v31, %v2032_v1  ;;  %v2041_v1 = vsel %vm1970_vm1, %v2038_v33, %v2040_v13  ;;  %4219 = vst.msk [vmem:[#allocation3 + $0x38] sm:$0xff] %vm2409_vm2, %v10456_v36  ;;  %4220 = vst.msk [vmem:[#allocation3 + $0x240] sm:$0xff] %vm2409_vm2, %v10456_v36 }
  0x74   : > { %v2037_v52 = vsel %vm1970_vm1, %v2034_v49, %v2036_v22  ;;  %v15148_v49 = vld [vmem:[#allocation21_spill] sm:$0xff]  ;;  %4221 = vst.msk [vmem:[#allocation3 + $0x248] sm:$0xff] %vm2409_vm2, %v10456_v36  ;;  %4222 = vst.msk [vmem:[#allocation3 + $0x250] sm:$0xff] %vm2409_vm2, %v10456_v36 }
  0x75   : > { %9219 = vrot.lane.b32.xlu1 %v9218_v45, %s10455_s20  ;;  %v2042_v45 = vrot.slane %v15144_v62, 2  ;;  %v9248_v32 = vpack.i.bf16 %v2037_v52, %v2035_v2  ;;  %v2050_v62 = vrot.slane %v15148_v49, 2  ;;  %v15150_v52 = vld [vmem:[#allocation15_spill] sm:$0xff]  ;;  %4223 = vst.msk [vmem:[#allocation3 + $0x258] sm:$0xff] %vm2409_vm2, %v10456_v36  ;;  %4224 = vst.msk [vmem:[#allocation3 + $0x260] sm:$0xff] %vm2409_vm2, %v10456_v36  ;;  %v15157_v49 = vld [vmem:[#allocation26_spill] sm:$0xff] }
  0x76   : > { %9214 = vrot.lane.b32.xlu0 %v9213_v27, %s10455_s20  ;;  %v2031_v27 = vsel %vm1970_vm1, %v2028_v34, %v2030_v31  ;;  %v2039_v34 = vsel %vm1970_vm1, %v2036_v22, %v2038_v33  ;;  %v15149_v31 = vld [vmem:[#allocation18_spill] sm:$0xff]  ;;  %4231 = vst.msk [vmem:[#allocation3 + $0x58] sm:$0xff] %vm2409_vm2, %v10456_v36  ;;  %4235 = vst.msk [vmem:[#allocation3 + $0x78] sm:$0xff] %vm2409_vm2, %v10456_v36 }
  0x77   : > { %v9243_v28 = vpack.i.bf16 %v2033_v30, %v2031_v27  ;;  %v2043_v37 = vsel %vm1970_vm1, %v2040_v13, %v2042_v45  ;;  %v2052_v2 = vrot.slane %v15149_v31, 2  ;;  %4239 = vst.msk [vmem:[#allocation3 + $0x98] sm:$0xff] %vm2409_vm2, %v10456_v36  ;;  %4243 = vst.msk [vmem:[#allocation3 + $0xb8] sm:$0xff] %vm2409_vm2, %v10456_v36  ;;  %v9253_v46 = vpack.i.bf16 %v2041_v1, %v2039_v34  ;;  %v15151_v13 = vld [vmem:[#allocation20_spill] sm:$0xff]  ;;  %v15152_v27 = vld [vmem:[#allocation25_spill] sm:$0xff] }
  0x78   : > { %4247 = vst.msk [vmem:[#allocation3 + $0xd8] sm:$0xff] %vm2409_vm2, %v10456_v36  ;;  %4251 = vst.msk [vmem:[#allocation3 + $0xf8] sm:$0xff] %vm2409_vm2, %v10456_v36  ;;  %v2058_v30 = vrot.slane %v15152_v27, 2  ;;  %v15156_v27 = vld [vmem:[#allocation29_spill] sm:$0xff] }
  0x79   : > { %9229 = vrot.lane.b32.xlu1 %v9228_v6, %s10455_s20  ;;  %v2045_v6 = vsel %vm1970_vm1, %v2042_v45, %v2044_v23  ;;  %4255 = vst.msk [vmem:[#allocation3 + $0x118] sm:$0xff] %vm2409_vm2, %v10456_v36  ;;  %4259 = vst.msk [vmem:[#allocation3 + $0x138] sm:$0xff] %vm2409_vm2, %v10456_v36  ;;  %v2056_v45 = vrot.slane %v15151_v13, 2  ;;  %v15155_v13 = vld [vmem:[#allocation24_spill] sm:$0xff] }
  0x7a   : > { %9224 = vrot.lane.b32.xlu0 %v9223_v21, %s10455_s20  ;;  %v2046_v21 = vrot.slane %v15150_v52, 2  ;;  %4263 = vst.msk [vmem:[#allocation3 + $0x158] sm:$0xff] %vm2409_vm2, %v10456_v36  ;;  %4267 = vst.msk [vmem:[#allocation3 + $0x178] sm:$0xff] %vm2409_vm2, %v10456_v36  ;;  %v9258_v22 = vpack.i.bf16 %v2045_v6, %v2043_v37  ;;  %v15154_v37 = vld [vmem:[#allocation19_spill] sm:$0xff] }
  0x7b   : > { %4271 = vst.msk [vmem:[#allocation3 + $0x198] sm:$0xff] %vm2409_vm2, %v10456_v36  ;;  %4275 = vst.msk [vmem:[#allocation3 + $0x1b8] sm:$0xff] %vm2409_vm2, %v10456_v36  ;;  %v2054_v6 = vrot.slane %v15154_v37, 2  ;;  %v2059_v1 = vsel %vm1970_vm1, %v2056_v45, %v2058_v30  ;;  %v15158_v37 = vld [vmem:[#allocation23_spill] sm:$0xff] }
  0x7c   : > { %4279 = vst.msk [vmem:[#allocation3 + $0x1d8] sm:$0xff] %vm2409_vm2, %v10456_v36  ;;  %4283 = vst.msk [vmem:[#allocation3 + $0x1f8] sm:$0xff] %vm2409_vm2, %v10456_v36  ;;  %v2047_v33 = vsel %vm1970_vm1, %v2044_v23, %v2046_v21  ;;  %v2049_v31 = vsel %vm1970_vm1, %v2046_v21, %v2048_v29  ;;  %v2066_v23 = vrot.slane %v15156_v27, 2 }
  0x7d   : > { %9239 = vrot.lane.b32.xlu1 %v9238_v9, %s10455_s20  ;;  %4287 = vst.msk [vmem:[#allocation3 + $0x218] sm:$0xff] %vm2409_vm2, %v10456_v36  ;;  %4291 = vst.msk [vmem:[#allocation3 + $0x238] sm:$0xff] %vm2409_vm2, %v10456_v36  ;;  %v2051_v9 = vsel %vm1970_vm1, %v2048_v29, %v2050_v62  ;;  %v2060_v36 = vrot.slane %v15153_v59, 2  ;;  %v9263_v34 = vpack.i.bf16 %v2049_v31, %v2047_v33  ;;  %v2068_v29 = vrot.slane %v15157_v49, 2 }
  0x7e   : > { %9234 = vrot.lane.b32.xlu0 %v9233_v54, %s10455_s20  ;;  %v2053_v54 = vsel %vm1970_vm1, %v2050_v62, %v2052_v2  ;;  %v2064_v62 = vrot.slane %v15155_v13, 2  ;;  %v2055_v21 = vsel %vm1970_vm1, %v2052_v2, %v2054_v6  ;;  %v2057_v59 = vsel %vm1970_vm1, %v2054_v6, %v2056_v45 }
  0x7f   : > { %v9273_v13 = vpack.i.bf16 %v2057_v59, %v2055_v21  ;;  %v2069_v2 = vsel %vm1970_vm1, %v2066_v23, %v2068_v29  ;;  %v15165_v21 = vld [vmem:[#allocation34_spill] sm:$0xff] }
  0x80   : > { %v2067_v49 = vsel %vm1970_vm1, %v2064_v62, %v2066_v23  ;;  %v2082_v23 = vrot.slane %v10814_v56, 2 }
  0x81   : > { %9249 = vrot.lane.b32.xlu1 %v9248_v32, %s10455_s20  ;;  %v9268_v32 = vpack.i.bf16 %v2053_v54, %v2051_v9  ;;  %v15159_v9 = vld [vmem:[#allocation28_spill] sm:$0xff]  ;;  %v15160_v54 = vld [vmem:[#allocation33_spill] sm:$0xff]  ;;  %v9288_v59 = vpack.i.bf16 %v2069_v2, %v2067_v49 }
  0x82   : > { %9244 = vrot.lane.b32.xlu0 %v9243_v28, %s10455_s20  ;;  %v2061_v28 = vsel %vm1970_vm1, %v2058_v30, %v2060_v36  ;;  %v2072_v31 = vrot.slane %v15159_v9, 2  ;;  %v2074_v33 = vrot.slane %v15160_v54, 2  ;;  %v15161_v30 = vld [vmem:[#allocation30_spill] sm:$0xff]  ;;  %v15162_v9 = vld [vmem:[#allocation27_spill] sm:$0xff] }
  0x83   : > { %v2076_v52 = vrot.slane %v15161_v30, 2  ;;  %v2070_v54 = vrot.slane %v15162_v9, 2  ;;  %v2084_v30 = vrot.slane %v15165_v21, 2  ;;  %v15169_v21 = vld [vmem:[#allocation35_spill] sm:$0xff] }
  0x84   : > { %v2086_v56 = vrot.slane %v15169_v21, 2 }
  0x85   : > { %9259 = vrot.lane.b32.xlu1 %v9258_v22, %s10455_s20  ;;  %v2062_v22 = vrot.slane %v15158_v37, 2  ;;  %v2085_v2 = vsel %vm1970_vm1, %v2082_v23, %v2084_v30 }
  0x86   : > { %9254 = vrot.lane.b32.xlu0 %v9253_v46, %s10455_s20  ;;  %v9278_v46 = vpack.i.bf16 %v2061_v28, %v2059_v1  ;;  %v15164_v1 = vld [vmem:[#allocation32_spill] sm:$0xff] }
  0x87   : > { %v2063_v45 = vsel %vm1970_vm1, %v2060_v36, %v2062_v22  ;;  %v2065_v6 = vsel %vm1970_vm1, %v2062_v22, %v2064_v62  ;;  %v2080_v28 = vrot.slane %v15164_v1, 2  ;;  %v15166_v62 = vld [vmem:[#allocation31_spill] sm:$0xff]  ;;  %v2073_v1 = vsel %vm1970_vm1, %v2070_v54, %v2072_v31 }
  0x88   : > { %v9283_v36 = vpack.i.bf16 %v2065_v6, %v2063_v45  ;;  %v2078_v22 = vrot.slane %v15166_v62, 2  ;;  %v15168_v45 = vld [vmem:[#allocation38_spill] sm:$0xff] }
  0x89   : > { %9269 = vrot.lane.b32.xlu1 %v9268_v32, %s10455_s20  ;;  %v2075_v32 = vsel %vm1970_vm1, %v2072_v31, %v2074_v33  ;;  %v2092_v6 = vrot.slane %v15168_v45, 2 }
  0x8a   : > { %9264 = vrot.lane.b32.xlu0 %v9263_v34, %s10455_s20  ;;  %v2077_v34 = vsel %vm1970_vm1, %v2074_v33, %v2076_v52  ;;  %v2088_v33 = vrot.slane %v10811_v39, 2  ;;  %v2079_v31 = vsel %vm1970_vm1, %v2076_v52, %v2078_v22 }
  0x8b   : > { %v11039_v27 = vpop.permute.xlu1 %8999  ;;  %v9298_v49 = vpack.i.bf16 %v2077_v34, %v2075_v32 }
  0x8c   : > { %v11044_v37 = vpop.permute.xlu0 %8989  ;;  %v2089_v52 = vsel %vm1970_vm1, %v2086_v56, %v2088_v33 }
  0x8d   : > { %15163 = vst [vmem:[#allocation8_spill] sm:$0xff] %v11044_v37  ;;  %9279 = vrot.lane.b32.xlu1 %v9278_v46, %s10455_s20  ;;  %v2071_v37 = vsel %vm1970_vm1, %v2068_v29, %v2070_v54  ;;  %v2090_v46 = vrot.slane %v10827_v50, 2  ;;  %v2081_v54 = vsel %vm1970_vm1, %v2078_v22, %v2080_v28  ;;  %v2100_v22 = vrot.slane %v10834_v41, 2 }
  0x8e   : > { %9274 = vrot.lane.b32.xlu0 %v9273_v13, %s10455_s20  ;;  %v2083_v13 = vsel %vm1970_vm1, %v2080_v28, %v2082_v23  ;;  %v9293_v29 = vpack.i.bf16 %v2073_v1, %v2071_v37  ;;  %v9303_v23 = vpack.i.bf16 %v2081_v54, %v2079_v31  ;;  %v15170_v37 = vld [vmem:[#allocation40_spill] sm:$0xff]  ;;  %v2098_v28 = vrot.slane %v10849_v63, 2  ;;  %v1386_v54 = vld [vmem:[%s10530_s18 + $0xc] ss:$292 sps:$4 sm:$0xff]  }
  0x8f   : > { %v11054_v9 = vpop.permute.xlu1 %9004  ;;  %v2093_v45 = vsel %vm1970_vm1, %v2090_v46, %v2092_v6  ;;  %v2096_v1 = vrot.slane %v15170_v37, 2  ;;  %v2108_v37 = vrot.slane %v10862_v61, 2  ;;  %v1533_v63 = vunpack.c.h.bf16 %v1386_v54 }
  0x90   : > { %v11058_v8 = vpop.permute.xlu0 %8994  ;;  %v2101_v41 = vsel %vm1970_vm1, %v2098_v28, %v2100_v22  ;;  %v2112_v54 = vrot.slane %v10866_v0, 2 }
  0x91   : > { %15167 = vst [vmem:[#allocation50_spill] sm:$0xff] %v11058_v8  ;;  %9289 = vrot.lane.b32.xlu1 %v9288_v59, %s10455_s20  ;;  %v9308_v59 = vpack.i.bf16 %v2085_v2, %v2083_v13  ;;  %v2091_v8 = vsel %vm1970_vm1, %v2088_v33, %v2090_v46  ;;  %v2099_v33 = vsel %vm1970_vm1, %v2096_v1, %v2098_v28  ;;  %v2114_v61 = vrot.slane %v1533_v63, 2 }
  0x92   : > { %9284 = vrot.lane.b32.xlu0 %v9283_v36, %s10455_s20  ;;  %v2087_v36 = vsel %vm1970_vm1, %v2084_v30, %v2086_v56  ;;  %v9318_v30 = vpack.i.bf16 %v2093_v45, %v2091_v8  ;;  %v2106_v56 = vrot.slane %v10869_v58, 2  ;;  %v2102_v45 = vrot.slane %v10844_v51, 2 }
  0x93   : > { %v11070_v32 = vpop.permute.xlu1 %9014  ;;  %v9313_v46 = vpack.i.bf16 %v2089_v52, %v2087_v36 }
  0x94   : > { %v11072_v34 = vpop.permute.xlu0 %9009  ;;  %v2109_v28 = vsel %vm1970_vm1, %v2106_v56, %v2108_v37 }
  0x95   : > { %9299 = vrot.lane.b32.xlu1 %v9298_v49, %s10455_s20  ;;  %v15171_v49 = vld [vmem:[#allocation39_spill] sm:$0xff] }
  0x96   : > { %9294 = vrot.lane.b32.xlu0 %v9293_v29, %s10455_s20  ;;  %v2094_v2 = vrot.slane %v15171_v49, 2  ;;  %v2104_v29 = vrot.slane %v10847_v7, 2 }
  0x97   : > { %v11083_v13 = vpop.permute.xlu1 %9024 }
  0x98   : > { %v11086_v31 = vpop.permute.xlu0 %9019  ;;  %v2095_v39 = vsel %vm1970_vm1, %v2092_v6, %v2094_v2  ;;  %v2097_v8 = vsel %vm1970_vm1, %v2094_v2, %v2096_v1  ;;  %v2107_v36 = vsel %vm1970_vm1, %v2104_v29, %v2106_v56  ;;  %v11108_v6 = vld [vmem:[#allocation3 + $0x20] sm:$0xff]  ;;  %v2103_v2 = vsel %vm1970_vm1, %v2100_v22, %v2102_v45 }
  0x99   : > { %9309 = vrot.lane.b32.xlu1 %v9308_v59, %s10455_s20  ;;  %v9323_v52 = vpack.i.bf16 %v2097_v8, %v2095_v39  ;;  %15172 = vst [vmem:[#allocation51_spill] sm:$0xff] %v11108_v6  ;;  %v2105_v7 = vsel %vm1970_vm1, %v2102_v45, %v2104_v29  ;;  %v9338_v39 = vpack.i.bf16 %v2109_v28, %v2107_v36 }
  0x9a   : > { %9304 = vrot.lane.b32.xlu0 %v9303_v23, %s10455_s20  ;;  %v9328_v23 = vpack.i.bf16 %v2101_v41, %v2099_v33  ;;  %v2110_v41 = vrot.slane %v10864_v15, 2  ;;  %v9333_v63 = vpack.i.bf16 %v2105_v7, %v2103_v2  ;;  %v2115_v56 = vsel %vm1970_vm1, %v2112_v54, %v2114_v61 }
  0x9b   : > { %v11096_v49 = vpop.permute.xlu1 %9034 }
  0x9c   : > { %v11101_v59 = vpop.permute.xlu0 %9029  ;;  %v2111_v22 = vsel %vm1970_vm1, %v2108_v37, %v2110_v41  ;;  %v2113_v29 = vsel %vm1970_vm1, %v2110_v41, %v2112_v54 }
  0x9d   : > { %9319 = vrot.lane.b32.xlu1 %v9318_v30, %s10455_s20 }
  0x9e   : > { %9314 = vrot.lane.b32.xlu0 %v9313_v46, %s10455_s20  ;;  %v14990_v46 = vrot.slane %v11108_v6, 1 }
  0x9f   : > { %v11110_v1 = vpop.permute.xlu1 %9044 }
  0xa0   : > { %v11115_v30 = vpop.permute.xlu0 %9039  ;;  %v9348_v45 = vpack.i.bf16 %v14990_v46, %v2115_v56 }
  0xa1   : > { %9329 = vrot.lane.b32.xlu1 %v9328_v23, %s10455_s20  ;;  %v9343_v23 = vpack.i.bf16 %v2113_v29, %v2111_v22 }
  0xa2   : > { %9324 = vrot.lane.b32.xlu0 %v9323_v52, %s10455_s20 }
  0xa3   : > { %v11121_v33 = vpop.permute.xlu1 %9054 }
  0xa4   : > { %v11125_v8 = vpop.permute.xlu0 %9049 }
  0xa5   : > { %9339 = vrot.lane.b32.xlu1 %v9338_v39, %s10455_s20 }
  0xa6   : > { %9334 = vrot.lane.b32.xlu0 %v9333_v63, %s10455_s20 }
  0xa7   : > { %v11131_v36 = vpop.permute.xlu1 %9064 }
  0xa8   : > { %v11133_v7 = vpop.permute.xlu0 %9059 }
  0xa9   : > { %9349 = vrot.lane.b32.xlu1 %v9348_v45, %s10455_s20 }
  0xaa   : > { %9344 = vrot.lane.b32.xlu0 %v9343_v23, %s10455_s20 }
  0xab   : > { %v11137_v61 = vpop.permute.xlu1 %9074 }
  0xac   : > { %v11139_v37 = vpop.permute.xlu0 %9069 }
  0xaf   : > { %v11141_v52 = vpop.permute.xlu1 %9084 }
  0xb0   : > { %v11143_v28 = vpop.permute.xlu0 %9079 }
  0xb3   : > { %v11145_v54 = vpop.permute.xlu1 %9094 }
  0xb4   : > { %v11147_v2 = vpop.permute.xlu0 %9089 }
  0xb7   : > { %v11149_v41 = vpop.permute.xlu1 %9104 }
  0xb8   : > { %v11151_v39 = vpop.permute.xlu0 %9099 }
  0xbb   : > { %v11153_v63 = vpop.permute.xlu1 %9114 }
  0xbc   : > { %15173 = vst [vmem:[#allocation52_spill] sm:$0xff] %v11153_v63  ;;  %v11155_v56 = vpop.permute.xlu0 %9109  ;;  %v9026_v63 = vunpack.i.l.bf16 %v11083_v13 }
  0xbd   : > { %15174 = vst [vmem:[#allocation53_spill] sm:$0xff] %v11155_v56 }
  0xbf   : > { %v11157_v22 = vpop.permute.xlu1 %9124 }
  0xc0   : > { %15175 = vst [vmem:[#allocation54_spill] sm:$0xff] %v11157_v22  ;;  %v11159_v29 = vpop.permute.xlu0 %9119 }
  0xc1   : > { %15176 = vst [vmem:[#allocation55_spill] sm:$0xff] %v11159_v29 }
  0xc3   : > { %v11161_v45 = vpop.permute.xlu1 %9134 }
  0xc4   : > { %15177 = vst [vmem:[#allocation56_spill] sm:$0xff] %v11161_v45  ;;  %v11163_v23 = vpop.permute.xlu0 %9129  ;;  %v9002_v45 = vunpack.i.h.bf16 %v11039_v27 }
  0xc5   : > { %15178 = vst [vmem:[#allocation57_spill] sm:$0xff] %v11163_v23  ;;  %v9001_v23 = vunpack.i.l.bf16 %v11039_v27 }
  0xc7   : > { %v11165_v46 = vpop.permute.xlu1 %9144  ;;  %v2340_v27 = vsel %vm2335_vm3, %v10535_v3, %v9001_v23 }
  0xc8   : > { %15179 = vst [vmem:[#allocation58_spill] sm:$0xff] %v11165_v46  ;;  %v11167_v0 = vpop.permute.xlu0 %9139  ;;  %v9006_v46 = vunpack.i.l.bf16 %v11054_v9 }
  0xc9   : > { %15180 = vst [vmem:[#allocation59_spill] sm:$0xff] %v11167_v0  ;;  %v9007_v0 = vunpack.i.h.bf16 %v11054_v9  ;;  %v2341_v9 = vsel %vm2335_vm3, %v10537_v4, %v9002_v45 }
  0xca   : > { %v2342_v29 = vsel %vm2335_vm3, %v10539_v5, %v9006_v46 }
  0xcb   : > { %v11169_v6 = vpop.permute.xlu1 %9154  ;;  %v2343_v46 = vsel %vm2335_vm3, %v10548_v10, %v9007_v0 }
  0xcc   : > { %15181 = vst [vmem:[#allocation60_spill] sm:$0xff] %v11169_v6  ;;  %v11171_v15 = vpop.permute.xlu0 %9149  ;;  %v9017_v6 = vunpack.i.h.bf16 %v11070_v32 }
  0xcd   : > { %15182 = vst [vmem:[#allocation61_spill] sm:$0xff] %v11171_v15  ;;  %v9016_v15 = vunpack.i.l.bf16 %v11070_v32  ;;  %v9027_v32 = vunpack.i.h.bf16 %v11083_v13  ;;  %v9022_v13 = vunpack.i.h.bf16 %v11086_v31 }
  0xcf   : > { %v11173_v58 = vpop.permute.xlu1 %9164  ;;  %v2346_v3 = vsel %vm2335_vm3, %v10565_v25, %v9016_v15  ;;  %v9021_v25 = vunpack.i.l.bf16 %v11086_v31  ;;  %v2351_v10 = vsel %vm2335_vm3, %v10586_v43, %v9027_v32 }
  0xd0   : > { %15183 = vst [vmem:[#allocation62_spill] sm:$0xff] %v11173_v58  ;;  %v11175_v51 = vpop.permute.xlu0 %9159  ;;  %v9012_v58 = vunpack.i.h.bf16 %v11072_v34 }
  0xd1   : > { %15184 = vst [vmem:[#allocation63_spill] sm:$0xff] %v11175_v51 }
  0xd3   : > { %v11177_v50 = vpop.permute.xlu1 %9169 }
  0xd4   : > { %15185 = vst [vmem:[#allocation64_spill] sm:$0xff] %v11177_v50  ;;  %v11179_v21 = vpop.permute.xlu0 %1894 }
  0xd5   : > { %15186 = vst [vmem:[#allocation65_spill] sm:$0xff] %v11179_v21  ;;  %v9011_v21 = vunpack.i.l.bf16 %v11072_v34  ;;  %v2347_v34 = vsel %vm2335_vm3, %v10573_v35, %v9017_v6 }
  0xd7   : > { %v9180_v62 = vpop.permute.xlu1 %9179  ;;  %v2344_v35 = vsel %vm2335_vm3, %v10550_v11, %v9011_v21  ;;  %v9032_v11 = vunpack.i.h.bf16 %v11101_v59 }
  0xd8   : > { %v9182_v51 = vunpack.i.h.bf16 %v9180_v62  ;;  %v9181_v50 = vunpack.i.l.bf16 %v9180_v62  ;;  %v11188_v22 = vpop.permute.xlu0 %9174 }
  0xda   : > { %v11200_v56 = vsel %vm2409_vm2, %v2340_v27, %v9181_v50  ;;  %v11203_v62 = vsel %vm2409_vm2, %v2341_v9, %v9182_v51  ;;  %v2345_v50 = vsel %vm2335_vm3, %v10580_v40, %v9012_v58  ;;  %v2350_v40 = vsel %vm2335_vm3, %v10584_v42, %v9026_v63 }
  0xdb   : > { %v9190_v4 = vpop.permute.xlu1 %9189  ;;  %v9353_v5 = vpack.i.bf16 %v11203_v62, %v11200_v56  ;;  %v2349_v42 = vsel %vm2335_vm3, %v10592_v47, %v9022_v13  ;;  %v9036_v47 = vunpack.i.l.bf16 %v11096_v49 }
  0xdc   : > { %v9192_v51 = vunpack.i.h.bf16 %v9190_v4  ;;  %v9191_v45 = vunpack.i.l.bf16 %v9190_v4  ;;  %v9185_v23 = vpop.permute.xlu0 %9184 }
  0xdd   : > { %v9187_v15 = vunpack.i.h.bf16 %v9185_v23  ;;  %v9186_v6 = vunpack.i.l.bf16 %v9185_v23  ;;  %9354 = vrot.lane.b32.xlu0 %v9353_v5, %s10457_s21  ;;  %v9031_v5 = vunpack.i.l.bf16 %v11101_v59 }
  0xde   : > { %v11225_v0 = vsel %vm2409_vm2, %v2344_v35, %v9191_v45  ;;  %v11228_v58 = vsel %vm2409_vm2, %v2345_v50, %v9192_v51  ;;  %v9037_v51 = vunpack.i.h.bf16 %v11096_v49 }
  0xdf   : > { %v9200_v21 = vpop.permute.xlu1 %9199  ;;  %v11232_v31 = vsel %vm2409_vm2, %v2342_v29, %v9186_v6  ;;  %v11235_v27 = vsel %vm2409_vm2, %v2343_v46, %v9187_v15  ;;  %v11239_v43 = vpack.i.bf16 %v11228_v58, %v11225_v0  ;;  %v2348_v29 = vsel %vm2335_vm3, %v10577_v38, %v9021_v25 }
  0xe0   : > { %v9202_v63 = vunpack.i.h.bf16 %v9200_v21  ;;  %v9201_v9 = vunpack.i.l.bf16 %v9200_v21  ;;  %v9195_v32 = vpop.permute.xlu0 %9194  ;;  %v9358_v4 = vpack.i.bf16 %v11235_v27, %v11232_v31  ;;  %v2353_v38 = vsel %vm2335_vm3, %v10619_v16, %v9032_v11 }
  0xe1   : > { %v9197_v46 = vunpack.i.h.bf16 %v9195_v32  ;;  %v9196_v50 = vunpack.i.l.bf16 %v9195_v32  ;;  %9364 = vrot.lane.b32.xlu0 %v11239_v43, %s10457_s21  ;;  %v9042_v25 = vunpack.i.h.bf16 %v11115_v30  ;;  %v2352_v16 = vsel %vm2335_vm3, %v10588_v44, %v9031_v5 }
  0xe2   : > { %9359 = vrot.lane.b32.xlu1 %v9358_v4, %s10457_s21  ;;  %v11254_v13 = vsel %vm2409_vm2, %v2348_v29, %v9201_v9  ;;  %v11257_v45 = vsel %vm2409_vm2, %v2349_v42, %v9202_v63  ;;  %v2355_v63 = vsel %vm2335_vm3, %v10614_v12, %v9037_v51  ;;  %v2354_v9 = vsel %vm2335_vm3, %v10594_v48, %v9036_v47 }
  0xe3   : > { %v9210_v59 = vpop.permute.xlu1 %9209  ;;  %v11262_v23 = vsel %vm2409_vm2, %v2346_v3, %v9196_v50  ;;  %v11265_v35 = vsel %vm2409_vm2, %v2347_v34, %v9197_v46  ;;  %v11269_v49 = vpack.i.bf16 %v11257_v45, %v11254_v13  ;;  %v9041_v3 = vunpack.i.l.bf16 %v11115_v30 }
  0xe4   : > { %v9212_v15 = vunpack.i.h.bf16 %v9210_v59  ;;  %v9211_v6 = vunpack.i.l.bf16 %v9210_v59  ;;  %v9205_v21 = vpop.permute.xlu0 %9204  ;;  %v11274_v42 = vpack.i.bf16 %v11265_v35, %v11262_v23  ;;  %v9047_v30 = vunpack.i.h.bf16 %v11110_v1 }
  0xe5   : > { %v9207_v34 = vunpack.i.h.bf16 %v9205_v21  ;;  %v9206_v11 = vunpack.i.l.bf16 %v9205_v21  ;;  %9374 = vrot.lane.b32.xlu0 %v11269_v49, %s10457_s21  ;;  %v2357_v5 = vsel %vm2335_vm3, %v10633_v24, %v9042_v25  ;;  %v9046_v24 = vunpack.i.l.bf16 %v11110_v1 }
  0xe6   : > { %9369 = vrot.lane.b32.xlu1 %v11274_v42, %s10457_s21  ;;  %v11288_v32 = vsel %vm2409_vm2, %v2352_v16, %v9211_v6  ;;  %v11291_v44 = vsel %vm2409_vm2, %v2353_v38, %v9212_v15 }
  0xe7   : > { %v9220_v4 = vpop.permute.xlu1 %9219  ;;  %v11295_v29 = vsel %vm2409_vm2, %v2350_v40, %v9206_v11  ;;  %v11298_v12 = vsel %vm2409_vm2, %v2351_v10, %v9207_v34  ;;  %v9383_v48 = vpack.i.bf16 %v11291_v44, %v11288_v32  ;;  %v10353_v40 = vld [vmem:[%s14909_s1 + $0x10] ss:$0 sps:$4 sm:$0x33]   ;;  %v2356_v10 = vsel %vm2335_vm3, %v10616_v14, %v9041_v3  ;;  %v10354_v34 = vld [vmem:[%s14909_s1 + $0x8] sm:$0xff]  }
  0xe8   : > { %v9222_v46 = vunpack.i.h.bf16 %v9220_v4  ;;  %v9221_v50 = vunpack.i.l.bf16 %v9220_v4  ;;  %v9215_v51 = vpop.permute.xlu0 %9214  ;;  %v9378_v47 = vpack.i.bf16 %v11298_v12, %v11295_v29  ;;  %8968 = vmatprep.subr.msk.bf16.mxu0 %vm3521_vm4, %v10353_v40  ;;  %v3523_v6 = vsel %vm3521_vm4, %v10353_v40, 0  ;;  %8969 = vmatprep.subr.msk.bf16.mxu1 %vm3521_vm4, %v10353_v40 }
  0xe9   : > { %v9217_v38 = vunpack.i.h.bf16 %v9215_v51  ;;  %v9216_v59 = vunpack.i.l.bf16 %v9215_v51  ;;  %9384 = vrot.lane.b32.xlu0 %v9383_v48, %s10457_s21  ;;  %8753 = vmatpush3.bf16.msra.mxu0 %v3523_v6  ;;  %v2358_v4 = vsel %vm2335_vm3, %v10623_v18, %v9046_v24  ;;  %v9051_v51 = vunpack.i.l.bf16 %v11125_v8 }
  0xea   : > { %9379 = vrot.lane.b32.xlu1 %v9378_v47, %s10457_s21  ;;  %v11315_v25 = vsel %vm2409_vm2, %v2356_v10, %v9221_v50  ;;  %v11318_v15 = vsel %vm2409_vm2, %v2357_v5, %v9222_v46  ;;  %8965 = vmatpush3.bf16.msra.mxu1 %v3523_v6 }
  0xeb   : > { %v11323_v14 = vsel %vm2409_vm2, %v2354_v9, %v9216_v59  ;;  %v11326_v21 = vsel %vm2409_vm2, %v2355_v63, %v9217_v38  ;;  %v9393_v1 = vpack.i.bf16 %v11318_v15, %v11315_v25  ;;  %v2359_v63 = vsel %vm2335_vm3, %v10625_v19, %v9047_v30  ;;  %8754 = vmatprep.subr.bf16.mxu0 %v10354_v34  ;;  %v10355_v19 = vld [vmem:[%s14909_s1] sm:$0xff]   ;;  %v9230_v18 = vpop.permute.xlu1 %9229 }
  0xec   : > { %v9225_v16 = vpop.permute.xlu0 %9224  ;;  %v9388_v3 = vpack.i.bf16 %v11326_v21, %v11323_v14  ;;  %8963 = vmatprep.subr.bf16.mxu1 %v10354_v34  ;;  %v9052_v30 = vunpack.i.h.bf16 %v11125_v8  ;;  %v9232_v40 = vunpack.i.h.bf16 %v9230_v18  ;;  %v9057_v38 = vunpack.i.h.bf16 %v11121_v33 }
  0xed   : > { %v9227_v11 = vunpack.i.h.bf16 %v9225_v16  ;;  %v9226_v9 = vunpack.i.l.bf16 %v9225_v16  ;;  %9394 = vrot.lane.b32.xlu0 %v9393_v1, %s10457_s21  ;;  %8755 = vmatpush3.bf16.msra.mxu0 %v10354_v34  ;;  %v9056_v59 = vunpack.i.l.bf16 %v11121_v33 }
  0xee   : > { %9389 = vrot.lane.b32.xlu1 %v9388_v3, %s10457_s21  ;;  %8966 = vmatpush3.bf16.msra.mxu1 %v10354_v34  ;;  %v2363_v33 = vsel %vm2335_vm3, %v10654_v53, %v9057_v38  ;;  %v9061_v34 = vunpack.i.l.bf16 %v11133_v7  ;;  %v9066_v53 = vunpack.i.l.bf16 %v11131_v36 }
  0xef   : > { %v11343_v5 = vsel %vm2409_vm2, %v2358_v4, %v9226_v9  ;;  %v11346_v46 = vsel %vm2409_vm2, %v2359_v63, %v9227_v11  ;;  %8756 = vmatprep.subr.bf16.mxu0 %v10355_v19  ;;  %8964 = vmatprep.subr.bf16.mxu1 %v10355_v19 }
  0xf0   : > { %v9398_v50 = vpack.i.bf16 %v11346_v46, %v11343_v5  ;;  %v9235_v10 = vpop.permute.xlu0 %9234 }
  0xf1   : > { %9404 = vrot.lane.b32.xlu0 %v11239_v43, %s10458_s28  ;;  %8757 = vmatpush3.bf16.msra.mxu0 %v10355_v19  ;;  %v9231_v43 = vunpack.i.l.bf16 %v9230_v18  ;;  %v9237_v24 = vunpack.i.h.bf16 %v9235_v10  ;;  %v9236_v6 = vunpack.i.l.bf16 %v9235_v10  ;;  %v9071_v10 = vunpack.i.l.bf16 %v11139_v37 }
  0xf2   : > { %9399 = vrot.lane.b32.xlu1 %v9398_v50, %s10457_s21  ;;  %8967 = vmatpush3.bf16.msra.mxu1 %v10355_v19  ;;  %v2364_v19 = vsel %vm2335_vm3, %v10656_v55, %v9061_v34  ;;  %v9072_v55 = vunpack.i.h.bf16 %v11139_v37  ;;  %v9076_v37 = vunpack.i.l.bf16 %v11137_v61 }
  0xf4   : > { %v9245_v63 = vpop.permute.xlu0 %9244 }
  0xf5   : > { %9414 = vrot.lane.b32.xlu0 %v11269_v49, %s10458_s28  ;;  %v2361_v49 = vsel %vm2335_vm3, %v10659_v57, %v9052_v30  ;;  %v2362_v57 = vsel %vm2335_vm3, %v10635_v26, %v9056_v59  ;;  %v9067_v26 = vunpack.i.h.bf16 %v11131_v36  ;;  %v9247_v18 = vunpack.i.h.bf16 %v9245_v63 }
  0xf6   : > { %9409 = vrot.lane.b32.xlu1 %v11274_v42, %s10458_s28  ;;  %v2360_v42 = vsel %vm2335_vm3, %v10627_v20, %v9051_v51  ;;  %v11374_v16 = vsel %vm2409_vm2, %v2361_v49, %v9232_v40  ;;  %v9062_v20 = vunpack.i.h.bf16 %v11133_v7  ;;  %v11387_v11 = vsel %vm2409_vm2, %v2362_v57, %v9236_v6  ;;  %v15187_v40 = vld [vmem:[#allocation7_spill] sm:$0xff] }
  0xf7   : > { %v11371_v8 = vsel %vm2409_vm2, %v2360_v42, %v9231_v43  ;;  %v9246_v30 = vunpack.i.l.bf16 %v9245_v63  ;;  %v2366_v43 = vsel %vm2335_vm3, %v15187_v40, %v9066_v53 }
  0xf8   : > { %v2365_v7 = vsel %vm2335_vm3, %v10672_v60, %v9062_v20  ;;  %v2367_v60 = vsel %vm2335_vm3, %v15142_v17, %v9067_v26  ;;  %v9255_v6 = vpop.permute.xlu0 %9254  ;;  %v9077_v17 = vunpack.i.h.bf16 %v11137_v61  ;;  %v15189_v20 = vld [vmem:[#allocation9_spill] sm:$0xff]  ;;  %v15190_v26 = vld [vmem:[#allocation11_spill] sm:$0xff] }
  0xf9   : > { %9424 = vrot.lane.b32.xlu0 %v9383_v48, %s10458_s28  ;;  %v9240_v48 = vpop.permute.xlu1 %9239  ;;  %v11417_v38 = vsel %vm2409_vm2, %v2367_v60, %v9247_v18  ;;  %v11420_v59 = vsel %vm2409_vm2, %v2366_v43, %v9246_v30  ;;  %v9257_v34 = vunpack.i.h.bf16 %v9255_v6  ;;  %v9081_v18 = vunpack.i.l.bf16 %v11143_v28 }
  0xfa   : > { %9419 = vrot.lane.b32.xlu1 %v9378_v47, %s10458_s28  ;;  %v9443_v47 = vpack.i.bf16 %v11374_v16, %v11371_v8  ;;  %v9241_v9 = vunpack.i.l.bf16 %v9240_v48  ;;  %v9473_v57 = vpack.i.bf16 %v11417_v38, %v11420_v59  ;;  %v2371_v53 = vsel %vm2335_vm3, %v15190_v26, %v9077_v17 }
  0xfb   : > { %v11449_v30 = vsel %vm2409_vm2, %v2371_v53, %v9257_v34  ;;  %v15198_v34 = vld [vmem:[#allocation14_spill] sm:$0xff]  ;;  %v9091_v26 = vunpack.i.l.bf16 %v11147_v2 }
  0xfc   : > { %v11404_v51 = vsel %vm2409_vm2, %v2364_v19, %v9241_v9  ;;  %v9082_v19 = vunpack.i.h.bf16 %v11143_v28  ;;  %v9086_v28 = vunpack.i.l.bf16 %v11141_v52 }
  0xfd   : > { %9434 = vrot.lane.b32.xlu0 %v9393_v1, %s10458_s28  ;;  %v11390_v1 = vsel %vm2409_vm2, %v2363_v33, %v9237_v24  ;;  %v9250_v36 = vpop.permute.xlu1 %9249 }
  0xfe   : > { %9429 = vrot.lane.b32.xlu1 %v9388_v3, %s10458_s28  ;;  %v9242_v3 = vunpack.i.h.bf16 %v9240_v48  ;;  %v9453_v4 = vpack.i.bf16 %v11390_v1, %v11387_v11  ;;  %v9252_v42 = vunpack.i.h.bf16 %v9250_v36  ;;  %v9251_v24 = vunpack.i.l.bf16 %v9250_v36  ;;  %v15188_v48 = vld [vmem:[#allocation13_spill] sm:$0xff] }
  0xff   : > { %v2369_v33 = vsel %vm2335_vm3, %v15188_v48, %v9072_v55  ;;  %v9265_v55 = vpop.permute.xlu0 %9264 }
 0x100   : > { %v11438_v63 = vsel %vm2409_vm2, %v2369_v33, %v9252_v42  ;;  %v9266_v48 = vunpack.i.l.bf16 %v9265_v55 }
 0x101   : > { %9444 = vrot.lane.b32.xlu0 %v9443_v47, %s10458_s28  ;;  %v9260_v61 = vpop.permute.xlu1 %9259 }
 0x102   : > { %9439 = vrot.lane.b32.xlu1 %v9398_v50, %s10458_s28  ;;  %v11407_v50 = vsel %vm2409_vm2, %v2365_v7, %v9242_v3  ;;  %v9256_v3 = vunpack.i.l.bf16 %v9255_v6  ;;  %v15191_v7 = vld [vmem:[#allocation10_spill] sm:$0xff]  ;;  %v9262_v40 = vunpack.i.h.bf16 %v9260_v61  ;;  %v9261_v43 = vunpack.i.l.bf16 %v9260_v61  ;;  %v15194_v6 = vld [vmem:[#allocation12_spill] sm:$0xff] }
 0x103   : > { %v9458_v49 = vpack.i.bf16 %v11407_v50, %v11404_v51  ;;  %v2372_v17 = vsel %vm2335_vm3, %v15194_v6, %v9081_v18  ;;  %v9092_v61 = vunpack.i.h.bf16 %v11147_v2  ;;  %v9096_v2 = vunpack.i.l.bf16 %v11145_v54 }
 0x104   : > { %v11467_v33 = vsel %vm2409_vm2, %v2372_v17, %v9261_v43  ;;  %v15201_v43 = vld [vmem:[#allocation21_spill] sm:$0xff] }
 0x105   : > { %9454 = vrot.lane.b32.xlu0 %v9453_v4, %s10458_s28  ;;  %15195 = vst [vmem:[#allocation13_spill] sm:$0xff] %v11467_v33 }
 0x106   : > { %9449 = vrot.lane.b32.xlu1 %v9443_v47, %s10457_s21  ;;  %v2368_v47 = vsel %vm2335_vm3, %v15189_v20, %v9071_v10  ;;  %v9087_v10 = vunpack.i.h.bf16 %v11141_v52  ;;  %v9270_v52 = vpop.permute.xlu1 %9269  ;;  %v15197_v20 = vld [vmem:[#allocation15_spill] sm:$0xff] }
 0x107   : > { %v11435_v9 = vsel %vm2409_vm2, %v2368_v47, %v9251_v24  ;;  %v9271_v18 = vunpack.i.l.bf16 %v9270_v52 }
 0x108   : > { %v9478_v60 = vpack.i.bf16 %v11438_v63, %v11435_v9  ;;  %v2375_v47 = vsel %vm2335_vm3, %v15197_v20, %v9087_v10 }
 0x109   : > { %9464 = vrot.lane.b32.xlu0 %v9453_v4, %s10457_s21  ;;  %v2370_v4 = vsel %vm2335_vm3, %v15191_v7, %v9076_v37  ;;  %v9267_v37 = vunpack.i.h.bf16 %v9265_v55  ;;  %v2377_v55 = vsel %vm2335_vm3, %v15201_v43, %v9092_v61 }
 0x10a   : > { %9459 = vrot.lane.b32.xlu1 %v9458_v49, %s10458_s28  ;;  %v11452_v36 = vsel %vm2409_vm2, %v2370_v4, %v9256_v3  ;;  %v2374_v3 = vsel %vm2335_vm3, %v15198_v34, %v9086_v28  ;;  %v15202_v28 = vld [vmem:[#allocation16_spill] sm:$0xff]  ;;  %v9101_v34 = vunpack.i.l.bf16 %v11151_v39 }
 0x10b   : > { %15192 = vst [vmem:[#allocation7_spill] sm:$0xff] %v11452_v36  ;;  %v9493_v24 = vpack.i.bf16 %v11449_v30, %v11452_v36  ;;  %v11481_v53 = vsel %vm2409_vm2, %v2375_v47, %v9267_v37  ;;  %v11484_v7 = vsel %vm2409_vm2, %v2374_v3, %v9266_v48  ;;  %v15205_v37 = vld [vmem:[#allocation19_spill] sm:$0xff]  ;;  %v9102_v47 = vunpack.i.h.bf16 %v11151_v39 }
 0x10c   : > { %15199 = vst [vmem:[#allocation11_spill] sm:$0xff] %v11481_v53  ;;  %15200 = vst [vmem:[#allocation10_spill] sm:$0xff] %v11484_v7  ;;  %v9513_v10 = vpack.i.bf16 %v11481_v53, %v11484_v7  ;;  %v9106_v39 = vunpack.i.l.bf16 %v11149_v41 }
 0x10d   : > { %9474 = vrot.lane.b32.xlu0 %v9473_v57, %s10458_s28 }
 0x10e   : > { %9469 = vrot.lane.b32.xlu1 %v9458_v49, %s10457_s21  ;;  %v15193_v49 = vld [vmem:[#allocation17_spill] sm:$0xff] }
 0x10f   : > { %v2373_v42 = vsel %vm2335_vm3, %v15193_v49, %v9082_v19  ;;  %v9272_v19 = vunpack.i.h.bf16 %v9270_v52  ;;  %v2376_v49 = vsel %vm2335_vm3, %v15202_v28, %v9091_v26  ;;  %v15206_v52 = vld [vmem:[#allocation18_spill] sm:$0xff] }
 0x110   : > { %v11499_v17 = vsel %vm2409_vm2, %v2376_v49, %v9271_v18  ;;  %v2378_v20 = vsel %vm2335_vm3, %v15206_v52, %v9096_v2 }
 0x111   : > { %9484 = vrot.lane.b32.xlu0 %v9473_v57, %s10457_s21  ;;  %v11470_v57 = vsel %vm2409_vm2, %v2373_v42, %v9262_v40  ;;  %v9097_v40 = vunpack.i.h.bf16 %v11145_v54  ;;  %15203 = vst [vmem:[#allocation17_spill] sm:$0xff] %v11499_v17  ;;  %v9280_v54 = vpop.permute.xlu1 %9279 }
 0x112   : > { %9479 = vrot.lane.b32.xlu1 %v9478_v60, %s10458_s28  ;;  %15196 = vst [vmem:[#allocation9_spill] sm:$0xff] %v11470_v57  ;;  %v9498_v4 = vpack.i.bf16 %v11470_v57, %v11467_v33 }
 0x113   : > { %v2379_v48 = vsel %vm2335_vm3, %v15205_v37, %v9097_v40  ;;  %v15209_v40 = vld [vmem:[#allocation25_spill] sm:$0xff] }
 0x114   : > { %v2381_v2 = vsel %vm2335_vm3, %v15209_v40, %v9102_v47 }
 0x115   : > { %9494 = vrot.lane.b32.xlu0 %v9493_v24, %s10458_s28 }
 0x116   : > { %9489 = vrot.lane.b32.xlu1 %v9478_v60, %s10457_s21  ;;  %v9275_v60 = vpop.permute.xlu0 %9274 }
 0x117   : > { %v9277_v42 = vunpack.i.h.bf16 %v9275_v60  ;;  %v9276_v6 = vunpack.i.l.bf16 %v9275_v60  ;;  %v9107_v60 = vunpack.i.h.bf16 %v11149_v41  ;;  %v9290_v41 = vpop.permute.xlu1 %9289 }
 0x118   : > { %v9291_v40 = vunpack.i.l.bf16 %v9290_v41 }
 0x119   : > { %9504 = vrot.lane.b32.xlu0 %v9493_v24, %s10457_s21  ;;  %v11502_v24 = vsel %vm2409_vm2, %v2377_v55, %v9272_v19  ;;  %v11513_v3 = vsel %vm2409_vm2, %v2379_v48, %v9277_v42  ;;  %v11516_v61 = vsel %vm2409_vm2, %v2378_v20, %v9276_v6  ;;  %v9281_v19 = vunpack.i.l.bf16 %v9280_v54  ;;  %v15210_v55 = vld [vmem:[#allocation20_spill] sm:$0xff]  ;;  %v15214_v48 = vld [vmem:[#allocation22_spill] sm:$0xff]  ;;  %v15215_v20 = vld [vmem:[#allocation53_spill] sm:$0xff] }
 0x11a   : > { %9499 = vrot.lane.b32.xlu1 %v9498_v4, %s10458_s28  ;;  %15204 = vst [vmem:[#allocation12_spill] sm:$0xff] %v11502_v24  ;;  %15207 = vst [vmem:[#allocation15_spill] sm:$0xff] %v11513_v3  ;;  %v9518_v26 = vpack.i.bf16 %v11502_v24, %v11499_v17  ;;  %v9285_v18 = vpop.permute.xlu0 %9284  ;;  %v9533_v43 = vpack.i.bf16 %v11513_v3, %v11516_v61  ;;  %v2380_v28 = vsel %vm2335_vm3, %v15210_v55, %v9101_v34  ;;  %v11722_v3 = vld [vmem:[#allocation3 + $0x28] sm:$0xff] }
 0x11b   : > { %15208 = vst [vmem:[#allocation14_spill] sm:$0xff] %v11516_v61  ;;  %v9287_v49 = vunpack.i.h.bf16 %v9285_v18  ;;  %v9286_v42 = vunpack.i.l.bf16 %v9285_v18  ;;  %v11531_v6 = vsel %vm2409_vm2, %v2380_v28, %v9281_v19  ;;  %v2382_v52 = vsel %vm2335_vm3, %v15214_v48, %v9106_v39  ;;  %v15219_v28 = vld [vmem:[#allocation29_spill] sm:$0xff] }
 0x11c   : > { %15211 = vst [vmem:[#allocation21_spill] sm:$0xff] %v11531_v6  ;;  %v9112_v47 = vunpack.i.h.bf16 %v15215_v20  ;;  %v9111_v34 = vunpack.i.l.bf16 %v15215_v20  ;;  %v9300_v20 = vpop.permute.xlu1 %9299  ;;  %v10393_v17 = vld [vmem:[%s10530_s18 + $0xc] ss:$292 sps:$4 sm:$0xff]  }
 0x11d   : > { %9514 = vrot.lane.b32.xlu0 %v9513_v10, %s10458_s28  ;;  %v1460_v24 = vunpack.c.l.bf16 %v10393_v17 }
 0x11e   : > { %9509 = vrot.lane.b32.xlu1 %v9498_v4, %s10457_s21  ;;  %v9282_v4 = vunpack.i.h.bf16 %v9280_v54  ;;  %v15213_v54 = vld [vmem:[#allocation23_spill] sm:$0xff] }
 0x11f   : > { %v2383_v37 = vsel %vm2335_vm3, %v15213_v54, %v9107_v60  ;;  %v15218_v60 = vld [vmem:[#allocation52_spill] sm:$0xff] }
 0x120   : > { %v11545_v19 = vsel %vm2409_vm2, %v2383_v37, %v9287_v49  ;;  %v9117_v39 = vunpack.i.h.bf16 %v15218_v60  ;;  %v9116_v55 = vunpack.i.l.bf16 %v15218_v60  ;;  %v2385_v49 = vsel %vm2335_vm3, %v15219_v28, %v9112_v47  ;;  %v15220_v54 = vld [vmem:[#allocation24_spill] sm:$0xff]  ;;  %v15223_v47 = vld [vmem:[#allocation27_spill] sm:$0xff]  ;;  %v15224_v28 = vld [vmem:[#allocation26_spill] sm:$0xff] }
 0x121   : > { %9524 = vrot.lane.b32.xlu0 %v9513_v10, %s10457_s21  ;;  %v11534_v10 = vsel %vm2409_vm2, %v2381_v2, %v9282_v4  ;;  %15216 = vst [vmem:[#allocation19_spill] sm:$0xff] %v11545_v19  ;;  %v11548_v4 = vsel %vm2409_vm2, %v2382_v52, %v9286_v42  ;;  %v9295_v2 = vpop.permute.xlu0 %9294  ;;  %v2384_v37 = vsel %vm2335_vm3, %v15220_v54, %v9111_v34  ;;  %v15225_v34 = vld [vmem:[#allocation55_spill] sm:$0xff] }
 0x122   : > { %9519 = vrot.lane.b32.xlu1 %v9518_v26, %s10458_s28  ;;  %15212 = vst [vmem:[#allocation16_spill] sm:$0xff] %v11534_v10  ;;  %15217 = vst [vmem:[#allocation18_spill] sm:$0xff] %v11548_v4  ;;  %v9538_v18 = vpack.i.bf16 %v11534_v10, %v11531_v6  ;;  %v9553_v42 = vpack.i.bf16 %v11545_v19, %v11548_v4  ;;  %v9297_v48 = vunpack.i.h.bf16 %v9295_v2  ;;  %v9122_v54 = vunpack.i.h.bf16 %v15225_v34 }
 0x123   : > { %v11563_v52 = vsel %vm2409_vm2, %v2384_v37, %v9291_v40  ;;  %v2387_v60 = vsel %vm2335_vm3, %v15223_v47, %v9117_v39  ;;  %v2386_v4 = vsel %vm2335_vm3, %v15224_v28, %v9116_v55  ;;  %v9301_v37 = vunpack.i.l.bf16 %v9300_v20  ;;  %v15228_v39 = vld [vmem:[#allocation54_spill] sm:$0xff]  ;;  %v15229_v28 = vld [vmem:[#allocation33_spill] sm:$0xff] }
 0x124   : > { %15221 = vst [vmem:[#allocation25_spill] sm:$0xff] %v11563_v52  ;;  %v11577_v40 = vsel %vm2409_vm2, %v2387_v60, %v9297_v48  ;;  %v9127_v55 = vunpack.i.h.bf16 %v15228_v39  ;;  %v9126_v47 = vunpack.i.l.bf16 %v15228_v39  ;;  %v2389_v48 = vsel %vm2335_vm3, %v15229_v28, %v9122_v54  ;;  %v9310_v39 = vpop.permute.xlu1 %9309  ;;  %v15233_v54 = vld [vmem:[#allocation31_spill] sm:$0xff] }
 0x125   : > { %9534 = vrot.lane.b32.xlu0 %v9533_v43, %s10458_s28  ;;  %15226 = vst [vmem:[#allocation23_spill] sm:$0xff] %v11577_v40  ;;  %v9305_v19 = vpop.permute.xlu0 %9304 }
 0x126   : > { %9529 = vrot.lane.b32.xlu1 %v9518_v26, %s10457_s21  ;;  %v9292_v26 = vunpack.i.h.bf16 %v9290_v41  ;;  %v9296_v41 = vunpack.i.l.bf16 %v9295_v2  ;;  %v9121_v2 = vunpack.i.l.bf16 %v15225_v34  ;;  %v9307_v34 = vunpack.i.h.bf16 %v9305_v19 }
 0x127   : > { %v2391_v28 = vsel %vm2335_vm3, %v15233_v54, %v9127_v55  ;;  %v15239_v54 = vld [vmem:[#allocation37_spill] sm:$0xff] }
 0x128   : > { %15270 = vst [vmem:[#allocation37_spill] sm:$0xff] %v11722_v3 }
 0x129   : > { %9544 = vrot.lane.b32.xlu0 %v9533_v43, %s10457_s21  ;;  %v11566_v43 = vsel %vm2409_vm2, %v2385_v49, %v9292_v26  ;;  %v11580_v26 = vsel %vm2409_vm2, %v2386_v4, %v9296_v41  ;;  %v15230_v41 = vld [vmem:[#allocation28_spill] sm:$0xff] }
 0x12a   : > { %9539 = vrot.lane.b32.xlu1 %v9538_v18, %s10458_s28  ;;  %15222 = vst [vmem:[#allocation20_spill] sm:$0xff] %v11566_v43  ;;  %15227 = vst [vmem:[#allocation22_spill] sm:$0xff] %v11580_v26  ;;  %v9558_v49 = vpack.i.bf16 %v11566_v43, %v11563_v52  ;;  %v9573_v4 = vpack.i.bf16 %v11577_v40, %v11580_v26  ;;  %v2388_v60 = vsel %vm2335_vm3, %v15230_v41, %v9121_v2  ;;  %v15234_v26 = vld [vmem:[#allocation30_spill] sm:$0xff]  ;;  %v15235_v2 = vld [vmem:[#allocation57_spill] sm:$0xff]  ;;  %v9315_v43 = vpop.permute.xlu0 %9314 }
 0x12b   : > { %v11595_v52 = vsel %vm2409_vm2, %v2388_v60, %v9301_v37  ;;  %v2390_v40 = vsel %vm2335_vm3, %v15234_v26, %v9126_v47  ;;  %v9132_v41 = vunpack.i.h.bf16 %v15235_v2  ;;  %v11609_v37 = vsel %vm2409_vm2, %v2391_v28, %v9307_v34  ;;  %v15238_v26 = vld [vmem:[#allocation56_spill] sm:$0xff] }
 0x12c   : > { %15231 = vst [vmem:[#allocation53_spill] sm:$0xff] %v11595_v52  ;;  %15236 = vst [vmem:[#allocation29_spill] sm:$0xff] %v11609_v37  ;;  %v9311_v60 = vunpack.i.l.bf16 %v9310_v39  ;;  %v9137_v55 = vunpack.i.h.bf16 %v15238_v26  ;;  %v9136_v47 = vunpack.i.l.bf16 %v15238_v26  ;;  %v9320_v26 = vpop.permute.xlu1 %9319 }
 0x12d   : > { %9554 = vrot.lane.b32.xlu0 %v9553_v42, %s10458_s28  ;;  %v2393_v34 = vsel %vm2335_vm3, %v15239_v54, %v9132_v41  ;;  %v15243_v41 = vld [vmem:[#allocation35_spill] sm:$0xff] }
 0x12e   : > { %9549 = vrot.lane.b32.xlu1 %v9538_v18, %s10457_s21  ;;  %v9302_v18 = vunpack.i.h.bf16 %v9300_v20  ;;  %v9306_v20 = vunpack.i.l.bf16 %v9305_v19  ;;  %v9131_v19 = vunpack.i.l.bf16 %v15235_v2  ;;  %v9317_v2 = vunpack.i.h.bf16 %v9315_v43 }
 0x12f   : > { %v2395_v54 = vsel %vm2335_vm3, %v15243_v41, %v9137_v55  ;;  %v15249_v41 = vld [vmem:[#allocation41_spill] sm:$0xff] }
 0x131   : > { %9564 = vrot.lane.b32.xlu0 %v9553_v42, %s10457_s21  ;;  %v11598_v42 = vsel %vm2409_vm2, %v2389_v48, %v9302_v18  ;;  %v11612_v18 = vsel %vm2409_vm2, %v2390_v40, %v9306_v20  ;;  %v15240_v20 = vld [vmem:[#allocation32_spill] sm:$0xff] }
 0x132   : > { %9559 = vrot.lane.b32.xlu1 %v9558_v49, %s10458_s28  ;;  %15232 = vst [vmem:[#allocation52_spill] sm:$0xff] %v11598_v42  ;;  %15237 = vst [vmem:[#allocation24_spill] sm:$0xff] %v11612_v18  ;;  %v9578_v48 = vpack.i.bf16 %v11598_v42, %v11595_v52  ;;  %v9593_v40 = vpack.i.bf16 %v11609_v37, %v11612_v18  ;;  %v2392_v28 = vsel %vm2335_vm3, %v15240_v20, %v9131_v19  ;;  %v15244_v18 = vld [vmem:[#allocation34_spill] sm:$0xff]  ;;  %v15245_v19 = vld [vmem:[#allocation59_spill] sm:$0xff] }
 0x133   : > { %v11627_v52 = vsel %vm2409_vm2, %v2392_v28, %v9311_v60  ;;  %v2394_v37 = vsel %vm2335_vm3, %v15244_v18, %v9136_v47  ;;  %v9142_v20 = vunpack.i.h.bf16 %v15245_v19  ;;  %v9141_v60 = vunpack.i.l.bf16 %v15245_v19  ;;  %v15248_v18 = vld [vmem:[#allocation58_spill] sm:$0xff]  ;;  %v9330_v19 = vpop.permute.xlu1 %9329 }
 0x134   : > { %15241 = vst [vmem:[#allocation27_spill] sm:$0xff] %v11627_v52  ;;  %v11641_v28 = vsel %vm2409_vm2, %v2395_v54, %v9317_v2  ;;  %v9321_v42 = vunpack.i.l.bf16 %v9320_v26  ;;  %v9147_v55 = vunpack.i.h.bf16 %v15248_v18  ;;  %v9146_v47 = vunpack.i.l.bf16 %v15248_v18 }
 0x135   : > { %9574 = vrot.lane.b32.xlu0 %v9573_v4, %s10458_s28  ;;  %15246 = vst [vmem:[#allocation55_spill] sm:$0xff] %v11641_v28  ;;  %v2397_v2 = vsel %vm2335_vm3, %v15249_v41, %v9142_v20  ;;  %v15253_v20 = vld [vmem:[#allocation39_spill] sm:$0xff]  ;;  %v15254_v41 = vld [vmem:[#allocation38_spill] sm:$0xff] }
 0x136   : > { %9569 = vrot.lane.b32.xlu1 %v9558_v49, %s10457_s21  ;;  %v9312_v49 = vunpack.i.h.bf16 %v9310_v39  ;;  %v9316_v39 = vunpack.i.l.bf16 %v9315_v43  ;;  %v9325_v43 = vpop.permute.xlu0 %9324  ;;  %v2399_v18 = vsel %vm2335_vm3, %v15253_v20, %v9147_v55 }
 0x137   : > { %v9340_v55 = vpop.permute.xlu1 %9339 }
 0x139   : > { %9584 = vrot.lane.b32.xlu0 %v9573_v4, %s10457_s21  ;;  %v11630_v4 = vsel %vm2409_vm2, %v2393_v34, %v9312_v49  ;;  %v11644_v49 = vsel %vm2409_vm2, %v2394_v37, %v9316_v39  ;;  %v9322_v34 = vunpack.i.h.bf16 %v9320_v26  ;;  %v15250_v39 = vld [vmem:[#allocation36_spill] sm:$0xff]  ;;  %v9326_v26 = vunpack.i.l.bf16 %v9325_v43 }
 0x13a   : > { %9579 = vrot.lane.b32.xlu1 %v9578_v48, %s10458_s28  ;;  %15242 = vst [vmem:[#allocation26_spill] sm:$0xff] %v11630_v4  ;;  %15247 = vst [vmem:[#allocation54_spill] sm:$0xff] %v11644_v49  ;;  %v9613_v37 = vpack.i.bf16 %v11641_v28, %v11644_v49  ;;  %v2396_v54 = vsel %vm2335_vm3, %v15250_v39, %v9141_v60  ;;  %v9335_v6 = vpop.permute.xlu0 %9334  ;;  %v2398_v60 = vsel %vm2335_vm3, %v15254_v41, %v9146_v47  ;;  %v15255_v39 = vld [vmem:[#allocation61_spill] sm:$0xff]  ;;  %v15258_v47 = vld [vmem:[#allocation60_spill] sm:$0xff] }
 0x13b   : > { %v9152_v49 = vunpack.i.h.bf16 %v15255_v39  ;;  %v9157_v20 = vunpack.i.h.bf16 %v15258_v47  ;;  %v9156_v41 = vunpack.i.l.bf16 %v15258_v47  ;;  %v15262_v47 = vld [vmem:[#allocation43_spill] sm:$0xff] }
 0x13d   : > { %9594 = vrot.lane.b32.xlu0 %v9593_v40, %s10458_s28 }
 0x13e   : > { %9589 = vrot.lane.b32.xlu1 %v9578_v48, %s10457_s21  ;;  %v9598_v48 = vpack.i.bf16 %v11630_v4, %v11627_v52  ;;  %v9327_v52 = vunpack.i.h.bf16 %v9325_v43  ;;  %v11662_v4 = vsel %vm2409_vm2, %v2397_v2, %v9322_v34  ;;  %v9151_v43 = vunpack.i.l.bf16 %v15255_v39  ;;  %v15259_v39 = vld [vmem:[#allocation45_spill] sm:$0xff] }
 0x13f   : > { %15252 = vst [vmem:[#allocation28_spill] sm:$0xff] %v11662_v4  ;;  %v11676_v34 = vsel %vm2409_vm2, %v2398_v60, %v9326_v26  ;;  %v15260_v60 = vld [vmem:[#allocation40_spill] sm:$0xff] }
 0x140   : > { %15257 = vst [vmem:[#allocation30_spill] sm:$0xff] %v11676_v34 }
 0x141   : > { %9604 = vrot.lane.b32.xlu0 %v9593_v40, %s10457_s21  ;;  %v11659_v40 = vsel %vm2409_vm2, %v2396_v54, %v9321_v42  ;;  %v11673_v42 = vsel %vm2409_vm2, %v2399_v18, %v9327_v52  ;;  %v9331_v54 = vunpack.i.l.bf16 %v9330_v19  ;;  %v2401_v52 = vsel %vm2335_vm3, %v15259_v39, %v9152_v49  ;;  %v9345_v18 = vpop.permute.xlu0 %9344  ;;  %v15263_v39 = vld [vmem:[#allocation42_spill] sm:$0xff] }
 0x142   : > { %9599 = vrot.lane.b32.xlu1 %v9598_v48, %s10458_s28  ;;  %15251 = vst [vmem:[#allocation33_spill] sm:$0xff] %v11659_v40  ;;  %15256 = vst [vmem:[#allocation31_spill] sm:$0xff] %v11673_v42  ;;  %v9618_v2 = vpack.i.bf16 %v11662_v4, %v11659_v40  ;;  %v9633_v26 = vpack.i.bf16 %v11673_v42, %v11676_v34  ;;  %v2400_v40 = vsel %vm2335_vm3, %v15260_v60, %v9151_v43  ;;  %v15264_v42 = vld [vmem:[#allocation63_spill] sm:$0xff] }
 0x143   : > { %v9336_v4 = vunpack.i.l.bf16 %v9335_v6  ;;  %v2403_v49 = vsel %vm2335_vm3, %v15262_v47, %v9157_v20  ;;  %v2402_v34 = vsel %vm2335_vm3, %v15263_v39, %v9156_v41  ;;  %v9162_v10 = vunpack.i.h.bf16 %v15264_v42  ;;  %v15266_v41 = vld [vmem:[#allocation62_spill] sm:$0xff]  ;;  %v15267_v47 = vld [vmem:[#allocation8_spill] sm:$0xff] }
 0x144   : > { %v9341_v20 = vunpack.i.l.bf16 %v9340_v55  ;;  %v9167_v60 = vunpack.i.h.bf16 %v15266_v41  ;;  %v8992_v39 = vunpack.i.h.bf16 %v15267_v47  ;;  %v9346_v61 = vunpack.i.l.bf16 %v9345_v18 }
 0x145   : > { %9614 = vrot.lane.b32.xlu0 %v9613_v37, %s10458_s28 }
 0x146   : > { %9609 = vrot.lane.b32.xlu1 %v9598_v48, %s10457_s21  ;;  %v9332_v48 = vunpack.i.h.bf16 %v9330_v19  ;;  %v9337_v19 = vunpack.i.h.bf16 %v9335_v6  ;;  %v9161_v6 = vunpack.i.l.bf16 %v15264_v42  ;;  %v9166_v42 = vunpack.i.l.bf16 %v15266_v41 }
 0x148   : > { %v2475_v28 = vsel %vm2409_vm2, %v2401_v52, %v9332_v48  ;;  %v2476_v48 = vsel %vm2409_vm2, %v2402_v34, %v9336_v4  ;;  %v9342_v52 = vunpack.i.h.bf16 %v9340_v55  ;;  %v9347_v55 = vunpack.i.h.bf16 %v9345_v18 }
 0x149   : > { %9624 = vrot.lane.b32.xlu0 %v9613_v37, %s10457_s21  ;;  %v11691_v37 = vsel %vm2409_vm2, %v2400_v40, %v9331_v54  ;;  %v2477_v40 = vsel %vm2409_vm2, %v2403_v49, %v9337_v19  ;;  %v11706_v54 = vpop.permute.xlu1 %9349  ;;  %v15268_v19 = vld [vmem:[#allocation49_spill] sm:$0xff] }
 0x14a   : > { %9619 = vrot.lane.b32.xlu1 %v9618_v2, %s10458_s28  ;;  %15261 = vst [vmem:[#allocation57_spill] sm:$0xff] %v11691_v37  ;;  %15265 = vst [vmem:[#allocation56_spill] sm:$0xff] %v11706_v54  ;;  %v2405_v4 = vsel %vm2335_vm3, %v15268_v19, %v9162_v10  ;;  %v9653_v49 = vpack.i.bf16 %v2477_v40, %v2476_v48  ;;  %v8991_v10 = vunpack.i.l.bf16 %v15267_v47  ;;  %v15271_v40 = vld [vmem:[#allocation50_spill] sm:$0xff]  ;;  %v15272_v19 = vld [vmem:[#allocation47_spill] sm:$0xff] }
 0x14b   : > { %v2479_v41 = vsel %vm2409_vm2, %v2405_v4, %v9342_v52  ;;  %v8997_v48 = vunpack.i.h.bf16 %v15271_v40  ;;  %v2407_v18 = vsel %vm2335_vm3, %v15272_v19, %v9167_v60  ;;  %v15275_v4 = vld [vmem:[#allocation5_spill] sm:$0xff]  ;;  %v15276_v19 = vld [vmem:[#allocation64_spill] sm:$0xff] }
 0x14c   : > { %v2337_v47 = vsel %vm2335_vm3, %v15275_v4, %v8992_v39  ;;  %v2481_v33 = vsel %vm2409_vm2, %v2407_v18, %v9347_v55  ;;  %v9171_v36 = vunpack.i.l.bf16 %v15276_v19  ;;  %v2336_v52 = vsel %vm2335_vm3, %v1460_v24, %v8991_v10  ;;  %v15277_v39 = vld [vmem:[#allocation4_spill] sm:$0xff]  ;;  %v15278_v18 = vld [vmem:[#allocation6_spill] sm:$0xff] }
 0x14d   : > { %9634 = vrot.lane.b32.xlu0 %v9633_v26, %s10458_s28  ;;  %v2339_v55 = vsel %vm2335_vm3, %v15277_v39, %v8997_v48 }
 0x14e   : > { %9629 = vrot.lane.b32.xlu1 %v9618_v2, %s10457_s21  ;;  %v9638_v2 = vpack.i.bf16 %v2475_v28, %v11691_v37  ;;  %v15269_v28 = vld [vmem:[#allocation44_spill] sm:$0xff] }
 0x14f   : > { %v11701_v43 = vpop.permute.xlu0 %9354  ;;  %v2404_v37 = vsel %vm2335_vm3, %v15269_v28, %v9161_v6  ;;  %v8996_v6 = vunpack.i.l.bf16 %v15271_v40  ;;  %v15273_v28 = vld [vmem:[#allocation46_spill] sm:$0xff] }
 0x150   : > { %v2478_v7 = vsel %vm2409_vm2, %v2404_v37, %v9341_v20  ;;  %v2406_v17 = vsel %vm2335_vm3, %v15273_v28, %v9166_v42  ;;  %v15274_v37 = vld [vmem:[#allocation51_spill] sm:$0xff]  ;;  %v9177_v42 = vunpack.i.h.bf16 %v11188_v22  ;;  %v9176_v28 = vunpack.i.l.bf16 %v11188_v22 }
 0x151   : > { %9644 = vrot.lane.b32.xlu0 %v9633_v26, %s10457_s21  ;;  %v4801_v20 = vrot.slane %v15274_v37, 2  ;;  %v2480_v40 = vsel %vm2409_vm2, %v2406_v17, %v9346_v61  ;;  %v9658_v60 = vpack.i.bf16 %v2479_v41, %v2478_v7  ;;  %v2338_v61 = vsel %vm2335_vm3, %v15278_v18, %v8996_v6  ;;  %v15279_v41 = vld [vmem:[#allocation65_spill] sm:$0xff]  ;;  %v15280_v17 = vld [vmem:[#allocation48_spill] sm:$0xff] }
 0x152   : > { %9639 = vrot.lane.b32.xlu1 %v9638_v2, %s10458_s28  ;;  %v2408_v4 = vsel %vm2335_vm3, %v15280_v17, %v15279_v41  ;;  %v9668_v37 = vpack.i.bf16 %v2481_v33, %v2480_v40  ;;  %v9357_v10 = vunpack.i.h.bf16 %v11701_v43  ;;  %v9356_v48 = vunpack.i.l.bf16 %v11701_v43 }
 0x153   : > { %v11716_v34 = vpop.permute.xlu0 %9364  ;;  %v2410_v18 = vsel %vm2409_vm2, %v2336_v52, %v9171_v36  ;;  %v2412_v17 = vsel %vm2409_vm2, %v2338_v61, %v9176_v28  ;;  %v2413_v33 = vsel %vm2409_vm2, %v2339_v55, %v9177_v42 }
 0x154   : > { %v11720_v26 = vpop.permute.xlu1 %9359  ;;  %v9367_v6 = vunpack.i.h.bf16 %v11716_v34 }
 0x155   : > { %9654 = vrot.lane.b32.xlu0 %v9653_v49, %s10458_s28  ;;  %v9362_v40 = vunpack.i.h.bf16 %v11720_v26 }
 0x156   : > { %9649 = vrot.lane.b32.xlu1 %v9638_v2, %s10457_s21  ;;  %v9172_v2 = vunpack.i.h.bf16 %v15276_v19  ;;  %v9351_v19 = vunpack.i.l.bf16 %v11706_v54 }
 0x157   : > { %v9375_v53 = vpop.permute.xlu0 %9374 }
 0x158   : > { %v11742_v57 = vpop.permute.xlu1 %9369  ;;  %v2411_v41 = vsel %vm2409_vm2, %v2337_v47, %v9172_v2  ;;  %v9377_v43 = vunpack.i.h.bf16 %v9375_v53  ;;  %v9376_v54 = vunpack.i.l.bf16 %v9375_v53  ;;  %v2482_v36 = vsel %vm2409_vm2, %v2408_v4, %v9351_v19 }
 0x159   : > { %9664 = vrot.lane.b32.xlu0 %v9653_v49, %s10457_s21  ;;  %v15281_v49 = vrot.slane %v11722_v3, 2  ;;  %v2943_v47 = vsel %vm2942_vm5, %v2410_v18, %v9356_v48  ;;  %v2944_v2 = vsel %vm2942_vm5, %v2411_v41, %v9357_v10 }
 0x15a   : > { %9659 = vrot.lane.b32.xlu1 %v9658_v60, %s10458_s28  ;;  %v9366_v60 = vunpack.i.l.bf16 %v11716_v34  ;;  %v9372_v34 = vunpack.i.h.bf16 %v11742_v57  ;;  %v2952_v4 = vsel %vm2942_vm5, %v11228_v58, %v9377_v43  ;;  %v2951_v19 = vsel %vm2942_vm5, %v11225_v0, %v9376_v54 }
 0x15b   : > { %v9385_v22 = vpop.permute.xlu0 %9384  ;;  %v4803_v24 = vsel %vm1970_vm1, %v4801_v20, %v15281_v49  ;;  %v9361_v49 = vunpack.i.l.bf16 %v11720_v26 }
 0x15c   : > { %v9380_v39 = vpop.permute.xlu1 %9379  ;;  %v9678_v52 = vpack.i.bf16 %v4803_v24, %v4801_v20  ;;  %v2947_v26 = vsel %vm2942_vm5, %v11200_v56, %v9366_v60  ;;  %v9387_v28 = vunpack.i.h.bf16 %v9385_v22  ;;  %v9386_v55 = vunpack.i.l.bf16 %v9385_v22 }
 0x15d   : > { %9669 = vrot.lane.b32.xlu0 %v9668_v37, %s10458_s28  ;;  %v2948_v37 = vsel %vm2942_vm5, %v11203_v62, %v9367_v6  ;;  %v9382_v42 = vunpack.i.h.bf16 %v9380_v39  ;;  %v2945_v61 = vsel %vm2942_vm5, %v2412_v17, %v9361_v49  ;;  %v2946_v20 = vsel %vm2942_vm5, %v2413_v33, %v9362_v40 }
 0x15e   : > { %2676 = vrot.lane.b32.xlu1 %v2478_v7, %s10457_s21  ;;  %v9371_v7 = vunpack.i.l.bf16 %v11742_v57  ;;  %v2950_v56 = vsel %vm2942_vm5, %v11235_v27, %v9372_v34  ;;  %v9381_v62 = vunpack.i.l.bf16 %v9380_v39  ;;  %v2956_v54 = vsel %vm2942_vm5, %v11257_v45, %v9387_v28 }
 0x15f   : > { %v9395_v3 = vpop.permute.xlu0 %9394  ;;  %v11796_v0 = vsel %vm2942_vm5, %v11265_v35, %v9382_v42  ;;  %v2955_v27 = vsel %vm2942_vm5, %v11254_v13, %v9386_v55 }
 0x160   : > { %v9390_v53 = vpop.permute.xlu1 %9389  ;;  %v9397_v57 = vunpack.i.h.bf16 %v9395_v3  ;;  %v9396_v24 = vunpack.i.l.bf16 %v9395_v3  ;;  %v2949_v58 = vsel %vm2942_vm5, %v11232_v31, %v9371_v7  ;;  %v2953_v31 = vsel %vm2942_vm5, %v11262_v23, %v9381_v62 }
 0x161   : > { %v9392_v22 = vunpack.i.h.bf16 %v9390_v53  ;;  %v9391_v48 = vunpack.i.l.bf16 %v9390_v53 }
 0x162   : > { %2875 = vrot.lane.b32.xlu1 %v2482_v36, %s10458_s28  ;;  %v11809_v35 = vsel %vm2942_vm5, %v11291_v44, %v9397_v57  ;;  %v11813_v45 = vsel %vm2942_vm5, %v11288_v32, %v9396_v24 }
 0x163   : > { %v9405_v10 = vpop.permute.xlu0 %9404  ;;  %v11817_v40 = vsel %vm2942_vm5, %v11298_v12, %v9392_v22  ;;  %v11821_v49 = vsel %vm2942_vm5, %v11295_v29, %v9391_v48 }
 0x164   : > { %v9400_v6 = vpop.permute.xlu1 %9399  ;;  %v9407_v60 = vunpack.i.h.bf16 %v9405_v10  ;;  %v9406_v18 = vunpack.i.l.bf16 %v9405_v10 }
 0x165   : > { %v9402_v3 = vunpack.i.h.bf16 %v9400_v6  ;;  %v9401_v39 = vunpack.i.l.bf16 %v9400_v6 }
 0x166   : > { %v3009_v41 = vsel %vm3008_vm6, %v2943_v47, %v9406_v18  ;;  %v3010_v17 = vsel %vm3008_vm6, %v2944_v2, %v9407_v60  ;;  %9679 = vrot.lane.b32.xlu1 %v9678_v52, %s10459_s29 }
 0x167   : > { %v3074_v13 = vpack.c.bf16 %v3010_v17, %v3009_v41  ;;  %v9415_v33 = vpop.permute.xlu0 %9414  ;;  %v11825_v32 = vsel %vm2942_vm5, %v11326_v21, %v9402_v3  ;;  %v11829_v2 = vsel %vm2942_vm5, %v11323_v14, %v9401_v39 }
 0x168   : > { %v9410_v43 = vpop.permute.xlu1 %9409  ;;  %v9417_v23 = vunpack.i.h.bf16 %v9415_v33  ;;  %v9416_v34 = vunpack.i.l.bf16 %v9415_v33 }
 0x169   : > { %v9412_v36 = vunpack.i.h.bf16 %v9410_v43  ;;  %v9411_v44 = vunpack.i.l.bf16 %v9410_v43  ;;  %v3114_v52 = vshrl.u32 %v3074_v13, 16  ;;  %v3117_v47 = vshll.u32 %v3074_v13, 16 }
 0x16a   : > { %v3013_v12 = vsel %vm3008_vm6, %v2947_v26, %v9416_v34  ;;  %v3014_v29 = vsel %vm3008_vm6, %v2948_v37, %v9417_v23 }
 0x16b   : > { %v3011_v53 = vsel %vm3008_vm6, %v2945_v61, %v9411_v44  ;;  %v3012_v7 = vsel %vm3008_vm6, %v2946_v20, %v9412_v36  ;;  %v3076_v42 = vpack.c.bf16 %v3014_v29, %v3013_v12  ;;  %v9425_v28 = vpop.permute.xlu0 %9424  ;;  %v3116_v55 = vrot.slane %v3114_v52, 3 }
 0x16c   : > { %v3075_v62 = vpack.c.bf16 %v3012_v7, %v3011_v53  ;;  %v9420_v21 = vpop.permute.xlu1 %9419  ;;  %v9427_v57 = vunpack.i.h.bf16 %v9425_v28  ;;  %v9426_v24 = vunpack.i.l.bf16 %v9425_v28  ;;  %v3119_v10 = vrot.slane %v3117_v47, 4 }
 0x16d   : > { %v9422_v14 = vunpack.i.h.bf16 %v9420_v21  ;;  %v9421_v22 = vunpack.i.l.bf16 %v9420_v21  ;;  %v3131_v48 = vshrl.u32 %v3076_v42, 16  ;;  %v3134_v26 = vshll.u32 %v3076_v42, 16 }
 0x16e   : > { %v3017_v37 = vsel %vm3008_vm6, %v2951_v19, %v9426_v24  ;;  %v3018_v6 = vsel %vm3008_vm6, %v2952_v4, %v9427_v57  ;;  %v3120_v61 = vor.u32 %v3119_v10, %v3116_v55  ;;  %v3122_v60 = vshrl.u32 %v3075_v62, 16 }
 0x16f   : > { %v3015_v20 = vsel %vm3008_vm6, %v2949_v58, %v9421_v22  ;;  %v3016_v18 = vsel %vm3008_vm6, %v2950_v56, %v9422_v14  ;;  %v3078_v3 = vpack.c.bf16 %v3018_v6, %v3017_v37  ;;  %v9435_v39 = vpop.permute.xlu0 %9434  ;;  %v3125_v41 = vshll.u32 %v3075_v62, 16 }
 0x170   : > { %v3077_v17 = vpack.c.bf16 %v3016_v18, %v3015_v20  ;;  %v9430_v13 = vpop.permute.xlu1 %9429  ;;  %v9437_v33 = vunpack.i.h.bf16 %v9435_v39  ;;  %v9436_v43 = vunpack.i.l.bf16 %v9435_v39  ;;  %v3124_v23 = vrot.slane %v3122_v60, 3 }
 0x171   : > { %v9432_v34 = vunpack.i.h.bf16 %v9430_v13  ;;  %v9431_v36 = vunpack.i.l.bf16 %v9430_v13  ;;  %v3127_v44 = vrot.slane %v3125_v41, 4  ;;  %v3133_v19 = vrot.slane %v3131_v48, 3 }
 0x172   : > { %v3021_v4 = vsel %vm3008_vm6, %v2955_v27, %v9436_v43  ;;  %v3022_v52 = vsel %vm3008_vm6, %v2956_v54, %v9437_v33  ;;  %v3136_v47 = vrot.slane %v3134_v26, 4  ;;  %v3140_v58 = vshrl.u32 %v3077_v17, 16 }
 0x173   : > { %v3019_v56 = vsel %vm3008_vm6, %v2953_v31, %v9431_v36  ;;  %v3020_v12 = vsel %vm3008_vm6, %v11796_v0, %v9432_v34  ;;  %v11844_v29 = vpack.c.bf16 %v3022_v52, %v3021_v4  ;;  %v9445_v53 = vpop.permute.xlu0 %9444  ;;  %v3128_v7 = vor.u32 %v3127_v44, %v3124_v23 }
 0x174   : > { %v3079_v42 = vpack.c.bf16 %v3020_v12, %v3019_v56  ;;  %v9440_v28 = vpop.permute.xlu1 %9439  ;;  %v9447_v55 = vunpack.i.h.bf16 %v9445_v53  ;;  %v9446_v62 = vunpack.i.l.bf16 %v9445_v53  ;;  %v3137_v21 = vor.u32 %v3136_v47, %v3133_v19 }
 0x175   : > { %v9442_v57 = vunpack.i.h.bf16 %v9440_v28  ;;  %v9441_v27 = vunpack.i.l.bf16 %v9440_v28  ;;  %v3129_v54 = vsel %vm3112_vm7, %v3120_v61, %v3128_v7  ;;  %v3142_v24 = vrot.slane %v3140_v58, 3 }
 0x176   : > { %v3025_v31 = vsel %vm3008_vm6, %v11813_v45, %v9446_v62  ;;  %v3026_v0 = vsel %vm3008_vm6, %v11809_v35, %v9447_v55  ;;  %8758 = vmatprep.mubr.msk.bf16.mxu0 %vm3424_vm8, %v3129_v54  ;;  %v3138_v10 = vsel %vm3112_vm7, %v3128_v7, %v3137_v21  ;;  %v3143_v14 = vshll.u32 %v3077_v17, 16 }
 0x177   : > { %v3023_v22 = vsel %vm3008_vm6, %v11821_v49, %v9441_v27  ;;  %v3024_v48 = vsel %vm3008_vm6, %v11817_v40, %v9442_v57  ;;  %v11857_v26 = vpack.c.bf16 %v3026_v0, %v3025_v31  ;;  %8759 = vmatmul.mubr.msk.bf16.vlgmr.msra.gmra.mxu0 %vm3424_vm8, %v3138_v10  ;;  %v9455_v37 = vpop.permute.xlu0 %9454  ;;  %v3149_v45 = vshrl.u32 %v3078_v3, 16 }
 0x178   : > { %v11860_v6 = vpack.c.bf16 %v3024_v48, %v3023_v22  ;;  %v9450_v35 = vpop.permute.xlu1 %9449  ;;  %v9457_v61 = vunpack.i.h.bf16 %v9455_v37  ;;  %v9456_v60 = vunpack.i.l.bf16 %v9455_v37  ;;  %v3145_v20 = vrot.slane %v3143_v14, 4 }
 0x179   : > { %v9452_v18 = vunpack.i.h.bf16 %v9450_v35  ;;  %v9451_v39 = vunpack.i.l.bf16 %v9450_v35  ;;  %v3151_v41 = vrot.slane %v3149_v45, 3  ;;  %v3152_v17 = vshll.u32 %v3078_v3, 16 }
 0x17a   : > { %v3028_v49 = vsel %vm3008_vm6, %v11825_v32, %v9457_v61  ;;  %v3027_v40 = vsel %vm3008_vm6, %v11829_v2, %v9456_v60  ;;  %v3146_v13 = vor.u32 %v3145_v20, %v3142_v24  ;;  %v3158_v33 = vshrl.u32 %v3079_v42, 16 }
 0x17b   : > { %v2963_v43 = vsel %vm2942_vm5, %v11315_v25, %v9451_v39  ;;  %v2964_v23 = vsel %vm2942_vm5, %v11318_v15, %v9452_v18  ;;  %v11870_v34 = vpack.c.bf16 %v3028_v49, %v3027_v40  ;;  %v9465_v36 = vpop.permute.xlu0 %9464  ;;  %v3154_v44 = vrot.slane %v3152_v17, 4 }
 0x17c   : > { %v3147_v3 = vsel %vm3112_vm7, %v3137_v21, %v3146_v13  ;;  %v9460_v19 = vpop.permute.xlu1 %9459  ;;  %v9467_v4 = vunpack.i.h.bf16 %v9465_v36  ;;  %v9466_v32 = vunpack.i.l.bf16 %v9465_v36  ;;  %v3160_v52 = vrot.slane %v3158_v33, 3 }
 0x17d   : > { %8762 = vmatprep.mubr.msk.bf16.mxu0 %vm3424_vm8, %v3147_v3  ;;  %v9462_v2 = vunpack.i.h.bf16 %v9460_v19  ;;  %v9461_v47 = vunpack.i.l.bf16 %v9460_v19  ;;  %v3155_v58 = vor.u32 %v3154_v44, %v3151_v41  ;;  %v3161_v56 = vshll.u32 %v3079_v42, 16 }
 0x17e   : > { %v2966_v25 = vsel %vm2942_vm5, %v11346_v46, %v9467_v4  ;;  %v2965_v15 = vsel %vm2942_vm5, %v11343_v5, %v9466_v32  ;;  %v3167_v12 = vshrl.u32 %v11844_v29, 16  ;;  %v3170_v53 = vshll.u32 %v11844_v29, 16 }
 0x17f   : > { %v3029_v7 = vsel %vm3008_vm6, %v2963_v43, %v9461_v47  ;;  %v3030_v28 = vsel %vm3008_vm6, %v2964_v23, %v9462_v2  ;;  %v3156_v55 = vsel %vm3112_vm7, %v3146_v13, %v3155_v58  ;;  %v3163_v62 = vrot.slane %v3161_v56, 4  ;;  %v9475_v21 = vpop.permute.xlu0 %9474 }
 0x180   : > { %v11883_v57 = vpack.c.bf16 %v3030_v28, %v3029_v7  ;;  %8763 = vmatmul.mubr.msk.bf16.gmra.mxu0 %vm3424_vm8, %v3156_v55  ;;  %v9470_v46 = vpop.permute.xlu1 %9469  ;;  %v9477_v42 = vunpack.i.h.bf16 %v9475_v21  ;;  %v9476_v27 = vunpack.i.l.bf16 %v9475_v21  ;;  %v3169_v5 = vrot.slane %v3167_v12, 3 }
 0x181   : > { %v3164_v54 = vor.u32 %v3163_v62, %v3160_v52  ;;  %v9472_v24 = vunpack.i.h.bf16 %v9470_v46  ;;  %v9471_v31 = vunpack.i.l.bf16 %v9470_v46  ;;  %v3172_v29 = vrot.slane %v3170_v53, 4 }
 0x182   : > { %v3031_v0 = vsel %vm3008_vm6, %v2965_v15, %v9476_v27  ;;  %v3032_v10 = vsel %vm3008_vm6, %v2966_v25, %v9477_v42  ;;  %v3176_v14 = vshrl.u32 %v11860_v6, 16  ;;  %v3179_v22 = vshll.u32 %v11860_v6, 16 }
 0x183   : > { %v3165_v48 = vsel %vm3112_vm7, %v3155_v58, %v3164_v54  ;;  %v2968_v37 = vsel %vm2942_vm5, %v11374_v16, %v9472_v24  ;;  %v2967_v45 = vsel %vm2942_vm5, %v11371_v8, %v9471_v31  ;;  %v11895_v35 = vpack.c.bf16 %v3032_v10, %v3031_v0  ;;  %v9485_v61 = vpop.permute.xlu0 %9484 }
 0x184   : > { %8766 = vmatprep.mubr.msk.bf16.mxu0 %vm3424_vm8, %v3165_v48  ;;  %v9480_v60 = vpop.permute.xlu1 %9479  ;;  %v9487_v20 = vunpack.i.h.bf16 %v9485_v61  ;;  %v9486_v18 = vunpack.i.l.bf16 %v9485_v61  ;;  %v3173_v39 = vor.u32 %v3172_v29, %v3169_v5  ;;  %v3178_v41 = vrot.slane %v3176_v14, 3 }
 0x185   : > { %v9482_v17 = vunpack.i.h.bf16 %v9480_v60  ;;  %v9481_v6 = vunpack.i.l.bf16 %v9480_v60  ;;  %v3181_v49 = vrot.slane %v3179_v22, 4  ;;  %v3185_v40 = vshrl.u32 %v11857_v26, 16 }
 0x186   : > { %v2970_v16 = vsel %vm2942_vm5, %v11390_v1, %v9487_v20  ;;  %v2969_v8 = vsel %vm2942_vm5, %v11387_v11, %v9486_v18  ;;  %v3174_v13 = vsel %vm3112_vm7, %v3164_v54, %v3173_v39  ;;  %v3188_v33 = vshll.u32 %v11857_v26, 16 }
 0x187   : > { %v3033_v43 = vsel %vm3008_vm6, %v2967_v45, %v9481_v6  ;;  %v3034_v23 = vsel %vm3008_vm6, %v2968_v37, %v9482_v17  ;;  %v3182_v36 = vor.u32 %v3181_v49, %v3178_v41  ;;  %v9495_v44 = vpop.permute.xlu0 %9494  ;;  %v3187_v3 = vrot.slane %v3185_v40, 3 }
 0x188   : > { %v11907_v19 = vpack.c.bf16 %v3034_v23, %v3033_v43  ;;  %8767 = vmatmul.mubr.msk.bf16.gmra.mxu0 %vm3424_vm8, %v3174_v13  ;;  %v9490_v4 = vpop.permute.xlu1 %9489  ;;  %v9497_v1 = vunpack.i.h.bf16 %v9495_v44  ;;  %v9496_v32 = vunpack.i.l.bf16 %v9495_v44  ;;  %v3190_v52 = vrot.slane %v3188_v33, 4 }
 0x189   : > { %v3183_v11 = vsel %vm3112_vm7, %v3173_v39, %v3182_v36  ;;  %v9492_v2 = vunpack.i.h.bf16 %v9490_v4  ;;  %v9491_v47 = vunpack.i.l.bf16 %v9490_v4  ;;  %v3194_v26 = vshrl.u32 %v11870_v34, 16 }
 0x18a   : > { %8770 = vmatprep.mubr.msk.bf16.mxu0 %vm3424_vm8, %v3183_v11  ;;  %v3035_v58 = vsel %vm3008_vm6, %v2969_v8, %v9496_v32  ;;  %v3036_v56 = vsel %vm3008_vm6, %v2970_v16, %v9497_v1  ;;  %v3191_v25 = vor.u32 %v3190_v52, %v3187_v3  ;;  %v3197_v15 = vshll.u32 %v11870_v34, 16 }
 0x18b   : > { %v2972_v12 = vsel %vm2942_vm5, %v11407_v50, %v9492_v2  ;;  %v2971_v53 = vsel %vm2942_vm5, %v11404_v51, %v9491_v47  ;;  %v11920_v7 = vpack.c.bf16 %v3036_v56, %v3035_v58  ;;  %v9505_v28 = vpop.permute.xlu0 %9504  ;;  %v3196_v55 = vrot.slane %v3194_v26, 3 }
 0x18c   : > { %v9500_v62 = vpop.permute.xlu1 %9499  ;;  %v9507_v21 = vunpack.i.h.bf16 %v9505_v28  ;;  %v9506_v46 = vunpack.i.l.bf16 %v9505_v28  ;;  %v3192_v42 = vsel %vm3112_vm7, %v3182_v36, %v3191_v25  ;;  %v3199_v27 = vrot.slane %v3197_v15, 4 }
 0x18d   : > { %v9502_v5 = vunpack.i.h.bf16 %v9500_v62  ;;  %v9501_v54 = vunpack.i.l.bf16 %v9500_v62  ;;  %v3203_v34 = vshrl.u32 %v11883_v57, 16  ;;  %v3206_v24 = vshll.u32 %v11883_v57, 16 }
 0x18e   : > { %v2974_v50 = vsel %vm2942_vm5, %v11417_v38, %v9507_v21  ;;  %v2973_v51 = vsel %vm2942_vm5, %v11420_v59, %v9506_v46  ;;  %v3200_v31 = vor.u32 %v3199_v27, %v3196_v55  ;;  %v3212_v29 = vshrl.u32 %v11895_v35, 16  ;;  %v15283_v27 = vld [vmem:[#allocation9_spill] sm:$0xff] }
 0x18f   : > { %v3037_v0 = vsel %vm3008_vm6, %v2971_v53, %v9501_v54  ;;  %v3038_v10 = vsel %vm3008_vm6, %v2972_v12, %v9502_v5  ;;  %v9515_v14 = vpop.permute.xlu0 %9514  ;;  %v3205_v22 = vrot.slane %v3203_v34, 3  ;;  %v3208_v48 = vrot.slane %v3206_v24, 4  ;;  %v15284_v54 = vld [vmem:[#allocation13_spill] sm:$0xff] }
 0x190   : > { %v11932_v37 = vpack.c.bf16 %v3038_v10, %v3037_v0  ;;  %8771 = vmatmul.mubr.msk.bf16.gmra.mxu0 %vm3424_vm8, %v3192_v42  ;;  %v3201_v57 = vsel %vm3112_vm7, %v3191_v25, %v3200_v31  ;;  %v9510_v38 = vpop.permute.xlu1 %9509  ;;  %v9517_v45 = vunpack.i.h.bf16 %v9515_v14  ;;  %v9516_v61 = vunpack.i.l.bf16 %v9515_v14 }
 0x191   : > { %8774 = vmatprep.mubr.msk.bf16.mxu0 %vm3424_vm8, %v3201_v57  ;;  %v9512_v59 = vunpack.i.h.bf16 %v9510_v38  ;;  %v9511_v60 = vunpack.i.l.bf16 %v9510_v38  ;;  %v3209_v20 = vor.u32 %v3208_v48, %v3205_v22  ;;  %v3214_v18 = vrot.slane %v3212_v29, 3 }
 0x192   : > { %v3039_v39 = vsel %vm3008_vm6, %v2973_v51, %v9516_v61  ;;  %v3040_v41 = vsel %vm3008_vm6, %v2974_v50, %v9517_v45  ;;  %v3215_v17 = vshll.u32 %v11895_v35, 16  ;;  %v3221_v6 = vshrl.u32 %v11907_v19, 16  ;;  %v15285_v45 = vld [vmem:[#allocation11_spill] sm:$0xff] }
 0x193   : > { %v2976_v49 = vsel %vm2942_vm5, %v11438_v63, %v9512_v59  ;;  %v2975_v40 = vsel %vm2942_vm5, %v11435_v9, %v9511_v60  ;;  %v11945_v16 = vpack.c.bf16 %v3040_v41, %v3039_v39  ;;  %v9525_v8 = vpop.permute.xlu0 %9524  ;;  %v3210_v13 = vsel %vm3112_vm7, %v3200_v31, %v3209_v20  ;;  %v15282_v9 = vld [vmem:[#allocation7_spill] sm:$0xff]  ;;  %v15286_v59 = vld [vmem:[#allocation10_spill] sm:$0xff] }
 0x194   : > { %v9520_v33 = vpop.permute.xlu1 %9519  ;;  %v9527_v43 = vunpack.i.h.bf16 %v9525_v8  ;;  %v9526_v23 = vunpack.i.l.bf16 %v9525_v8  ;;  %v3217_v36 = vrot.slane %v3215_v17, 4  ;;  %v3223_v44 = vrot.slane %v3221_v6, 3 }
 0x195   : > { %v9522_v3 = vunpack.i.h.bf16 %v9520_v33  ;;  %v9521_v35 = vunpack.i.l.bf16 %v9520_v33  ;;  %v3224_v4 = vshll.u32 %v11907_v19, 16  ;;  %v3230_v1 = vshrl.u32 %v11920_v7, 16 }
 0x196   : > { %v2978_v63 = vsel %vm2942_vm5, %v11449_v30, %v9527_v43  ;;  %v2977_v32 = vsel %vm2942_vm5, %v15282_v9, %v9526_v23  ;;  %v3218_v52 = vor.u32 %v3217_v36, %v3214_v18  ;;  %v3233_v11 = vshll.u32 %v11920_v7, 16  ;;  %v15287_v9 = vld [vmem:[#allocation12_spill] sm:$0xff] }
 0x197   : > { %v3041_v2 = vsel %vm3008_vm6, %v2975_v40, %v9521_v35  ;;  %v3042_v47 = vsel %vm3008_vm6, %v2976_v49, %v9522_v3  ;;  %v9535_v26 = vpop.permute.xlu0 %9534  ;;  %v3226_v58 = vrot.slane %v3224_v4, 4  ;;  %v3232_v56 = vrot.slane %v3230_v1, 3 }
 0x198   : > { %v3090_v25 = vpack.c.bf16 %v3042_v47, %v3041_v2  ;;  %8775 = vmatmul.mubr.msk.bf16.gmra.mxu0 %vm3424_vm8, %v3210_v13  ;;  %v3219_v19 = vsel %vm3112_vm7, %v3209_v20, %v3218_v52  ;;  %v9530_v15 = vpop.permute.xlu1 %9529  ;;  %v9537_v30 = vunpack.i.h.bf16 %v9535_v26  ;;  %v9536_v12 = vunpack.i.l.bf16 %v9535_v26 }
 0x199   : > { %8778 = vmatprep.mubr.msk.bf16.mxu0 %vm3424_vm8, %v3219_v19  ;;  %v9532_v53 = vunpack.i.h.bf16 %v9530_v15  ;;  %v9531_v28 = vunpack.i.l.bf16 %v9530_v15  ;;  %v3227_v7 = vor.u32 %v3226_v58, %v3223_v44  ;;  %v3235_v55 = vrot.slane %v3233_v11, 4 }
 0x19a   : > { %v3043_v62 = vsel %vm3008_vm6, %v2977_v32, %v9536_v12  ;;  %v3044_v21 = vsel %vm3008_vm6, %v2978_v63, %v9537_v30  ;;  %v3257_v46 = vshrl.u32 %v3090_v25, 16  ;;  %v3260_v42 = vshll.u32 %v3090_v25, 16 }
 0x19b   : > { %v2980_v5 = vsel %vm2942_vm5, %v15283_v27, %v9532_v53  ;;  %v2979_v34 = vsel %vm2942_vm5, %v15284_v54, %v9531_v28  ;;  %v3091_v24 = vpack.c.bf16 %v3044_v21, %v3043_v62  ;;  %v9545_v50 = vpop.permute.xlu0 %9544  ;;  %v3228_v51 = vsel %vm3112_vm7, %v3218_v52, %v3227_v7  ;;  %v15288_v52 = vld [vmem:[#allocation17_spill] sm:$0xff]  ;;  %v15289_v28 = vld [vmem:[#allocation15_spill] sm:$0xff] }
 0x19c   : > { %v9540_v31 = vpop.permute.xlu1 %9539  ;;  %v9547_v29 = vunpack.i.h.bf16 %v9545_v50  ;;  %v9546_v0 = vunpack.i.l.bf16 %v9545_v50  ;;  %v3236_v10 = vor.u32 %v3235_v55, %v3232_v56  ;;  %v3259_v14 = vrot.slane %v3257_v46, 3  ;;  %v15290_v55 = vld [vmem:[#allocation14_spill] sm:$0xff] }
 0x19d   : > { %v9542_v22 = vunpack.i.h.bf16 %v9540_v31  ;;  %v9541_v48 = vunpack.i.l.bf16 %v9540_v31  ;;  %v3262_v57 = vrot.slane %v3260_v42, 4  ;;  %v3266_v38 = vshrl.u32 %v3091_v24, 16 }
 0x19e   : > { %v2982_v61 = vsel %vm2942_vm5, %v15285_v45, %v9547_v29  ;;  %v2981_v60 = vsel %vm2942_vm5, %v15286_v59, %v9546_v0  ;;  %v3237_v20 = vsel %vm3112_vm7, %v3227_v7, %v3236_v10  ;;  %v3269_v18 = vshll.u32 %v3091_v24, 16  ;;  %v15291_v59 = vld [vmem:[#allocation16_spill] sm:$0xff] }
 0x19f   : > { %v3045_v39 = vsel %vm3008_vm6, %v2979_v34, %v9541_v48  ;;  %v3046_v41 = vsel %vm3008_vm6, %v2980_v5, %v9542_v22  ;;  %v9555_v17 = vpop.permute.xlu0 %9554  ;;  %v11974_v6 = vor.u32 %v3262_v57, %v3259_v14  ;;  %v3268_v49 = vrot.slane %v3266_v38, 3 }
 0x1a0   : > { %v3092_v40 = vpack.c.bf16 %v3046_v41, %v3045_v39  ;;  %8779 = vmatmul.mubr.msk.bf16.gmra.mxu0 %vm3424_vm8, %v3228_v51  ;;  %v9550_v8 = vpop.permute.xlu1 %9549  ;;  %v9557_v13 = vunpack.i.h.bf16 %v9555_v17  ;;  %v9556_v33 = vunpack.i.l.bf16 %v9555_v17  ;;  %v3271_v43 = vrot.slane %v3269_v18, 4 }
 0x1a1   : > { %8782 = vmatprep.mubr.msk.bf16.mxu0 %vm3424_vm8, %v3237_v20  ;;  %v9552_v23 = vunpack.i.h.bf16 %v9550_v8  ;;  %v9551_v36 = vunpack.i.l.bf16 %v9550_v8  ;;  %v3239_v44 = vshrl.u32 %v11932_v37, 16  ;;  %v3242_v3 = vshll.u32 %v11932_v37, 16 }
 0x1a2   : > { %v3047_v35 = vsel %vm3008_vm6, %v2981_v60, %v9556_v33  ;;  %v3048_v4 = vsel %vm3008_vm6, %v2982_v61, %v9557_v13  ;;  %v3272_v1 = vor.u32 %v3271_v43, %v3268_v49  ;;  %v3248_v63 = vshrl.u32 %v11945_v16, 16  ;;  %v15292_v60 = vld [vmem:[#allocation21_spill] sm:$0xff] }
 0x1a3   : > { %v2984_v32 = vsel %vm2942_vm5, %v15287_v9, %v9552_v23  ;;  %v2983_v11 = vsel %vm2942_vm5, %v15288_v52, %v9551_v36  ;;  %v3093_v2 = vpack.c.bf16 %v3048_v4, %v3047_v35  ;;  %v9565_v47 = vpop.permute.xlu0 %9564  ;;  %v3241_v26 = vrot.slane %v3239_v44, 3  ;;  %v15293_v44 = vld [vmem:[#allocation19_spill] sm:$0xff]  ;;  %v15294_v35 = vld [vmem:[#allocation18_spill] sm:$0xff] }
 0x1a4   : > { %v9560_v58 = vpop.permute.xlu1 %9559  ;;  %v9567_v56 = vunpack.i.h.bf16 %v9565_v47  ;;  %v9566_v25 = vunpack.i.l.bf16 %v9565_v47  ;;  %v3273_v37 = vsel %vm3112_vm7, %v11974_v6, %v3272_v1  ;;  %v3244_v19 = vrot.slane %v3242_v3, 4 }
 0x1a5   : > { %v9562_v15 = vunpack.i.h.bf16 %v9560_v58  ;;  %v9561_v30 = vunpack.i.l.bf16 %v9560_v58  ;;  %8790 = vmatprep.mubr.msk.bf16.mxu1 %vm3424_vm8, %v3273_v37  ;;  %v3250_v12 = vrot.slane %v3248_v63, 3  ;;  %v3251_v53 = vshll.u32 %v11945_v16, 16 }
 0x1a6   : > { %v2986_v7 = vsel %vm2942_vm5, %v15289_v28, %v9567_v56  ;;  %v2985_v62 = vsel %vm2942_vm5, %v15290_v55, %v9566_v25  ;;  %v3245_v21 = vor.u32 %v3244_v19, %v3241_v26  ;;  %v3275_v46 = vshrl.u32 %v3092_v40, 16 }
 0x1a7   : > { %v3049_v42 = vsel %vm3008_vm6, %v2983_v11, %v9561_v30  ;;  %v3050_v27 = vsel %vm3008_vm6, %v2984_v32, %v9562_v15  ;;  %v3253_v5 = vrot.slane %v3251_v53, 4  ;;  %v9575_v54 = vpop.permute.xlu0 %9574  ;;  %v3278_v34 = vshll.u32 %v3092_v40, 16 }
 0x1a8   : > { %v3094_v24 = vpack.c.bf16 %v3050_v27, %v3049_v42  ;;  %v3246_v50 = vsel %vm3112_vm7, %v3236_v10, %v3245_v21  ;;  %v9570_v51 = vpop.permute.xlu1 %9569  ;;  %v9577_v16 = vunpack.i.h.bf16 %v9575_v54  ;;  %v9576_v31 = vunpack.i.l.bf16 %v9575_v54 }
 0x1a9   : > { %8783 = vmatmul.mubr.msk.bf16.gmra.mxu0 %vm3424_vm8, %v3246_v50  ;;  %v3254_v29 = vor.u32 %v3253_v5, %v3250_v12  ;;  %v9572_v0 = vunpack.i.h.bf16 %v9570_v51  ;;  %v9571_v14 = vunpack.i.l.bf16 %v9570_v51  ;;  %v3277_v22 = vrot.slane %v3275_v46, 3 }
 0x1aa   : > { %v3051_v48 = vsel %vm3008_vm6, %v2985_v62, %v9576_v31  ;;  %v3052_v57 = vsel %vm3008_vm6, %v2986_v7, %v9577_v16  ;;  %v3280_v38 = vrot.slane %v3278_v34, 4  ;;  %v3284_v45 = vshrl.u32 %v3093_v2, 16  ;;  %v15295_v7 = vld [vmem:[#allocation20_spill] sm:$0xff]  ;;  %v15296_v62 = vld [vmem:[#allocation25_spill] sm:$0xff] }
 0x1ab   : > { %v3255_v61 = vsel %vm3112_vm7, %v3245_v21, %v3254_v29  ;;  %v2988_v10 = vsel %vm2942_vm5, %v15291_v59, %v9572_v0  ;;  %v2987_v20 = vsel %vm2942_vm5, %v15292_v60, %v9571_v14  ;;  %v3095_v18 = vpack.c.bf16 %v3052_v57, %v3051_v48  ;;  %v9585_v39 = vpop.permute.xlu0 %9584  ;;  %v15297_v0 = vld [vmem:[#allocation23_spill] sm:$0xff] }
 0x1ac   : > { %8786 = vmatprep.mubr.msk.bf16.mxu0 %vm3424_vm8, %v3255_v61  ;;  %v3281_v41 = vor.u32 %v3280_v38, %v3277_v22  ;;  %v9580_v17 = vpop.permute.xlu1 %9579  ;;  %v9587_v49 = vunpack.i.h.bf16 %v9585_v39  ;;  %v9586_v40 = vunpack.i.l.bf16 %v9585_v39  ;;  %v3286_v8 = vrot.slane %v3284_v45, 3  ;;  %v15298_v22 = vld [vmem:[#allocation22_spill] sm:$0xff] }
 0x1ad   : > { %v9582_v13 = vunpack.i.h.bf16 %v9580_v17  ;;  %v9581_v33 = vunpack.i.l.bf16 %v9580_v17  ;;  %v3287_v43 = vshll.u32 %v3093_v2, 16  ;;  %v3264_v23 = vsel %vm3112_vm7, %v3254_v29, %v11974_v6 }
 0x1ae   : > { %v3282_v36 = vsel %vm3112_vm7, %v3272_v1, %v3281_v41  ;;  %v2990_v3 = vsel %vm2942_vm5, %v15293_v44, %v9587_v49  ;;  %v2989_v4 = vsel %vm2942_vm5, %v15294_v35, %v9586_v40  ;;  %v3293_v63 = vshrl.u32 %v3094_v24, 16 }
 0x1af   : > { %8791 = vmatmul.mubr.msk.bf16.vlgmr.msra.gmra.mxu1 %vm3424_vm8, %v3282_v36  ;;  %v3053_v9 = vsel %vm3008_vm6, %v2987_v20, %v9581_v33  ;;  %v3054_v32 = vsel %vm3008_vm6, %v2988_v10, %v9582_v13  ;;  %v3289_v52 = vrot.slane %v3287_v43, 4  ;;  %v9595_v11 = vpop.permute.xlu0 %9594  ;;  %v3296_v2 = vshll.u32 %v3094_v24, 16  ;;  %v15299_v36 = vld [vmem:[#allocation52_spill] sm:$0xff] }
 0x1b0   : > { %v3096_v47 = vpack.c.bf16 %v3054_v32, %v3053_v9  ;;  %v9590_v6 = vpop.permute.xlu1 %9589  ;;  %v9597_v26 = vunpack.i.h.bf16 %v9595_v11  ;;  %v9596_v1 = vunpack.i.l.bf16 %v9595_v11  ;;  %v3295_v58 = vrot.slane %v3293_v63, 3 }
 0x1b1   : > { %v3290_v56 = vor.u32 %v3289_v52, %v3286_v8  ;;  %8787 = vmatmul.mubr.msk.bf16.gmra.mxu0 %vm3424_vm8, %v3264_v23  ;;  %v9592_v25 = vunpack.i.h.bf16 %v9590_v6  ;;  %v9591_v37 = vunpack.i.l.bf16 %v9590_v6  ;;  %v3298_v19 = vrot.slane %v3296_v2, 4 }
 0x1b2   : > { %v3055_v15 = vsel %vm3008_vm6, %v2989_v4, %v9596_v1  ;;  %v3056_v30 = vsel %vm3008_vm6, %v2990_v3, %v9597_v26  ;;  %v3302_v12 = vshrl.u32 %v3095_v18, 16  ;;  %v3305_v53 = vshll.u32 %v3095_v18, 16  ;;  %v15300_v3 = vld [vmem:[#allocation53_spill] sm:$0xff] }
 0x1b3   : > { %v3291_v28 = vsel %vm3112_vm7, %v3281_v41, %v3290_v56  ;;  %v2992_v55 = vsel %vm2942_vm5, %v15295_v7, %v9592_v25  ;;  %v2991_v21 = vsel %vm2942_vm5, %v15296_v62, %v9591_v37  ;;  %v3097_v46 = vpack.c.bf16 %v3056_v30, %v3055_v15  ;;  %v9605_v42 = vpop.permute.xlu0 %9604  ;;  %v15302_v37 = vld [vmem:[#allocation24_spill] sm:$0xff] }
 0x1b4   : > { %8794 = vmatprep.mubr.msk.bf16.mxu1 %vm3424_vm8, %v3291_v28  ;;  %v3299_v27 = vor.u32 %v3298_v19, %v3295_v58  ;;  %v9600_v5 = vpop.permute.xlu1 %9599  ;;  %v9607_v54 = vunpack.i.h.bf16 %v9605_v42  ;;  %v9606_v34 = vunpack.i.l.bf16 %v9605_v42  ;;  %v3304_v24 = vrot.slane %v3302_v12, 3 }
 0x1b5   : > { %v9602_v50 = vunpack.i.h.bf16 %v9600_v5  ;;  %v9601_v51 = vunpack.i.l.bf16 %v9600_v5  ;;  %v3307_v16 = vrot.slane %v3305_v53, 4  ;;  %v3311_v31 = vshrl.u32 %v3096_v47, 16 }
 0x1b6   : > { %v3300_v29 = vsel %vm3112_vm7, %v3290_v56, %v3299_v27  ;;  %v2994_v14 = vsel %vm2942_vm5, %v15297_v0, %v9607_v54  ;;  %v2993_v48 = vsel %vm2942_vm5, %v15298_v22, %v9606_v34  ;;  %v3314_v57 = vshll.u32 %v3096_v47, 16  ;;  %v15301_v56 = vld [vmem:[#allocation29_spill] sm:$0xff] }
 0x1b7   : > { %8795 = vmatmul.mubr.msk.bf16.gmra.mxu1 %vm3424_vm8, %v3300_v29  ;;  %v3057_v38 = vsel %vm3008_vm6, %v2991_v21, %v9601_v51  ;;  %v3058_v45 = vsel %vm3008_vm6, %v2992_v55, %v9602_v50  ;;  %v3308_v61 = vor.u32 %v3307_v16, %v3304_v24  ;;  %v9615_v59 = vpop.permute.xlu0 %9614  ;;  %v3313_v10 = vrot.slane %v3311_v31, 3  ;;  %v15303_v29 = vld [vmem:[#allocation26_spill] sm:$0xff] }
 0x1b8   : > { %v3098_v60 = vpack.c.bf16 %v3058_v45, %v3057_v38  ;;  %v9610_v20 = vpop.permute.xlu1 %9609  ;;  %v9617_v18 = vunpack.i.h.bf16 %v9615_v59  ;;  %v9616_v39 = vunpack.i.l.bf16 %v9615_v59  ;;  %v3316_v41 = vrot.slane %v3314_v57, 4 }
 0x1b9   : > { %v3309_v17 = vsel %vm3112_vm7, %v3299_v27, %v3308_v61  ;;  %v9612_v49 = vunpack.i.h.bf16 %v9610_v20  ;;  %v9611_v40 = vunpack.i.l.bf16 %v9610_v20  ;;  %v3320_v8 = vshrl.u32 %v3097_v46, 16 }
 0x1ba   : > { %8798 = vmatprep.mubr.msk.bf16.mxu1 %vm3424_vm8, %v3309_v17  ;;  %v3059_v13 = vsel %vm3008_vm6, %v2993_v48, %v9616_v39  ;;  %v3060_v33 = vsel %vm3008_vm6, %v2994_v14, %v9617_v18  ;;  %v3317_v43 = vor.u32 %v3316_v41, %v3313_v10  ;;  %v3323_v23 = vshll.u32 %v3097_v46, 16  ;;  %v15304_v14 = vld [vmem:[#allocation27_spill] sm:$0xff] }
 0x1bb   : > { %v2996_v44 = vsel %vm2942_vm5, %v15299_v36, %v9612_v49  ;;  %v2995_v35 = vsel %vm2942_vm5, %v15300_v3, %v9611_v40  ;;  %v3099_v4 = vpack.c.bf16 %v3060_v33, %v3059_v13  ;;  %v9625_v63 = vpop.permute.xlu0 %9624  ;;  %v3322_v9 = vrot.slane %v3320_v8, 3  ;;  %v15305_v17 = vld [vmem:[#allocation55_spill] sm:$0xff]  ;;  %v15306_v40 = vld [vmem:[#allocation54_spill] sm:$0xff] }
 0x1bc   : > { %v3318_v32 = vsel %vm3112_vm7, %v3308_v61, %v3317_v43  ;;  %v9620_v52 = vpop.permute.xlu1 %9619  ;;  %v9627_v11 = vunpack.i.h.bf16 %v9625_v63  ;;  %v9626_v2 = vunpack.i.l.bf16 %v9625_v63  ;;  %v3325_v47 = vrot.slane %v3323_v23, 4 }
 0x1bd   : > { %v9622_v6 = vunpack.i.h.bf16 %v9620_v52  ;;  %v9621_v26 = vunpack.i.l.bf16 %v9620_v52  ;;  %v3329_v1 = vshrl.u32 %v3098_v60, 16  ;;  %v3332_v58 = vshll.u32 %v3098_v60, 16 }
 0x1be   : > { %v2998_v25 = vsel %vm2942_vm5, %v15301_v56, %v9627_v11  ;;  %v2997_v19 = vsel %vm2942_vm5, %v15302_v37, %v9626_v2  ;;  %v3326_v15 = vor.u32 %v3325_v47, %v3322_v9  ;;  %v3338_v30 = vshrl.u32 %v3099_v4, 16 }
 0x1bf   : > { %8799 = vmatmul.mubr.msk.bf16.gmra.mxu1 %vm3424_vm8, %v3318_v32  ;;  %v3061_v12 = vsel %vm3008_vm6, %v2995_v35, %v9621_v26  ;;  %v3062_v53 = vsel %vm3008_vm6, %v2996_v44, %v9622_v6  ;;  %v9635_v28 = vpop.permute.xlu0 %9634  ;;  %v3331_v7 = vrot.slane %v3329_v1, 3  ;;  %v3334_v55 = vrot.slane %v3332_v58, 4 }
 0x1c0   : > { %v3100_v62 = vpack.c.bf16 %v3062_v53, %v3061_v12  ;;  %v3327_v21 = vsel %vm3112_vm7, %v3317_v43, %v3326_v15  ;;  %v9630_v46 = vpop.permute.xlu1 %9629  ;;  %v9637_v42 = vunpack.i.h.bf16 %v9635_v28  ;;  %v9636_v27 = vunpack.i.l.bf16 %v9635_v28 }
 0x1c1   : > { %8802 = vmatprep.mubr.msk.bf16.mxu1 %vm3424_vm8, %v3327_v21  ;;  %v9632_v5 = vunpack.i.h.bf16 %v9630_v46  ;;  %v9631_v54 = vunpack.i.l.bf16 %v9630_v46  ;;  %v3335_v34 = vor.u32 %v3334_v55, %v3331_v7  ;;  %v3340_v24 = vrot.slane %v3338_v30, 3  ;;  %v15307_v21 = vld [vmem:[#allocation28_spill] sm:$0xff] }
 0x1c2   : > { %v3063_v50 = vsel %vm3008_vm6, %v2997_v19, %v9636_v27  ;;  %v3064_v51 = vsel %vm3008_vm6, %v2998_v25, %v9637_v42  ;;  %v3341_v16 = vshll.u32 %v3099_v4, 16  ;;  %v3347_v31 = vshrl.u32 %v3100_v62, 16  ;;  %v15308_v42 = vld [vmem:[#allocation33_spill] sm:$0xff] }
 0x1c3   : > { %v3000_v0 = vsel %vm2942_vm5, %v15303_v29, %v9632_v5  ;;  %v2999_v22 = vsel %vm2942_vm5, %v15304_v14, %v9631_v54  ;;  %v3101_v48 = vpack.c.bf16 %v3064_v51, %v3063_v50  ;;  %v3336_v57 = vsel %vm3112_vm7, %v3326_v15, %v3335_v34  ;;  %v9645_v38 = vpop.permute.xlu0 %9644 }
 0x1c4   : > { %v9640_v45 = vpop.permute.xlu1 %9639  ;;  %v9647_v61 = vunpack.i.h.bf16 %v9645_v38  ;;  %v9646_v59 = vunpack.i.l.bf16 %v9645_v38  ;;  %v3343_v10 = vrot.slane %v3341_v16, 4  ;;  %v3349_v60 = vrot.slane %v3347_v31, 3  ;;  %v15310_v38 = vld [vmem:[#allocation30_spill] sm:$0xff] }
 0x1c5   : > { %v9642_v20 = vunpack.i.h.bf16 %v9640_v45  ;;  %v9641_v18 = vunpack.i.l.bf16 %v9640_v45  ;;  %v3350_v39 = vshll.u32 %v3100_v62, 16  ;;  %v3356_v41 = vshrl.u32 %v3101_v48, 16 }
 0x1c6   : > { %v3002_v49 = vsel %vm2942_vm5, %v15305_v17, %v9647_v61  ;;  %v3001_v8 = vsel %vm2942_vm5, %v15306_v40, %v9646_v59  ;;  %v3344_v13 = vor.u32 %v3343_v10, %v3340_v24  ;;  %v3359_v33 = vshll.u32 %v3101_v48, 16  ;;  %v15309_v48 = vld [vmem:[#allocation31_spill] sm:$0xff] }
 0x1c7   : > { %8803 = vmatmul.mubr.msk.bf16.gmra.mxu1 %vm3424_vm8, %v3336_v57  ;;  %v3065_v43 = vsel %vm3008_vm6, %v2999_v22, %v9641_v18  ;;  %v3066_v23 = vsel %vm3008_vm6, %v3000_v0, %v9642_v20  ;;  %v9655_v36 = vpop.permute.xlu0 %9654  ;;  %v3352_v44 = vrot.slane %v3350_v39, 4  ;;  %v3358_v3 = vrot.slane %v3356_v41, 3  ;;  %v15311_v39 = vld [vmem:[#allocation57_spill] sm:$0xff] }
 0x1c8   : > { %v3102_v35 = vpack.c.bf16 %v3066_v23, %v3065_v43  ;;  %v3345_v4 = vsel %vm3112_vm7, %v3335_v34, %v3344_v13  ;;  %v9650_v63 = vpop.permute.xlu1 %9649  ;;  %v9657_v9 = vunpack.i.h.bf16 %v9655_v36  ;;  %v9656_v32 = vunpack.i.l.bf16 %v9655_v36 }
 0x1c9   : > { %8806 = vmatprep.mubr.msk.bf16.mxu1 %vm3424_vm8, %v3345_v4  ;;  %v9652_v52 = vunpack.i.h.bf16 %v9650_v63  ;;  %v9651_v11 = vunpack.i.l.bf16 %v9650_v63  ;;  %v3353_v2 = vor.u32 %v3352_v44, %v3349_v60  ;;  %v3361_v47 = vrot.slane %v3359_v33, 4  ;;  %v12093_v4 = vld [vmem:[#allocation3 + $0x240] sm:$0xff]  ;;  %v12095_v63 = vld [vmem:[#allocation3 + $0x248] sm:$0xff] }
 0x1ca   : > { %v3067_v6 = vsel %vm3008_vm6, %v3001_v8, %v9656_v32  ;;  %v3068_v26 = vsel %vm3008_vm6, %v3002_v49, %v9657_v9  ;;  %v3365_v1 = vshrl.u32 %v3102_v35, 16  ;;  %v3368_v58 = vshll.u32 %v3102_v35, 16  ;;  %15312 = vst [vmem:[#allocation32_spill] sm:$0xff] %v12095_v63  ;;  %v12097_v32 = vld [vmem:[#allocation3 + $0x250] sm:$0xff] }
 0x1cb   : > { %v3103_v56 = vpack.c.bf16 %v3068_v26, %v3067_v6  ;;  %v3354_v25 = vsel %vm3112_vm7, %v3344_v13, %v3353_v2  ;;  %v9665_v37 = vpop.permute.xlu0 %9664  ;;  %v3362_v12 = vor.u32 %v3361_v47, %v3358_v3  ;;  %v3004_v46 = vsel %vm2942_vm5, %v15307_v21, %v9652_v52  ;;  %v12103_v26 = vld [vmem:[#allocation3 + $0x238] sm:$0xff] }
 0x1cc   : > { %v9660_v19 = vpop.permute.xlu1 %9659  ;;  %v9667_v15 = vunpack.i.h.bf16 %v9665_v37  ;;  %v9666_v30 = vunpack.i.l.bf16 %v9665_v37  ;;  %v3367_v53 = vrot.slane %v3365_v1, 3  ;;  %v3370_v55 = vrot.slane %v3368_v58, 4  ;;  %v10394_v37 = vld [vmem:[#allocation3 + $0x28] sm:$0xff] }
 0x1cd   : > { %v9662_v28 = vunpack.i.h.bf16 %v9660_v19  ;;  %v9661_v7 = vunpack.i.l.bf16 %v9660_v19  ;;  %v3374_v62 = vshrl.u32 %v3103_v56, 16  ;;  %v3003_v27 = vsel %vm2942_vm5, %v15308_v42, %v9651_v11 }
 0x1ce   : > { %v3363_v5 = vsel %vm3112_vm7, %v3353_v2, %v3362_v12  ;;  %v3377_v54 = vshll.u32 %v3103_v56, 16  ;;  %v3371_v51 = vor.u32 %v3370_v55, %v3367_v53  ;;  %v3006_v57 = vsel %vm2942_vm5, %v15309_v48, %v9667_v15  ;;  %v12099_v2 = vld [vmem:[#allocation3 + $0x30] sm:$0xff] }
 0x1cf   : > { %8807 = vmatmul.mubr.msk.bf16.gmra.mxu1 %vm3424_vm8, %v3354_v25  ;;  %v3069_v34 = vsel %vm3008_vm6, %v3003_v27, %v9661_v7  ;;  %v3070_v24 = vsel %vm3008_vm6, %v3004_v46, %v9662_v28  ;;  %v9670_v50 = vpop.permute.xlu0 %9669  ;;  %v3376_v16 = vrot.slane %v3374_v62, 3  ;;  %v3005_v45 = vsel %vm2942_vm5, %v15310_v38, %v9666_v30  ;;  %v12116_v7 = vld [vmem:[#allocation3 + $0x38] sm:$0xff] }
 0x1d0   : > { %v3104_v31 = vpack.c.bf16 %v3070_v24, %v3069_v34  ;;  %8810 = vmatprep.mubr.msk.bf16.mxu1 %vm3424_vm8, %v3363_v5  ;;  %v2677_v29 = vpop.permute.xlu1 %2676  ;;  %v9672_v0 = vunpack.i.h.bf16 %v9670_v50  ;;  %v9671_v14 = vunpack.i.l.bf16 %v9670_v50  ;;  %v3379_v22 = vrot.slane %v3377_v54, 4  ;;  %v15313_v62 = vld [vmem:[#allocation51_spill] sm:$0xff] }
 0x1d1   : > { %v3007_v41 = vsel %vm2942_vm5, %v15311_v39, %v2677_v29  ;;  %v3372_v17 = vsel %vm3112_vm7, %v3362_v12, %v3371_v51  ;;  %v4573_v47 = vrot.slane %v12093_v4, 1  ;;  %v4575_v6 = vrot.slane %v12095_v63, 1  ;;  %v15315_v29 = vld [vmem:[#allocation37_spill] sm:$0xff] }
 0x1d2   : > { %v3071_v61 = vsel %vm3008_vm6, %v3005_v45, %v9671_v14  ;;  %v3072_v59 = vsel %vm3008_vm6, %v3006_v57, %v9672_v0  ;;  %v3380_v10 = vor.u32 %v3379_v22, %v3376_v16  ;;  %v3383_v60 = vshrl.u32 %v3104_v31, 16 }
 0x1d3   : > { %v3105_v20 = vpack.c.bf16 %v3072_v59, %v3071_v61  ;;  %v3386_v18 = vshll.u32 %v3104_v31, 16  ;;  %v15044_v58 = vrot.slane %v12097_v32, 1  ;;  %v4576_v25 = vsel %vm1606_vm0, %v4573_v47, %v4575_v6 }
 0x1d4   : > { %v2876_v49 = vpop.permute.xlu1 %2875  ;;  %v3381_v40 = vsel %vm3112_vm7, %v3371_v51, %v3380_v10  ;;  %v3385_v8 = vrot.slane %v3383_v60, 3  ;;  %v4439_v19 = vrot.slane %v10394_v37, 1  ;;  %v4441_v15 = vrot.slane %v12099_v2, 1 }
 0x1d5   : > { %v3073_v13 = vsel %vm3008_vm6, %v3007_v41, %v2876_v49  ;;  %v3388_v33 = vrot.slane %v3386_v18, 4  ;;  %v3392_v43 = vshrl.u32 %v3105_v20, 16  ;;  %v3395_v23 = vshll.u32 %v3105_v20, 16  ;;  %v12157_v20 = vld [vmem:[%s14910_s2] ss:$0 sm:$0xff] }
 0x1d6   : > { %v3106_v36 = vpack.c.bf16 %v3073_v13, %v3073_v13  ;;  %v4578_v53 = vsel %vm1606_vm0, %v4575_v6, %v15044_v58  ;;  %v15045_v28 = vrot.slane %v12103_v26, 2  ;;  %v15314_v21 = vrot.slane %v15313_v62, 1 }
 0x1d7   : > { %8811 = vmatmul.mubr.msk.bf16.gmra.mxu1 %vm3424_vm8, %v3372_v17  ;;  %v3394_v44 = vrot.slane %v3392_v43, 3  ;;  %v3397_v3 = vrot.slane %v3395_v23, 4  ;;  %v3389_v35 = vor.u32 %v3388_v33, %v3385_v8  ;;  %v9688_v55 = vpack.i.bf16 %v4578_v53, %v4576_v25  ;;  %v12163_v17 = vld [vmem:[%s14911_s3] ss:$0 sm:$0xff] }
 0x1d8   : > { %8814 = vmatprep.mubr.msk.bf16.mxu1 %vm3424_vm8, %v3381_v40  ;;  %v3401_v52 = vshrl.u32 %v3106_v36, 16  ;;  %v3404_v11 = vshll.u32 %v3106_v36, 16  ;;  %v4440_v46 = vsel %vm1606_vm0, %v15314_v21, %v4439_v19  ;;  %v4442_v42 = vsel %vm1606_vm0, %v4439_v19, %v4441_v15 }
 0x1d9   : > { %v3398_v9 = vor.u32 %v3397_v3, %v3394_v44  ;;  %v3390_v1 = vsel %vm3112_vm7, %v3380_v10, %v3389_v35  ;;  %v9673_v27 = vpack.i.bf16 %v4442_v42, %v4440_v46  ;;  %v4936_v5 = vrot.slane %v12093_v4, 2  ;;  %9689 = vrot.lane.b32.xlu1 %v9688_v55, %s10455_s20 }
 0x1da   : > { %v3403_v30 = vrot.slane %v3401_v52, 3  ;;  %v3406_v12 = vrot.slane %v3404_v11, 4  ;;  %v15043_v54 = vrot.slane %v12095_v63, 2  ;;  %v4804_v34 = vrot.slane %v12099_v2, 2 }
 0x1db   : > { %v3399_v56 = vsel %vm3112_vm7, %v3389_v35, %v3398_v9  ;;  %v4806_v24 = vrot.slane %v12116_v7, 2  ;;  %9674 = vrot.lane.b32.xlu0 %v9673_v27, %s10455_s20  ;;  %v4937_v51 = vsel %vm1970_vm1, %v15045_v28, %v4936_v5  ;;  %v15316_v0 = vrot.slane %v15315_v29, 2 }
 0x1dc   : > { %v3407_v50 = vor.u32 %v3406_v12, %v3403_v30  ;;  %v4939_v16 = vsel %vm1970_vm1, %v4936_v5, %v15043_v54  ;;  %v361_v38 = vlaneseq }
 0x1dd   : > { %v9693_v31 = vpack.i.bf16 %v4939_v16, %v4937_v51  ;;  %v4805_v14 = vsel %vm1970_vm1, %v15316_v0, %v4804_v34  ;;  %v4807_v22 = vsel %vm1970_vm1, %v4804_v34, %v4806_v24  ;;  %v4443_v51 = vrot.slane %v12116_v7, 1 }
 0x1de   : > { %v9683_v48 = vpack.i.bf16 %v4807_v22, %v4805_v14  ;;  %v3408_v57 = vsel %vm3112_vm7, %v3398_v9, %v3407_v50  ;;  %v12148_v45 = vshrl.u32 %v361_v38, 7 }
 0x1df   : > { %8815 = vmatmul.mubr.msk.bf16.gmra.mxu1 %vm3424_vm8, %v3390_v1  ;;  %9694 = vrot.lane.b32.xlu1 %v9693_v31, %s10459_s29 }
 0x1e0   : > { %8818 = vmatprep.mubr.msk.bf16.mxu1 %vm3424_vm8, %v3399_v56  ;;  %9684 = vrot.lane.b32.xlu0 %v9683_v48, %s10459_s29  ;;  %v364_v10 = vadd.s32 16, %v12148_v45  ;;  %v430_v8 = vand.u32 31, %v12148_v45  ;;  %v368_v3 = vadd.s32 48, %v12148_v45  ;;  %v366_v1 = vadd.s32 32, %v12148_v45 }
 0x1e1   : > { %v372_v46 = vadd.s32 80, %v12148_v45  ;;  %v370_v34 = vadd.s32 64, %v12148_v45  ;;  %v376_v2 = vadd.s32 112, %v12148_v45 }
 0x1e2   : > { %v444_v39 = vand.u32 31, %v364_v10  ;;  %vm1194_vm10 = vcmp.ge.s32.totalorder %v430_v8, 1  ;;  %v472_v19 = vand.u32 31, %v368_v3  ;;  %v458_v62 = vand.u32 31, %v366_v1 }
 0x1e3   : > { %v500_v0 = vand.u32 31, %v372_v46 }
 0x1e4   : > { %vm1260_vm9 = vcmp.le.s32.totalorder %v444_v39, 16  ;;  %vm1264_vm11 = vcmp.le.s32.totalorder %v472_v19, 16  ;;  %vm1198_vm12 = vcmp.ge.s32.totalorder %v458_v62, 1 }
 0x1e5   : > { %vm12203_vm13 = vcmp.le.s32.totalorder %v500_v0, 16 }
 0x1e7   : > { %8819 = vmatmul.mubr.msk.bf16.gmra.mxu1 %vm3424_vm8, %v3408_v57 }
 0x237   : > { %v8760_v61 = vpop.f32.mrf.mxu0 }
 0x238   : > { %3816 = vst.msk [vmem:[#allocation2 + $0x10] sm:$0xff] %vm2409_vm2, %v8760_v61  ;;  %v486_v61 = vand.u32 31, %v370_v34 }
 0x239   : > { %v3559_v59 = vpop.f32.mrf.mxu0 }
 0x23a   : > { %3814 = vst.msk [vmem:[#allocation2] sm:$0xff] %vm2409_vm2, %v3559_v59  ;;  %vm12218_vm14 = vcmp.ge.s32.totalorder %v486_v61, 1 }
 0x23b   : > { %v8761_v60 = vpop.f32.mrf.mxu0 }
 0x23c   : > { %3817 = vst.msk [vmem:[#allocation2 + $0x18] sm:$0xff] %vm2409_vm2, %v8761_v60  ;;  %v4444_v60 = vsel %vm1606_vm0, %v4441_v15, %v4443_v51 }
 0x23d   : > { %v3562_v18 = vpop.f32.mrf.mxu0 }
 0x23e   : > { %3815 = vst.msk [vmem:[#allocation2 + $0x8] sm:$0xff] %vm2409_vm2, %v3562_v18 }
 0x23f   : > { %v3880_v41 = vld [vmem:[#allocation2 + $0x10] sm:$0xff] }
 0x240   : > { %v3951_v49 = vmul.f32 %v12157_v20, %v3880_v41  ;;  %v8764_v40 = vpop.f32.mrf.mxu0 }
 0x241   : > { %v3878_v13 = vld [vmem:[#allocation2] sm:$0xff]  ;;  %3820 = vst.msk [vmem:[#allocation2 + $0x30] sm:$0xff] %vm2409_vm2, %v8764_v40 }
 0x242   : > { %v4022_v33 = vadd.f32 %v12163_v17, %v3951_v49  ;;  %v3949_v43 = vmul.f32 %v12157_v20, %v3878_v13  ;;  %v3575_v23 = vpop.f32.mrf.mxu0 }
 0x243   : > { %3818 = vst.msk [vmem:[#allocation2 + $0x20] sm:$0xff] %vm2409_vm2, %v3575_v23 }
 0x244   : > { %v4086_v36 = vmax.f32 %v4022_v33, 0.0  ;;  %v4020_v44 = vadd.f32 %v12163_v17, %v3949_v43  ;;  %v8765_v35 = vpop.f32.mrf.mxu0 }
 0x245   : > { %v3879_v9 = vld [vmem:[#allocation2 + $0x8] sm:$0xff]  ;;  %3821 = vst.msk [vmem:[#allocation2 + $0x38] sm:$0xff] %vm2409_vm2, %v8765_v35 }
 0x246   : > { %v4150_v52 = vsel %vm1260_vm9, %v4086_v36, 0.0  ;;  %v4084_v11 = vmax.f32 %v4020_v44, 0.0  ;;  %v3950_v6 = vmul.f32 %v12157_v20, %v3879_v9  ;;  %v3578_v56 = vpop.f32.mrf.mxu0 }
 0x247   : > { %4230 = vst.msk [vmem:[#allocation3 + $0x50] sm:$0xff] %vm2409_vm2, %v4150_v52  ;;  %3819 = vst.msk [vmem:[#allocation2 + $0x28] sm:$0xff] %vm2409_vm2, %v3578_v56 }
 0x248   : > { %v4148_v25 = vsel %vm1194_vm10, %v4084_v11, 0.0  ;;  %v4021_v37 = vadd.f32 %v12163_v17, %v3950_v6  ;;  %v3884_v30 = vld [vmem:[#allocation2 + $0x30] sm:$0xff]  ;;  %v8768_v12 = vpop.f32.mrf.mxu0 }
 0x249   : > { %4228 = vst.msk [vmem:[#allocation3 + $0x40] sm:$0xff] %vm2409_vm2, %v4148_v25  ;;  %v3955_v53 = vmul.f32 %v12157_v20, %v3884_v30  ;;  %3824 = vst.msk [vmem:[#allocation2 + $0x50] sm:$0xff] %vm2409_vm2, %v8768_v12 }
 0x24a   : > { %v4085_v55 = vmax.f32 %v4021_v37, 0.0  ;;  %v3882_v21 = vld [vmem:[#allocation2 + $0x20] sm:$0xff]  ;;  %v3591_v42 = vpop.f32.mrf.mxu0  ;;  %v374_v37 = vadd.s32 96, %v12148_v45 }
 0x24b   : > { %v4026_v27 = vadd.f32 %v12163_v17, %v3955_v53  ;;  %v3953_v5 = vmul.f32 %v12157_v20, %v3882_v21  ;;  %3822 = vst.msk [vmem:[#allocation2 + $0x40] sm:$0xff] %vm2409_vm2, %v3591_v42 }
 0x24c   : > { %4229 = vst.msk [vmem:[#allocation3 + $0x48] sm:$0xff] %vm2409_vm2, %v4085_v55  ;;  %v8769_v50 = vpop.f32.mrf.mxu0 }
 0x24d   : > { %v4090_v16 = vmax.f32 %v4026_v27, 0.0  ;;  %v4024_v31 = vadd.f32 %v12163_v17, %v3953_v5  ;;  %3825 = vst.msk [vmem:[#allocation2 + $0x58] sm:$0xff] %vm2409_vm2, %v8769_v50  ;;  %v528_v5 = vand.u32 31, %v376_v2 }
 0x24e   : > { %v3883_v29 = vld [vmem:[#allocation2 + $0x28] sm:$0xff]  ;;  %v3594_v14 = vpop.f32.mrf.mxu0  ;;  %v12200_v40 = vld [vmem:[#allocation3 + $0x50] sm:$0xff] }
 0x24f   : > { %v4154_v22 = vsel %vm1264_vm11, %v4090_v16, 0.0  ;;  %v4088_v48 = vmax.f32 %v4024_v31, 0.0  ;;  %v3954_v57 = vmul.f32 %v12157_v20, %v3883_v29  ;;  %3823 = vst.msk [vmem:[#allocation2 + $0x48] sm:$0xff] %vm2409_vm2, %v3594_v14  ;;  %v4449_v11 = vrot.slane %v12200_v40, 1 }
 0x250   : > { %4234 = vst.msk [vmem:[#allocation3 + $0x70] sm:$0xff] %vm2409_vm2, %v4154_v22  ;;  %v3888_v38 = vld [vmem:[#allocation2 + $0x50] sm:$0xff]  ;;  %v8772_v59 = vpop.f32.mrf.mxu0  ;;  %v4297_v10 = vld [vmem:[#allocation3 + $0x40] sm:$0xff]  ;;  %v514_v31 = vand.u32 31, %v374_v37  ;;  %vm1272_vm15 = vcmp.le.s32.totalorder %v528_v5, 16 }
 0x251   : > { %v4152_v18 = vsel %vm1198_vm12, %v4088_v48, 0.0  ;;  %v4025_v39 = vadd.f32 %v12163_v17, %v3954_v57  ;;  %v3959_v41 = vmul.f32 %v12157_v20, %v3888_v38  ;;  %3828 = vst.msk [vmem:[#allocation2 + $0x70] sm:$0xff] %vm2409_vm2, %v8772_v59  ;;  %v4445_v49 = vrot.slane %v4297_v10, 1 }
 0x252   : > { %4232 = vst.msk [vmem:[#allocation3 + $0x60] sm:$0xff] %vm2409_vm2, %v4152_v18  ;;  %v3886_v13 = vld [vmem:[#allocation2 + $0x40] sm:$0xff]  ;;  %v3607_v15 = vpop.f32.mrf.mxu0  ;;  %v4808_v33 = vrot.slane %v4297_v10, 2  ;;  %v380_v57 = vadd.s32 144, %v12148_v45  ;;  %vm1206_vm5 = vcmp.ge.s32.totalorder %v514_v31, 1 }
 0x253   : > { %v4089_v43 = vmax.f32 %v4025_v39, 0.0  ;;  %v4030_v23 = vadd.f32 %v12163_v17, %v3959_v41  ;;  %v3957_v36 = vmul.f32 %v12157_v20, %v3886_v13  ;;  %3826 = vst.msk [vmem:[#allocation2 + $0x60] sm:$0xff] %vm2409_vm2, %v3607_v15  ;;  %v4446_v44 = vsel %vm1606_vm0, %v4443_v51, %v4445_v49  ;;  %v12212_v3 = vld [vmem:[#allocation3 + $0x48] sm:$0xff] }
 0x254   : > { %v8773_v35 = vpop.f32.mrf.mxu0  ;;  %v9698_v9 = vpack.i.bf16 %v4446_v44, %v4444_v60  ;;  %v4447_v52 = vrot.slane %v12212_v3, 1  ;;  %v4810_v6 = vrot.slane %v12212_v3, 2  ;;  %v4809_v55 = vsel %vm1970_vm1, %v4806_v24, %v4808_v33 }
 0x255   : > { %4233 = vst.msk [vmem:[#allocation3 + $0x68] sm:$0xff] %vm2409_vm2, %v4089_v43  ;;  %v4094_v1 = vmax.f32 %v4030_v23, 0.0  ;;  %v4028_v25 = vadd.f32 %v12163_v17, %v3957_v36  ;;  %3829 = vst.msk [vmem:[#allocation2 + $0x78] sm:$0xff] %vm2409_vm2, %v8773_v35  ;;  %v378_v60 = vadd.s32 128, %v12148_v45  ;;  %v556_v8 = vand.u32 31, %v380_v57 }
 0x256   : > { %v3887_v19 = vld [vmem:[#allocation2 + $0x48] sm:$0xff]  ;;  %v3610_v30 = vpop.f32.mrf.mxu0  ;;  %9699 = vrot.lane.b32.xlu1 %v9698_v9, %s10455_s20  ;;  %v4448_v12 = vsel %vm1606_vm0, %v4445_v49, %v4447_v52  ;;  %v4450_v53 = vsel %vm1606_vm0, %v4447_v52, %v4449_v11  ;;  %v4811_v62 = vsel %vm1970_vm1, %v4808_v33, %v4810_v6 }
 0x257   : > { %v4158_v21 = vsel %vm12203_vm13, %v4094_v1, 0.0  ;;  %v4092_v46 = vmax.f32 %v4028_v25, 0.0  ;;  %v3958_v42 = vmul.f32 %v12157_v20, %v3887_v19  ;;  %3827 = vst.msk [vmem:[#allocation2 + $0x68] sm:$0xff] %vm2409_vm2, %v3610_v30  ;;  %v9703_v27 = vpack.i.bf16 %v4450_v53, %v4448_v12 }
 0x258   : > { %4238 = vst.msk [vmem:[#allocation3 + $0x90] sm:$0xff] %vm2409_vm2, %v4158_v21  ;;  %v3892_v34 = vld [vmem:[#allocation2 + $0x70] sm:$0xff]  ;;  %v8776_v7 = vpop.f32.mrf.mxu0  ;;  %v9713_v50 = vpack.i.bf16 %v4811_v62, %v4809_v55  ;;  %v542_v23 = vand.u32 31, %v378_v60  ;;  %vm1276_vm8 = vcmp.le.s32.totalorder %v556_v8, 16  ;;  %v384_v1 = vadd.s32 176, %v12148_v45 }
 0x259   : > { %v4156_v24 = vsel %vm12218_vm14, %v4092_v46, 0.0  ;;  %v4029_v51 = vadd.f32 %v12163_v17, %v3958_v42  ;;  %v3963_v16 = vmul.f32 %v12157_v20, %v3892_v34  ;;  %3832 = vst.msk [vmem:[#allocation2 + $0x90] sm:$0xff] %vm2409_vm2, %v8776_v7  ;;  %9704 = vrot.lane.b32.xlu0 %v9703_v27, %s10455_s20  ;;  %v382_v30 = vadd.s32 160, %v12148_v45 }
 0x25a   : > { %4236 = vst.msk [vmem:[#allocation3 + $0x80] sm:$0xff] %vm2409_vm2, %v4156_v24  ;;  %v3890_v29 = vld [vmem:[#allocation2 + $0x60] sm:$0xff]  ;;  %v3623_v0 = vpop.f32.mrf.mxu0  ;;  %9714 = vrot.lane.b32.xlu1 %v9713_v50, %s10459_s29  ;;  %vm1210_vm9 = vcmp.ge.s32.totalorder %v542_v23, 1  ;;  %v584_v21 = vand.u32 31, %v384_v1  ;;  %v396_v8 = vadd.s32 272, %v12148_v45 }
 0x25b   : > { %v4093_v14 = vmax.f32 %v4029_v51, 0.0  ;;  %v4034_v22 = vadd.f32 %v12163_v17, %v3963_v16  ;;  %v3961_v48 = vmul.f32 %v12157_v20, %v3890_v29  ;;  %3830 = vst.msk [vmem:[#allocation2 + $0x80] sm:$0xff] %vm2409_vm2, %v3623_v0  ;;  %v570_v7 = vand.u32 31, %v382_v30 }
 0x25c   : > { %v8777_v38 = vpop.f32.mrf.mxu0  ;;  %vm1280_vm10 = vcmp.le.s32.totalorder %v584_v21, 16  ;;  %v668_v30 = vand.u32 31, %v396_v8  ;;  %v12393_v8 = vld [vmem:[#allocation3 + $0x158] sm:$0xff] }
 0x25d   : > { %4237 = vst.msk [vmem:[#allocation3 + $0x88] sm:$0xff] %vm2409_vm2, %v4093_v14  ;;  %v4098_v61 = vmax.f32 %v4034_v22, 0.0  ;;  %v4032_v59 = vadd.f32 %v12163_v17, %v3961_v48  ;;  %3833 = vst.msk [vmem:[#allocation2 + $0x98] sm:$0xff] %vm2409_vm2, %v8777_v38  ;;  %v388_v14 = vadd.s32 208, %v12148_v45  ;;  %vm1214_vm11 = vcmp.ge.s32.totalorder %v570_v7, 1 }
 0x25e   : > { %v3891_v10 = vld [vmem:[#allocation2 + $0x68] sm:$0xff]  ;;  %v3626_v18 = vpop.f32.mrf.mxu0  ;;  %vm12334_vm14 = vcmp.le.s32.totalorder %v668_v30, 16 }
 0x25f   : > { %v4162_v39 = vsel %vm1272_vm15, %v4098_v61, 0.0  ;;  %v4096_v41 = vmax.f32 %v4032_v59, 0.0  ;;  %v3962_v49 = vmul.f32 %v12157_v20, %v3891_v10  ;;  %3831 = vst.msk [vmem:[#allocation2 + $0x88] sm:$0xff] %vm2409_vm2, %v3626_v18  ;;  %v386_v59 = vadd.s32 192, %v12148_v45 }
 0x260   : > { %4242 = vst.msk [vmem:[#allocation3 + $0xb0] sm:$0xff] %vm2409_vm2, %v4162_v39  ;;  %v3896_v13 = vld [vmem:[#allocation2 + $0x90] sm:$0xff]  ;;  %v8780_v2 = vpop.f32.mrf.mxu0 }
 0x261   : > { %v4160_v15 = vsel %vm1206_vm5, %v4096_v41, 0.0  ;;  %v4033_v33 = vadd.f32 %v12163_v17, %v3962_v49  ;;  %v3967_v43 = vmul.f32 %v12157_v20, %v3896_v13  ;;  %3836 = vst.msk [vmem:[#allocation2 + $0xb0] sm:$0xff] %vm2409_vm2, %v8780_v2  ;;  %v612_v41 = vand.u32 31, %v388_v14 }
 0x262   : > { %4240 = vst.msk [vmem:[#allocation3 + $0xa0] sm:$0xff] %vm2409_vm2, %v4160_v15  ;;  %v3894_v36 = vld [vmem:[#allocation2 + $0x80] sm:$0xff]  ;;  %v3639_v44 = vpop.f32.mrf.mxu0  ;;  %v12293_v15 = vld [vmem:[#allocation3 + $0x58] sm:$0xff]  ;;  %v598_v23 = vand.u32 31, %v386_v59 }
 0x263   : > { %v4097_v35 = vmax.f32 %v4033_v33, 0.0  ;;  %v4038_v9 = vadd.f32 %v12163_v17, %v3967_v43  ;;  %v3965_v52 = vmul.f32 %v12157_v20, %v3894_v36  ;;  %3834 = vst.msk [vmem:[#allocation2 + $0xa0] sm:$0xff] %vm2409_vm2, %v3639_v44  ;;  %v394_v44 = vadd.s32 256, %v12148_v45 }
 0x264   : > { %v8781_v56 = vpop.f32.mrf.mxu0  ;;  %vm12310_vm12 = vcmp.le.s32.totalorder %v612_v41, 16  ;;  %vm12321_vm13 = vcmp.ge.s32.totalorder %v598_v23, 1  ;;  %v404_v23 = vadd.s32 336, %v12148_v45 }
 0x265   : > { %4241 = vst.msk [vmem:[#allocation3 + $0xa8] sm:$0xff] %vm2409_vm2, %v4097_v35  ;;  %v4102_v25 = vmax.f32 %v4038_v9, 0.0  ;;  %v4036_v37 = vadd.f32 %v12163_v17, %v3965_v52  ;;  %3837 = vst.msk [vmem:[#allocation2 + $0xb8] sm:$0xff] %vm2409_vm2, %v8781_v56  ;;  %v12300_v52 = vld [vmem:[#allocation3 + $0x78] sm:$0xff]  ;;  %v654_v7 = vand.u32 31, %v394_v44 }
 0x266   : > { %v3895_v19 = vld [vmem:[#allocation2 + $0x88] sm:$0xff]  ;;  %v3642_v12 = vpop.f32.mrf.mxu0 }
 0x267   : > { %v4166_v53 = vsel %vm1276_vm8, %v4102_v25, 0.0  ;;  %v4100_v55 = vmax.f32 %v4036_v37, 0.0  ;;  %v3966_v62 = vmul.f32 %v12157_v20, %v3895_v19  ;;  %3835 = vst.msk [vmem:[#allocation2 + $0xa8] sm:$0xff] %vm2409_vm2, %v3642_v12  ;;  %v4814_v25 = vrot.slane %v12293_v15, 2  ;;  %v12307_v37 = vld [vmem:[#allocation3 + $0x98] sm:$0xff] }
 0x268   : > { %4246 = vst.msk [vmem:[#allocation3 + $0xd0] sm:$0xff] %vm2409_vm2, %v4166_v53  ;;  %v3900_v46 = vld [vmem:[#allocation2 + $0xb0] sm:$0xff]  ;;  %v392_v12 = vadd.s32 240, %v12148_v45  ;;  %vm12346_vm15 = vcmp.ge.s32.totalorder %v654_v7, 1 }
 0x269   : > { %v4164_v42 = vsel %vm1210_vm9, %v4100_v55, 0.0  ;;  %v4037_v27 = vadd.f32 %v12163_v17, %v3966_v62  ;;  %v3971_v5 = vmul.f32 %v12157_v20, %v3900_v46  ;;  %v8784_v34 = vpop.f32.mrf.mxu0  ;;  %v390_v55 = vadd.s32 224, %v12148_v45 }
 0x26a   : > { %4244 = vst.msk [vmem:[#allocation3 + $0xc0] sm:$0xff] %vm2409_vm2, %v4164_v42  ;;  %v3898_v50 = vld [vmem:[#allocation2 + $0xa0] sm:$0xff]  ;;  %3840 = vst.msk [vmem:[#allocation2 + $0xd0] sm:$0xff] %vm2409_vm2, %v8784_v34  ;;  %v4451_v42 = vrot.slane %v12293_v15, 1 }
 0x26b   : > { %v4101_v24 = vmax.f32 %v4037_v27, 0.0  ;;  %v4042_v51 = vadd.f32 %v12163_v17, %v3971_v5  ;;  %v3969_v16 = vmul.f32 %v12157_v20, %v3898_v50  ;;  %v3655_v31 = vpop.f32.mrf.mxu0  ;;  %v4822_v27 = vrot.slane %v12300_v52, 2 }
 0x26c   : > { %3838 = vst.msk [vmem:[#allocation2 + $0xc0] sm:$0xff] %vm2409_vm2, %v3655_v31  ;;  %v4830_v31 = vrot.slane %v12307_v37, 2  ;;  %v626_v59 = vand.u32 31, %v390_v55 }
 0x26d   : > { %4245 = vst.msk [vmem:[#allocation3 + $0xc8] sm:$0xff] %vm2409_vm2, %v4101_v24  ;;  %v4106_v29 = vmax.f32 %v4042_v51, 0.0  ;;  %v4040_v0 = vadd.f32 %v12163_v17, %v3969_v16  ;;  %v8785_v22 = vpop.f32.mrf.mxu0  ;;  %v4459_v16 = vrot.slane %v12300_v52, 1 }
 0x26e   : > { %v3899_v48 = vld [vmem:[#allocation2 + $0xa8] sm:$0xff]  ;;  %3841 = vst.msk [vmem:[#allocation2 + $0xd8] sm:$0xff] %vm2409_vm2, %v8785_v22  ;;  %vm12361_vm8 = vcmp.ge.s32.totalorder %v626_v59, 1 }
 0x26f   : > { %v4170_v57 = vsel %vm1280_vm10, %v4106_v29, 0.0  ;;  %v4104_v38 = vmax.f32 %v4040_v0, 0.0  ;;  %v3970_v61 = vmul.f32 %v12157_v20, %v3899_v48  ;;  %v8792_v10 = vpop.f32.mrf.mxu1  ;;  %v3658_v60 = vpop.f32.mrf.mxu0 }
 0x270   : > { %4250 = vst.msk [vmem:[#allocation3 + $0xf0] sm:$0xff] %vm2409_vm2, %v4170_v57  ;;  %3848 = vst.msk [vmem:[#allocation2 + $0x110] sm:$0xff] %vm2409_vm2, %v8792_v10  ;;  %v400_v10 = vadd.s32 304, %v12148_v45 }
 0x271   : > { %3839 = vst.msk [vmem:[#allocation2 + $0xc8] sm:$0xff] %vm2409_vm2, %v3658_v60  ;;  %v4168_v18 = vsel %vm1214_vm11, %v4104_v38, 0.0  ;;  %v4041_v39 = vadd.f32 %v12163_v17, %v3970_v61  ;;  %v3904_v49 = vld [vmem:[#allocation2 + $0xd0] sm:$0xff]  ;;  %v3687_v13 = vpop.f32.mrf.mxu1  ;;  %v8788_v2 = vpop.f32.mrf.mxu0  ;;  %v640_v38 = vand.u32 31, %v392_v12 }
 0x272   : > { %4248 = vst.msk [vmem:[#allocation3 + $0xe0] sm:$0xff] %vm2409_vm2, %v4168_v18  ;;  %v3975_v33 = vmul.f32 %v12157_v20, %v3904_v49  ;;  %3846 = vst.msk [vmem:[#allocation2 + $0x100] sm:$0xff] %vm2409_vm2, %v3687_v13  ;;  %v696_v12 = vand.u32 31, %v400_v10 }
 0x273   : > { %3844 = vst.msk [vmem:[#allocation2 + $0xf0] sm:$0xff] %vm2409_vm2, %v8788_v2  ;;  %v4105_v43 = vmax.f32 %v4041_v39, 0.0  ;;  %v3902_v36 = vld [vmem:[#allocation2 + $0xc0] sm:$0xff]  ;;  %v8793_v35 = vpop.f32.mrf.mxu1  ;;  %v3671_v9 = vpop.f32.mrf.mxu0  ;;  %vm12356_vm5 = vcmp.le.s32.totalorder %v640_v38, 16 }
 0x274   : > { %v4046_v1 = vadd.f32 %v12163_v17, %v3975_v33  ;;  %v3973_v56 = vmul.f32 %v12157_v20, %v3902_v36  ;;  %3849 = vst.msk [vmem:[#allocation2 + $0x118] sm:$0xff] %vm2409_vm2, %v8793_v35  ;;  %3842 = vst.msk [vmem:[#allocation2 + $0xe0] sm:$0xff] %vm2409_vm2, %v3671_v9  ;;  %v398_v33 = vadd.s32 288, %v12148_v45  ;;  %vm12381_vm9 = vcmp.le.s32.totalorder %v696_v12, 16 }
 0x275   : > { %4249 = vst.msk [vmem:[#allocation3 + $0xe8] sm:$0xff] %vm2409_vm2, %v4105_v43  ;;  %v3690_v53 = vpop.f32.mrf.mxu1  ;;  %v8789_v62 = vpop.f32.mrf.mxu0  ;;  %v12415_v12 = vadd.s32 400, %v12148_v45 }
 0x276   : > { %v4110_v21 = vmax.f32 %v4046_v1, 0.0  ;;  %v4044_v46 = vadd.f32 %v12163_v17, %v3973_v56  ;;  %3847 = vst.msk [vmem:[#allocation2 + $0x108] sm:$0xff] %vm2409_vm2, %v3690_v53  ;;  %3845 = vst.msk [vmem:[#allocation2 + $0xf8] sm:$0xff] %vm2409_vm2, %v8789_v62  ;;  %v682_v7 = vand.u32 31, %v398_v33  ;;  %v12412_v1 = vld [vmem:[#allocation3 + $0x138] sm:$0xff] }
 0x277   : > { %v3912_v34 = vld [vmem:[#allocation2 + $0x110] sm:$0xff]  ;;  %v8796_v24 = vpop.f32.mrf.mxu1  ;;  %v3674_v51 = vpop.f32.mrf.mxu0 }
 0x278   : > { %v3903_v50 = vld [vmem:[#allocation2 + $0xc8] sm:$0xff]  ;;  %v4174_v29 = vsel %vm12310_vm12, %v4110_v21, 0.0  ;;  %v4108_v0 = vmax.f32 %v4044_v46, 0.0  ;;  %v3983_v14 = vmul.f32 %v12157_v20, %v3912_v34  ;;  %3852 = vst.msk [vmem:[#allocation2 + $0x130] sm:$0xff] %vm2409_vm2, %v8796_v24  ;;  %3843 = vst.msk [vmem:[#allocation2 + $0xe8] sm:$0xff] %vm2409_vm2, %v3674_v51  ;;  %v724_v24 = vand.u32 31, %v404_v23 }
 0x279   : > { %v3974_v22 = vmul.f32 %v12157_v20, %v3903_v50  ;;  %4254 = vst.msk [vmem:[#allocation3 + $0x110] sm:$0xff] %vm2409_vm2, %v4174_v29  ;;  %v3910_v57 = vld [vmem:[#allocation2 + $0x100] sm:$0xff]  ;;  %v3703_v60 = vpop.f32.mrf.mxu1  ;;  %v402_v29 = vadd.s32 320, %v12148_v45  ;;  %v12399_v23 = vadd.s32 352, %v12148_v45  ;;  %vm12402_vm10 = vcmp.ge.s32.totalorder %v682_v7, 1 }
 0x27a   : > { %v3908_v61 = vld [vmem:[#allocation2 + $0xf0] sm:$0xff]  ;;  %v4172_v18 = vsel %vm12321_vm13, %v4108_v0, 0.0  ;;  %v4054_v39 = vadd.f32 %v12163_v17, %v3983_v14  ;;  %v3981_v41 = vmul.f32 %v12157_v20, %v3910_v57  ;;  %3850 = vst.msk [vmem:[#allocation2 + $0x120] sm:$0xff] %vm2409_vm2, %v3703_v60  ;;  %v4467_v60 = vrot.slane %v12307_v37, 1 }
 0x27b   : > { %v4045_v49 = vadd.f32 %v12163_v17, %v3974_v22  ;;  %4252 = vst.msk [vmem:[#allocation3 + $0x100] sm:$0xff] %vm2409_vm2, %v4172_v18  ;;  %v3979_v13 = vmul.f32 %v12157_v20, %v3908_v61  ;;  %v3906_v2 = vld [vmem:[#allocation2 + $0xe0] sm:$0xff]  ;;  %v8797_v43 = vpop.f32.mrf.mxu1  ;;  %vm12407_vm11 = vcmp.le.s32.totalorder %v724_v24, 16 }
 0x27c   : > { %v4118_v36 = vmax.f32 %v4054_v39, 0.0  ;;  %v4052_v44 = vadd.f32 %v12163_v17, %v3981_v41  ;;  %v3977_v9 = vmul.f32 %v12157_v20, %v3906_v2  ;;  %3853 = vst.msk [vmem:[#allocation2 + $0x138] sm:$0xff] %vm2409_vm2, %v8797_v43  ;;  %v710_v2 = vand.u32 31, %v402_v29 }
 0x27d   : > { %v4109_v35 = vmax.f32 %v4045_v49, 0.0  ;;  %v4050_v56 = vadd.f32 %v12163_v17, %v3979_v13  ;;  %v3911_v19 = vld [vmem:[#allocation2 + $0x108] sm:$0xff]  ;;  %v3706_v53 = vpop.f32.mrf.mxu1  ;;  %v408_v43 = vadd.s32 368, %v12148_v45  ;;  %v738_v29 = vand.u32 31, %v12399_v23 }
 0x27e   : > { %v4182_v55 = vsel %vm12334_vm14, %v4118_v36, 0.0  ;;  %v4116_v62 = vmax.f32 %v4052_v44, 0.0  ;;  %v3982_v21 = vmul.f32 %v12157_v20, %v3911_v19  ;;  %v4048_v46 = vadd.f32 %v12163_v17, %v3977_v9  ;;  %3851 = vst.msk [vmem:[#allocation2 + $0x128] sm:$0xff] %vm2409_vm2, %v3706_v53 }
 0x27f   : > { %4253 = vst.msk [vmem:[#allocation3 + $0x108] sm:$0xff] %vm2409_vm2, %v4109_v35  ;;  %4262 = vst.msk [vmem:[#allocation3 + $0x150] sm:$0xff] %vm2409_vm2, %v4182_v55  ;;  %v4114_v5 = vmax.f32 %v4050_v56, 0.0  ;;  %v3916_v34 = vld [vmem:[#allocation2 + $0x130] sm:$0xff]  ;;  %v3907_v50 = vld [vmem:[#allocation2 + $0xe8] sm:$0xff]  ;;  %v8800_v51 = vpop.f32.mrf.mxu1  ;;  %v12418_v53 = vadd.s32 384, %v12148_v45 }
 0x280   : > { %v4180_v0 = vsel %vm12346_vm15, %v4116_v62, 0.0  ;;  %v4053_v14 = vadd.f32 %v12163_v17, %v3982_v21  ;;  %v4112_v22 = vmax.f32 %v4048_v46, 0.0  ;;  %v3987_v48 = vmul.f32 %v12157_v20, %v3916_v34  ;;  %3856 = vst.msk [vmem:[#allocation2 + $0x150] sm:$0xff] %vm2409_vm2, %v8800_v51  ;;  %v12421_v62 = vld [vmem:[#allocation3 + $0x178] sm:$0xff] }
 0x281   : > { %4260 = vst.msk [vmem:[#allocation3 + $0x140] sm:$0xff] %vm2409_vm2, %v4180_v0  ;;  %v4178_v57 = vsel %vm12356_vm5, %v4114_v5, 0.0  ;;  %v3914_v61 = vld [vmem:[#allocation2 + $0x120] sm:$0xff]  ;;  %v3978_v59 = vmul.f32 %v12157_v20, %v3907_v50  ;;  %v3719_v10 = vpop.f32.mrf.mxu1  ;;  %v4878_v55 = vrot.slane %v12393_v8, 2  ;;  %v4515_v34 = vrot.slane %v12393_v8, 1 }
 0x282   : > { %4258 = vst.msk [vmem:[#allocation3 + $0x130] sm:$0xff] %vm2409_vm2, %v4178_v57  ;;  %v4117_v18 = vmax.f32 %v4053_v14, 0.0  ;;  %v4176_v39 = vsel %vm12361_vm8, %v4112_v22, 0.0  ;;  %v4058_v41 = vadd.f32 %v12163_v17, %v3987_v48  ;;  %v3985_v49 = vmul.f32 %v12157_v20, %v3914_v61  ;;  %3854 = vst.msk [vmem:[#allocation2 + $0x140] sm:$0xff] %vm2409_vm2, %v3719_v10  ;;  %v12436_v14 = vld [vmem:[#allocation3 + $0x198] sm:$0xff]  ;;  %v12445_v61 = vld [vmem:[#allocation3 + $0x60] sm:$0xff] }
 0x283   : > { %4256 = vst.msk [vmem:[#allocation3 + $0x120] sm:$0xff] %vm2409_vm2, %v4176_v39  ;;  %v4049_v13 = vadd.f32 %v12163_v17, %v3978_v59  ;;  %v8801_v33 = vpop.f32.mrf.mxu1  ;;  %vm12430_vm12 = vcmp.ge.s32.totalorder %v710_v2, 1  ;;  %v752_v24 = vand.u32 31, %v408_v43  ;;  %v15046_v0 = vrot.slane %v12412_v1, 2 }
 0x284   : > { %4261 = vst.msk [vmem:[#allocation3 + $0x148] sm:$0xff] %vm2409_vm2, %v4117_v18  ;;  %v4122_v36 = vmax.f32 %v4058_v41, 0.0  ;;  %v4056_v35 = vadd.f32 %v12163_v17, %v3985_v49  ;;  %3857 = vst.msk [vmem:[#allocation2 + $0x158] sm:$0xff] %vm2409_vm2, %v8801_v33  ;;  %v4886_v59 = vrot.slane %v12421_v62, 2  ;;  %v780_v39 = vand.u32 31, %v12415_v12  ;;  %v12550_v12 = vld [vmem:[#allocation3 + $0x70] sm:$0xff] }
 0x285   : > { %v4113_v56 = vmax.f32 %v4049_v13, 0.0  ;;  %v3915_v19 = vld [vmem:[#allocation2 + $0x128] sm:$0xff]  ;;  %v3722_v30 = vpop.f32.mrf.mxu1  ;;  %v766_v41 = vand.u32 31, %v12418_v53  ;;  %v4523_v13 = vrot.slane %v12421_v62, 1  ;;  %vm12459_vm13 = vcmp.le.s32.totalorder %v752_v24, 16 }
 0x286   : > { %v4186_v21 = vsel %vm12381_vm9, %v4122_v36, 0.0  ;;  %v4120_v46 = vmax.f32 %v4056_v35, 0.0  ;;  %v3986_v5 = vmul.f32 %v12157_v20, %v3915_v19  ;;  %3855 = vst.msk [vmem:[#allocation2 + $0x148] sm:$0xff] %vm2409_vm2, %v3722_v30  ;;  %v12456_v23 = vld [vmem:[#allocation3 + $0x150] sm:$0xff]  ;;  %v4894_v36 = vrot.slane %v12436_v14, 2 }
 0x287   : > { %4266 = vst.msk [vmem:[#allocation3 + $0x170] sm:$0xff] %vm2409_vm2, %v4186_v21  ;;  %4257 = vst.msk [vmem:[#allocation3 + $0x128] sm:$0xff] %vm2409_vm2, %v4113_v56  ;;  %v3920_v7 = vld [vmem:[#allocation2 + $0x150] sm:$0xff]  ;;  %v8804_v51 = vpop.f32.mrf.mxu1  ;;  %v4812_v19 = vrot.slane %v12200_v40, 2  ;;  %v4453_v30 = vrot.slane %v12445_v61, 1  ;;  %v12468_v21 = vadd.s32 432, %v12148_v45 }
 0x288   : > { %v4184_v22 = vsel %vm12402_vm10, %v4120_v46, 0.0  ;;  %v4057_v48 = vadd.f32 %v12163_v17, %v3986_v5  ;;  %v3991_v57 = vmul.f32 %v12157_v20, %v3920_v7  ;;  %3860 = vst.msk [vmem:[#allocation2 + $0x170] sm:$0xff] %vm2409_vm2, %v8804_v51  ;;  %v12443_v38 = vld [vmem:[#allocation3 + $0x140] sm:$0xff]  ;;  %v12471_v46 = vadd.s32 416, %v12148_v45 }
 0x289   : > { %4264 = vst.msk [vmem:[#allocation3 + $0x160] sm:$0xff] %vm2409_vm2, %v4184_v22  ;;  %v3918_v10 = vld [vmem:[#allocation2 + $0x140] sm:$0xff]  ;;  %v3735_v18 = vpop.f32.mrf.mxu1  ;;  %v4872_v49 = vrot.slane %v12443_v38, 2  ;;  %vm12478_vm14 = vcmp.ge.s32.totalorder %v738_v29, 1  ;;  %v4454_v9 = vsel %vm1606_vm0, %v4451_v42, %v4453_v30  ;;  %v4815_v50 = vsel %vm1970_vm1, %v4812_v19, %v4814_v25 }
 0x28a   : > { %v4121_v2 = vmax.f32 %v4057_v48, 0.0  ;;  %v4062_v33 = vadd.f32 %v12163_v17, %v3991_v57  ;;  %v3989_v43 = vmul.f32 %v12157_v20, %v3918_v10  ;;  %3858 = vst.msk [vmem:[#allocation2 + $0x160] sm:$0xff] %vm2409_vm2, %v3735_v18  ;;  %v4509_v18 = vrot.slane %v12443_v38, 1 }
 0x28b   : > { %v8805_v35 = vpop.f32.mrf.mxu1  ;;  %v12463_v56 = vld [vmem:[#allocation3 + $0x148] sm:$0xff]  ;;  %v4873_v10 = vsel %vm1970_vm1, %v15046_v0, %v4872_v49  ;;  %vm12535_vm15 = vcmp.le.s32.totalorder %v780_v39, 16  ;;  %vm12554_vm5 = vcmp.ge.s32.totalorder %v766_v41, 1 }
 0x28c   : > { %4265 = vst.msk [vmem:[#allocation3 + $0x168] sm:$0xff] %vm2409_vm2, %v4121_v2  ;;  %v4126_v5 = vmax.f32 %v4062_v33, 0.0  ;;  %v4060_v7 = vadd.f32 %v12163_v17, %v3989_v43  ;;  %3861 = vst.msk [vmem:[#allocation2 + $0x178] sm:$0xff] %vm2409_vm2, %v8805_v35  ;;  %v4874_v24 = vrot.slane %v12463_v56, 2  ;;  %v4511_v51 = vrot.slane %v12463_v56, 1 }
 0x28d   : > { %v3919_v22 = vld [vmem:[#allocation2 + $0x148] sm:$0xff]  ;;  %v3738_v57 = vpop.f32.mrf.mxu1  ;;  %v4513_v2 = vrot.slane %v12456_v23, 1  ;;  %v4813_v33 = vsel %vm1970_vm1, %v4810_v6, %v4812_v19 }
 0x28e   : > { %v4190_v43 = vsel %vm12407_vm11, %v4126_v5, 0.0  ;;  %v4124_v29 = vmax.f32 %v4060_v7, 0.0  ;;  %v3990_v35 = vmul.f32 %v12157_v20, %v3919_v22  ;;  %3859 = vst.msk [vmem:[#allocation2 + $0x168] sm:$0xff] %vm2409_vm2, %v3738_v57  ;;  %v4875_v56 = vsel %vm1970_vm1, %v4872_v49, %v4874_v24 }
 0x28f   : > { %4270 = vst.msk [vmem:[#allocation3 + $0x190] sm:$0xff] %vm2409_vm2, %v4190_v43  ;;  %v3924_v54 = vld [vmem:[#allocation2 + $0x170] sm:$0xff]  ;;  %v8808_v58 = vpop.f32.mrf.mxu1  ;;  %v9723_v28 = vpack.i.bf16 %v4875_v56, %v4873_v10  ;;  %v4512_v3 = vsel %vm1606_vm0, %v4509_v18, %v4511_v51  ;;  %v4514_v6 = vsel %vm1606_vm0, %v4511_v51, %v4513_v2  ;;  %v12514_v10 = vld [vmem:[#allocation3 + $0x68] sm:$0xff] }
 0x290   : > { %v4188_v49 = vsel %vm12430_vm12, %v4124_v29, 0.0  ;;  %v4061_v5 = vadd.f32 %v12163_v17, %v3990_v35  ;;  %v3995_v7 = vmul.f32 %v12157_v20, %v3924_v54  ;;  %3864 = vst.msk [vmem:[#allocation2 + $0x190] sm:$0xff] %vm2409_vm2, %v8808_v58  ;;  %v9708_v22 = vpack.i.bf16 %v4514_v6, %v4512_v3  ;;  %v12512_v57 = vld [vmem:[#allocation3 + $0x160] sm:$0xff] }
 0x291   : > { %4268 = vst.msk [vmem:[#allocation3 + $0x180] sm:$0xff] %vm2409_vm2, %v4188_v49  ;;  %v3922_v51 = vld [vmem:[#allocation2 + $0x160] sm:$0xff]  ;;  %v3751_v43 = vpop.f32.mrf.mxu1  ;;  %9724 = vrot.lane.b32.xlu1 %v9723_v28, %s10459_s29  ;;  %v808_v29 = vand.u32 31, %v12468_v21  ;;  %v4876_v54 = vrot.slane %v12456_v23, 2  ;;  %v4517_v58 = vrot.slane %v12512_v57, 1  ;;  %v4452_v28 = vsel %vm1606_vm0, %v4449_v11, %v4451_v42 }
 0x292   : > { %v4125_v35 = vmax.f32 %v4061_v5, 0.0  ;;  %v4066_v56 = vadd.f32 %v12163_v17, %v3995_v7  ;;  %v3993_v3 = vmul.f32 %v12157_v20, %v3922_v51  ;;  %3862 = vst.msk [vmem:[#allocation2 + $0x180] sm:$0xff] %vm2409_vm2, %v3751_v43  ;;  %9709 = vrot.lane.b32.xlu0 %v9708_v22, %s10455_s20  ;;  %v9718_v49 = vpack.i.bf16 %v4815_v50, %v4813_v33 }
 0x293   : > { %v8809_v6 = vpop.f32.mrf.mxu1  ;;  %v9733_v5 = vpack.i.bf16 %v4454_v9, %v4452_v28  ;;  %v794_v7 = vand.u32 31, %v12471_v46  ;;  %v4818_v51 = vrot.slane %v12514_v10, 2  ;;  %v4877_v11 = vsel %vm1970_vm1, %v4874_v24, %v4876_v54 }
 0x294   : > { %4269 = vst.msk [vmem:[#allocation3 + $0x188] sm:$0xff] %vm2409_vm2, %v4125_v35  ;;  %v4130_v22 = vmax.f32 %v4066_v56, 0.0  ;;  %v4064_v40 = vadd.f32 %v12163_v17, %v3993_v3  ;;  %3865 = vst.msk [vmem:[#allocation2 + $0x198] sm:$0xff] %vm2409_vm2, %v8809_v6  ;;  %v4518_v42 = vsel %vm1606_vm0, %v4515_v34, %v4517_v58  ;;  %v4879_v24 = vsel %vm1970_vm1, %v4876_v54, %v4878_v55  ;;  %v12567_v56 = vld [vmem:[#allocation3 + $0x168] sm:$0xff] }
 0x295   : > { %v3923_v39 = vld [vmem:[#allocation2 + $0x168] sm:$0xff]  ;;  %v3754_v9 = vpop.f32.mrf.mxu1  ;;  %9734 = vrot.lane.b32.xlu1 %v9733_v5, %s10455_s20  ;;  %v4816_v43 = vrot.slane %v12445_v61, 2  ;;  %v4455_v50 = vrot.slane %v12514_v10, 1  ;;  %v12565_v35 = vadd.s32 464, %v12148_v45  ;;  %v4516_v54 = vsel %vm1606_vm0, %v4513_v2, %v4515_v34  ;;  %v12590_v2 = vld [vmem:[#allocation3 + $0x170] sm:$0xff] }
 0x296   : > { %v4194_v53 = vsel %vm12459_vm13, %v4130_v22, 0.0  ;;  %v4128_v41 = vmax.f32 %v4064_v40, 0.0  ;;  %v3994_v3 = vmul.f32 %v12157_v20, %v3923_v39  ;;  %3863 = vst.msk [vmem:[#allocation2 + $0x188] sm:$0xff] %vm2409_vm2, %v3754_v9  ;;  %9719 = vrot.lane.b32.xlu0 %v9718_v49, %s10459_s29  ;;  %v9728_v5 = vpack.i.bf16 %v4879_v24, %v4877_v11  ;;  %v12592_v11 = vld [vmem:[#allocation3 + $0x80] sm:$0xff] }
 0x297   : > { %4274 = vst.msk [vmem:[#allocation3 + $0x1b0] sm:$0xff] %vm2409_vm2, %v4194_v53  ;;  %v3928_v28 = vld [vmem:[#allocation2 + $0x190] sm:$0xff]  ;;  %v8812_v6 = vpop.f32.mrf.mxu1  ;;  %v9738_v44 = vpack.i.bf16 %v4518_v42, %v4516_v54  ;;  %v4819_v22 = vsel %vm1970_vm1, %v4816_v43, %v4818_v51  ;;  %v4457_v40 = vrot.slane %v12550_v12, 1  ;;  %v4882_v34 = vrot.slane %v12567_v56, 2 }
 0x298   : > { %v4192_v49 = vsel %vm12478_vm14, %v4128_v41, 0.0  ;;  %v4065_v39 = vadd.f32 %v12163_v17, %v3994_v3  ;;  %v3999_v23 = vmul.f32 %v12157_v20, %v3928_v28  ;;  %3868 = vst.msk [vmem:[#allocation2 + $0x1b0] sm:$0xff] %vm2409_vm2, %v8812_v6  ;;  %v4817_v48 = vsel %vm1970_vm1, %v4814_v25, %v4816_v43 }
 0x299   : > { %4272 = vst.msk [vmem:[#allocation3 + $0x1a0] sm:$0xff] %vm2409_vm2, %v4192_v49  ;;  %v3926_v42 = vld [vmem:[#allocation2 + $0x180] sm:$0xff]  ;;  %v3767_v9 = vpop.f32.mrf.mxu1  ;;  %9739 = vrot.lane.b32.xlu1 %v9738_v44, %s10455_s20  ;;  %v4456_v24 = vsel %vm1606_vm0, %v4453_v30, %v4455_v50  ;;  %v4458_v53 = vsel %vm1606_vm0, %v4455_v50, %v4457_v40  ;;  %v4519_v41 = vrot.slane %v12567_v56, 1  ;;  %v4880_v15 = vrot.slane %v12512_v57, 2  ;;  %v12626_v49 = vld [vmem:[#allocation3 + $0x88] sm:$0xff] }
 0x29a   : > { %v4129_v3 = vmax.f32 %v4065_v39, 0.0  ;;  %v4070_v54 = vadd.f32 %v12163_v17, %v3999_v23  ;;  %v3997_v28 = vmul.f32 %v12157_v20, %v3926_v42  ;;  %3866 = vst.msk [vmem:[#allocation2 + $0x1a0] sm:$0xff] %vm2409_vm2, %v3767_v9  ;;  %9729 = vrot.lane.b32.xlu0 %v9728_v5, %s10459_s29  ;;  %vm12613_vm8 = vcmp.le.s32.totalorder %v808_v29, 16 }
 0x29b   : > { %v8813_v61 = vpop.f32.mrf.mxu1  ;;  %v9753_v30 = vpack.i.bf16 %v4819_v22, %v4817_v48  ;;  %v836_v43 = vand.u32 31, %v12565_v35  ;;  %v4521_v50 = vrot.slane %v12590_v2, 1  ;;  %v4461_v6 = vrot.slane %v12592_v11, 1 }
 0x29c   : > { %4273 = vst.msk [vmem:[#allocation3 + $0x1a8] sm:$0xff] %vm2409_vm2, %v4129_v3  ;;  %v4134_v44 = vmax.f32 %v4070_v54, 0.0  ;;  %v4068_v5 = vadd.f32 %v12163_v17, %v3997_v28  ;;  %3869 = vst.msk [vmem:[#allocation2 + $0x1b8] sm:$0xff] %vm2409_vm2, %v8813_v61  ;;  %v9743_v21 = vpack.i.bf16 %v4458_v53, %v4456_v24  ;;  %v4883_v29 = vsel %vm1970_vm1, %v4880_v15, %v4882_v34 }
 0x29d   : > { %v3927_v22 = vld [vmem:[#allocation2 + $0x188] sm:$0xff]  ;;  %v3770_v35 = vpop.f32.mrf.mxu1  ;;  %9754 = vrot.lane.b32.xlu1 %v9753_v30, %s10459_s29  ;;  %v12630_v39 = vadd.s32 448, %v12148_v45  ;;  %v4520_v17 = vsel %vm1606_vm0, %v4517_v58, %v4519_v41  ;;  %v4522_v23 = vsel %vm1606_vm0, %v4519_v41, %v4521_v50  ;;  %v4820_v42 = vrot.slane %v12550_v12, 2 }
 0x29e   : > { %v4198_v9 = vsel %vm12535_vm15, %v4134_v44, 0.0  ;;  %v4132_v48 = vmax.f32 %v4068_v5, 0.0  ;;  %v3998_v24 = vmul.f32 %v12157_v20, %v3927_v22  ;;  %3867 = vst.msk [vmem:[#allocation2 + $0x1a8] sm:$0xff] %vm2409_vm2, %v3770_v35  ;;  %9744 = vrot.lane.b32.xlu0 %v9743_v21, %s10455_s20  ;;  %v4881_v57 = vsel %vm1970_vm1, %v4878_v55, %v4880_v15  ;;  %v12662_v55 = vld [vmem:[%s14911_s3] ss:$0 sm:$0xff]  ;;  %v12672_v15 = vld [vmem:[#allocation3 + $0x188] sm:$0xff] }
 0x29f   : > { %4278 = vst.msk [vmem:[#allocation3 + $0x1d0] sm:$0xff] %vm2409_vm2, %v4198_v9  ;;  %v3932_v58 = vld [vmem:[#allocation2 + $0x1b0] sm:$0xff]  ;;  %v8816_v53 = vpop.f32.mrf.mxu1  ;;  %v9763_v41 = vpack.i.bf16 %v4883_v29, %v4881_v57  ;;  %v4821_v19 = vsel %vm1970_vm1, %v4818_v51, %v4820_v42  ;;  %v4462_v20 = vsel %vm1606_vm0, %v4459_v16, %v4461_v6  ;;  %v4826_v3 = vrot.slane %v12626_v49, 2  ;;  %v12668_v51 = vld [vmem:[%s14910_s2] ss:$0 sm:$0xff] }
 0x2a0   : > { %v4196_v8 = vsel %vm12554_vm5, %v4132_v48, 0.0  ;;  %v4069_v10 = vadd.f32 %v12662_v55, %v3998_v24  ;;  %v4003_v54 = vmul.f32 %v12668_v51, %v3932_v58  ;;  %3872 = vst.msk [vmem:[#allocation2 + $0x1d0] sm:$0xff] %vm2409_vm2, %v8816_v53  ;;  %v9748_v28 = vpack.i.bf16 %v4522_v23, %v4520_v17  ;;  %v12696_v35 = vld [vmem:[#allocation3 + $0x180] sm:$0xff]  ;;  %v12703_v24 = vld [vmem:[#allocation3 + $0x190] sm:$0xff] }
 0x2a1   : > { %4276 = vst.msk [vmem:[#allocation3 + $0x1c0] sm:$0xff] %vm2409_vm2, %v4196_v8  ;;  %vm12677_vm9 = vcmp.ge.s32.totalorder %v794_v7, 1  ;;  %v3930_v61 = vld [vmem:[#allocation2 + $0x1a0] sm:$0xff]  ;;  %v3783_v30 = vpop.f32.mrf.mxu1  ;;  %9764 = vrot.lane.b32.xlu1 %v9763_v41, %s10459_s29  ;;  %v4823_v44 = vsel %vm1970_vm1, %v4820_v42, %v4822_v27  ;;  %v4884_v5 = vrot.slane %v12590_v2, 2  ;;  %v4824_v21 = vrot.slane %v12592_v11, 2  ;;  %v12773_v2 = vld [vmem:[#allocation3 + $0xa8] sm:$0xff] }
 0x2a2   : > { %v4133_v29 = vmax.f32 %v4069_v10, 0.0  ;;  %v4074_v22 = vadd.f32 %v12662_v55, %v4003_v54  ;;  %v4001_v46 = vmul.f32 %v12668_v51, %v3930_v61  ;;  %3870 = vst.msk [vmem:[#allocation2 + $0x1c0] sm:$0xff] %vm2409_vm2, %v3783_v30  ;;  %9749 = vrot.lane.b32.xlu0 %v9748_v28, %s10455_s20  ;;  %v4460_v7 = vsel %vm1606_vm0, %v4457_v40, %v4459_v16  ;;  %v12730_v28 = vld [vmem:[#allocation3 + $0x90] sm:$0xff] }
 0x2a3   : > { %vm12698_vm10 = vcmp.le.s32.totalorder %v836_v43, 16  ;;  %v822_v23 = vand.u32 31, %v12630_v39  ;;  %v8817_v42 = vpop.f32.mrf.mxu1  ;;  %v9758_v9 = vpack.i.bf16 %v4823_v44, %v4821_v19  ;;  %v9773_v48 = vpack.i.bf16 %v4462_v20, %v4460_v7 }
 0x2a4   : > { %v4527_v57 = vrot.slane %v12672_v15, 1  ;;  %4277 = vst.msk [vmem:[#allocation3 + $0x1c8] sm:$0xff] %vm2409_vm2, %v4133_v29  ;;  %v4138_v12 = vmax.f32 %v4074_v22, 0.0  ;;  %v4072_v16 = vadd.f32 %v12662_v55, %v4001_v46  ;;  %3873 = vst.msk [vmem:[#allocation2 + $0x1d8] sm:$0xff] %vm2409_vm2, %v8817_v42  ;;  %v4885_v40 = vsel %vm1970_vm1, %v4882_v34, %v4884_v5  ;;  %v12743_v46 = vld [vmem:[#allocation3 + $0xa0] sm:$0xff] }
 0x2a5   : > { %v4827_v43 = vsel %vm1970_vm1, %v4824_v21, %v4826_v3  ;;  %v3931_v58 = vld [vmem:[#allocation2 + $0x1a8] sm:$0xff]  ;;  %v3786_v53 = vpop.f32.mrf.mxu1  ;;  %9774 = vrot.lane.b32.xlu1 %v9773_v48, %s10455_s20  ;;  %v4887_v41 = vsel %vm1970_vm1, %v4884_v5, %v4886_v59  ;;  %v4825_v19 = vsel %vm1970_vm1, %v4822_v27, %v4824_v21  ;;  %v4525_v56 = vrot.slane %v12696_v35, 1 }
 0x2a6   : > { %v4463_v34 = vrot.slane %v12626_v49, 1  ;;  %v4202_v20 = vsel %vm12613_vm8, %v4138_v12, 0.0  ;;  %v4136_v8 = vmax.f32 %v4072_v16, 0.0  ;;  %v4002_v10 = vmul.f32 %v12668_v51, %v3931_v58  ;;  %3871 = vst.msk [vmem:[#allocation2 + $0x1c8] sm:$0xff] %vm2409_vm2, %v3786_v53  ;;  %9759 = vrot.lane.b32.xlu0 %v9758_v9, %s10459_s29 }
 0x2a7   : > { %v4529_v54 = vrot.slane %v12703_v24, 1  ;;  %4282 = vst.msk [vmem:[#allocation3 + $0x1f0] sm:$0xff] %vm2409_vm2, %v4202_v20  ;;  %v3936_v52 = vld [vmem:[#allocation2 + $0x1d0] sm:$0xff]  ;;  %v8820_v27 = vpop.f32.mrf.mxu1  ;;  %v9768_v61 = vpack.i.bf16 %v4887_v41, %v4885_v40  ;;  %v9788_v30 = vpack.i.bf16 %v4827_v43, %v4825_v19  ;;  %v4528_v25 = vsel %vm1606_vm0, %v4525_v56, %v4527_v57 }
 0x2a8   : > { %v4890_v44 = vrot.slane %v12672_v15, 2  ;;  %v4200_v5 = vsel %vm12677_vm9, %v4136_v8, 0.0  ;;  %v4073_v21 = vadd.f32 %v12662_v55, %v4002_v10  ;;  %v4007_v29 = vmul.f32 %v12668_v51, %v3936_v52  ;;  %3876 = vst.msk [vmem:[#allocation2 + $0x1f0] sm:$0xff] %vm2409_vm2, %v8820_v27 }
 0x2a9   : > { %v4530_v22 = vsel %vm1606_vm0, %v4527_v57, %v4529_v54  ;;  %4280 = vst.msk [vmem:[#allocation3 + $0x1e0] sm:$0xff] %vm2409_vm2, %v4200_v5  ;;  %v3934_v7 = vld [vmem:[#allocation2 + $0x1c0] sm:$0xff]  ;;  %v424_v42 = vadd.s32 496, %v12148_v45  ;;  %v3799_v9 = vpop.f32.mrf.mxu1  ;;  %9789 = vrot.lane.b32.xlu1 %v9788_v30, %s10459_s29  ;;  %v4526_v33 = vsel %vm1606_vm0, %v4523_v13, %v4525_v56  ;;  %v4464_v48 = vsel %vm1606_vm0, %v4461_v6, %v4463_v34 }
 0x2aa   : > { %v4465_v57 = vrot.slane %v12730_v28, 1  ;;  %v4137_v12 = vmax.f32 %v4073_v21, 0.0  ;;  %v4078_v16 = vadd.f32 %v12662_v55, %v4007_v29  ;;  %v4005_v40 = vmul.f32 %v12668_v51, %v3934_v7  ;;  %3874 = vst.msk [vmem:[#allocation2 + $0x1e0] sm:$0xff] %vm2409_vm2, %v3799_v9  ;;  %9769 = vrot.lane.b32.xlu0 %v9768_v61, %s10459_s29  ;;  %v12813_v9 = vld [vmem:[#allocation3 + $0x1a8] sm:$0xff] }
 0x2ab   : > { %v4888_v43 = vrot.slane %v12696_v35, 2  ;;  %v8821_v58 = vpop.f32.mrf.mxu1  ;;  %v4524_v11 = vsel %vm1606_vm0, %v4521_v50, %v4523_v13  ;;  %v9798_v6 = vpack.i.bf16 %v4530_v22, %v4528_v25  ;;  %v4469_v41 = vrot.slane %v12743_v46, 1 }
 0x2ac   : > { %v4466_v53 = vsel %vm1606_vm0, %v4463_v34, %v4465_v57  ;;  %4281 = vst.msk [vmem:[#allocation3 + $0x1e8] sm:$0xff] %vm2409_vm2, %v4137_v12  ;;  %v4142_v19 = vmax.f32 %v4078_v16, 0.0  ;;  %v4076_v56 = vadd.f32 %v12662_v55, %v4005_v40  ;;  %3877 = vst.msk [vmem:[#allocation2 + $0x1f8] sm:$0xff] %vm2409_vm2, %v8821_v58  ;;  %v9778_v35 = vpack.i.bf16 %v4526_v33, %v4524_v11  ;;  %v4341_v40 = vld [vmem:[#allocation3 + $0x1a0] sm:$0xff]  ;;  %v12828_v11 = vld [vmem:[#allocation3 + $0x1b0] sm:$0xff] }
 0x2ad   : > { %v4891_v20 = vsel %vm1970_vm1, %v4888_v43, %v4890_v44  ;;  %vm12777_vm11 = vcmp.ge.s32.totalorder %v822_v23, 1  ;;  %v3935_v50 = vld [vmem:[#allocation2 + $0x1c8] sm:$0xff]  ;;  %v864_v34 = vand.u32 31, %v424_v42  ;;  %v422_v8 = vadd.s32 480, %v12148_v45  ;;  %v3802_v10 = vpop.f32.mrf.mxu1  ;;  %9799 = vrot.lane.b32.xlu1 %v9798_v6, %s10455_s20 }
 0x2ae   : > { %v4828_v52 = vrot.slane %v12730_v28, 2  ;;  %v4206_v27 = vsel %vm12698_vm10, %v4142_v19, 0.0  ;;  %v4140_v61 = vmax.f32 %v4076_v56, 0.0  ;;  %v4006_v30 = vmul.f32 %v12668_v51, %v3935_v50  ;;  %3875 = vst.msk [vmem:[#allocation2 + $0x1e8] sm:$0xff] %vm2409_vm2, %v3802_v10  ;;  %9779 = vrot.lane.b32.xlu0 %v9778_v35, %s10455_s20  ;;  %v12905_v35 = vld [vmem:[#allocation3 + $0x1d0] sm:$0xff] }
 0x2af   : > { %v4889_v39 = vsel %vm1970_vm1, %v4886_v59, %v4888_v43  ;;  %4286 = vst.msk [vmem:[#allocation3 + $0x210] sm:$0xff] %vm2409_vm2, %v4206_v27  ;;  %v3940_v45 = vld [vmem:[#allocation2 + $0x1f0] sm:$0xff]  ;;  %v9783_v25 = vpack.i.bf16 %v4466_v53, %v4464_v48  ;;  %v4834_v5 = vrot.slane %v12773_v2, 2  ;;  %v4470_v59 = vsel %vm1606_vm0, %v4467_v60, %v4469_v41 }
 0x2b0   : > { %v9803_v23 = vpack.i.bf16 %v4891_v20, %v4889_v39  ;;  %v4829_v17 = vsel %vm1970_vm1, %v4826_v3, %v4828_v52  ;;  %v4204_v21 = vsel %vm12777_vm11, %v4140_v61, 0.0  ;;  %v4077_v29 = vadd.f32 %v12662_v55, %v4006_v30 }
 0x2b1   : > { %v4011_v62 = vmul.f32 %v12668_v51, %v3940_v45  ;;  %4284 = vst.msk [vmem:[#allocation3 + $0x200] sm:$0xff] %vm2409_vm2, %v4204_v21  ;;  %v850_v49 = vand.u32 31, %v422_v8  ;;  %v3938_v22 = vld [vmem:[#allocation2 + $0x1e0] sm:$0xff]  ;;  %v4468_v3 = vsel %vm1606_vm0, %v4465_v57, %v4467_v60  ;;  %v4892_v7 = vrot.slane %v12703_v24, 2  ;;  %v12862_v45 = vld [vmem:[#allocation3 + $0xb0] sm:$0xff]  ;;  %v4344_v60 = vld [vmem:[#allocation3 + $0x1b8] sm:$0xff] }
 0x2b2   : > { %9804 = vrot.lane.b32.xlu1 %v9803_v23, %s10459_s29  ;;  %v4832_v42 = vrot.slane %v12743_v46, 2  ;;  %v4141_v33 = vmax.f32 %v4077_v29, 0.0  ;;  %v4009_v12 = vmul.f32 %v12668_v51, %v3938_v22  ;;  %9784 = vrot.lane.b32.xlu0 %v9783_v25, %s10455_s20  ;;  %v4831_v16 = vsel %vm1970_vm1, %v4828_v52, %v4830_v31 }
 0x2b3   : > { %v4082_v48 = vadd.f32 %v12662_v55, %v4011_v62  ;;  %vm12821_vm12 = vcmp.le.s32.totalorder %v864_v34, 16  ;;  %v9793_v57 = vpack.i.bf16 %v4831_v16, %v4829_v17  ;;  %v9813_v43 = vpack.i.bf16 %v4470_v59, %v4468_v3  ;;  %v12868_v17 = vld [vmem:[#allocation3 + $0xc0] sm:$0xff] }
 0x2b4   : > { %v4835_v58 = vsel %vm1970_vm1, %v4832_v42, %v4834_v5  ;;  %4285 = vst.msk [vmem:[#allocation3 + $0x208] sm:$0xff] %vm2409_vm2, %v4141_v33  ;;  %v4080_v53 = vadd.f32 %v12662_v55, %v4009_v12  ;;  %v4893_v19 = vsel %vm1970_vm1, %v4890_v44, %v4892_v7  ;;  %v4535_v56 = vrot.slane %v12813_v9, 1 }
 0x2b5   : > { %v4146_v6 = vmax.f32 %v4082_v48, 0.0  ;;  %vm12836_vm13 = vcmp.ge.s32.totalorder %v850_v49, 1  ;;  %v3939_v20 = vld [vmem:[#allocation2 + $0x1e8] sm:$0xff]  ;;  %v4895_v13 = vsel %vm1970_vm1, %v4892_v7, %v4894_v36  ;;  %v4833_v50 = vsel %vm1970_vm1, %v4830_v31, %v4832_v42  ;;  %v4312_v49 = vld [vmem:[#allocation3 + $0xb8] sm:$0xff] }
 0x2b6   : > { %9814 = vrot.lane.b32.xlu1 %v9813_v43, %s10455_s20  ;;  %v4533_v15 = vrot.slane %v4341_v40, 1  ;;  %v4144_v34 = vmax.f32 %v4080_v53, 0.0  ;;  %v4010_v8 = vmul.f32 %v12668_v51, %v3939_v20  ;;  %9794 = vrot.lane.b32.xlu0 %v9793_v57, %s10459_s29  ;;  %v4537_v10 = vrot.slane %v12828_v11, 1 }
 0x2b7   : > { %v4210_v44 = vsel %vm12821_vm12, %v4146_v6, 0.0  ;;  %v9808_v52 = vpack.i.bf16 %v4895_v13, %v4893_v19  ;;  %v9828_v27 = vpack.i.bf16 %v4835_v58, %v4833_v50  ;;  %v4531_v61 = vrot.slane %v12436_v14, 1  ;;  %v12896_v14 = vld [vmem:[#allocation3 + $0x1c8] sm:$0xff]  ;;  %v12901_v58 = vld [vmem:[#allocation3 + $0x1c0] sm:$0xff] }
 0x2b8   : > { %4290 = vst.msk [vmem:[#allocation3 + $0x230] sm:$0xff] %vm2409_vm2, %v4210_v44  ;;  %v4898_v37 = vrot.slane %v12813_v9, 2  ;;  %v4208_v31 = vsel %vm12836_vm13, %v4144_v34, 0.0  ;;  %v4081_v30 = vadd.f32 %v12662_v55, %v4010_v8  ;;  %v4536_v39 = vsel %vm1606_vm0, %v4533_v15, %v4535_v56 }
 0x2b9   : > { %v4538_v51 = vsel %vm1606_vm0, %v4535_v56, %v4537_v10  ;;  %4288 = vst.msk [vmem:[#allocation3 + $0x220] sm:$0xff] %vm2409_vm2, %v4208_v31  ;;  %v4534_v23 = vsel %vm1606_vm0, %v4531_v61, %v4533_v15  ;;  %v4471_v25 = vrot.slane %v12773_v2, 1  ;;  %v4896_v55 = vrot.slane %v4341_v40, 2 }
 0x2ba   : > { %9829 = vrot.lane.b32.xlu1 %v9828_v27, %s10459_s29  ;;  %v4145_v21 = vmax.f32 %v4081_v30, 0.0  ;;  %9809 = vrot.lane.b32.xlu0 %v9808_v52, %s10459_s29  ;;  %v4532_v29 = vsel %vm1606_vm0, %v4529_v54, %v4531_v61  ;;  %v9838_v62 = vpack.i.bf16 %v4538_v51, %v4536_v39  ;;  %v4473_v59 = vrot.slane %v12862_v45, 1  ;;  %v12883_v54 = vld [vmem:[#allocation3 + $0xc8] sm:$0xff]  ;;  %v12921_v39 = vld [vmem:[#allocation3 + $0xd0] sm:$0xff] }
 0x2bb   : > { %v9818_v22 = vpack.i.bf16 %v4534_v23, %v4532_v29  ;;  %v4899_v3 = vsel %vm1970_vm1, %v4896_v55, %v4898_v37  ;;  %v4477_v7 = vrot.slane %v12868_v17, 1  ;;  %v4472_v42 = vsel %vm1606_vm0, %v4469_v41, %v4471_v25 }
 0x2bc   : > { %4289 = vst.msk [vmem:[#allocation3 + $0x228] sm:$0xff] %vm2409_vm2, %v4145_v21  ;;  %v4474_v24 = vsel %vm1606_vm0, %v4471_v25, %v4473_v59  ;;  %v4897_v9 = vsel %vm1970_vm1, %v4894_v36, %v4896_v55  ;;  %v4475_v33 = vrot.slane %v4312_v49, 1  ;;  %v4836_v12 = vrot.slane %v12862_v45, 2  ;;  %v12926_v25 = vld [vmem:[#allocation3 + $0xe0] sm:$0xff] }
 0x2bd   : > { %v9843_v48 = vpack.i.bf16 %v4899_v3, %v4897_v9  ;;  %v4838_v16 = vrot.slane %v4312_v49, 2  ;;  %v9823_v40 = vpack.i.bf16 %v4474_v24, %v4472_v42  ;;  %v4842_v41 = vrot.slane %v12883_v54, 2  ;;  %v12939_v24 = vld [vmem:[#allocation3 + $0xe8] sm:$0xff] }
 0x2be   : > { %9839 = vrot.lane.b32.xlu1 %v9838_v62, %s10455_s20  ;;  %9819 = vrot.lane.b32.xlu0 %v9818_v22, %s10455_s20  ;;  %v4478_v46 = vsel %vm1606_vm0, %v4475_v33, %v4477_v7  ;;  %v4837_v57 = vsel %vm1970_vm1, %v4834_v5, %v4836_v12  ;;  %v4476_v36 = vsel %vm1606_vm0, %v4473_v59, %v4475_v33  ;;  %v4840_v43 = vrot.slane %v12868_v17, 2  ;;  %v4316_v62 = vld [vmem:[#allocation3 + $0xd8] sm:$0xff] }
 0x2bf   : > { %v4839_v6 = vsel %vm1970_vm1, %v4836_v12, %v4838_v16  ;;  %v9853_v53 = vpack.i.bf16 %v4478_v46, %v4476_v36  ;;  %v4900_v19 = vrot.slane %v12828_v11, 2  ;;  %v4902_v56 = vrot.slane %v4344_v60, 2 }
 0x2c0   : > { %v9833_v20 = vpack.i.bf16 %v4839_v6, %v4837_v57  ;;  %v4843_v5 = vsel %vm1970_vm1, %v4840_v43, %v4842_v41  ;;  %v4543_v13 = vrot.slane %v12896_v14, 1  ;;  %v4541_v15 = vrot.slane %v12901_v58, 1 }
 0x2c1   : > { %v4901_v50 = vsel %vm1970_vm1, %v4898_v37, %v4900_v19  ;;  %v4841_v44 = vsel %vm1970_vm1, %v4838_v16, %v4840_v43  ;;  %v4545_v34 = vrot.slane %v12905_v35, 1  ;;  %v4903_v8 = vsel %vm1970_vm1, %v4900_v19, %v4902_v56  ;;  %v12955_v43 = vld [vmem:[#allocation3 + $0x1e0] sm:$0xff] }
 0x2c2   : > { %9844 = vrot.lane.b32.xlu1 %v9843_v48, %s10459_s29  ;;  %9824 = vrot.lane.b32.xlu0 %v9823_v40, %s10455_s20  ;;  %v9868_v52 = vpack.i.bf16 %v4843_v5, %v4841_v44  ;;  %v4539_v27 = vrot.slane %v4344_v60, 1  ;;  %v9848_v61 = vpack.i.bf16 %v4903_v8, %v4901_v50  ;;  %v4544_v31 = vsel %vm1606_vm0, %v4541_v15, %v4543_v13  ;;  %v12945_v40 = vld [vmem:[#allocation3 + $0x1d8] sm:$0xff]  ;;  %v12950_v60 = vld [vmem:[#allocation3 + $0x1e8] sm:$0xff] }
 0x2c3   : > { %v4546_v30 = vsel %vm1606_vm0, %v4543_v13, %v4545_v34  ;;  %v4906_v37 = vrot.slane %v12896_v14, 2  ;;  %v4479_v23 = vrot.slane %v12883_v54, 1  ;;  %v4904_v17 = vrot.slane %v12901_v58, 2 }
 0x2c4   : > { %v4542_v51 = vsel %vm1606_vm0, %v4539_v27, %v4541_v15  ;;  %v4540_v21 = vsel %vm1606_vm0, %v4537_v10, %v4539_v27  ;;  %v9878_v55 = vpack.i.bf16 %v4546_v30, %v4544_v31  ;;  %v4481_v29 = vrot.slane %v12921_v39, 1 }
 0x2c5   : > { %v9858_v59 = vpack.i.bf16 %v4542_v51, %v4540_v21  ;;  %v4907_v49 = vsel %vm1970_vm1, %v4904_v17, %v4906_v37  ;;  %v4485_v22 = vrot.slane %v12926_v25, 1  ;;  %v4480_v3 = vsel %vm1606_vm0, %v4477_v7, %v4479_v23  ;;  %v12982_v21 = vld [vmem:[#allocation3 + $0x100] sm:$0xff] }
 0x2c6   : > { %9854 = vrot.lane.b32.xlu1 %v9853_v53, %s10455_s20  ;;  %9834 = vrot.lane.b32.xlu0 %v9833_v20, %s10459_s29  ;;  %v4482_v42 = vsel %vm1606_vm0, %v4479_v23, %v4481_v29  ;;  %v4905_v11 = vsel %vm1970_vm1, %v4902_v56, %v4904_v17  ;;  %v4483_v10 = vrot.slane %v4316_v62, 1  ;;  %v4844_v33 = vrot.slane %v12921_v39, 2  ;;  %v12960_v20 = vld [vmem:[#allocation3 + $0x1f0] sm:$0xff] }
 0x2c7   : > { %v9883_v9 = vpack.i.bf16 %v4907_v49, %v4905_v11  ;;  %v4846_v48 = vrot.slane %v4316_v62, 2  ;;  %v9863_v12 = vpack.i.bf16 %v4482_v42, %v4480_v3  ;;  %v4850_v7 = vrot.slane %v12939_v24, 2  ;;  %v12977_v23 = vld [vmem:[#allocation3 + $0xf0] sm:$0xff]  ;;  %v12990_v49 = vld [vmem:[#allocation3 + $0xf8] sm:$0xff] }
 0x2c8   : > { %v4486_v16 = vsel %vm1606_vm0, %v4483_v10, %v4485_v22  ;;  %v4845_v46 = vsel %vm1970_vm1, %v4842_v41, %v4844_v33  ;;  %v4484_v57 = vsel %vm1606_vm0, %v4481_v29, %v4483_v10  ;;  %v4848_v36 = vrot.slane %v12926_v25, 2 }
 0x2c9   : > { %v4847_v6 = vsel %vm1970_vm1, %v4844_v33, %v4846_v48  ;;  %v9893_v53 = vpack.i.bf16 %v4486_v16, %v4484_v57  ;;  %v4908_v19 = vrot.slane %v12905_v35, 2  ;;  %v4910_v56 = vrot.slane %v12945_v40, 2  ;;  %v12997_v33 = vld [vmem:[#allocation3 + $0x108] sm:$0xff] }
 0x2ca   : > { %9869 = vrot.lane.b32.xlu1 %v9868_v52, %s10459_s29  ;;  %9849 = vrot.lane.b32.xlu0 %v9848_v61, %s10459_s29  ;;  %v9873_v41 = vpack.i.bf16 %v4847_v6, %v4845_v46  ;;  %v4851_v5 = vsel %vm1970_vm1, %v4848_v36, %v4850_v7  ;;  %v4551_v13 = vrot.slane %v12950_v60, 1  ;;  %v4549_v15 = vrot.slane %v12955_v43, 1  ;;  %v13005_v6 = vld [vmem:[#allocation3 + $0x1f8] sm:$0xff] }
 0x2cb   : > { %v4909_v50 = vsel %vm1970_vm1, %v4906_v37, %v4908_v19  ;;  %v4849_v44 = vsel %vm1970_vm1, %v4846_v48, %v4848_v36  ;;  %v4553_v8 = vrot.slane %v12960_v20, 1  ;;  %v4911_v52 = vsel %vm1970_vm1, %v4908_v19, %v4910_v56  ;;  %v13010_v19 = vld [vmem:[#allocation3 + $0x208] sm:$0xff] }
 0x2cc   : > { %v9908_v27 = vpack.i.bf16 %v4851_v5, %v4849_v44  ;;  %v4547_v61 = vrot.slane %v12945_v40, 1  ;;  %v9888_v31 = vpack.i.bf16 %v4911_v52, %v4909_v50  ;;  %v4552_v30 = vsel %vm1606_vm0, %v4549_v15, %v4551_v13  ;;  %v13015_v5 = vld [vmem:[#allocation3 + $0x200] sm:$0xff]  ;;  %v13020_v52 = vld [vmem:[#allocation3 + $0x210] sm:$0xff] }
 0x2cd   : > { %v4554_v37 = vsel %vm1606_vm0, %v4551_v13, %v4553_v8  ;;  %v4914_v51 = vrot.slane %v12950_v60, 2  ;;  %v4487_v17 = vrot.slane %v12939_v24, 1  ;;  %v4493_v11 = vrot.slane %v12982_v21, 1 }
 0x2ce   : > { %9879 = vrot.lane.b32.xlu1 %v9878_v55, %s10455_s20  ;;  %9859 = vrot.lane.b32.xlu0 %v9858_v59, %s10455_s20  ;;  %v4550_v25 = vsel %vm1606_vm0, %v4547_v61, %v4549_v15  ;;  %v4912_v55 = vrot.slane %v12955_v43, 2  ;;  %v4548_v29 = vsel %vm1606_vm0, %v4545_v34, %v4547_v61  ;;  %v9918_v62 = vpack.i.bf16 %v4554_v37, %v4552_v30 }
 0x2cf   : > { %v4489_v59 = vrot.slane %v12977_v23, 1  ;;  %v9898_v3 = vpack.i.bf16 %v4550_v25, %v4548_v29  ;;  %v4488_v10 = vsel %vm1606_vm0, %v4485_v22, %v4487_v17  ;;  %v4491_v48 = vrot.slane %v12990_v49, 1 }
 0x2d0   : > { %v4915_v42 = vsel %vm1970_vm1, %v4912_v55, %v4914_v51  ;;  %v4913_v34 = vsel %vm1970_vm1, %v4910_v56, %v4912_v55  ;;  %v4852_v16 = vrot.slane %v12977_v23, 2  ;;  %v4854_v46 = vrot.slane %v12990_v49, 2 }
 0x2d1   : > { %v4494_v36 = vsel %vm1606_vm0, %v4491_v48, %v4493_v11  ;;  %v4858_v22 = vrot.slane %v12997_v33, 2  ;;  %v4492_v56 = vsel %vm1606_vm0, %v4489_v59, %v4491_v48  ;;  %v4916_v15 = vrot.slane %v12960_v20, 2  ;;  %v13044_v48 = vld [vmem:[#allocation3 + $0x130] sm:$0xff] }
 0x2d2   : > { %9884 = vrot.lane.b32.xlu1 %v9883_v9, %s10459_s29  ;;  %9864 = vrot.lane.b32.xlu0 %v9863_v12, %s10455_s20  ;;  %v4490_v9 = vsel %vm1606_vm0, %v4487_v17, %v4489_v59  ;;  %v9923_v12 = vpack.i.bf16 %v4915_v42, %v4913_v34  ;;  %v4855_v13 = vsel %vm1970_vm1, %v4852_v16, %v4854_v46  ;;  %v4918_v44 = vrot.slane %v13005_v6, 2  ;;  %v13037_v42 = vld [vmem:[#allocation3 + $0x110] sm:$0xff] }
 0x2d3   : > { %v9903_v57 = vpack.i.bf16 %v4490_v9, %v4488_v10  ;;  %v9933_v50 = vpack.i.bf16 %v4494_v36, %v4492_v56  ;;  %v4559_v61 = vrot.slane %v13010_v19, 1  ;;  %v4557_v30 = vrot.slane %v13015_v5, 1  ;;  %v13039_v10 = vpop.permute.xlu1 %9679  ;;  %v13053_v56 = vld [vmem:[#allocation3 + $0x118] sm:$0xff] }
 0x2d4   : > { %v4561_v25 = vrot.slane %v13020_v52, 1  ;;  %v4919_v17 = vsel %vm1970_vm1, %v4916_v15, %v4918_v44  ;;  %v4555_v29 = vrot.slane %v13005_v6, 1  ;;  %15361 = vst [vmem:[#allocation35_spill] sm:$0xff] %v13039_v10  ;;  %v4495_v34 = vrot.slane %v12997_v33, 1 }
 0x2d5   : > { %v4560_v59 = vsel %vm1606_vm0, %v4557_v30, %v4559_v61  ;;  %vm5238_vm14 = vcmask 130048   ;;  %vm6364_vm15 = vcmask 1043456  }
 0x2d6   : > { %9894 = vrot.lane.b32.xlu1 %v9893_v53, %s10455_s20  ;;  %9874 = vrot.lane.b32.xlu0 %v9873_v41, %s10459_s29  ;;  %v4853_v53 = vsel %vm1970_vm1, %v4850_v7, %v4852_v16  ;;  %v4856_v41 = vrot.slane %v12982_v21, 2  ;;  %v4558_v9 = vsel %vm1606_vm0, %v4555_v29, %v4557_v30  ;;  %v4556_v16 = vsel %vm1606_vm0, %v4553_v8, %v4555_v29 }
 0x2d7   : > { %v9913_v7 = vpack.i.bf16 %v4855_v13, %v4853_v53  ;;  %v9938_v36 = vpack.i.bf16 %v4558_v9, %v4556_v16  ;;  %v13056_v13 = vpop.permute.xlu1 %9689  ;;  %v4860_v30 = vrot.slane %v13037_v42, 2  ;;  %v13085_v9 = vld [vmem:[#allocation3 + $0x230] sm:$0xff] }
 0x2d8   : > { %v4857_v37 = vsel %vm1970_vm1, %v4854_v46, %v4856_v41  ;;  %15362 = vst [vmem:[#allocation34_spill] sm:$0xff] %v13056_v13 }
 0x2da   : > { %9909 = vrot.lane.b32.xlu1 %v9908_v27, %s10459_s29  ;;  %9889 = vrot.lane.b32.xlu0 %v9888_v31, %s10459_s29  ;;  %v4859_v27 = vsel %vm1970_vm1, %v4856_v41, %v4858_v22  ;;  %v4917_v31 = vsel %vm1970_vm1, %v4914_v51, %v4916_v15  ;;  %v4562_v51 = vsel %vm1606_vm0, %v4559_v61, %v4561_v25  ;;  %v15047_v41 = vrot.slane %v13044_v48, 1 }
 0x2db   : > { %v9948_v55 = vpack.i.bf16 %v4859_v27, %v4857_v37  ;;  %v9958_v46 = vpack.i.bf16 %v4562_v51, %v4560_v59  ;;  %v13065_v27 = vld [vmem:[#allocation3 + $0x138] sm:$0xff]  ;;  %v4862_v37 = vrot.slane %v13053_v56, 2  ;;  %v4499_v51 = vrot.slane %v13053_v56, 1 }
 0x2dc   : > { %v4507_v61 = vrot.slane %v13065_v27, 1 }
 0x2de   : > { %9919 = vrot.lane.b32.xlu1 %v9918_v62, %s10455_s20  ;;  %9899 = vrot.lane.b32.xlu0 %v9898_v3, %s10455_s20  ;;  %v9928_v62 = vpack.i.bf16 %v4919_v17, %v4917_v31  ;;  %v4922_v3 = vrot.slane %v13010_v19, 2  ;;  %v4510_v59 = vsel %vm1606_vm0, %v4507_v61, %v4509_v18 }
 0x2e2   : > { %9924 = vrot.lane.b32.xlu1 %v9923_v12, %s10459_s29  ;;  %9904 = vrot.lane.b32.xlu0 %v9903_v57, %s10455_s20  ;;  %v4920_v12 = vrot.slane %v13015_v5, 2  ;;  %v4497_v57 = vrot.slane %v13037_v42, 1 }
 0x2e4   : > { %v4923_v53 = vsel %vm1970_vm1, %v4920_v12, %v4922_v3  ;;  %v4498_v15 = vsel %vm1606_vm0, %v4495_v34, %v4497_v57  ;;  %v4921_v8 = vsel %vm1970_vm1, %v4918_v44, %v4920_v12  ;;  %v4861_v44 = vsel %vm1970_vm1, %v4858_v22, %v4860_v30 }
 0x2e5   : > { %v9963_v31 = vpack.i.bf16 %v4923_v53, %v4921_v8  ;;  %v4863_v12 = vsel %vm1970_vm1, %v4860_v30, %v4862_v37  ;;  %v10398_v8 = vld [vmem:[#allocation3 + $0x238] sm:$0xff]  ;;  %v4500_v30 = vsel %vm1606_vm0, %v4497_v57, %v4499_v51 }
 0x2e6   : > { %9934 = vrot.lane.b32.xlu1 %v9933_v50, %s10455_s20  ;;  %9914 = vrot.lane.b32.xlu0 %v9913_v7, %s10459_s29  ;;  %v4496_v50 = vsel %vm1606_vm0, %v4493_v11, %v4495_v34  ;;  %v13061_v7 = vld [vmem:[#allocation3 + $0x120] sm:$0xff]  ;;  %v4508_v11 = vsel %vm1606_vm0, %v15047_v41, %v4507_v61  ;;  %v13087_v34 = vpop.permute.xlu1 %9694  ;;  %v9953_v53 = vpack.i.bf16 %v4863_v12, %v4861_v44  ;;  %v4571_v61 = vrot.slane %v10398_v8, 1 }
 0x2e7   : > { %v9943_v17 = vpack.i.bf16 %v4498_v15, %v4496_v50  ;;  %v4501_v29 = vrot.slane %v13061_v7, 1  ;;  %15363 = vst [vmem:[#allocation59_spill] sm:$0xff] %v13087_v34  ;;  %v9973_v16 = vpack.i.bf16 %v4510_v59, %v4508_v11  ;;  %v4569_v15 = vrot.slane %v13085_v9, 1  ;;  %v13102_v11 = vld [vmem:[#allocation3 + $0x220] sm:$0xff] }
 0x2e8   : > { %15365 = vst [vmem:[#allocation41_spill] sm:$0xff] %v13102_v11  ;;  %v4574_v57 = vsel %vm1606_vm0, %v4571_v61, %v4573_v47 }
 0x2e9   : > { %v4502_v38 = vsel %vm1606_vm0, %v4499_v51, %v4501_v29  ;;  %v4572_v8 = vsel %vm1606_vm0, %v4569_v15, %v4571_v61  ;;  %v4565_v51 = vrot.slane %v13102_v11, 1  ;;  %v4928_v61 = vrot.slane %v13102_v11, 2 }
 0x2ea   : > { %9949 = vrot.lane.b32.xlu1 %v9948_v55, %s10459_s29  ;;  %9929 = vrot.lane.b32.xlu0 %v9928_v62, %s10459_s29  ;;  %v13073_v55 = vld [vmem:[#allocation3 + $0x218] sm:$0xff]  ;;  %v13078_v62 = vld [vmem:[#allocation3 + $0x128] sm:$0xff]  ;;  %v9983_v59 = vpack.i.bf16 %v4502_v38, %v4500_v30  ;;  %v13106_v0 = vpop.permute.xlu1 %9699  ;;  %v9978_v30 = vpack.i.bf16 %v4574_v57, %v4572_v8 }
 0x2eb   : > { %v4926_v22 = vrot.slane %v13073_v55, 2  ;;  %v4866_v18 = vrot.slane %v13078_v62, 2  ;;  %15366 = vst [vmem:[#allocation36_spill] sm:$0xff] %v13106_v0  ;;  %v4503_v47 = vrot.slane %v13078_v62, 1 }
 0x2ed   : > { %v4929_v57 = vsel %vm1970_vm1, %v4926_v22, %v4928_v61 }
 0x2ee   : > { %9959 = vrot.lane.b32.xlu1 %v9958_v46, %s10455_s20  ;;  %9939 = vrot.lane.b32.xlu0 %v9938_v36, %s10455_s20  ;;  %v4924_v46 = vrot.slane %v13020_v52, 2  ;;  %v13092_v36 = vpop.permute.xlu0 %9674 }
 0x2ef   : > { %15364 = vst [vmem:[#allocation58_spill] sm:$0xff] %v13092_v36 }
 0x2f0   : > { %v4925_v50 = vsel %vm1970_vm1, %v4922_v3, %v4924_v46  ;;  %v4927_v44 = vsel %vm1970_vm1, %v4924_v46, %v4926_v22  ;;  %v15369_v22 = vrot.slane %v12412_v1, 2 }
 0x2f1   : > { %v9968_v12 = vpack.i.bf16 %v4927_v44, %v4925_v50  ;;  %v4563_v50 = vrot.slane %v13073_v55, 1 }
 0x2f2   : > { %9964 = vrot.lane.b32.xlu1 %v9963_v31, %s10459_s29  ;;  %9944 = vrot.lane.b32.xlu0 %v9943_v17, %s10455_s20  ;;  %v4358_v31 = vld [vmem:[#allocation3 + $0x228] sm:$0xff]  ;;  %v4864_v17 = vrot.slane %v13061_v7, 2 }
 0x2f3   : > { %v4567_v3 = vrot.slane %v4358_v31, 1  ;;  %v4930_v41 = vrot.slane %v4358_v31, 2  ;;  %v4566_v4 = vsel %vm1606_vm0, %v4563_v50, %v4565_v51  ;;  %v4564_v55 = vsel %vm1606_vm0, %v4561_v25, %v4563_v50 }
 0x2f4   : > { %v4865_v46 = vsel %vm1970_vm1, %v4862_v37, %v4864_v17  ;;  %v9715_v37 = vpop.permute.xlu1 %9714  ;;  %v4504_v31 = vsel %vm1606_vm0, %v4501_v29, %v4503_v47 }
 0x2f5   : > { %v4568_v44 = vsel %vm1606_vm0, %v4565_v51, %v4567_v3 }
 0x2f6   : > { %9974 = vrot.lane.b32.xlu1 %v9973_v16, %s10455_s20  ;;  %9954 = vrot.lane.b32.xlu0 %v9953_v53, %s10459_s29  ;;  %v4867_v16 = vsel %vm1970_vm1, %v4864_v17, %v4866_v18  ;;  %v13114_v53 = vpop.permute.xlu0 %9684 }
 0x2f7   : > { %15367 = vst [vmem:[#allocation39_spill] sm:$0xff] %v13114_v53  ;;  %v9998_v38 = vpack.i.bf16 %v4867_v16, %v4865_v46  ;;  %v9988_v16 = vpack.i.bf16 %v4566_v4, %v4564_v55  ;;  %v4868_v46 = vrot.slane %v13044_v48, 2 }
 0x2f9   : > { %v4869_v29 = vsel %vm1970_vm1, %v4866_v18, %v4868_v46  ;;  %v9716_v18 = vunpack.i.l.bf16 %v9715_v37 }
 0x2fa   : > { %9984 = vrot.lane.b32.xlu1 %v9983_v59, %s10455_s20  ;;  %9969 = vrot.lane.b32.xlu0 %v9968_v12, %s10459_s29  ;;  %v4570_v59 = vsel %vm1606_vm0, %v4567_v3, %v4569_v15  ;;  %v9705_v12 = vpop.permute.xlu0 %9704  ;;  %v4931_v15 = vsel %vm1970_vm1, %v4928_v61, %v4930_v41  ;;  %v15368_v3 = vrot.slane %v13044_v48, 1  ;;  %v9702_v61 = vunpack.i.h.bf16 %v13106_v0 }
 0x2fb   : > { %v10008_v17 = vpack.i.bf16 %v4570_v59, %v4568_v44  ;;  %v10013_v25 = vpack.i.bf16 %v4931_v15, %v4929_v57  ;;  %v9706_v44 = vunpack.i.l.bf16 %v9705_v12  ;;  %v4932_v59 = vrot.slane %v13085_v9, 2  ;;  %v10400_v57 = vld [vmem:[#allocation3 + $0x40] sm:$0xff] }
 0x2fc   : > { %v4506_v8 = vsel %vm1606_vm0, %v4503_v47, %v15368_v3  ;;  %v4871_v47 = vsel %vm1970_vm1, %v4868_v46, %v15369_v22 }
 0x2fd   : > { %v9993_v50 = vpack.i.bf16 %v4506_v8, %v4504_v31  ;;  %v4933_v15 = vsel %vm1970_vm1, %v4930_v41, %v4932_v59  ;;  %v9717_v31 = vunpack.i.h.bf16 %v9715_v37  ;;  %v10399_v8 = vld [vmem:[#allocation3 + $0x48] sm:$0xff]  ;;  %v5170_v1 = vsel %vm2409_vm2, %v10400_v57, %v9706_v44 }
 0x2fe   : > { %9999 = vrot.lane.b32.xlu1 %v9998_v38, %s10459_s29  ;;  %9979 = vrot.lane.b32.xlu0 %v9978_v30, %s10455_s20  ;;  %v9707_v30 = vunpack.i.h.bf16 %v9705_v12  ;;  %v15371_v37 = vrot.slane %v12103_v26, 2 }
 0x300   : > { %v5171_v9 = vsel %vm2409_vm2, %v10399_v8, %v9707_v30  ;;  %v10402_v30 = vld [vmem:[#allocation3 + $0x38] sm:$0xff] }
 0x301   : > { %v5169_v44 = vsel %vm2409_vm2, %v10402_v30, %v9702_v61 }
 0x302   : > { %10009 = vrot.lane.b32.xlu1 %v10008_v17, %s10455_s20  ;;  %9989 = vrot.lane.b32.xlu0 %v9988_v16, %s10455_s20  ;;  %v10003_v16 = vpack.i.bf16 %v4871_v47, %v4869_v29  ;;  %v4935_v29 = vsel %vm1970_vm1, %v4932_v59, %v15371_v37 }
 0x303   : > { %v13137_v51 = vpop.permute.xlu1 %9724 }
 0x304   : > { %v13140_v38 = vpop.permute.xlu0 %9709 }
 0x306   : > { %10014 = vrot.lane.b32.xlu1 %v10013_v25, %s10459_s29  ;;  %9994 = vrot.lane.b32.xlu0 %v9993_v50, %s10455_s20  ;;  %v10401_v25 = vld [vmem:[#allocation3 + $0x50] sm:$0xff] }
 0x307   : > { %v9735_v4 = vpop.permute.xlu1 %9734 }
 0x308   : > { %v9720_v55 = vpop.permute.xlu0 %9719  ;;  %v9736_v17 = vunpack.i.l.bf16 %v9735_v4  ;;  %v9737_v26 = vunpack.i.h.bf16 %v9735_v4  ;;  %v10404_v4 = vld [vmem:[#allocation3 + $0x60] sm:$0xff] }
 0x309   : > { %v9722_v3 = vunpack.i.h.bf16 %v9720_v55  ;;  %v9721_v12 = vunpack.i.l.bf16 %v9720_v55  ;;  %v10018_v55 = vpack.i.bf16 %v4935_v29, %v4933_v15 }
 0x30a   : > { %v5172_v46 = vsel %vm2409_vm2, %v10401_v25, %v9736_v17  ;;  %10004 = vrot.lane.b32.xlu0 %v10003_v16, %s10459_s29  ;;  %v13172_v16 = vsel %vm5238_vm14, %v5169_v44, %v9716_v18 }
 0x30b   : > { %v13156_v50 = vsel %vm5238_vm14, %v5171_v9, %v9721_v12  ;;  %v13158_v41 = vpop.permute.xlu1 %9739  ;;  %v13164_v22 = vsel %vm5238_vm14, %v5172_v46, %v9722_v3  ;;  %15373 = vst [vmem:[#allocation60_spill] sm:$0xff] %v13172_v16  ;;  %v13175_v12 = vsel %vm5238_vm14, %v5170_v1, %v9717_v31  ;;  %v10403_v9 = vld [vmem:[#allocation3 + $0x58] sm:$0xff] }
 0x30c   : > { %15370 = vst [vmem:[#allocation38_spill] sm:$0xff] %v13156_v50  ;;  %15372 = vst [vmem:[#allocation61_spill] sm:$0xff] %v13164_v22  ;;  %v13167_v47 = vpop.permute.xlu0 %9729  ;;  %v10028_v17 = vpack.i.bf16 %v13164_v22, %v13156_v50  ;;  %v10023_v15 = vpack.i.bf16 %v13175_v12, %v13172_v16  ;;  %v5173_v57 = vsel %vm2409_vm2, %v10403_v9, %v9737_v26 }
 0x30d   : > { %15374 = vst [vmem:[#allocation45_spill] sm:$0xff] %v13175_v12 }
 0x30e   : > { %10019 = vrot.lane.b32.xlu0 %v10018_v55, %s10459_s29  ;;  %10029 = vrot.lane.b32.xlu1 %v10028_v17, %s10458_s28 }
 0x30f   : > { %v9755_v59 = vpop.permute.xlu1 %9754 }
 0x310   : > { %v9757_v3 = vunpack.i.h.bf16 %v9755_v59  ;;  %v9756_v61 = vunpack.i.l.bf16 %v9755_v59  ;;  %v9745_v8 = vpop.permute.xlu0 %9744 }
 0x311   : > { %v9746_v18 = vunpack.i.l.bf16 %v9745_v8  ;;  %v9747_v30 = vunpack.i.h.bf16 %v9745_v8 }
 0x312   : > { %v13183_v25 = vsel %vm5238_vm14, %v5173_v57, %v9756_v61  ;;  %10024 = vrot.lane.b32.xlu0 %v10023_v15, %s10458_s28  ;;  %v10405_v61 = vld [vmem:[#allocation3 + $0x68] sm:$0xff] }
 0x313   : > { %15375 = vst [vmem:[#allocation40_spill] sm:$0xff] %v13183_v25  ;;  %v5174_v31 = vsel %vm2409_vm2, %v10404_v4, %v9746_v18  ;;  %v13187_v1 = vpop.permute.xlu1 %9764  ;;  %v5175_v15 = vsel %vm2409_vm2, %v10405_v61, %v9747_v30 }
 0x314   : > { %v13189_v46 = vpop.permute.xlu0 %9749  ;;  %v13192_v37 = vsel %vm5238_vm14, %v5174_v31, %v9757_v3  ;;  %v10406_v3 = vld [vmem:[#allocation3 + $0x70] sm:$0xff] }
 0x315   : > { %15376 = vst [vmem:[#allocation43_spill] sm:$0xff] %v13192_v37  ;;  %v13196_v29 = vpack.i.bf16 %v13192_v37, %v13183_v25  ;;  %v10407_v37 = vld [vmem:[#allocation3 + $0x88] sm:$0xff] }
 0x317   : > { %10039 = vrot.lane.b32.xlu0 %v13196_v29, %s10458_s28  ;;  %v13200_v44 = vpop.permute.xlu1 %9774 }
 0x318   : > { %v9760_v55 = vpop.permute.xlu0 %9759  ;;  %v9776_v17 = vunpack.i.l.bf16 %v13200_v44 }
 0x319   : > { %v9762_v26 = vunpack.i.h.bf16 %v9760_v55  ;;  %v9761_v59 = vunpack.i.l.bf16 %v9760_v55 }
 0x31a   : > { %v5176_v9 = vsel %vm2409_vm2, %v10406_v3, %v9776_v17 }
 0x31b   : > { %v13206_v57 = vsel %vm5238_vm14, %v5175_v15, %v9761_v59  ;;  %v13208_v8 = vpop.permute.xlu1 %9789  ;;  %v13211_v18 = vsel %vm5238_vm14, %v5176_v9, %v9762_v26 }
 0x31c   : > { %15377 = vst [vmem:[#allocation42_spill] sm:$0xff] %v13206_v57  ;;  %15378 = vst [vmem:[#allocation63_spill] sm:$0xff] %v13211_v18  ;;  %v13213_v4 = vpop.permute.xlu0 %9769  ;;  %v10048_v31 = vpack.i.bf16 %v13211_v18, %v13206_v57 }
 0x31d   : > { %15379 = vst [vmem:[#allocation62_spill] sm:$0xff] %v13213_v4 }
 0x31e   : > { %10049 = vrot.lane.b32.xlu0 %v10048_v31, %s10460_s22 }
 0x31f   : > { %v13218_v30 = vpop.permute.xlu1 %9799 }
 0x320   : > { %v13220_v55 = vpop.permute.xlu0 %9779 }
 0x322   : > { %10054 = vrot.lane.b32.xlu0 %v10048_v31, %s10458_s28 }
 0x324   : > { %v13223_v17 = vpop.permute.xlu1 %9804  ;;  %v13225_v59 = vpop.permute.xlu0 %9784 }
 0x325   : > { %v9787_v26 = vunpack.i.h.bf16 %v13225_v59 }
 0x327   : > { %v5179_v16 = vsel %vm2409_vm2, %v10407_v37, %v9787_v26 }
 0x328   : > { %v13228_v61 = vpop.permute.xlu1 %9814  ;;  %v9795_v15 = vpop.permute.xlu0 %9794 }
 0x329   : > { %v9816_v3 = vunpack.i.l.bf16 %v13228_v61  ;;  %v9797_v9 = vunpack.i.h.bf16 %v9795_v15  ;;  %v9796_v25 = vunpack.i.l.bf16 %v9795_v15 }
 0x32b   : > { %v5180_v12 = vsel %vm2409_vm2, %v12730_v28, %v9816_v3  ;;  %v13235_v31 = vsel %vm5238_vm14, %v5179_v16, %v9796_v25 }
 0x32c   : > { %15380 = vst [vmem:[#allocation8_spill] sm:$0xff] %v13235_v31  ;;  %v13237_v57 = vpop.permute.xlu1 %9829  ;;  %v13240_v18 = vsel %vm5238_vm14, %v5180_v12, %v9797_v9  ;;  %v13242_v50 = vpop.permute.xlu0 %9809 }
 0x32d   : > { %15381 = vst [vmem:[#allocation49_spill] sm:$0xff] %v13240_v18  ;;  %15382 = vst [vmem:[#allocation44_spill] sm:$0xff] %v13242_v50  ;;  %v10068_v22 = vpack.i.bf16 %v13240_v18, %v13235_v31 }
 0x32f   : > { %10069 = vrot.lane.b32.xlu0 %v10068_v22, %s10460_s22 }
 0x330   : > { %v13247_v15 = vpop.permute.xlu1 %9839  ;;  %v13249_v37 = vpop.permute.xlu0 %9819 }
 0x333   : > { %10074 = vrot.lane.b32.xlu0 %v10068_v22, %s10458_s28 }
 0x334   : > { %v13252_v28 = vpop.permute.xlu1 %9844  ;;  %v13254_v16 = vpop.permute.xlu0 %9824 }
 0x335   : > { %v9827_v12 = vunpack.i.h.bf16 %v13254_v16 }
 0x337   : > { %v5183_v18 = vsel %vm2409_vm2, %v12773_v2, %v9827_v12 }
 0x338   : > { %v13257_v25 = vpop.permute.xlu1 %9854  ;;  %v9835_v26 = vpop.permute.xlu0 %9834 }
 0x339   : > { %v9856_v3 = vunpack.i.l.bf16 %v13257_v25  ;;  %v9837_v9 = vunpack.i.h.bf16 %v9835_v26  ;;  %v9836_v31 = vunpack.i.l.bf16 %v9835_v26 }
 0x33b   : > { %v5184_v10 = vsel %vm2409_vm2, %v12862_v45, %v9856_v3  ;;  %v13265_v22 = vsel %vm5238_vm14, %v5183_v18, %v9836_v31 }
 0x33c   : > { %15383 = vst [vmem:[#allocation50_spill] sm:$0xff] %v13265_v22  ;;  %v13267_v53 = vpop.permute.xlu1 %9869  ;;  %v13270_v0 = vsel %vm5238_vm14, %v5184_v10, %v9837_v9  ;;  %v13272_v36 = vpop.permute.xlu0 %9849 }
 0x33d   : > { %15384 = vst [vmem:[#allocation47_spill] sm:$0xff] %v13270_v0  ;;  %15385 = vst [vmem:[#allocation46_spill] sm:$0xff] %v13272_v36  ;;  %v10088_v34 = vpack.i.bf16 %v13270_v0, %v13265_v22 }
 0x33f   : > { %10089 = vrot.lane.b32.xlu0 %v10088_v34, %s10460_s22 }
 0x340   : > { %v9880_v26 = vpop.permute.xlu1 %9879  ;;  %v13277_v2 = vpop.permute.xlu0 %9859 }
 0x341   : > { %v9881_v12 = vunpack.i.l.bf16 %v9880_v26  ;;  %v9882_v11 = vunpack.i.h.bf16 %v9880_v26 }
 0x343   : > { %10094 = vrot.lane.b32.xlu0 %v10088_v34, %s10458_s28  ;;  %v5218_v10 = vsel %vm2409_vm2, %v12901_v58, %v9881_v12  ;;  %v5219_v26 = vsel %vm2409_vm2, %v12896_v14, %v9882_v11 }
 0x344   : > { %v13280_v45 = vpop.permute.xlu1 %9884  ;;  %v13283_v31 = vpop.permute.xlu0 %9864 }
 0x345   : > { %v9887_v18 = vunpack.i.h.bf16 %v13280_v45  ;;  %v9867_v9 = vunpack.i.h.bf16 %v13283_v31 }
 0x347   : > { %v13288_v3 = vsel %vm5238_vm14, %v5218_v10, %v9887_v18  ;;  %v5187_v50 = vsel %vm2409_vm2, %v12883_v54, %v9867_v9 }
 0x348   : > { %15386 = vst [vmem:[#allocation5_spill] sm:$0xff] %v13288_v3  ;;  %v13291_v22 = vpop.permute.xlu1 %9894  ;;  %v9875_v0 = vpop.permute.xlu0 %9874 }
 0x349   : > { %v9896_v36 = vunpack.i.l.bf16 %v13291_v22  ;;  %v9877_v34 = vunpack.i.h.bf16 %v9875_v0  ;;  %v9876_v13 = vunpack.i.l.bf16 %v9875_v0 }
 0x34b   : > { %v5188_v4 = vsel %vm2409_vm2, %v12921_v39, %v9896_v36  ;;  %v13299_v58 = vsel %vm5238_vm14, %v5187_v50, %v9876_v13 }
 0x34c   : > { %15387 = vst [vmem:[#allocation64_spill] sm:$0xff] %v13299_v58  ;;  %v13302_v12 = vsel %vm5238_vm14, %v5188_v4, %v9877_v34  ;;  %v13304_v18 = vpop.permute.xlu1 %9909  ;;  %v9890_v10 = vpop.permute.xlu0 %9889 }
 0x34d   : > { %15388 = vst [vmem:[#allocation4_spill] sm:$0xff] %v13302_v12  ;;  %v10108_v63 = vpack.i.bf16 %v13302_v12, %v13299_v58  ;;  %v9891_v0 = vunpack.i.l.bf16 %v9890_v10  ;;  %v9892_v9 = vunpack.i.h.bf16 %v9890_v10 }
 0x34f   : > { %10109 = vrot.lane.b32.xlu0 %v10108_v63, %s10460_s22  ;;  %v13312_v54 = vsel %vm5238_vm14, %v5219_v26, %v9891_v0 }
 0x350   : > { %15389 = vst [vmem:[#allocation6_spill] sm:$0xff] %v13312_v54  ;;  %v9920_v39 = vpop.permute.xlu1 %9919  ;;  %v9900_v13 = vpop.permute.xlu0 %9899 }
 0x351   : > { %v9902_v36 = vunpack.i.h.bf16 %v9900_v13  ;;  %v9901_v50 = vunpack.i.l.bf16 %v9900_v13  ;;  %v9921_v4 = vunpack.i.l.bf16 %v9920_v39 }
 0x353   : > { %10114 = vrot.lane.b32.xlu0 %v10108_v63, %s10458_s28  ;;  %v5220_v34 = vsel %vm2409_vm2, %v12905_v35, %v9901_v50  ;;  %v5221_v0 = vsel %vm2409_vm2, %v12945_v40, %v9902_v36  ;;  %v5222_v26 = vsel %vm2409_vm2, %v12955_v43, %v9921_v4 }
 0x354   : > { %v9925_v58 = vpop.permute.xlu1 %9924  ;;  %v13318_v12 = vsel %vm5238_vm14, %v5220_v34, %v9892_v9  ;;  %v13320_v3 = vpop.permute.xlu0 %9904 }
 0x355   : > { %15390 = vst [vmem:[#allocation65_spill] sm:$0xff] %v13318_v12  ;;  %v9927_v14 = vunpack.i.h.bf16 %v9925_v58  ;;  %v9926_v11 = vunpack.i.l.bf16 %v9925_v58  ;;  %v9907_v35 = vunpack.i.h.bf16 %v13320_v3  ;;  %v9922_v12 = vunpack.i.h.bf16 %v9920_v39 }
 0x357   : > { %v13327_v10 = vsel %vm5238_vm14, %v5221_v0, %v9926_v11  ;;  %v13330_v63 = vsel %vm5238_vm14, %v5222_v26, %v9927_v14  ;;  %v5191_v40 = vsel %vm2409_vm2, %v12939_v24, %v9907_v35  ;;  %v5223_v39 = vsel %vm2409_vm2, %v12950_v60, %v9922_v12 }
 0x358   : > { %15391 = vst [vmem:[#allocation48_spill] sm:$0xff] %v13327_v10  ;;  %15392 = vst [vmem:[#allocation7_spill] sm:$0xff] %v13330_v63  ;;  %v13333_v13 = vpop.permute.xlu1 %9934  ;;  %v9915_v50 = vpop.permute.xlu0 %9914 }
 0x359   : > { %v9936_v58 = vunpack.i.l.bf16 %v13333_v13  ;;  %v9917_v9 = vunpack.i.h.bf16 %v9915_v50  ;;  %v9916_v34 = vunpack.i.l.bf16 %v9915_v50 }
 0x35b   : > { %v5192_v43 = vsel %vm2409_vm2, %v12977_v23, %v9936_v58  ;;  %v13341_v36 = vsel %vm5238_vm14, %v5191_v40, %v9916_v34  ;;  %v10356_v34 = vld [vmem:[%s14912_s4 + $0x20] ss:$0 sps:$4 sm:$0xff]  }
 0x35c   : > { %15393 = vst [vmem:[#allocation9_spill] sm:$0xff] %v13341_v36  ;;  %v13344_v4 = vsel %vm5238_vm14, %v5192_v43, %v9917_v9  ;;  %v13346_v14 = vpop.permute.xlu1 %9949  ;;  %v9930_v11 = vpop.permute.xlu0 %9929  ;;  %8970 = vmatprep.subr.msk.bf16.mxu1 %vm6364_vm15, %v10356_v34  ;;  %v6366_v43 = vsel %vm6364_vm15, %v10356_v34, 0  ;;  %v9727_v34 = vunpack.i.h.bf16 %v13137_v51 }
 0x35d   : > { %15394 = vst [vmem:[#allocation13_spill] sm:$0xff] %v13344_v4  ;;  %v10128_v0 = vpack.i.bf16 %v13344_v4, %v13341_v36  ;;  %v9931_v26 = vunpack.i.l.bf16 %v9930_v11  ;;  %v9932_v40 = vunpack.i.h.bf16 %v9930_v11  ;;  %8823 = vmatpush3.bf16.msra.mxu1 %v6366_v43 }
 0x35f   : > { %10129 = vrot.lane.b32.xlu0 %v10128_v0, %s10460_s22  ;;  %v13354_v24 = vsel %vm5238_vm14, %v5223_v39, %v9931_v26  ;;  %v9711_v26 = vunpack.i.l.bf16 %v13140_v38 }
 0x360   : > { %15395 = vst [vmem:[#allocation11_spill] sm:$0xff] %v13354_v24  ;;  %v9960_v23 = vpop.permute.xlu1 %9959  ;;  %v9940_v35 = vpop.permute.xlu0 %9939  ;;  %v9792_v24 = vunpack.i.h.bf16 %v13208_v8 }
 0x361   : > { %v9942_v50 = vunpack.i.h.bf16 %v9940_v35  ;;  %v9941_v58 = vunpack.i.l.bf16 %v9940_v35  ;;  %v9961_v9 = vunpack.i.l.bf16 %v9960_v23 }
 0x363   : > { %10134 = vrot.lane.b32.xlu0 %v10128_v0, %s10458_s28  ;;  %v5224_v60 = vsel %vm2409_vm2, %v12960_v20, %v9941_v58  ;;  %v5225_v11 = vsel %vm2409_vm2, %v13005_v6, %v9942_v50  ;;  %v5226_v0 = vsel %vm2409_vm2, %v13015_v5, %v9961_v9  ;;  %v9726_v6 = vunpack.i.l.bf16 %v13137_v51 }
 0x364   : > { %v9965_v12 = vpop.permute.xlu1 %9964  ;;  %v13364_v39 = vsel %vm5238_vm14, %v5224_v60, %v9932_v40  ;;  %v13366_v4 = vpop.permute.xlu0 %9944  ;;  %v10408_v60 = vld [vmem:[#allocation3 + $0x140] sm:$0xff]  ;;  %v9786_v5 = vunpack.i.l.bf16 %v13225_v59  ;;  %v9962_v50 = vunpack.i.h.bf16 %v9960_v23 }
 0x365   : > { %15396 = vst [vmem:[#allocation10_spill] sm:$0xff] %v13364_v39  ;;  %v9967_v35 = vunpack.i.h.bf16 %v9965_v12  ;;  %v9966_v36 = vunpack.i.l.bf16 %v9965_v12  ;;  %v5202_v12 = vsel %vm2409_vm2, %v10408_v60, %v9711_v26  ;;  %v9741_v60 = vunpack.i.l.bf16 %v13158_v41 }
 0x366   : > { %v13394_v26 = vsel %vm5238_vm14, %v5202_v12, %v9727_v34  ;;  %v5227_v54 = vsel %vm2409_vm2, %v13010_v19, %v9962_v50 }
 0x367   : > { %v13373_v20 = vsel %vm5238_vm14, %v5225_v11, %v9966_v36  ;;  %v13376_v58 = vsel %vm5238_vm14, %v5226_v0, %v9967_v35  ;;  %v9947_v36 = vunpack.i.h.bf16 %v13366_v4  ;;  %15400 = vst [vmem:[#allocation14_spill] sm:$0xff] %v13394_v26 }
 0x368   : > { %15397 = vst [vmem:[#allocation12_spill] sm:$0xff] %v13373_v20  ;;  %15398 = vst [vmem:[#allocation17_spill] sm:$0xff] %v13376_v58  ;;  %v13379_v40 = vpop.permute.xlu1 %9974  ;;  %v9955_v43 = vpop.permute.xlu0 %9954 }
 0x369   : > { %v9977_v39 = vunpack.i.h.bf16 %v13379_v40  ;;  %v9956_v35 = vunpack.i.l.bf16 %v9955_v43  ;;  %v9957_v34 = vunpack.i.h.bf16 %v9955_v43 }
 0x36b   : > { %v5201_v9 = vsel %vm2409_vm2, %v13065_v27, %v9977_v39  ;;  %v10357_v27 = vld [vmem:[%s14912_s4 + $0x18] sm:$0xff]   ;;  %v9777_v39 = vunpack.i.h.bf16 %v13200_v44  ;;  %v9791_v44 = vunpack.i.l.bf16 %v13208_v8  ;;  %v9731_v8 = vunpack.i.l.bf16 %v13167_v47 }
 0x36c   : > { %v13389_v11 = vsel %vm5238_vm14, %v5201_v9, %v9726_v6  ;;  %v13391_v0 = vpop.permute.xlu1 %9984  ;;  %v9970_v51 = vpop.permute.xlu0 %9969  ;;  %v10409_v6 = vld [vmem:[#allocation3 + $0x80] sm:$0xff]  ;;  %8824 = vmatprep.subr.bf16.mxu1 %v10357_v27 }
 0x36d   : > { %15399 = vst [vmem:[#allocation15_spill] sm:$0xff] %v13389_v11  ;;  %v9986_v59 = vunpack.i.l.bf16 %v13391_v0  ;;  %v13400_v23 = vpack.i.bf16 %v13394_v26, %v13389_v11  ;;  %v5178_v9 = vsel %vm2409_vm2, %v10409_v6, %v9786_v5  ;;  %v9971_v12 = vunpack.i.l.bf16 %v9970_v51  ;;  %8825 = vmatpush3.bf16.msra.mxu1 %v10357_v27 }
 0x36e   : > { %v5195_v26 = vsel %vm2409_vm2, %v12997_v33, %v9947_v36  ;;  %v9712_v33 = vunpack.i.h.bf16 %v13140_v38  ;;  %v9732_v36 = vunpack.i.h.bf16 %v13167_v47  ;;  %v9826_v38 = vunpack.i.l.bf16 %v13254_v16  ;;  %v10358_v47 = vld [vmem:[%s14912_s4 + $0x10] sm:$0xff]  }
 0x36f   : > { %v5196_v11 = vsel %vm2409_vm2, %v13037_v42, %v9986_v59  ;;  %10034 = vrot.lane.b32.xlu1 %v13400_v23, %s10460_s22  ;;  %v13418_v43 = vsel %vm5238_vm14, %v5195_v26, %v9956_v35  ;;  %v13421_v5 = vsel %vm5238_vm14, %v5227_v54, %v9971_v12  ;;  %v13434_v35 = vsel %vm5238_vm14, %v5178_v9, %v9792_v24  ;;  %v10410_v54 = vld [vmem:[#allocation3 + $0x150] sm:$0xff]  ;;  %v10412_v24 = vld [vmem:[#allocation3 + $0x148] sm:$0xff] }
 0x370   : > { %15401 = vst [vmem:[#allocation16_spill] sm:$0xff] %v13421_v5  ;;  %v13424_v19 = vsel %vm5238_vm14, %v5196_v11, %v9957_v34  ;;  %v13427_v50 = vpop.permute.xlu0 %9979  ;;  %v5204_v26 = vsel %vm2409_vm2, %v10410_v54, %v9741_v60  ;;  %v10411_v11 = vld [vmem:[#allocation3 + $0x78] sm:$0xff]  ;;  %v5203_v60 = vsel %vm2409_vm2, %v10412_v24, %v9712_v33  ;;  %8826 = vmatprep.subr.bf16.mxu1 %v10358_v47  ;;  %v9817_v12 = vunpack.i.h.bf16 %v13228_v61 }
 0x371   : > { %v10148_v42 = vpack.i.bf16 %v13424_v19, %v13418_v43  ;;  %v5177_v59 = vsel %vm2409_vm2, %v10411_v11, %v9777_v39  ;;  %v13457_v39 = vsel %vm5238_vm14, %v5203_v60, %v9731_v8  ;;  %v13461_v34 = vsel %vm5238_vm14, %v5204_v26, %v9732_v36  ;;  %v13467_v11 = vld [vmem:[#allocation3 + $0x258] sm:$0xff]  ;;  %8827 = vmatpush3.bf16.msra.mxu1 %v10358_v47 }
 0x372   : > { %v13443_v27 = vsel %vm5238_vm14, %v5177_v59, %v9791_v44  ;;  %15402 = vst [vmem:[#allocation21_spill] sm:$0xff] %v13457_v39  ;;  %v10413_v44 = vld [vmem:[#allocation3 + $0xa0] sm:$0xff]  ;;  %v9972_v54 = vunpack.i.h.bf16 %v9970_v51  ;;  %v9832_v8 = vunpack.i.h.bf16 %v13237_v57  ;;  %v9831_v59 = vunpack.i.l.bf16 %v13237_v57 }
 0x373   : > { %10044 = vrot.lane.b32.xlu1 %v13196_v29, %s10460_s22  ;;  %10149 = vrot.lane.b32.xlu0 %v10148_v42, %s10460_s22  ;;  %v10058_v16 = vpack.i.bf16 %v13434_v35, %v13443_v27  ;;  %v10359_v29 = vld [vmem:[%s14912_s4 + $0x8] sm:$0xff]   ;;  %v5182_v33 = vsel %vm2409_vm2, %v10413_v44, %v9826_v38  ;;  %v13480_v51 = vpack.i.bf16 %v13461_v34, %v13457_v39  ;;  %v10414_v38 = vld [vmem:[#allocation3 + $0x98] sm:$0xff]  ;;  %v9866_v24 = vunpack.i.l.bf16 %v13283_v31  ;;  %v6991_v31 = vld [vmem:[%s14915_s7] sm:$0x3] }
 0x374   : > { %v13449_v6 = vpop.permute.xlu0 %9989  ;;  %8828 = vmatprep.subr.bf16.mxu1 %v10359_v29  ;;  %v13486_v57 = vsel %vm5238_vm14, %v5182_v33, %v9832_v8  ;;  %v5181_v47 = vsel %vm2409_vm2, %v10414_v38, %v9817_v12  ;;  %v9976_v60 = vunpack.i.l.bf16 %v13379_v40  ;;  %v9857_v40 = vunpack.i.h.bf16 %v13257_v25  ;;  %8971 = vmatprep.subr.msk.bf16.mxu0 %vm3521_vm4, %v6991_v31 }
 0x375   : > { %v9991_v9 = vunpack.i.l.bf16 %v13449_v6  ;;  %v13497_v44 = vsel %vm5238_vm14, %v5181_v47, %v9831_v59  ;;  %8829 = vmatpush3.bf16.msra.mxu1 %v10359_v29  ;;  %v15403_v8 = vrot.slane %v12097_v32, 1  ;;  %v10415_v29 = vld [vmem:[#allocation3 + $0xc0] sm:$0xff]  ;;  %v7249_v25 = vsel %vm3521_vm4, %v6991_v31, 0 }
 0x376   : > { %v5186_v59 = vsel %vm2409_vm2, %v10415_v29, %v9866_v24  ;;  %v5200_v38 = vsel %vm2409_vm2, %v13044_v48, %v9976_v60  ;;  %v9872_v32 = vunpack.i.h.bf16 %v13267_v53  ;;  %8897 = vmatpush3.bf16.msra.mxu0 %v7249_v25  ;;  %v10361_v24 = vld [vmem:[%s10530_s18 + $0x20] sm:$0xff]   ;;  %v10362_v60 = vld [vmem:[%s10530_s18 + $0x28] sm:$0xff]   ;;  %v9742_v25 = vunpack.i.h.bf16 %v13158_v41 }
 0x377   : > { %10059 = vrot.lane.b32.xlu1 %v10058_v16, %s10460_s22  ;;  %10154 = vrot.lane.b32.xlu0 %v10148_v42, %s10458_s28  ;;  %v5228_v36 = vsel %vm2409_vm2, %v13020_v52, %v9991_v9  ;;  %v10360_v42 = vld [vmem:[%s14912_s4] sm:$0xff]   ;;  %v4579_v52 = vrot.slane %v13467_v11, 1 }
 0x378   : > { %v13474_v61 = vsel %vm5238_vm14, %v5228_v36, %v9972_v54  ;;  %v13476_v26 = vpop.permute.xlu0 %9994  ;;  %v10078_v54 = vpack.i.bf16 %v13486_v57, %v13497_v44  ;;  %8830 = vmatprep.subr.bf16.mxu1 %v10360_v42  ;;  %8898 = vmatprep.mubr.msk.bf16.mxu0 %vm2335_vm3, %v10361_v24  ;;  %v4365_v29 = vld [vmem:[#allocation3 + $0x260] sm:$0xff]  ;;  %v9766_v24 = vunpack.i.l.bf16 %v13187_v1 }
 0x379   : > { %v9997_v9 = vunpack.i.h.bf16 %v13476_v26  ;;  %v4580_v36 = vsel %vm1606_vm0, %v15403_v8, %v4579_v52  ;;  %8831 = vmatpush3.bf16.msra.mxu1 %v10360_v42  ;;  %8899 = vmatmul.mubr.msk.bf16.vlgmr.msra.gmra.mxu0 %vm2335_vm3, %v10362_v60  ;;  %vm5836_vm0 = vcmask 392192  }
 0x37b   : > { %10064 = vrot.lane.b32.xlu1 %v10058_v16, %s10458_s28  ;;  %10169 = vrot.lane.b32.xlu0 %v13480_v51, %s10460_s22  ;;  %v5199_v47 = vsel %vm2409_vm2, %v13078_v62, %v9997_v9  ;;  %v13527_v62 = vsel %vm5238_vm14, %v5186_v59, %v9872_v32  ;;  %v10416_v9 = vld [vmem:[#allocation3 + $0xb8] sm:$0xff]  ;;  %v10417_v59 = vld [vmem:[#allocation3 + $0xe0] sm:$0xff]  ;;  %v10363_v32 = vld [vmem:[%s10530_s18 + $0x30] sm:$0xff]  }
 0x37c   : > { %v10005_v33 = vpop.permute.xlu0 %10004  ;;  %v5185_v31 = vsel %vm2409_vm2, %v10416_v9, %v9857_v40  ;;  %v9897_v40 = vunpack.i.h.bf16 %v13291_v22  ;;  %v9767_v22 = vunpack.i.h.bf16 %v13187_v1  ;;  %v10418_v9 = vld [vmem:[#allocation3 + $0x160] sm:$0xff]  ;;  %8902 = vmatprep.mubr.msk.bf16.mxu0 %vm2335_vm3, %v10363_v32  ;;  %v9951_v32 = vunpack.i.l.bf16 %v13346_v14 }
 0x37d   : > { %v10007_v12 = vunpack.i.h.bf16 %v10005_v33  ;;  %v10006_v16 = vunpack.i.l.bf16 %v10005_v33  ;;  %v9871_v33 = vunpack.i.l.bf16 %v13267_v53  ;;  %v9906_v53 = vunpack.i.l.bf16 %v13320_v3 }
 0x37e   : > { %v9751_v3 = vunpack.i.l.bf16 %v13189_v46 }
 0x37f   : > { %10079 = vrot.lane.b32.xlu1 %v10078_v54, %s10460_s22  ;;  %v13519_v8 = vsel %vm5238_vm14, %v5200_v38, %v10007_v12  ;;  %v13522_v39 = vsel %vm5238_vm14, %v5199_v47, %v10006_v16  ;;  %v10188_v12 = vpack.i.bf16 %v4579_v52, %v4580_v36  ;;  %v13536_v42 = vsel %vm5238_vm14, %v5185_v31, %v9871_v33  ;;  %v10364_v33 = vld [vmem:[%s10530_s18 + $0x38] sm:$0xff]  }
 0x380   : > { %v10183_v48 = vpack.i.bf16 %v13519_v8, %v13522_v39  ;;  %v10098_v16 = vpack.i.bf16 %v13527_v62, %v13536_v42  ;;  %v5190_v52 = vsel %vm2409_vm2, %v10417_v59, %v9906_v53  ;;  %v9911_v36 = vunpack.i.l.bf16 %v13304_v18  ;;  %v10419_v53 = vld [vmem:[#allocation3 + $0xd8] sm:$0xff] }
 0x381   : > { %v4942_v38 = vrot.slane %v13467_v11, 2  ;;  %v4944_v47 = vrot.slane %v4365_v29, 2  ;;  %v5206_v31 = vsel %vm2409_vm2, %v10418_v9, %v9751_v3  ;;  %v10420_v29 = vld [vmem:[#allocation3 + $0x158] sm:$0xff]  ;;  %8903 = vmatmul.mubr.msk.bf16.gmra.mxu0 %vm2335_vm3, %v10364_v33  ;;  %v9807_v59 = vunpack.i.h.bf16 %v13223_v17  ;;  %v10365_v9 = vld [vmem:[%s10530_s18 + $0x40] sm:$0xff]  }
 0x382   : > { %10184 = vrot.lane.b32.xlu0 %v10183_v48, %s10460_s22  ;;  %v5205_v3 = vsel %vm2409_vm2, %v10420_v29, %v9742_v25  ;;  %v9952_v25 = vunpack.i.h.bf16 %v13346_v14  ;;  %v10421_v33 = vld [vmem:[#allocation3 + $0x178] sm:$0xff]  ;;  %8906 = vmatprep.mubr.msk.bf16.mxu0 %vm2335_vm3, %v10365_v9  ;;  %v9822_v29 = vunpack.i.h.bf16 %v13249_v37 }
 0x383   : > { %10084 = vrot.lane.b32.xlu1 %v10078_v54, %s10458_s28  ;;  %v9912_v54 = vunpack.i.h.bf16 %v13304_v18  ;;  %v5189_v18 = vsel %vm2409_vm2, %v10419_v53, %v9897_v40  ;;  %v4945_v1 = vsel %vm1970_vm1, %v4942_v38, %v4944_v47  ;;  %v9782_v40 = vunpack.i.h.bf16 %v13220_v55 }
 0x384   : > { %v13564_v41 = vsel %vm5238_vm14, %v5189_v18, %v9911_v36  ;;  %v9937_v36 = vunpack.i.h.bf16 %v13333_v13 }
 0x385   : > { %v13556_v60 = vsel %vm5238_vm14, %v5190_v52, %v9912_v54  ;;  %v9806_v52 = vunpack.i.l.bf16 %v13223_v17  ;;  %v13582_v54 = vsel %vm5238_vm14, %v5206_v31, %v9767_v22  ;;  %v10422_v17 = vld [vmem:[#allocation3 + $0x180] sm:$0xff] }
 0x386   : > { %10189 = vrot.lane.b32.xlu0 %v10188_v12, %s10455_s20  ;;  %v9946_v12 = vunpack.i.l.bf16 %v13366_v4  ;;  %v9801_v4 = vunpack.i.l.bf16 %v13218_v30  ;;  %v5193_v18 = vsel %vm2409_vm2, %v12990_v49, %v9937_v36 }
 0x387   : > { %10099 = vrot.lane.b32.xlu1 %v10098_v16, %s10460_s22 }
 0x388   : > { %v5194_v47 = vsel %vm2409_vm2, %v12982_v21, %v9946_v12  ;;  %v5210_v22 = vsel %vm2409_vm2, %v10422_v17, %v9801_v4  ;;  %v10366_v21 = vld [vmem:[%s10530_s18 + $0x48] sm:$0xff]   ;;  %v9996_v12 = vunpack.i.l.bf16 %v13476_v26  ;;  %v9847_v4 = vunpack.i.h.bf16 %v13252_v28  ;;  %v10367_v17 = vld [vmem:[%s10530_s18 + $0x50] sm:$0xff]  }
 0x389   : > { %v13603_v53 = vsel %vm5238_vm14, %v5210_v22, %v9807_v59  ;;  %v13606_v14 = vsel %vm5238_vm14, %v5194_v47, %v9952_v25  ;;  %8907 = vmatmul.mubr.msk.bf16.gmra.mxu0 %vm2335_vm3, %v10366_v21  ;;  %v9987_v59 = vunpack.i.h.bf16 %v13391_v0  ;;  %v10423_v25 = vld [vmem:[#allocation3 + $0x198] sm:$0xff] }
 0x38a   : > { %10199 = vrot.lane.b32.xlu0 %v10183_v48, %s10458_s28  ;;  %v10118_v48 = vpack.i.bf16 %v13556_v60, %v13564_v41  ;;  %v10368_v22 = vld [vmem:[%s10530_s18 + $0x58] sm:$0xff]   ;;  %8910 = vmatprep.mubr.msk.bf16.mxu0 %vm2335_vm3, %v10367_v17  ;;  %v9781_v17 = vunpack.i.l.bf16 %v13220_v55 }
 0x38b   : > { %10104 = vrot.lane.b32.xlu1 %v10098_v16, %s10458_s28  ;;  %v13577_v16 = vsel %vm5238_vm14, %v5205_v3, %v9766_v24  ;;  %v5209_v24 = vsel %vm2409_vm2, %v10421_v33, %v9782_v40  ;;  %v9841_v3 = vunpack.i.l.bf16 %v13247_v15  ;;  %v10000_v40 = vpop.permute.xlu1 %9999  ;;  %v10424_v33 = vld [vmem:[#allocation3 + $0x1a0] sm:$0xff]  ;;  %v5197_v9 = vsel %vm2409_vm2, %v13053_v56, %v9987_v59  ;;  %v15405_v59 = vld [vmem:[#allocation5_spill] sm:$0xff] }
 0x38c   : > { %v13595_v13 = vpack.i.bf16 %v13582_v54, %v13577_v16  ;;  %v13600_v31 = vsel %vm5238_vm14, %v5209_v24, %v9806_v52  ;;  %v5198_v52 = vsel %vm2409_vm2, %v13061_v7, %v9996_v12  ;;  %v10002_v36 = vunpack.i.h.bf16 %v10000_v40 }
 0x38d   : > { %v10218_v49 = vpack.i.bf16 %v13603_v53, %v13600_v31  ;;  %v10001_v47 = vunpack.i.l.bf16 %v10000_v40  ;;  %v5214_v24 = vsel %vm2409_vm2, %v10424_v33, %v9841_v3  ;;  %v9886_v56 = vunpack.i.l.bf16 %v13280_v45  ;;  %v10425_v3 = vld [vmem:[#allocation3 + $0x1b8] sm:$0xff]  ;;  %v13672_v45 = vld [vmem:[#allocation3 + $0x250] sm:$0xff] }
 0x38e   : > { %5090 = vrot.lane.b32.xlu0 %v4945_v1, %s10459_s29  ;;  %v13615_v1 = vsel %vm5238_vm14, %v5193_v18, %v9951_v32  ;;  %v5213_v32 = vsel %vm2409_vm2, %v10423_v25, %v9822_v29  ;;  %v13640_v0 = vsel %vm5238_vm14, %v5214_v24, %v9847_v4  ;;  %v13643_v7 = vsel %vm5238_vm14, %v5198_v52, %v10002_v36  ;;  %v13667_v4 = vpop.permute.xlu0 %10019  ;;  %v10370_v36 = vld [vmem:[%s10530_s18 + $0x68] sm:$0xff]   ;;  %v10371_v24 = vld [vmem:[%s10530_s18 + $0x70] sm:$0xff]  }
 0x38f   : > { %10119 = vrot.lane.b32.xlu1 %v10118_v48, %s10460_s22  ;;  %v10138_v26 = vpack.i.bf16 %v13606_v14, %v13615_v1  ;;  %v13650_v21 = vsel %vm5238_vm14, %v5197_v9, %v10001_v47  ;;  %v9862_v18 = vunpack.i.h.bf16 %v13277_v2  ;;  %v15406_v47 = vld [vmem:[#allocation32_spill] sm:$0xff]  ;;  %v10372_v9 = vld [vmem:[%s10530_s18 + $0x78] sm:$0xff]  }
 0x390   : > { %v10158_v29 = vpack.i.bf16 %v13643_v7, %v13650_v21  ;;  %v15407_v25 = vrot.slane %v15406_v47, 2 }
 0x391   : > { %8911 = vmatmul.mubr.msk.bf16.gmra.mxu0 %vm2335_vm3, %v10368_v22  ;;  %v5217_v40 = vsel %vm2409_vm2, %v10425_v3, %v9862_v18  ;;  %v13697_v18 = vpop.permute.xlu1 %10009 }
 0x392   : > { %10209 = vrot.lane.b32.xlu0 %v13595_v13, %s10458_s28  ;;  %v13688_v33 = vpop.permute.xlu0 %10024 }
 0x393   : > { %10124 = vrot.lane.b32.xlu1 %v10118_v48, %s10458_s28  ;;  %v9846_v48 = vunpack.i.l.bf16 %v13252_v28 }
 0x395   : > { %v13637_v28 = vsel %vm5238_vm14, %v5213_v32, %v9846_v48  ;;  %v4940_v48 = vrot.slane %v13672_v45, 2  ;;  %v10015_v47 = vpop.permute.xlu1 %10014 }
 0x396   : > { %10219 = vrot.lane.b32.xlu0 %v10218_v49, %s10460_s22  ;;  %v10238_v12 = vpack.i.bf16 %v13640_v0, %v13637_v28 }
 0x397   : > { %10139 = vrot.lane.b32.xlu1 %v10138_v26, %s10460_s22  ;;  %v4941_v32 = vsel %vm1970_vm1, %v15407_v25, %v4940_v48 }
 0x39a   : > { %10229 = vrot.lane.b32.xlu0 %v10218_v49, %s10458_s28  ;;  %v10369_v49 = vld [vmem:[%s10530_s18 + $0x60] sm:$0xff]  }
 0x39b   : > { %10144 = vrot.lane.b32.xlu1 %v10138_v26, %s10458_s28  ;;  %v13665_v26 = vsel %vm5238_vm14, %v5217_v40, %v9886_v56  ;;  %8914 = vmatprep.mubr.msk.bf16.mxu0 %vm2335_vm3, %v10369_v49  ;;  %v13703_v56 = vpop.permute.xlu0 %10039 }
 0x39c   : > { %15404 = vst [vmem:[#allocation19_spill] sm:$0xff] %v13665_v26  ;;  %v10258_v52 = vpack.i.bf16 %v15405_v59, %v13665_v26  ;;  %8915 = vmatmul.mubr.msk.bf16.gmra.mxu0 %vm2335_vm3, %v10370_v36  ;;  %v9821_v36 = vunpack.i.l.bf16 %v13249_v37  ;;  %v10298_v37 = vpack.i.bf16 %v13376_v58, %v13373_v20  ;;  %v9861_v20 = vunpack.i.l.bf16 %v13277_v2 }
 0x39d   : > { %8918 = vmatprep.mubr.msk.bf16.mxu0 %vm2335_vm3, %v10371_v24  ;;  %v9992_v24 = vunpack.i.h.bf16 %v13449_v6  ;;  %v15411_v6 = vld [vmem:[#allocation44_spill] sm:$0xff] }
 0x39e   : > { %10239 = vrot.lane.b32.xlu0 %v10238_v12, %s10460_s22 }
 0x39f   : > { %10159 = vrot.lane.b32.xlu1 %v10158_v29, %s10460_s22  ;;  %v13716_v25 = vpop.permute.xlu0 %10049 }
 0x3a2   : > { %10249 = vrot.lane.b32.xlu0 %v10238_v12, %s10458_s28  ;;  %v9752_v12 = vunpack.i.h.bf16 %v13189_v46  ;;  %v10373_v46 = vld [vmem:[%s10530_s18 + $0x80] sm:$0xff]  }
 0x3a3   : > { %10164 = vrot.lane.b32.xlu1 %v13400_v23, %s10458_s28  ;;  %v4943_v23 = vsel %vm1970_vm1, %v4940_v48, %v4942_v38  ;;  %v10278_v38 = vpack.i.bf16 %v13330_v63, %v13327_v10  ;;  %v10428_v48 = vld [vmem:[#allocation3 + $0x168] sm:$0xff]  ;;  %vm6267_vm1 = vcmask 588800  }
 0x3a4   : > { %v10193_v22 = vpack.i.bf16 %v4943_v23, %v4941_v32  ;;  %8919 = vmatmul.mubr.msk.bf16.gmra.mxu0 %vm2335_vm3, %v10372_v9  ;;  %v10374_v23 = vld [vmem:[%s10530_s18 + $0x88] sm:$0xff]   ;;  %v10017_v9 = vunpack.i.h.bf16 %v10015_v47 }
 0x3a5   : > { %8922 = vmatprep.mubr.msk.bf16.mxu0 %vm2335_vm3, %v10373_v46  ;;  %v15412_v46 = vld [vmem:[#allocation41_spill] sm:$0xff] }
 0x3a6   : > { %10259 = vrot.lane.b32.xlu0 %v10258_v52, %s10460_s22  ;;  %v10436_v10 = vld [vmem:[#allocation3 + $0x28] sm:$0xff] }
 0x3a7   : > { %10174 = vrot.lane.b32.xlu1 %v10158_v29, %s10458_s28  ;;  %v10427_v29 = vld [vmem:[#allocation3 + $0x170] sm:$0xff] }
 0x3a8   : > { %v5208_v55 = vsel %vm2409_vm2, %v10427_v29, %v9781_v17  ;;  %v10011_v17 = vunpack.i.l.bf16 %v13697_v18 }
 0x3aa   : > { %10269 = vrot.lane.b32.xlu0 %v10258_v52, %s10458_s28  ;;  %v5207_v52 = vsel %vm2409_vm2, %v10428_v48, %v9752_v12  ;;  %v10429_v12 = vld [vmem:[#allocation3 + $0x190] sm:$0xff]  ;;  %v13742_v48 = vpop.permute.xlu0 %10054 }
 0x3ab   : > { %10179 = vrot.lane.b32.xlu1 %v13595_v13, %s10460_s22  ;;  %v15408_v13 = vld [vmem:[#allocation62_spill] sm:$0xff]  ;;  %v5212_v29 = vsel %vm2409_vm2, %v10429_v12, %v9821_v36 }
 0x3ac   : > { %v9772_v3 = vunpack.i.h.bf16 %v15408_v13  ;;  %v9771_v40 = vunpack.i.l.bf16 %v15408_v13  ;;  %v9811_v13 = vunpack.i.l.bf16 %v15411_v6  ;;  %8923 = vmatmul.mubr.msk.bf16.gmra.mxu0 %vm2335_vm3, %v10374_v23  ;;  %v10375_v12 = vld [vmem:[%s10530_s18 + $0x90] sm:$0xff]  }
 0x3ad   : > { %8926 = vmatprep.mubr.msk.bf16.mxu0 %vm2335_vm3, %v10375_v12  ;;  %v15418_v12 = vld [vmem:[#allocation46_spill] sm:$0xff] }
 0x3ae   : > { %10279 = vrot.lane.b32.xlu0 %v10278_v38, %s10460_s22  ;;  %v13711_v49 = vsel %vm5238_vm14, %v5208_v55, %v9772_v3  ;;  %v13722_v32 = vsel %vm5238_vm14, %v5207_v52, %v9771_v40  ;;  %v9812_v55 = vunpack.i.h.bf16 %v15411_v6  ;;  %v10430_v3 = vld [vmem:[#allocation3 + $0x218] sm:$0xff]  ;;  %v10431_v6 = vld [vmem:[#allocation3 + $0x188] sm:$0xff] }
 0x3af   : > { %10194 = vrot.lane.b32.xlu1 %v10193_v22, %s10459_s29  ;;  %15409 = vst [vmem:[#allocation18_spill] sm:$0xff] %v13711_v49  ;;  %15410 = vst [vmem:[#allocation20_spill] sm:$0xff] %v13722_v32  ;;  %v10213_v22 = vpack.i.bf16 %v13711_v49, %v13722_v32  ;;  %v5229_v40 = vsel %vm2409_vm2, %v10430_v3, %v9992_v24  ;;  %v9982_v24 = vunpack.i.h.bf16 %v13427_v50  ;;  %v13764_v3 = vpop.permute.xlu0 %10069 }
 0x3b2   : > { %10289 = vrot.lane.b32.xlu0 %v10278_v38, %s10458_s28  ;;  %v10016_v38 = vunpack.i.l.bf16 %v10015_v47  ;;  %v13749_v47 = vsel %vm5238_vm14, %v5212_v29, %v9812_v55 }
 0x3b3   : > { %10204 = vrot.lane.b32.xlu1 %v13480_v51, %s10458_s28  ;;  %v9802_v51 = vunpack.i.h.bf16 %v13218_v30  ;;  %v5230_v30 = vsel %vm2409_vm2, %v15412_v46, %v10011_v17  ;;  %15414 = vst [vmem:[#allocation23_spill] sm:$0xff] %v13749_v47  ;;  %v15417_v46 = vld [vmem:[#allocation59_spill] sm:$0xff]  ;;  %v13785_v58 = vpop.permute.xlu0 %10074 }
 0x3b4   : > { %v13745_v52 = vsel %vm5238_vm14, %v5229_v40, %v10016_v38  ;;  %v5304_v36 = vsel %vm5238_vm14, %v5230_v30, %v10017_v9  ;;  %v10376_v9 = vld [vmem:[%s10530_s18 + $0x98] sm:$0xff]   ;;  %v15416_v38 = vld [vmem:[#allocation34_spill] sm:$0xff]  ;;  %v9697_v30 = vunpack.i.h.bf16 %v15417_v46 }
 0x3b5   : > { %15413 = vst [vmem:[#allocation25_spill] sm:$0xff] %v13745_v52  ;;  %v5211_v23 = vsel %vm2409_vm2, %v10431_v6, %v9802_v51  ;;  %v9691_v29 = vunpack.i.l.bf16 %v15416_v38  ;;  %v10323_v55 = vpack.i.bf16 %v5304_v36, %v13745_v52  ;;  %v9842_v51 = vunpack.i.h.bf16 %v13247_v15  ;;  %8927 = vmatmul.mubr.msk.bf16.gmra.mxu0 %vm2335_vm3, %v10376_v9  ;;  %v10435_v52 = vld [vmem:[#allocation3 + $0x1a8] sm:$0xff] }
 0x3b6   : > { %10299 = vrot.lane.b32.xlu0 %v10298_v37, %s10460_s22  ;;  %v13758_v17 = vsel %vm5238_vm14, %v5211_v23, %v9811_v13  ;;  %v10433_v13 = vld [vmem:[#allocation3 + $0x238] sm:$0xff]  ;;  %v9696_v36 = vunpack.i.l.bf16 %v15417_v46  ;;  %v9852_v6 = vunpack.i.h.bf16 %v15418_v12  ;;  %v9851_v15 = vunpack.i.l.bf16 %v15418_v12  ;;  %v10434_v23 = vld [vmem:[#allocation3 + $0x240] sm:$0xff]  ;;  %v15422_v12 = vld [vmem:[#allocation65_spill] sm:$0xff] }
 0x3b7   : > { %10214 = vrot.lane.b32.xlu1 %v10213_v22, %s10460_s22  ;;  %15415 = vst [vmem:[#allocation22_spill] sm:$0xff] %v13758_v17  ;;  %v10233_v2 = vpack.i.bf16 %v13749_v47, %v13758_v17  ;;  %v5233_v40 = vsel %vm2409_vm2, %v10433_v13, %v9982_v24  ;;  %v10377_v13 = vld [vmem:[%s10530_s18 + $0xa0] sm:$0xff]   ;;  %v5215_v46 = vsel %vm2409_vm2, %v10435_v52, %v9842_v51  ;;  %v13797_v51 = vpop.permute.xlu0 %10089 }
 0x3b8   : > { %v5307_v24 = vsel %vm5238_vm14, %v5233_v40, %v9696_v36  ;;  %8930 = vmatprep.mubr.msk.bf16.mxu0 %vm2335_vm3, %v10377_v13  ;;  %v15421_v36 = vld [vmem:[#allocation6_spill] sm:$0xff] }
 0x3ba   : > { %10309 = vrot.lane.b32.xlu0 %v10298_v37, %s10458_s28  ;;  %v10432_v37 = vld [vmem:[#allocation3 + $0x1b0] sm:$0xff] }
 0x3bb   : > { %10224 = vrot.lane.b32.xlu1 %v10213_v22, %s10458_s28  ;;  %v5216_v22 = vsel %vm2409_vm2, %v10432_v37, %v9861_v20  ;;  %v5234_v20 = vsel %vm2409_vm2, %v10434_v23, %v9691_v29  ;;  %v13791_v29 = vsel %vm5238_vm14, %v5215_v46, %v9851_v15  ;;  %v10381_v23 = vld [vmem:[%s10530_s18 + $0xc0] sm:$0xff]  }
 0x3bc   : > { %v13781_v37 = vsel %vm5238_vm14, %v5216_v22, %v9852_v6  ;;  %v5308_v9 = vsel %vm5238_vm14, %v5234_v20, %v9697_v30  ;;  %15420 = vst [vmem:[#allocation53_spill] sm:$0xff] %v13791_v29  ;;  %v10378_v22 = vld [vmem:[%s10530_s18 + $0xa8] sm:$0xff]   ;;  %v13807_v30 = vpop.permute.xlu0 %10094  ;;  %v10273_v6 = vpack.i.bf16 %v15422_v12, %v15421_v36  ;;  %v15423_v20 = vld [vmem:[#allocation58_spill] sm:$0xff]  ;;  %v15427_v36 = vld [vmem:[#allocation39_spill] sm:$0xff] }
 0x3bd   : > { %15419 = vst [vmem:[#allocation52_spill] sm:$0xff] %v13781_v37  ;;  %v10333_v40 = vpack.i.bf16 %v5308_v9, %v5307_v24  ;;  %v10253_v52 = vpack.i.bf16 %v13781_v37, %v13791_v29  ;;  %8931 = vmatmul.mubr.msk.bf16.gmra.mxu0 %vm2335_vm3, %v10378_v22  ;;  %v9677_v13 = vunpack.i.h.bf16 %v15423_v20  ;;  %v10030_v9 = vpop.permute.xlu1 %10029  ;;  %v10382_v22 = vld [vmem:[%s10530_s18 + $0xc8] sm:$0xff]   ;;  %v9687_v12 = vunpack.i.h.bf16 %v15427_v36  ;;  %v10437_v37 = vld [vmem:[#allocation3 + $0x30] sm:$0xff] }
 0x3be   : > { %10324 = vrot.lane.b32.xlu0 %v10323_v55, %s10460_s22  ;;  %v10032_v63 = vunpack.i.h.bf16 %v10030_v9 }
 0x3bf   : > { %10234 = vrot.lane.b32.xlu1 %v10233_v2, %s10460_s22  ;;  %v5167_v29 = vsel %vm2409_vm2, %v10436_v10, %v9677_v13  ;;  %v9676_v10 = vunpack.i.l.bf16 %v15423_v20  ;;  %v4292_v13 = vld [vmem:[#allocation3 + $0x18] sm:$0xff] }
 0x3c1   : > { %v13813_v15 = vpop.permute.xlu0 %10109 }
 0x3c2   : > { %10329 = vrot.lane.b32.xlu0 %v10323_v55, %s10458_s28  ;;  %v10379_v55 = vld [vmem:[%s10530_s18 + $0xb0] sm:$0xff]  }
 0x3c3   : > { %10244 = vrot.lane.b32.xlu1 %v10233_v2, %s10458_s28  ;;  %8934 = vmatprep.mubr.msk.bf16.mxu0 %vm2335_vm3, %v10379_v55  ;;  %v10380_v2 = vld [vmem:[%s10530_s18 + $0xb8] sm:$0xff]  }
 0x3c5   : > { %8935 = vmatmul.mubr.msk.bf16.gmra.mxu0 %vm2335_vm3, %v10380_v2  ;;  %v9686_v2 = vunpack.i.l.bf16 %v15427_v36  ;;  %v13827_v17 = vpop.permute.xlu0 %10114  ;;  %v15429_v36 = vld [vmem:[#allocation35_spill] sm:$0xff] }
 0x3c6   : > { %10334 = vrot.lane.b32.xlu0 %v10333_v40, %s10460_s22  ;;  %8938 = vmatprep.mubr.msk.bf16.mxu0 %vm2335_vm3, %v10381_v23  ;;  %v15425_v40 = vld [vmem:[#allocation11_spill] sm:$0xff]  ;;  %v15428_v23 = vld [vmem:[#allocation56_spill] sm:$0xff]  ;;  %v9681_v26 = vunpack.i.l.bf16 %v15429_v36 }
 0x3c7   : > { %10254 = vrot.lane.b32.xlu1 %v10253_v52, %s10460_s22  ;;  %v9352_v47 = vunpack.i.h.bf16 %v15428_v23  ;;  %v10012_v23 = vunpack.i.h.bf16 %v13697_v18 }
 0x3ca   : > { %5505 = vrot.lane.b32.xlu0 %v5307_v24, %s10458_s28  ;;  %v15424_v24 = vld [vmem:[#allocation36_spill] sm:$0xff] }
 0x3cb   : > { %10264 = vrot.lane.b32.xlu1 %v10253_v52, %s10458_s28  ;;  %v9701_v46 = vunpack.i.l.bf16 %v15424_v24  ;;  %v15426_v52 = vld [vmem:[#allocation10_spill] sm:$0xff] }
 0x3cc   : > { %v10293_v55 = vpack.i.bf16 %v15426_v52, %v15425_v40  ;;  %v10052_v40 = vunpack.i.h.bf16 %v13716_v25  ;;  %v10051_v52 = vunpack.i.l.bf16 %v13716_v25  ;;  %v10022_v25 = vunpack.i.h.bf16 %v13667_v4 }
 0x3cd   : > { %v5168_v24 = vsel %vm2409_vm2, %v10437_v37, %v9701_v46  ;;  %8939 = vmatmul.mubr.msk.bf16.gmra.mxu0 %vm2335_vm3, %v10382_v22  ;;  %v10383_v37 = vld [vmem:[%s10530_s18 + $0xd0] sm:$0xff]   ;;  %v5241_v46 = vsel %vm5238_vm14, %v5167_v29, %v9686_v2  ;;  %v10021_v22 = vunpack.i.l.bf16 %v13667_v4  ;;  %v10384_v29 = vld [vmem:[%s10530_s18 + $0xd8] sm:$0xff]   ;;  %v10313_v4 = vpack.i.bf16 %v13474_v61, %v13421_v5 }
 0x3ce   : > { %v5242_v59 = vsel %vm5238_vm14, %v5168_v24, %v9687_v12  ;;  %8942 = vmatprep.mubr.msk.bf16.mxu0 %vm2335_vm3, %v10383_v37  ;;  %v5165_v12 = vsel %vm2409_vm2, %v4292_v13, %v9352_v47  ;;  %v10438_v2 = vld [vmem:[#allocation3 + $0x230] sm:$0xff]  ;;  %v10440_v37 = vld [vmem:[#allocation3 + $0x20] sm:$0xff]  ;;  %v10056_v13 = vunpack.i.l.bf16 %v13742_v48 }
 0x3cf   : > { %10274 = vrot.lane.b32.xlu1 %v10273_v6, %s10460_s22  ;;  %v5774_v32 = vsel %vm3008_vm6, %v5242_v59, %v10032_v63  ;;  %v9682_v63 = vunpack.i.h.bf16 %v15429_v36  ;;  %v5239_v59 = vsel %vm5238_vm14, %v5165_v12, %v9681_v26  ;;  %v10027_v36 = vunpack.i.h.bf16 %v13688_v33 }
 0x3d0   : > { %v10057_v26 = vunpack.i.h.bf16 %v13742_v48  ;;  %v10092_v48 = vunpack.i.h.bf16 %v13797_v51  ;;  %v10026_v12 = vunpack.i.l.bf16 %v13688_v33 }
 0x3d1   : > { %v13845_v49 = vpop.permute.xlu0 %10129 }
 0x3d3   : > { %10284 = vrot.lane.b32.xlu1 %v10273_v6, %s10458_s28  ;;  %v10031_v6 = vunpack.i.l.bf16 %v10030_v9  ;;  %v9981_v9 = vunpack.i.l.bf16 %v13427_v50  ;;  %v5840_v50 = vsel %vm5836_vm0, %v5774_v32, %v10052_v40  ;;  %v5166_v32 = vsel %vm2409_vm2, %v10440_v37, %v9676_v10 }
 0x3d4   : > { %v10077_v10 = vunpack.i.h.bf16 %v13785_v58 }
 0x3d5   : > { %v5773_v20 = vsel %vm3008_vm6, %v5241_v46, %v10031_v6  ;;  %v5232_v24 = vsel %vm2409_vm2, %v10438_v2, %v9981_v9  ;;  %8943 = vmatmul.mubr.msk.bf16.gmra.mxu0 %vm2335_vm3, %v10384_v29  ;;  %v10072_v46 = vunpack.i.h.bf16 %v13764_v3  ;;  %v10071_v9 = vunpack.i.l.bf16 %v13764_v3 }
 0x3d6   : > { %v5839_v18 = vsel %vm5836_vm0, %v5773_v20, %v10051_v52  ;;  %v5306_v40 = vsel %vm5238_vm14, %v5232_v24, %v10022_v25  ;;  %v13871_v25 = vpop.permute.xlu0 %10134  ;;  %v10385_v20 = vld [vmem:[%s10530_s18 + $0xe0] sm:$0xff]   ;;  %v10091_v29 = vunpack.i.l.bf16 %v13797_v51  ;;  %v10042_v24 = vunpack.i.h.bf16 %v13703_v56  ;;  %v10386_v51 = vld [vmem:[%s10530_s18 + $0xe8] sm:$0xff]  }
 0x3d7   : > { %10294 = vrot.lane.b32.xlu1 %v10293_v55, %s10460_s22  ;;  %v5903_v52 = vpack.c.bf16 %v5840_v50, %v5839_v18  ;;  %v5240_v18 = vsel %vm5238_vm14, %v5166_v32, %v9682_v63  ;;  %8946 = vmatprep.mubr.msk.bf16.mxu0 %vm2335_vm3, %v10385_v20 }
 0x3d9   : > { %v5953_v3 = vshrl.u32 %v5903_v52, 16  ;;  %v5956_v2 = vshll.u32 %v5903_v52, 16 }
 0x3db   : > { %10304 = vrot.lane.b32.xlu1 %v10293_v55, %s10458_s28  ;;  %v10439_v55 = vld [vmem:[#allocation3 + $0x228] sm:$0xff] }
 0x3dc   : > { %v5231_v6 = vsel %vm2409_vm2, %v10439_v55, %v10012_v23  ;;  %v10076_v23 = vunpack.i.l.bf16 %v13785_v58  ;;  %v5772_v58 = vsel %vm3008_vm6, %v5240_v18, %v10027_v36  ;;  %v15430_v55 = vld [vmem:[#allocation61_spill] sm:$0xff] }
 0x3dd   : > { %v5305_v47 = vsel %vm5238_vm14, %v5231_v6, %v10021_v22  ;;  %v5778_v63 = vsel %vm3008_vm6, %v15430_v55, %v10057_v26  ;;  %v15431_v6 = vld [vmem:[#allocation38_spill] sm:$0xff]  ;;  %8947 = vmatmul.mubr.msk.bf16.gmra.mxu0 %vm2335_vm3, %v10386_v51 }
 0x3de   : > { %v10343_v50 = vpack.i.bf16 %v5306_v40, %v5305_v47  ;;  %v5777_v37 = vsel %vm3008_vm6, %v15431_v6, %v10056_v13  ;;  %v5844_v32 = vsel %vm5836_vm0, %v5778_v63, %v10072_v46  ;;  %v15432_v40 = vld [vmem:[#allocation63_spill] sm:$0xff]  ;;  %v15433_v47 = vld [vmem:[#allocation42_spill] sm:$0xff]  ;;  %v10041_v46 = vunpack.i.l.bf16 %v13703_v56 }
 0x3df   : > { %10314 = vrot.lane.b32.xlu1 %v10313_v4, %s10460_s22  ;;  %v5843_v33 = vsel %vm5836_vm0, %v5777_v37, %v10071_v9  ;;  %v5781_v52 = vsel %vm3008_vm6, %v15433_v47, %v10076_v23  ;;  %v10387_v6 = vld [vmem:[%s10530_s18 + $0xf0] sm:$0xff]   ;;  %v5771_v9 = vsel %vm3008_vm6, %v5239_v59, %v10026_v12  ;;  %v5955_v63 = vrot.slane %v5953_v3, 3  ;;  %v15435_v47 = vld [vmem:[#allocation60_spill] sm:$0xff] }
 0x3e0   : > { %v5847_v18 = vsel %vm5836_vm0, %v5781_v52, %v10091_v29  ;;  %v5958_v37 = vrot.slane %v5956_v2, 4  ;;  %v10097_v59 = vunpack.i.h.bf16 %v13807_v30  ;;  %v10096_v56 = vunpack.i.l.bf16 %v13807_v30  ;;  %8950 = vmatprep.mubr.msk.bf16.mxu0 %vm2335_vm3, %v10387_v6  ;;  %v15436_v6 = vld [vmem:[#allocation49_spill] sm:$0xff] }
 0x3e1   : > { %v13873_v22 = vpop.permute.xlu1 %10034  ;;  %v10112_v2 = vunpack.i.h.bf16 %v13813_v15 }
 0x3e2   : > { %v5959_v30 = vor.u32 %v5958_v37, %v5955_v63 }
 0x3e3   : > { %10319 = vrot.lane.b32.xlu1 %v10313_v4, %s10458_s28  ;;  %v5782_v4 = vsel %vm3008_vm6, %v15432_v40, %v10077_v10  ;;  %v15434_v10 = vld [vmem:[#allocation45_spill] sm:$0xff]  ;;  %v5905_v40 = vpack.c.bf16 %v5844_v32, %v5843_v33 }
 0x3e4   : > { %v5848_v26 = vsel %vm5836_vm0, %v5782_v4, %v10092_v48  ;;  %v5776_v23 = vsel %vm3008_vm6, %v15434_v10, %v10042_v24  ;;  %v10111_v24 = vunpack.i.l.bf16 %v13813_v15  ;;  %v10388_v15 = vld [vmem:[%s10530_s18 + $0xf8] sm:$0xff]   ;;  %v15437_v10 = vld [vmem:[#allocation8_spill] sm:$0xff] }
 0x3e5   : > { %v10045_v36 = vpop.permute.xlu1 %10044  ;;  %v13895_v20 = vpop.permute.xlu0 %10149  ;;  %v5907_v4 = vpack.c.bf16 %v5848_v26, %v5847_v18  ;;  %v5971_v18 = vshrl.u32 %v5905_v40, 16  ;;  %v5974_v26 = vshll.u32 %v5905_v40, 16  ;;  %8951 = vmatmul.mubr.msk.bf16.gmra.mxu0 %vm2335_vm3, %v10388_v15 }
 0x3e6   : > { %v10047_v55 = vunpack.i.h.bf16 %v10045_v36  ;;  %v10046_v13 = vunpack.i.l.bf16 %v10045_v36 }
 0x3e7   : > { %10339 = vrot.lane.b32.xlu1 %v10343_v50, %s10460_s22  ;;  %v5992_v40 = vshll.u32 %v5907_v4, 16 }
 0x3e8   : > { %v5837_v29 = vsel %vm5836_vm0, %v5771_v9, %v10046_v13  ;;  %v5838_v48 = vsel %vm5836_vm0, %v5772_v58, %v10047_v55  ;;  %v5775_v58 = vsel %vm3008_vm6, %v15435_v47, %v10041_v46  ;;  %v5786_v9 = vsel %vm3008_vm6, %v15436_v6, %v10097_v59 }
 0x3e9   : > { %v5902_v12 = vpack.c.bf16 %v5838_v48, %v5837_v29  ;;  %v10060_v3 = vpop.permute.xlu1 %10059  ;;  %v13915_v36 = vpop.permute.xlu0 %10154  ;;  %v5785_v46 = vsel %vm3008_vm6, %v15437_v10, %v10096_v56  ;;  %v5989_v47 = vshrl.u32 %v5907_v4, 16  ;;  %v5852_v63 = vsel %vm5836_vm0, %v5786_v9, %v10112_v2  ;;  %v15439_v10 = vld [vmem:[#allocation40_spill] sm:$0xff] }
 0x3ea   : > { %v10062_v33 = vunpack.i.h.bf16 %v10060_v3  ;;  %v10061_v32 = vunpack.i.l.bf16 %v10060_v3  ;;  %v10389_v3 = vld [vmem:[%s10530_s18 + $0x100] sm:$0xff]   ;;  %v5973_v59 = vrot.slane %v5971_v18, 3  ;;  %v5976_v56 = vrot.slane %v5974_v26, 4  ;;  %v15438_v18 = vld [vmem:[#allocation43_spill] sm:$0xff] }
 0x3eb   : > { %v5945_v51 = vshrl.u32 %v5902_v12, 16  ;;  %v5948_v52 = vshll.u32 %v5902_v12, 16  ;;  %10344 = vrot.lane.b32.xlu1 %v10343_v50, %s10458_s28  ;;  %v5851_v50 = vsel %vm5836_vm0, %v5785_v46, %v10111_v24  ;;  %8954 = vmatprep.mubr.msk.bf16.mxu0 %vm2335_vm3, %v10389_v3  ;;  %v5991_v9 = vrot.slane %v5989_v47, 3 }
 0x3ec   : > { %v5841_v55 = vsel %vm5836_vm0, %v5775_v58, %v10061_v32  ;;  %v5842_v13 = vsel %vm5836_vm0, %v5776_v23, %v10062_v33  ;;  %v5994_v15 = vrot.slane %v5992_v40, 4  ;;  %v5977_v40 = vor.u32 %v5976_v56, %v5973_v59 }
 0x3ed   : > { %v5947_v29 = vrot.slane %v5945_v51, 3  ;;  %v5950_v48 = vrot.slane %v5948_v52, 4  ;;  %v10065_v12 = vpop.permute.xlu1 %10064  ;;  %v5904_v37 = vpack.c.bf16 %v5842_v13, %v5841_v55  ;;  %v13929_v51 = vpack.c.bf16 %v5852_v63, %v5851_v50  ;;  %v13931_v52 = vpop.permute.xlu0 %10169 }
 0x3ee   : > { %v10067_v32 = vunpack.i.h.bf16 %v10065_v12  ;;  %v10066_v23 = vunpack.i.l.bf16 %v10065_v12  ;;  %v10116_v50 = vunpack.i.l.bf16 %v13827_v17  ;;  %v13956_v59 = vor.u32 %v5994_v15, %v5991_v9 }
 0x3ef   : > { %v5951_v33 = vor.u32 %v5950_v48, %v5947_v29  ;;  %v5962_v58 = vshrl.u32 %v5904_v37, 16  ;;  %v5965_v5 = vshll.u32 %v5904_v37, 16  ;;  %v10117_v29 = vunpack.i.h.bf16 %v13827_v17 }
 0x3f0   : > { %v5780_v26 = vsel %vm3008_vm6, %v15438_v18, %v10067_v32  ;;  %v5779_v46 = vsel %vm3008_vm6, %v15439_v10, %v10066_v23  ;;  %v6007_v3 = vshrl.u32 %v13929_v51, 16  ;;  %v10390_v32 = vld [vmem:[%s10530_s18 + $0x108] sm:$0xff]   ;;  %v10131_v23 = vunpack.i.l.bf16 %v13845_v49 }
 0x3f1   : > { %v10080_v6 = vpop.permute.xlu1 %10079  ;;  %v5960_v24 = vsel %vm3112_vm7, %v5951_v33, %v5959_v30  ;;  %v5964_v2 = vrot.slane %v5962_v58, 3  ;;  %v5967_v4 = vrot.slane %v5965_v5, 4  ;;  %v10132_v33 = vunpack.i.h.bf16 %v13845_v49  ;;  %8955 = vmatmul.mubr.msk.bf16.gmra.mxu0 %vm2335_vm3, %v10390_v32 }
 0x3f2   : > { %v10082_v55 = vunpack.i.h.bf16 %v10080_v6  ;;  %v10081_v13 = vunpack.i.l.bf16 %v10080_v6  ;;  %8832 = vmatprep.mubr.msk.bf16.mxu1 %vm6267_vm1, %v5960_v24  ;;  %v6010_v17 = vshll.u32 %v13929_v51, 16  ;;  %v6009_v56 = vrot.slane %v6007_v3, 3 }
 0x3f3   : > { %v5968_v48 = vor.u32 %v5967_v4, %v5964_v2 }
 0x3f4   : > { %v5845_v12 = vsel %vm5836_vm0, %v5779_v46, %v10081_v13  ;;  %v5846_v5 = vsel %vm5836_vm0, %v5780_v26, %v10082_v55  ;;  %v13945_v47 = vpop.permute.xlu0 %10184  ;;  %v15440_v13 = vld [vmem:[#allocation47_spill] sm:$0xff]  ;;  %v15441_v26 = vld [vmem:[#allocation50_spill] sm:$0xff] }
 0x3f5   : > { %v5906_v63 = vpack.c.bf16 %v5846_v5, %v5845_v12  ;;  %v10085_v37 = vpop.permute.xlu1 %10084  ;;  %v5969_v4 = vsel %vm3112_vm7, %v5959_v30, %v5968_v48  ;;  %v5978_v55 = vsel %vm3112_vm7, %v5968_v48, %v5977_v40  ;;  %v5790_v18 = vsel %vm3008_vm6, %v15440_v13, %v10117_v29 }
 0x3f6   : > { %v10087_v58 = vunpack.i.h.bf16 %v10085_v37  ;;  %v10086_v6 = vunpack.i.l.bf16 %v10085_v37  ;;  %8833 = vmatmul.mubr.msk.bf16.vlgmr.msra.gmra.mxu1 %vm6267_vm1, %v5969_v4  ;;  %v5789_v49 = vsel %vm3008_vm6, %v15441_v26, %v10116_v50  ;;  %v5856_v15 = vsel %vm5836_vm0, %v5790_v18, %v10132_v33 }
 0x3f7   : > { %v5980_v24 = vshrl.u32 %v5906_v63, 16  ;;  %v5983_v2 = vshll.u32 %v5906_v63, 16  ;;  %8836 = vmatprep.mubr.msk.bf16.mxu1 %vm6267_vm1, %v5978_v55  ;;  %v5855_v51 = vsel %vm5836_vm0, %v5789_v49, %v10131_v23  ;;  %v10137_v63 = vunpack.i.h.bf16 %v13871_v25 }
 0x3f8   : > { %v13961_v30 = vpop.permute.xlu0 %10189  ;;  %v5784_v5 = vsel %vm3008_vm6, %v13434_v35, %v10087_v58  ;;  %v5783_v3 = vsel %vm3008_vm6, %v13443_v27, %v10086_v6  ;;  %v10136_v37 = vunpack.i.l.bf16 %v13871_v25  ;;  %v6012_v27 = vrot.slane %v6010_v17, 4 }
 0x3f9   : > { %v5982_v10 = vrot.slane %v5980_v24, 3  ;;  %v5985_v46 = vrot.slane %v5983_v2, 4  ;;  %v10100_v48 = vpop.permute.xlu1 %10099  ;;  %v10192_v29 = vunpack.i.h.bf16 %v13961_v30  ;;  %v10152_v24 = vunpack.i.h.bf16 %v13895_v20 }
 0x3fa   : > { %v10102_v12 = vunpack.i.h.bf16 %v10100_v48  ;;  %v10101_v9 = vunpack.i.l.bf16 %v10100_v48  ;;  %v10151_v2 = vunpack.i.l.bf16 %v13895_v20  ;;  %v5911_v6 = vpack.c.bf16 %v5856_v15, %v5855_v51 }
 0x3fb   : > { %v5986_v50 = vor.u32 %v5985_v46, %v5982_v10  ;;  %v5237_v25 = vsel %vm2409_vm2, %v13467_v11, %v10192_v29  ;;  %v15442_v10 = vld [vmem:[#allocation4_spill] sm:$0xff] }
 0x3fc   : > { %v5849_v32 = vsel %vm5836_vm0, %v5783_v3, %v10101_v9  ;;  %v5850_v23 = vsel %vm5836_vm0, %v5784_v5, %v10102_v12  ;;  %v13977_v4 = vpop.permute.xlu0 %10199  ;;  %v5794_v20 = vsel %vm3008_vm6, %v15442_v10, %v10137_v63  ;;  %v15443_v46 = vld [vmem:[#allocation64_spill] sm:$0xff]  ;;  %v6013_v3 = vor.u32 %v6012_v27, %v6009_v56 }
 0x3fd   : > { %v5908_v33 = vpack.c.bf16 %v5850_v23, %v5849_v32  ;;  %v10105_v35 = vpop.permute.xlu1 %10104  ;;  %v5987_v58 = vsel %vm3112_vm7, %v5977_v40, %v5986_v50  ;;  %v5996_v49 = vsel %vm3112_vm7, %v5986_v50, %v13956_v59  ;;  %v5793_v48 = vsel %vm3008_vm6, %v15443_v46, %v10136_v37 }
 0x3fe   : > { %v10107_v55 = vunpack.i.h.bf16 %v10105_v35  ;;  %v10106_v26 = vunpack.i.l.bf16 %v10105_v35  ;;  %8837 = vmatmul.mubr.msk.bf16.gmra.mxu1 %vm6267_vm1, %v5987_v58  ;;  %v5859_v40 = vsel %vm5836_vm0, %v5793_v48, %v10151_v2  ;;  %v5860_v17 = vsel %vm5836_vm0, %v5794_v20, %v10152_v24 }
 0x3ff   : > { %v5998_v13 = vshrl.u32 %v5908_v33, 16  ;;  %v6001_v18 = vshll.u32 %v5908_v33, 16  ;;  %8840 = vmatprep.mubr.msk.bf16.mxu1 %vm6267_vm1, %v5996_v49  ;;  %v6025_v50 = vshrl.u32 %v5911_v6, 16  ;;  %v6028_v23 = vshll.u32 %v5911_v6, 16 }
 0x400   : > { %v5091_v29 = vpop.permute.xlu0 %5090  ;;  %v5788_v63 = vsel %vm3008_vm6, %v13486_v57, %v10107_v55  ;;  %v5787_v37 = vsel %vm3008_vm6, %v13497_v44, %v10106_v26  ;;  %v5913_v24 = vpack.c.bf16 %v5860_v17, %v5859_v40  ;;  %v10157_v35 = vunpack.i.h.bf16 %v13915_v36  ;;  %v15444_v40 = vld [vmem:[#allocation13_spill] sm:$0xff] }
 0x401   : > { %v6000_v51 = vrot.slane %v5998_v13, 3  ;;  %v6003_v11 = vrot.slane %v6001_v18, 4  ;;  %v10120_v12 = vpop.permute.xlu1 %10119  ;;  %v5311_v9 = vsel %vm5238_vm14, %v5237_v25, %v5091_v29  ;;  %v10156_v44 = vunpack.i.l.bf16 %v13915_v36 }
 0x402   : > { %v10122_v15 = vunpack.i.h.bf16 %v10120_v12  ;;  %v10121_v5 = vunpack.i.l.bf16 %v10120_v12  ;;  %5704 = vrot.lane.b32.xlu0 %v5311_v9, %s10460_s22  ;;  %v10187_v55 = vunpack.i.h.bf16 %v13945_v47  ;;  %v10186_v6 = vunpack.i.l.bf16 %v13945_v47 }
 0x403   : > { %v6004_v32 = vor.u32 %v6003_v11, %v6000_v51  ;;  %v6027_v10 = vrot.slane %v6025_v50, 3  ;;  %v6030_v20 = vrot.slane %v6028_v23, 4  ;;  %v6043_v46 = vshrl.u32 %v5913_v24, 16  ;;  %v15445_v11 = vld [vmem:[#allocation9_spill] sm:$0xff] }
 0x404   : > { %v5853_v2 = vsel %vm5836_vm0, %v5787_v37, %v10121_v5  ;;  %v5854_v33 = vsel %vm5836_vm0, %v5788_v63, %v10122_v15  ;;  %v14001_v56 = vpop.permute.xlu0 %10209  ;;  %v6046_v48 = vshll.u32 %v5913_v24, 16  ;;  %v5797_v29 = vsel %vm3008_vm6, %v15445_v11, %v10156_v44 }
 0x405   : > { %v5910_v58 = vpack.c.bf16 %v5854_v33, %v5853_v2  ;;  %v10125_v27 = vpop.permute.xlu1 %10124  ;;  %v6005_v57 = vsel %vm3112_vm7, %v13956_v59, %v6004_v32  ;;  %v6014_v25 = vsel %vm3112_vm7, %v6004_v32, %v6013_v3  ;;  %v5798_v59 = vsel %vm3008_vm6, %v15444_v40, %v10157_v35 }
 0x406   : > { %v10127_v26 = vunpack.i.h.bf16 %v10125_v27  ;;  %v10126_v49 = vunpack.i.l.bf16 %v10125_v27  ;;  %8841 = vmatmul.mubr.msk.bf16.gmra.mxu1 %vm6267_vm1, %v6005_v57  ;;  %v5864_v12 = vsel %vm5836_vm0, %v5798_v59, %v10187_v55  ;;  %v5863_v5 = vsel %vm5836_vm0, %v5797_v29, %v10186_v6 }
 0x407   : > { %v6016_v13 = vshrl.u32 %v5910_v58, 16  ;;  %v6019_v18 = vshll.u32 %v5910_v58, 16  ;;  %8844 = vmatprep.mubr.msk.bf16.mxu1 %vm6267_vm1, %v6014_v25  ;;  %v6031_v24 = vor.u32 %v6030_v20, %v6027_v10  ;;  %v10202_v2 = vunpack.i.h.bf16 %v13977_v4 }
 0x408   : > { %v14013_v47 = vpop.permute.xlu0 %10219  ;;  %v5792_v50 = vsel %vm3008_vm6, %v13527_v62, %v10127_v26  ;;  %v5791_v63 = vsel %vm3008_vm6, %v13536_v42, %v10126_v49  ;;  %v10201_v33 = vunpack.i.l.bf16 %v13977_v4  ;;  %v6045_v62 = vrot.slane %v6043_v46, 3 }
 0x409   : > { %v6018_v36 = vrot.slane %v6016_v13, 3  ;;  %v6021_v17 = vrot.slane %v6019_v18, 4  ;;  %v10140_v51 = vpop.permute.xlu1 %10139  ;;  %v6048_v44 = vrot.slane %v6046_v48, 4  ;;  %v5915_v55 = vpack.c.bf16 %v5864_v12, %v5863_v5 }
 0x40a   : > { %v10142_v9 = vunpack.i.h.bf16 %v10140_v51  ;;  %v10141_v15 = vunpack.i.l.bf16 %v10140_v51  ;;  %v10172_v26 = vunpack.i.h.bf16 %v13931_v52  ;;  %v10171_v49 = vunpack.i.l.bf16 %v13931_v52 }
 0x40b   : > { %v6022_v37 = vor.u32 %v6021_v17, %v6018_v36  ;;  %v5802_v4 = vsel %vm3008_vm6, %v13424_v19, %v10202_v2  ;;  %v6061_v48 = vshrl.u32 %v5915_v55, 16  ;;  %v6049_v36 = vor.u32 %v6048_v44, %v6045_v62 }
 0x40c   : > { %v5857_v32 = vsel %vm5836_vm0, %v5791_v63, %v10141_v15  ;;  %v5858_v23 = vsel %vm5836_vm0, %v5792_v50, %v10142_v9  ;;  %v14027_v58 = vpop.permute.xlu0 %10229  ;;  %v6064_v17 = vshll.u32 %v5915_v55, 16 }
 0x40d   : > { %v5912_v35 = vpack.c.bf16 %v5858_v23, %v5857_v32  ;;  %v10145_v27 = vpop.permute.xlu1 %10144  ;;  %v6023_v57 = vsel %vm3112_vm7, %v6013_v3, %v6022_v37  ;;  %v6032_v42 = vsel %vm3112_vm7, %v6022_v37, %v6031_v24  ;;  %v5801_v3 = vsel %vm3008_vm6, %v13418_v43, %v10201_v33 }
 0x40e   : > { %v10147_v13 = vunpack.i.h.bf16 %v10145_v27  ;;  %v10146_v18 = vunpack.i.l.bf16 %v10145_v27  ;;  %8845 = vmatmul.mubr.msk.bf16.gmra.mxu1 %vm6267_vm1, %v6023_v57  ;;  %v5868_v43 = vsel %vm5836_vm0, %v5802_v4, %v10172_v26  ;;  %v5867_v29 = vsel %vm5836_vm0, %v5801_v3, %v10171_v49 }
 0x40f   : > { %v6034_v6 = vshrl.u32 %v5912_v35, 16  ;;  %v6037_v25 = vshll.u32 %v5912_v35, 16  ;;  %8848 = vmatprep.mubr.msk.bf16.mxu1 %vm6267_vm1, %v6032_v42  ;;  %v6063_v63 = vrot.slane %v6061_v48, 3  ;;  %v6066_v37 = vrot.slane %v6064_v17, 4 }
 0x410   : > { %v5796_v52 = vsel %vm3008_vm6, %v13556_v60, %v10147_v13  ;;  %v5795_v51 = vsel %vm3008_vm6, %v13564_v41, %v10146_v18  ;;  %v14043_v19 = vpop.permute.xlu0 %10239  ;;  %v10191_v60 = vunpack.i.l.bf16 %v13961_v30  ;;  %v5917_v32 = vpack.c.bf16 %v5868_v43, %v5867_v29  ;;  %v15446_v29 = vld [vmem:[#allocation15_spill] sm:$0xff] }
 0x411   : > { %v6036_v10 = vrot.slane %v6034_v6, 3  ;;  %v6039_v20 = vrot.slane %v6037_v25, 4  ;;  %v10160_v46 = vpop.permute.xlu1 %10159  ;;  %v9692_v33 = vunpack.i.h.bf16 %v15416_v38  ;;  %v10037_v35 = vunpack.i.h.bf16 %v13873_v22 }
 0x412   : > { %v10162_v40 = vunpack.i.h.bf16 %v10160_v46  ;;  %v10161_v59 = vunpack.i.l.bf16 %v10160_v46  ;;  %v10036_v30 = vunpack.i.l.bf16 %v13873_v22  ;;  %v5236_v44 = vsel %vm2409_vm2, %v13672_v45, %v10191_v60 }
 0x413   : > { %v6040_v11 = vor.u32 %v6039_v20, %v6036_v10  ;;  %v6067_v13 = vor.u32 %v6066_v37, %v6063_v63  ;;  %v6079_v38 = vshrl.u32 %v5917_v32, 16  ;;  %v6082_v4 = vshll.u32 %v5917_v32, 16 }
 0x414   : > { %v5862_v12 = vsel %vm5836_vm0, %v5796_v52, %v10162_v40  ;;  %v5861_v9 = vsel %vm5836_vm0, %v5795_v51, %v10161_v59  ;;  %v14055_v62 = vpop.permute.xlu0 %10249  ;;  %v10211_v3 = vunpack.i.l.bf16 %v14001_v56  ;;  %v10212_v46 = vunpack.i.h.bf16 %v14001_v56 }
 0x415   : > { %v5914_v15 = vpack.c.bf16 %v5862_v12, %v5861_v9  ;;  %v10165_v5 = vpop.permute.xlu1 %10164  ;;  %v6041_v50 = vsel %vm3112_vm7, %v6031_v24, %v6040_v11  ;;  %v6050_v41 = vsel %vm3112_vm7, %v6040_v11, %v6049_v36  ;;  %v10221_v48 = vunpack.i.l.bf16 %v14013_v47 }
 0x416   : > { %8849 = vmatmul.mubr.msk.bf16.gmra.mxu1 %vm6267_vm1, %v6041_v50  ;;  %v10167_v6 = vunpack.i.h.bf16 %v10165_v5  ;;  %v10166_v18 = vunpack.i.l.bf16 %v10165_v5  ;;  %v6081_v43 = vrot.slane %v6079_v38, 3  ;;  %v15447_v5 = vld [vmem:[#allocation14_spill] sm:$0xff] }
 0x417   : > { %v6052_v23 = vshrl.u32 %v5914_v15, 16  ;;  %v6055_v2 = vshll.u32 %v5914_v15, 16  ;;  %8852 = vmatprep.mubr.msk.bf16.mxu1 %vm6267_vm1, %v6050_v41  ;;  %v6084_v15 = vrot.slane %v6082_v4, 4  ;;  %v5808_v50 = vsel %vm3008_vm6, %v15447_v5, %v10212_v46  ;;  %v10391_v46 = vld [vmem:[%s10530_s18 + $0x110] sm:$0xff]  }
 0x418   : > { %v14074_v17 = vpop.permute.xlu0 %10259  ;;  %v5803_v11 = vsel %vm3008_vm6, %v13650_v21, %v10166_v18  ;;  %v10232_v18 = vunpack.i.h.bf16 %v14027_v58  ;;  %8958 = vmatprep.mubr.msk.bf16.mxu0 %vm2335_vm3, %v10391_v46 }
 0x419   : > { %v6054_v27 = vrot.slane %v6052_v23, 3  ;;  %v6057_v57 = vrot.slane %v6055_v2, 4  ;;  %v10175_v24 = vpop.permute.xlu1 %10174  ;;  %v10441_v2 = vld [vmem:[#allocation3 + $0x248] sm:$0xff] }
 0x41a   : > { %v10177_v55 = vunpack.i.h.bf16 %v10175_v24  ;;  %v10176_v42 = vunpack.i.l.bf16 %v10175_v24 }
 0x41b   : > { %v6058_v25 = vor.u32 %v6057_v57, %v6054_v27 }
 0x41c   : > { %v5800_v26 = vsel %vm3008_vm6, %v13606_v14, %v10177_v55  ;;  %v5799_v49 = vsel %vm3008_vm6, %v13615_v1, %v10176_v42  ;;  %v10222_v14 = vunpack.i.h.bf16 %v14013_v47  ;;  %v5804_v1 = vsel %vm3008_vm6, %v13643_v7, %v10167_v6  ;;  %v14090_v24 = vpop.permute.xlu0 %10269 }
 0x41d   : > { %v5866_v22 = vsel %vm5836_vm0, %v5800_v26, %v10037_v35  ;;  %v5865_v45 = vsel %vm5836_vm0, %v5799_v49, %v10036_v30  ;;  %v10180_v10 = vpop.permute.xlu1 %10179  ;;  %v6059_v20 = vsel %vm3112_vm7, %v6049_v36, %v6058_v25  ;;  %v6068_v51 = vsel %vm3112_vm7, %v6058_v25, %v6067_v13 }
 0x41e   : > { %v5916_v40 = vpack.c.bf16 %v5866_v22, %v5865_v45  ;;  %v10182_v59 = vunpack.i.h.bf16 %v10180_v10  ;;  %v10181_v52 = vunpack.i.l.bf16 %v10180_v10  ;;  %8853 = vmatmul.mubr.msk.bf16.gmra.mxu1 %vm6267_vm1, %v6059_v20  ;;  %v5807_v47 = vsel %vm3008_vm6, %v15446_v29, %v10211_v3 }
 0x41f   : > { %8856 = vmatprep.mubr.msk.bf16.mxu1 %vm6267_vm1, %v6068_v51  ;;  %v5873_v21 = vsel %vm5836_vm0, %v5807_v47, %v10221_v48  ;;  %v5874_v41 = vsel %vm5836_vm0, %v5808_v50, %v10222_v14  ;;  %v5235_v35 = vsel %vm2409_vm2, %v10441_v2, %v9692_v33  ;;  %v6085_v25 = vor.u32 %v6084_v15, %v6081_v43  ;;  %v10392_v48 = vld [vmem:[%s10530_s18 + $0x118] sm:$0xff]  }
 0x420   : > { %v5870_v36 = vsel %vm5836_vm0, %v5804_v1, %v10182_v59  ;;  %v6070_v56 = vshrl.u32 %v5916_v40, 16  ;;  %v5869_v12 = vsel %vm5836_vm0, %v5803_v11, %v10181_v52  ;;  %v6073_v9 = vshll.u32 %v5916_v40, 16  ;;  %8959 = vmatmul.mubr.msk.bf16.gmra.mxu0 %vm2335_vm3, %v10392_v48 }
 0x421   : > { %v10195_v7 = vpop.permute.xlu1 %10194  ;;  %v5918_v63 = vpack.c.bf16 %v5870_v36, %v5869_v12  ;;  %v5920_v38 = vpack.c.bf16 %v5874_v41, %v5873_v21  ;;  %v10231_v26 = vunpack.i.l.bf16 %v14027_v58  ;;  %v10242_v33 = vunpack.i.h.bf16 %v14043_v19 }
 0x422   : > { %v10197_v60 = vunpack.i.h.bf16 %v10195_v7  ;;  %v10196_v37 = vunpack.i.l.bf16 %v10195_v7  ;;  %v6072_v32 = vrot.slane %v6070_v56, 3  ;;  %v6075_v23 = vrot.slane %v6073_v9, 4 }
 0x423   : > { %v6088_v27 = vshrl.u32 %v5918_v63, 16  ;;  %v6091_v57 = vshll.u32 %v5918_v63, 16  ;;  %v6106_v40 = vshrl.u32 %v5920_v38, 16  ;;  %v5812_v59 = vsel %vm3008_vm6, %v13582_v54, %v10232_v18 }
 0x424   : > { %v5310_v30 = vsel %vm5238_vm14, %v5236_v44, %v10197_v60  ;;  %v5309_v55 = vsel %vm5238_vm14, %v5235_v35, %v10196_v37  ;;  %v6076_v6 = vor.u32 %v6075_v23, %v6072_v32  ;;  %v10241_v44 = vunpack.i.l.bf16 %v14043_v19 }
 0x425   : > { %v10205_v42 = vpop.permute.xlu1 %10204  ;;  %v10348_v49 = vpack.i.bf16 %v5310_v30, %v5309_v55  ;;  %v6090_v4 = vrot.slane %v6088_v27, 3  ;;  %v6093_v3 = vrot.slane %v6091_v57, 4  ;;  %v5811_v19 = vsel %vm3008_vm6, %v13577_v16, %v10231_v26 }
 0x426   : > { %v10207_v22 = vunpack.i.h.bf16 %v10205_v42  ;;  %v10206_v45 = vunpack.i.l.bf16 %v10205_v42  ;;  %v6077_v10 = vsel %vm3112_vm7, %v6067_v13, %v6076_v6  ;;  %v6086_v20 = vsel %vm3112_vm7, %v6076_v6, %v6085_v25  ;;  %v14110_v13 = vpop.permute.xlu0 %10279  ;;  %v15448_v42 = vld [vmem:[#allocation21_spill] sm:$0xff] }
 0x427   : > { %10349 = vrot.lane.b32.xlu1 %v10348_v49, %s10460_s22  ;;  %8857 = vmatmul.mubr.msk.bf16.gmra.mxu1 %vm6267_vm1, %v6077_v10  ;;  %v6094_v51 = vor.u32 %v6093_v3, %v6090_v4  ;;  %v5877_v11 = vsel %vm5836_vm0, %v5811_v19, %v10241_v44  ;;  %v5878_v54 = vsel %vm5836_vm0, %v5812_v59, %v10242_v33  ;;  %v6109_v43 = vshll.u32 %v5920_v38, 16 }
 0x428   : > { %8860 = vmatprep.mubr.msk.bf16.mxu1 %vm6267_vm1, %v6086_v20  ;;  %v5806_v1 = vsel %vm3008_vm6, %v13519_v8, %v10207_v22  ;;  %v5805_v36 = vsel %vm3008_vm6, %v13522_v39, %v10206_v45  ;;  %v10252_v16 = vunpack.i.h.bf16 %v14055_v62  ;;  %v10251_v29 = vunpack.i.l.bf16 %v14055_v62 }
 0x429   : > { %v10215_v58 = vpop.permute.xlu1 %10214  ;;  %v10262_v12 = vunpack.i.h.bf16 %v14074_v17  ;;  %v10261_v7 = vunpack.i.l.bf16 %v14074_v17  ;;  %v5922_v15 = vpack.c.bf16 %v5878_v54, %v5877_v11  ;;  %v6095_v5 = vsel %vm3112_vm7, %v6085_v25, %v6094_v51 }
 0x42a   : > { %v10217_v14 = vunpack.i.h.bf16 %v10215_v58  ;;  %v10216_v52 = vunpack.i.l.bf16 %v10215_v58  ;;  %v6108_v60 = vrot.slane %v6106_v40, 3  ;;  %v6111_v41 = vrot.slane %v6109_v43, 4  ;;  %v14130_v32 = vpop.permute.xlu0 %10289 }
 0x42b   : > { %v5816_v62 = vsel %vm3008_vm6, %v13603_v53, %v10252_v16  ;;  %v5815_v37 = vsel %vm3008_vm6, %v13600_v31, %v10251_v29  ;;  %v6124_v55 = vshrl.u32 %v5922_v15, 16  ;;  %v6127_v25 = vshll.u32 %v5922_v15, 16  ;;  %v15449_v16 = vld [vmem:[#allocation18_spill] sm:$0xff] }
 0x42c   : > { %v5872_v56 = vsel %vm5836_vm0, %v5806_v1, %v10217_v14  ;;  %v5871_v8 = vsel %vm5836_vm0, %v5805_v36, %v10216_v52  ;;  %v5881_v23 = vsel %vm5836_vm0, %v5815_v37, %v10261_v7  ;;  %v5882_v2 = vsel %vm5836_vm0, %v5816_v62, %v10262_v12 }
 0x42d   : > { %v10225_v47 = vpop.permute.xlu1 %10224  ;;  %v5919_v9 = vpack.c.bf16 %v5872_v56, %v5871_v8  ;;  %v5924_v38 = vpack.c.bf16 %v5882_v2, %v5881_v23  ;;  %v10271_v33 = vunpack.i.l.bf16 %v14090_v24  ;;  %v6112_v3 = vor.u32 %v6111_v41, %v6108_v60  ;;  %v15450_v8 = vld [vmem:[#allocation20_spill] sm:$0xff] }
 0x42e   : > { %v10227_v21 = vunpack.i.h.bf16 %v10225_v47  ;;  %v10226_v63 = vunpack.i.l.bf16 %v10225_v47  ;;  %v10272_v22 = vunpack.i.h.bf16 %v14090_v24  ;;  %v10282_v44 = vunpack.i.h.bf16 %v14110_v13  ;;  %v10300_v45 = vpop.permute.xlu0 %10299 }
 0x42f   : > { %v6097_v50 = vshrl.u32 %v5919_v9, 16  ;;  %v6100_v39 = vshll.u32 %v5919_v9, 16  ;;  %8861 = vmatmul.mubr.msk.bf16.gmra.mxu1 %vm6267_vm1, %v6095_v5  ;;  %v6126_v40 = vrot.slane %v6124_v55, 3  ;;  %v6129_v59 = vrot.slane %v6127_v25, 4 }
 0x430   : > { %v5810_v53 = vsel %vm3008_vm6, %v13461_v34, %v10227_v21  ;;  %v5809_v31 = vsel %vm3008_vm6, %v15448_v42, %v10226_v63  ;;  %v10281_v34 = vunpack.i.l.bf16 %v14110_v13  ;;  %v6142_v14 = vshrl.u32 %v5924_v38, 16 }
 0x431   : > { %v10235_v17 = vpop.permute.xlu1 %10234  ;;  %v6099_v35 = vrot.slane %v6097_v50, 3  ;;  %v6102_v27 = vrot.slane %v6100_v39, 4  ;;  %v6145_v19 = vshll.u32 %v5924_v38, 16  ;;  %v5819_v24 = vsel %vm3008_vm6, %v13637_v28, %v10271_v33  ;;  %v15453_v33 = vld [vmem:[#allocation23_spill] sm:$0xff] }
 0x432   : > { %v10237_v57 = vunpack.i.h.bf16 %v10235_v17  ;;  %v10236_v30 = vunpack.i.l.bf16 %v10235_v17  ;;  %v5885_v54 = vsel %vm5836_vm0, %v5819_v24, %v10281_v34  ;;  %v10292_v12 = vunpack.i.h.bf16 %v14130_v32 }
 0x433   : > { %v6103_v6 = vor.u32 %v6102_v27, %v6099_v35  ;;  %v10291_v7 = vunpack.i.l.bf16 %v14130_v32  ;;  %v10302_v50 = vunpack.i.h.bf16 %v10300_v45  ;;  %v10301_v39 = vunpack.i.l.bf16 %v10300_v45  ;;  %v15451_v27 = vld [vmem:[#allocation5_spill] sm:$0xff] }
 0x434   : > { %v5875_v18 = vsel %vm5836_vm0, %v5809_v31, %v10236_v30  ;;  %v5876_v26 = vsel %vm5836_vm0, %v5810_v53, %v10237_v57  ;;  %v6130_v63 = vor.u32 %v6129_v59, %v6126_v40  ;;  %v6144_v2 = vrot.slane %v6142_v14, 3  ;;  %v15452_v30 = vld [vmem:[#allocation19_spill] sm:$0xff] }
 0x435   : > { %v10245_v49 = vpop.permute.xlu1 %10244  ;;  %v5921_v4 = vpack.c.bf16 %v5876_v26, %v5875_v18  ;;  %v6104_v10 = vsel %vm3112_vm7, %v6094_v51, %v6103_v6  ;;  %v6113_v13 = vsel %vm3112_vm7, %v6103_v6, %v6112_v3  ;;  %v5820_v51 = vsel %vm3008_vm6, %v13640_v0, %v10272_v22  ;;  %v14161_v0 = vpop.permute.xlu0 %10309 }
 0x436   : > { %v10247_v48 = vunpack.i.h.bf16 %v10245_v49  ;;  %v10246_v58 = vunpack.i.l.bf16 %v10245_v49  ;;  %8864 = vmatprep.mubr.msk.bf16.mxu1 %vm6267_vm1, %v6104_v10  ;;  %v5886_v43 = vsel %vm5836_vm0, %v5820_v51, %v10282_v44  ;;  %v6147_v35 = vrot.slane %v6145_v19, 4 }
 0x437   : > { %v6115_v20 = vshrl.u32 %v5921_v4, 16  ;;  %v6118_v46 = vshll.u32 %v5921_v4, 16  ;;  %8865 = vmatmul.mubr.msk.bf16.gmra.mxu1 %vm6267_vm1, %v6113_v13  ;;  %v5926_v60 = vpack.c.bf16 %v5886_v43, %v5885_v54  ;;  %v5824_v57 = vsel %vm3008_vm6, %v15451_v27, %v10292_v12 }
 0x438   : > { %v5814_v29 = vsel %vm3008_vm6, %v15449_v16, %v10247_v48  ;;  %v5813_v28 = vsel %vm3008_vm6, %v15450_v8, %v10246_v58  ;;  %v5823_v55 = vsel %vm3008_vm6, %v15452_v30, %v10291_v7  ;;  %v5890_v31 = vsel %vm5836_vm0, %v5824_v57, %v10302_v50  ;;  %v15457_v50 = vld [vmem:[#allocation53_spill] sm:$0xff] }
 0x439   : > { %v10255_v1 = vpop.permute.xlu1 %10254  ;;  %v6117_v52 = vrot.slane %v6115_v20, 3  ;;  %v6120_v11 = vrot.slane %v6118_v46, 4  ;;  %v5889_v42 = vsel %vm5836_vm0, %v5823_v55, %v10301_v39  ;;  %v6160_v38 = vshrl.u32 %v5926_v60, 16  ;;  %v10325_v18 = vpop.permute.xlu0 %10324 }
 0x43a   : > { %v10257_v36 = vunpack.i.h.bf16 %v10255_v1  ;;  %v10256_v56 = vunpack.i.l.bf16 %v10255_v1  ;;  %v6163_v34 = vshll.u32 %v5926_v60, 16  ;;  %v5928_v45 = vpack.c.bf16 %v5890_v31, %v5889_v42  ;;  %v14184_v24 = vpop.f32.mrf.mxu0 }
 0x43b   : > { %v6121_v47 = vor.u32 %v6120_v11, %v6117_v52  ;;  %v6148_v40 = vor.u32 %v6147_v35, %v6144_v2  ;;  %v6162_v59 = vrot.slane %v6160_v38, 3  ;;  %v10312_v14 = vunpack.i.h.bf16 %v14161_v0 }
 0x43c   : > { %v5879_v9 = vsel %vm5836_vm0, %v5813_v28, %v10256_v56  ;;  %v5880_v15 = vsel %vm5836_vm0, %v5814_v29, %v10257_v36  ;;  %v10311_v52 = vunpack.i.l.bf16 %v14161_v0  ;;  %v6165_v54 = vrot.slane %v6163_v34, 4 }
 0x43d   : > { %v10265_v5 = vpop.permute.xlu1 %10264  ;;  %v5923_v21 = vpack.c.bf16 %v5880_v15, %v5879_v9  ;;  %v6122_v62 = vsel %vm3112_vm7, %v6112_v3, %v6121_v47  ;;  %v6131_v32 = vsel %vm3112_vm7, %v6121_v47, %v6130_v63  ;;  %v15454_v3 = vld [vmem:[#allocation22_spill] sm:$0xff]  ;;  %v6178_v36 = vshrl.u32 %v5928_v45, 16  ;;  %v10330_v16 = vpop.permute.xlu0 %10329  ;;  %v15455_v9 = vld [vmem:[#allocation7_spill] sm:$0xff] }
 0x43e   : > { %v10267_v41 = vunpack.i.h.bf16 %v10265_v5  ;;  %v10266_v23 = vunpack.i.l.bf16 %v10265_v5  ;;  %8868 = vmatprep.mubr.msk.bf16.mxu1 %vm6267_vm1, %v6122_v62  ;;  %v10327_v56 = vunpack.i.h.bf16 %v10325_v18  ;;  %v10326_v43 = vunpack.i.l.bf16 %v10325_v18  ;;  %v15456_v5 = vld [vmem:[#allocation52_spill] sm:$0xff] }
 0x43f   : > { %v6133_v37 = vshrl.u32 %v5923_v21, 16  ;;  %v6136_v17 = vshll.u32 %v5923_v21, 16  ;;  %8869 = vmatmul.mubr.msk.bf16.gmra.mxu1 %vm6267_vm1, %v6131_v32  ;;  %v6181_v7 = vshll.u32 %v5928_v45, 16  ;;  %v5828_v15 = vsel %vm3008_vm6, %v15455_v9, %v10312_v14  ;;  %v14195_v21 = vpop.f32.mrf.mxu0 }
 0x440   : > { %v5818_v4 = vsel %vm3008_vm6, %v15453_v33, %v10267_v41  ;;  %v5817_v22 = vsel %vm3008_vm6, %v15454_v3, %v10266_v23  ;;  %v5894_v23 = vsel %vm5836_vm0, %v5828_v15, %v10327_v56  ;;  %v6166_v27 = vor.u32 %v6165_v54, %v6162_v59 }
 0x441   : > { %v10275_v53 = vpop.permute.xlu1 %10274  ;;  %v6135_v6 = vrot.slane %v6133_v37, 3  ;;  %v6138_v25 = vrot.slane %v6136_v17, 4  ;;  %v14204_v57 = vpop.f32.mrf.mxu0  ;;  %vm8066_vm3 = vcmask 60416  }
 0x442   : > { %v10277_v26 = vunpack.i.h.bf16 %v10275_v53  ;;  %v10276_v49 = vunpack.i.l.bf16 %v10275_v53  ;;  %v10335_v30 = vpop.permute.xlu0 %10334 }
 0x443   : > { %v6139_v44 = vor.u32 %v6138_v25, %v6135_v6  ;;  %v6180_v6 = vrot.slane %v6178_v36, 3  ;;  %v6183_v25 = vrot.slane %v6181_v7, 4 }
 0x444   : > { %v5883_v10 = vsel %vm5836_vm0, %v5817_v22, %v10276_v49  ;;  %v5884_v20 = vsel %vm5836_vm0, %v5818_v4, %v10277_v26  ;;  %v10332_v26 = vunpack.i.h.bf16 %v10330_v16  ;;  %v10331_v49 = vunpack.i.l.bf16 %v10330_v16 }
 0x445   : > { %v10285_v46 = vpop.permute.xlu1 %10284  ;;  %v5925_v48 = vpack.c.bf16 %v5884_v20, %v5883_v10  ;;  %v6140_v58 = vsel %vm3112_vm7, %v6130_v63, %v6139_v44  ;;  %v6149_v51 = vsel %vm3112_vm7, %v6139_v44, %v6148_v40  ;;  %v15458_v63 = vld [vmem:[#allocation48_spill] sm:$0xff]  ;;  %v10337_v22 = vunpack.i.h.bf16 %v10335_v30  ;;  %v14208_v10 = vpop.f32.mrf.mxu0  ;;  %v15459_v20 = vld [vmem:[#allocation65_spill] sm:$0xff] }
 0x446   : > { %v10287_v19 = vunpack.i.h.bf16 %v10285_v46  ;;  %v10286_v1 = vunpack.i.l.bf16 %v10285_v46  ;;  %8872 = vmatprep.mubr.msk.bf16.mxu1 %vm6267_vm1, %v6140_v58  ;;  %v5827_v60 = vsel %vm3008_vm6, %v15458_v63, %v10311_v52  ;;  %v10336_v44 = vunpack.i.l.bf16 %v10335_v30 }
 0x447   : > { %v6151_v11 = vshrl.u32 %v5925_v48, 16  ;;  %v6154_v13 = vshll.u32 %v5925_v48, 16  ;;  %8873 = vmatmul.mubr.msk.bf16.gmra.mxu1 %vm6267_vm1, %v6149_v51  ;;  %v5893_v17 = vsel %vm5836_vm0, %v5827_v60, %v10326_v43  ;;  %v15460_v48 = vld [vmem:[#allocation6_spill] sm:$0xff] }
 0x448   : > { %v5822_v0 = vsel %vm3008_vm6, %v15456_v5, %v10287_v19  ;;  %v5821_v39 = vsel %vm3008_vm6, %v15457_v50, %v10286_v1  ;;  %v5930_v38 = vpack.c.bf16 %v5894_v23, %v5893_v17  ;;  %v15461_v1 = vld [vmem:[#allocation17_spill] sm:$0xff]  ;;  %v15464_v23 = vld [vmem:[#allocation11_spill] sm:$0xff] }
 0x449   : > { %v10295_v29 = vpop.permute.xlu1 %10294  ;;  %v6153_v8 = vrot.slane %v6151_v11, 3  ;;  %v6156_v28 = vrot.slane %v6154_v13, 4  ;;  %v5832_v52 = vsel %vm3008_vm6, %v15461_v1, %v10332_v26  ;;  %v15462_v11 = vld [vmem:[#allocation12_spill] sm:$0xff] }
 0x44a   : > { %v10297_v47 = vunpack.i.h.bf16 %v10295_v29  ;;  %v10296_v12 = vunpack.i.l.bf16 %v10295_v29  ;;  %v6196_v59 = vshrl.u32 %v5930_v38, 16  ;;  %v5831_v13 = vsel %vm3008_vm6, %v15462_v11, %v10331_v49  ;;  %v5506_v11 = vpop.permute.xlu0 %5505 }
 0x44b   : > { %v6157_v37 = vor.u32 %v6156_v28, %v6153_v8  ;;  %v6199_v56 = vshll.u32 %v5930_v38, 16  ;;  %v5897_v43 = vsel %vm5836_vm0, %v5831_v13, %v10336_v44  ;;  %v5898_v16 = vsel %vm5836_vm0, %v5832_v52, %v10337_v22  ;;  %v14225_v8 = vpop.f32.mrf.mxu0 }
 0x44c   : > { %v5887_v41 = vsel %vm5836_vm0, %v5821_v39, %v10296_v12  ;;  %v5888_v62 = vsel %vm5836_vm0, %v5822_v0, %v10297_v47  ;;  %v6184_v29 = vor.u32 %v6183_v25, %v6180_v6  ;;  %v6198_v15 = vrot.slane %v6196_v59, 3 }
 0x44d   : > { %v5927_v32 = vpack.c.bf16 %v5888_v62, %v5887_v41  ;;  %v10305_v2 = vpop.permute.xlu1 %10304  ;;  %v6158_v35 = vsel %vm3112_vm7, %v6148_v40, %v6157_v37  ;;  %v6167_v18 = vsel %vm3112_vm7, %v6157_v37, %v6166_v27  ;;  %v6201_v39 = vrot.slane %v6199_v56, 4  ;;  %v14228_v62 = vpop.f32.mrf.mxu0  ;;  %v15463_v37 = vld [vmem:[#allocation10_spill] sm:$0xff] }
 0x44e   : > { %v10307_v42 = vunpack.i.h.bf16 %v10305_v2  ;;  %v10306_v31 = vunpack.i.l.bf16 %v10305_v2  ;;  %8876 = vmatprep.mubr.msk.bf16.mxu1 %vm6267_vm1, %v6158_v35  ;;  %v5932_v63 = vpack.c.bf16 %v5898_v16, %v5897_v43 }
 0x44f   : > { %v6169_v55 = vshrl.u32 %v5927_v32, 16  ;;  %v6172_v53 = vshll.u32 %v5927_v32, 16  ;;  %8877 = vmatmul.mubr.msk.bf16.gmra.mxu1 %vm6267_vm1, %v6167_v18  ;;  %v14239_v6 = vpop.f32.mrf.mxu0 }
 0x450   : > { %v5826_v46 = vsel %vm3008_vm6, %v15459_v20, %v10307_v42  ;;  %v5825_v58 = vsel %vm3008_vm6, %v15460_v48, %v10306_v31  ;;  %v6217_v42 = vshll.u32 %v5932_v63, 16  ;;  %v6202_v31 = vor.u32 %v6201_v39, %v6198_v15 }
 0x451   : > { %v6171_v33 = vrot.slane %v6169_v55, 3  ;;  %v6174_v4 = vrot.slane %v6172_v53, 4  ;;  %v10315_v3 = vpop.permute.xlu1 %10314  ;;  %v6214_v53 = vshrl.u32 %v5932_v63, 16 }
 0x452   : > { %v10317_v34 = vunpack.i.h.bf16 %v10315_v3  ;;  %v10316_v45 = vunpack.i.l.bf16 %v10315_v3  ;;  %v14242_v3 = vpop.f32.mrf.mxu0 }
 0x453   : > { %v6175_v40 = vor.u32 %v6174_v4, %v6171_v33  ;;  %v6216_v33 = vrot.slane %v6214_v53, 3  ;;  %v6219_v4 = vrot.slane %v6217_v42, 4 }
 0x454   : > { %v5891_v14 = vsel %vm5836_vm0, %v5825_v58, %v10316_v45  ;;  %v5892_v19 = vsel %vm5836_vm0, %v5826_v46, %v10317_v34  ;;  %v14247_v45 = vpop.f32.mrf.mxu0 }
 0x455   : > { %v5929_v51 = vpack.c.bf16 %v5892_v19, %v5891_v14  ;;  %v10320_v54 = vpop.permute.xlu1 %10319  ;;  %v6176_v36 = vsel %vm3112_vm7, %v6166_v27, %v6175_v40  ;;  %v6185_v9 = vsel %vm3112_vm7, %v6175_v40, %v6184_v29  ;;  %v6220_v34 = vor.u32 %v6219_v4, %v6216_v33 }
 0x456   : > { %8880 = vmatprep.mubr.msk.bf16.mxu1 %vm6267_vm1, %v6176_v36  ;;  %v10322_v12 = vunpack.i.h.bf16 %v10320_v54  ;;  %v10321_v7 = vunpack.i.l.bf16 %v10320_v54  ;;  %v14250_v46 = vpop.f32.mrf.mxu0  ;;  %v15465_v36 = vld [vmem:[#allocation25_spill] sm:$0xff] }
 0x457   : > { %v6187_v28 = vshrl.u32 %v5929_v51, 16  ;;  %v6190_v47 = vshll.u32 %v5929_v51, 16  ;;  %8881 = vmatmul.mubr.msk.bf16.gmra.mxu1 %vm6267_vm1, %v6185_v9  ;;  %v5835_v56 = vsel %vm3008_vm6, %v15465_v36, %v5506_v11  ;;  %v14319_v36 = vld [vmem:[%s14913_s5] ss:$0 sm:$0xff] }
 0x458   : > { %v5830_v17 = vsel %vm3008_vm6, %v15463_v37, %v10322_v12  ;;  %v5829_v32 = vsel %vm3008_vm6, %v15464_v23, %v10321_v7  ;;  %v14253_v48 = vpop.f32.mrf.mxu0 }
 0x459   : > { %v6189_v5 = vrot.slane %v6187_v28, 3  ;;  %v6192_v0 = vrot.slane %v6190_v47, 4  ;;  %v10340_v50 = vpop.permute.xlu1 %10339 }
 0x45a   : > { %v10342_v60 = vunpack.i.h.bf16 %v10340_v50  ;;  %v10341_v41 = vunpack.i.l.bf16 %v10340_v50  ;;  %v14255_v58 = vpop.f32.mrf.mxu0  ;;  %v15466_v50 = vld [vmem:[#allocation16_spill] sm:$0xff] }
 0x45b   : > { %v6193_v2 = vor.u32 %v6192_v0, %v6189_v5 }
 0x45c   : > { %v5895_v35 = vsel %vm5836_vm0, %v5829_v32, %v10341_v41  ;;  %v5896_v27 = vsel %vm5836_vm0, %v5830_v17, %v10342_v60  ;;  %v14257_v40 = vpop.f32.mrf.mxu0 }
 0x45d   : > { %v5931_v30 = vpack.c.bf16 %v5896_v27, %v5895_v35  ;;  %v6194_v55 = vsel %vm3112_vm7, %v6184_v29, %v6193_v2  ;;  %v6203_v18 = vsel %vm3112_vm7, %v6193_v2, %v6202_v31  ;;  %v10345_v43 = vpop.permute.xlu1 %10344 }
 0x45e   : > { %8884 = vmatprep.mubr.msk.bf16.mxu1 %vm6267_vm1, %v6194_v55  ;;  %v14259_v59 = vpop.f32.mrf.mxu0  ;;  %v10347_v28 = vunpack.i.h.bf16 %v10345_v43  ;;  %v10346_v47 = vunpack.i.l.bf16 %v10345_v43 }
 0x45f   : > { %v6205_v25 = vshrl.u32 %v5931_v30, 16  ;;  %v6208_v38 = vshll.u32 %v5931_v30, 16  ;;  %8885 = vmatmul.mubr.msk.bf16.gmra.mxu1 %vm6267_vm1, %v6203_v18 }
 0x460   : > { %v14261_v14 = vpop.f32.mrf.mxu0  ;;  %v5834_v0 = vsel %vm3008_vm6, %v13474_v61, %v10347_v28  ;;  %v5833_v39 = vsel %vm3008_vm6, %v15466_v50, %v10346_v47  ;;  %v14334_v47 = vld [vmem:[%s14914_s6] ss:$0 sm:$0xff] }
 0x461   : > { %v6207_v26 = vrot.slane %v6205_v25, 3  ;;  %v6210_v49 = vrot.slane %v6208_v38, 4 }
 0x462   : > { %v14263_v19 = vpop.f32.mrf.mxu0 }
 0x463   : > { %v6211_v22 = vor.u32 %v6210_v49, %v6207_v26 }
 0x464   : > { %v14265_v1 = vpop.f32.mrf.mxu0 }
 0x465   : > { %v6212_v44 = vsel %vm3112_vm7, %v6202_v31, %v6211_v22  ;;  %v6221_v20 = vsel %vm3112_vm7, %v6211_v22, %v6220_v34 }
 0x466   : > { %8888 = vmatprep.mubr.msk.bf16.mxu1 %vm6267_vm1, %v6212_v44  ;;  %v14267_v52 = vpop.f32.mrf.mxu0  ;;  %v14308_v44 = vld [vmem:[%s14916_s8] ss:$0 sm:$0xff] }
 0x467   : > { %8889 = vmatmul.mubr.msk.bf16.gmra.mxu1 %vm6267_vm1, %v6221_v20  ;;  %v7549_v11 = vmul.f32 %v14184_v24, %v14308_v44 }
 0x468   : > { %v14269_v13 = vpop.f32.mrf.mxu0 }
 0x46a   : > { %v14271_v54 = vpop.f32.mrf.mxu0 }
 0x46c   : > { %v14276_v29 = vpop.f32.mrf.mxu0 }
 0x46e   : > { %v14278_v9 = vpop.f32.mrf.mxu0 }
 0x470   : > { %v14286_v23 = vpop.f32.mrf.mxu0 }
 0x472   : > { %v14288_v53 = vpop.f32.mrf.mxu0 }
 0x474   : > { %v5705_v51 = vpop.permute.xlu0 %5704  ;;  %v14292_v38 = vpop.f32.mrf.mxu0 }
 0x475   : > { %v5901_v16 = vsel %vm5836_vm0, %v5835_v56, %v5705_v51  ;;  %v14324_v56 = vld [vmem:[%s14917_s9] ss:$0 sm:$0xff] }
 0x476   : > { %v5934_v12 = vpack.c.bf16 %v5901_v16, %v5901_v16  ;;  %v14296_v18 = vpop.f32.mrf.mxu0  ;;  %v7547_v16 = vmul.f32 %v14308_v44, %v14195_v21  ;;  %v7548_v21 = vmul.f32 %v14308_v44, %v14208_v10 }
 0x478   : > { %v6232_v63 = vshrl.u32 %v5934_v12, 16  ;;  %v6235_v60 = vshll.u32 %v5934_v12, 16  ;;  %v14298_v26 = vpop.f32.mrf.mxu0 }
 0x47a   : > { %v6234_v32 = vrot.slane %v6232_v63, 3  ;;  %v6237_v2 = vrot.slane %v6235_v60, 4  ;;  %v14300_v49 = vpop.f32.mrf.mxu0  ;;  %v7618_v60 = vadd.f32 %v14324_v56, %v7547_v16 }
 0x47c   : > { %v6238_v61 = vor.u32 %v6237_v2, %v6234_v32  ;;  %v14302_v33 = vpop.f32.mrf.mxu0 }
 0x499   : > { %v10350_v7 = vpop.permute.xlu1 %10349 }
 0x49a   : > { %v10352_v15 = vunpack.i.h.bf16 %v10350_v7  ;;  %v10351_v5 = vunpack.i.l.bf16 %v10350_v7  ;;  %v7620_v7 = vadd.f32 %v14324_v56, %v7549_v11 }
 0x49c   : > { %v5900_v41 = vsel %vm5836_vm0, %v5834_v0, %v10352_v15  ;;  %v5899_v37 = vsel %vm5836_vm0, %v5833_v39, %v10351_v5  ;;  %v7550_v15 = vmul.f32 %v14204_v57, %v14308_v44 }
 0x49d   : > { %v5933_v17 = vpack.c.bf16 %v5900_v41, %v5899_v37 }
 0x49e   : > { %v7621_v32 = vadd.f32 %v14324_v56, %v7550_v15 }
 0x49f   : > { %v6223_v35 = vshrl.u32 %v5933_v17, 16  ;;  %v6226_v27 = vshll.u32 %v5933_v17, 16 }
 0x4a1   : > { %v6225_v30 = vrot.slane %v6223_v35, 3  ;;  %v6228_v55 = vrot.slane %v6226_v27, 4  ;;  %v7619_v27 = vadd.f32 %v14324_v56, %v7548_v21 }
 0x4a3   : > { %v6229_v42 = vor.u32 %v6228_v55, %v6225_v30  ;;  %v7553_v30 = vmul.f32 %v14225_v8, %v14308_v44  ;;  %v7551_v55 = vmul.f32 %v14308_v44, %v14228_v62  ;;  %v7554_v62 = vmul.f32 %v14239_v6, %v14308_v44 }
 0x4a5   : > { %v6230_v31 = vsel %vm3112_vm7, %v6220_v34, %v6229_v42  ;;  %v6239_v25 = vsel %vm3112_vm7, %v6229_v42, %v6238_v61  ;;  %v14310_v34 = vpop.f32.mrf.mxu0  ;;  %v7622_v15 = vadd.f32 %v14324_v56, %v7551_v55 }
 0x4a6   : > { %8892 = vmatprep.mubr.msk.bf16.mxu1 %vm6267_vm1, %v6230_v31 }
 0x4a7   : > { %8893 = vmatmul.mubr.msk.bf16.gmra.mxu1 %vm6267_vm1, %v6239_v25  ;;  %v14326_v43 = vpop.f32.mrf.mxu0 }
 0x4a9   : > { %v14343_v50 = vpop.f32.mrf.mxu0 }
 0x4ab   : > { %v14359_v61 = vpop.f32.mrf.mxu0 }
 0x4ad   : > { %v14378_v6 = vpop.f32.mrf.mxu0 }
 0x4b6   : > { %v8834_v4 = vpop.f32.mrf.mxu1 }
 0x4b7   : > { %6659 = vst.msk [vmem:[#allocation2 + $0x10] sm:$0xff] %vm2409_vm2, %v8834_v4 }
 0x4b8   : > { %v6402_v22 = vpop.f32.mrf.mxu1 }
 0x4b9   : > { %6657 = vst.msk [vmem:[#allocation2] sm:$0xff] %vm2409_vm2, %v6402_v22 }
 0x4ba   : > { %v8835_v20 = vpop.f32.mrf.mxu1 }
 0x4bb   : > { %6660 = vst.msk [vmem:[#allocation2 + $0x18] sm:$0xff] %vm2409_vm2, %v8835_v20 }
 0x4bc   : > { %v6405_v51 = vpop.f32.mrf.mxu1 }
 0x4bd   : > { %6658 = vst.msk [vmem:[#allocation2 + $0x8] sm:$0xff] %vm2409_vm2, %v6405_v51 }
 0x4be   : > { %v8838_v28 = vpop.f32.mrf.mxu1  ;;  %v6723_v24 = vld [vmem:[#allocation2 + $0x10] sm:$0xff] }
 0x4bf   : > { %6663 = vst.msk [vmem:[#allocation2 + $0x30] sm:$0xff] %vm2409_vm2, %v8838_v28  ;;  %v6794_v12 = vmul.f32 %v14319_v36, %v6723_v24  ;;  %v7624_v24 = vadd.f32 %v14324_v56, %v7553_v30 }
 0x4c0   : > { %v6418_v5 = vpop.f32.mrf.mxu1  ;;  %v6721_v0 = vld [vmem:[#allocation2] sm:$0xff] }
 0x4c1   : > { %v6865_v39 = vadd.f32 %v14334_v47, %v6794_v12  ;;  %6661 = vst.msk [vmem:[#allocation2 + $0x20] sm:$0xff] %vm2409_vm2, %v6418_v5  ;;  %v6792_v63 = vmul.f32 %v14319_v36, %v6721_v0  ;;  %v7552_v5 = vmul.f32 %v14308_v44, %v14242_v3  ;;  %v7557_v3 = vmul.f32 %v14247_v45, %v14308_v44 }
 0x4c2   : > { %v8839_v41 = vpop.f32.mrf.mxu1  ;;  %v6724_v37 = vld [vmem:[#allocation2 + $0x18] sm:$0xff] }
 0x4c3   : > { %v7684_v17 = vadd.f32 %v7620_v7, %v6865_v39  ;;  %v6863_v57 = vadd.f32 %v14334_v47, %v6792_v63  ;;  %6664 = vst.msk [vmem:[#allocation2 + $0x38] sm:$0xff] %vm2409_vm2, %v8839_v41  ;;  %v6795_v10 = vmul.f32 %v14319_v36, %v6724_v37  ;;  %v7623_v55 = vadd.f32 %v14324_v56, %v7552_v5 }
 0x4c4   : > { %v6421_v2 = vpop.f32.mrf.mxu1  ;;  %v6722_v35 = vld [vmem:[#allocation2 + $0x8] sm:$0xff] }
 0x4c5   : > { %v7748_v42 = vmax.f32 %v7684_v17, 0.0  ;;  %v7682_v31 = vadd.f32 %v7618_v60, %v6863_v57  ;;  %v6866_v25 = vadd.f32 %v14334_v47, %v6795_v10  ;;  %6662 = vst.msk [vmem:[#allocation2 + $0x28] sm:$0xff] %vm2409_vm2, %v6421_v2  ;;  %v6793_v4 = vmul.f32 %v14319_v36, %v6722_v35 }
 0x4c6   : > { %v8842_v8 = vpop.f32.mrf.mxu1  ;;  %v6727_v22 = vld [vmem:[#allocation2 + $0x30] sm:$0xff]  ;;  %v7625_v17 = vadd.f32 %v14324_v56, %v7554_v62 }
 0x4c7   : > { %v8405_v20 = vpack.c.bf16 %v7748_v42, %v7748_v42  ;;  %v7746_v11 = vmax.f32 %v7682_v31, 0.0  ;;  %v7685_v51 = vadd.f32 %v7621_v32, %v6866_v25  ;;  %v6864_v16 = vadd.f32 %v14334_v47, %v6793_v4  ;;  %6667 = vst.msk [vmem:[#allocation2 + $0x50] sm:$0xff] %vm2409_vm2, %v8842_v8  ;;  %v14394_v42 = vpop.f32.mrf.mxu0 }
 0x4c8   : > { %v6798_v28 = vmul.f32 %v14319_v36, %v6727_v22  ;;  %v6434_v12 = vpop.f32.mrf.mxu1  ;;  %v6725_v7 = vld [vmem:[#allocation2 + $0x20] sm:$0xff] }
 0x4c9   : > { %8069 = vst.msk [vmem:[%s14367_s27 + $0x8] sm:$0xf] %vm8066_vm3, %v8405_v20  ;;  %v8403_v0 = vpack.c.bf16 %v7746_v11, %v7746_v11  ;;  %v7749_v21 = vmax.f32 %v7685_v51, 0.0  ;;  %v7683_v39 = vadd.f32 %v7619_v27, %v6864_v16  ;;  %v6796_v63 = vmul.f32 %v14319_v36, %v6725_v7 }
 0x4ca   : > { %6665 = vst.msk [vmem:[#allocation2 + $0x40] sm:$0xff] %vm2409_vm2, %v6434_v12  ;;  %v6869_v60 = vadd.f32 %v14334_v47, %v6798_v28  ;;  %v8843_v41 = vpop.f32.mrf.mxu1  ;;  %v6728_v37 = vld [vmem:[#allocation2 + $0x38] sm:$0xff]  ;;  %v7628_v20 = vadd.f32 %v14324_v56, %v7557_v3  ;;  %v7555_v11 = vmul.f32 %v14308_v44, %v14250_v46  ;;  %v7558_v51 = vmul.f32 %v14253_v48, %v14308_v44 }
 0x4cb   : > { %8067 = vst.msk [vmem:[%s14367_s27] sm:$0xf] %vm8066_vm3, %v8403_v0  ;;  %v8406_v57 = vpack.c.bf16 %v7749_v21, %v7749_v21  ;;  %v7747_v10 = vmax.f32 %v7683_v39, 0.0  ;;  %v6867_v32 = vadd.f32 %v14334_v47, %v6796_v63  ;;  %v6799_v2 = vmul.f32 %v14319_v36, %v6728_v37  ;;  %v14413_v0 = vpop.f32.mrf.mxu0 }
 0x4cc   : > { %6668 = vst.msk [vmem:[#allocation2 + $0x58] sm:$0xff] %vm2409_vm2, %v8843_v41  ;;  %v7688_v35 = vadd.f32 %v7624_v24, %v6869_v60  ;;  %v6437_v27 = vpop.f32.mrf.mxu1  ;;  %v6726_v30 = vld [vmem:[#allocation2 + $0x28] sm:$0xff]  ;;  %v7556_v46 = vmul.f32 %v14308_v44, %v14255_v58  ;;  %v7626_v41 = vadd.f32 %v14324_v56, %v7555_v11  ;;  %v7629_v58 = vadd.f32 %v14324_v56, %v7558_v51 }
 0x4cd   : > { %8070 = vst.msk [vmem:[%s14367_s27 + $0xc] sm:$0xf] %vm8066_vm3, %v8406_v57  ;;  %v8404_v45 = vpack.c.bf16 %v7747_v10, %v7747_v10  ;;  %v7686_v31 = vadd.f32 %v7622_v15, %v6867_v32  ;;  %v6870_v25 = vadd.f32 %v14334_v47, %v6799_v2  ;;  %v6797_v4 = vmul.f32 %v14319_v36, %v6726_v30 }
 0x4ce   : > { %6666 = vst.msk [vmem:[#allocation2 + $0x48] sm:$0xff] %vm2409_vm2, %v6437_v27  ;;  %v7752_v8 = vmax.f32 %v7688_v35, 0.0  ;;  %v8846_v22 = vpop.f32.mrf.mxu1  ;;  %v6731_v62 = vld [vmem:[#allocation2 + $0x50] sm:$0xff]  ;;  %v7561_v3 = vmul.f32 %v14257_v40, %v14308_v44  ;;  %v14432_v40 = vpop.f32.mrf.mxu0 }
 0x4cf   : > { %8068 = vst.msk [vmem:[%s14367_s27 + $0x4] sm:$0xf] %vm8066_vm3, %v8404_v45  ;;  %v7750_v16 = vmax.f32 %v7686_v31, 0.0  ;;  %v7689_v28 = vadd.f32 %v7625_v17, %v6870_v25  ;;  %v6868_v24 = vadd.f32 %v14334_v47, %v6797_v4  ;;  %v6802_v12 = vmul.f32 %v14319_v36, %v6731_v62 }
 0x4d0   : > { %6671 = vst.msk [vmem:[#allocation2 + $0x70] sm:$0xff] %vm2409_vm2, %v8846_v22  ;;  %v8409_v7 = vpack.c.bf16 %v7752_v8, %v7752_v8  ;;  %v6450_v15 = vpop.f32.mrf.mxu1  ;;  %v7559_v45 = vmul.f32 %v14308_v44, %v14259_v59  ;;  %v7632_v11 = vadd.f32 %v14324_v56, %v7561_v3 }
 0x4d1   : > { %v6729_v5 = vld [vmem:[#allocation2 + $0x40] sm:$0xff]  ;;  %v8407_v48 = vpack.c.bf16 %v7750_v16, %v7750_v16  ;;  %v7753_v21 = vmax.f32 %v7689_v28, 0.0  ;;  %v7687_v39 = vadd.f32 %v7623_v55, %v6868_v24  ;;  %v6873_v63 = vadd.f32 %v14334_v47, %v6802_v12  ;;  %6669 = vst.msk [vmem:[#allocation2 + $0x60] sm:$0xff] %vm2409_vm2, %v6450_v15 }
 0x4d2   : > { %8073 = vst.msk [vmem:[%s14367_s27 + $0x18] sm:$0xf] %vm8066_vm3, %v8409_v7  ;;  %v6800_v60 = vmul.f32 %v14319_v36, %v6729_v5  ;;  %v8847_v37 = vpop.f32.mrf.mxu1  ;;  %v7627_v55 = vadd.f32 %v14324_v56, %v7556_v46  ;;  %v7630_v15 = vadd.f32 %v14324_v56, %v7559_v45  ;;  %v7562_v5 = vmul.f32 %v14261_v14, %v14308_v44 }
 0x4d3   : > { %v6732_v17 = vld [vmem:[#allocation2 + $0x58] sm:$0xff]  ;;  %8071 = vst.msk [vmem:[%s14367_s27 + $0x10] sm:$0xf] %vm8066_vm3, %v8407_v48  ;;  %v8410_v57 = vpack.c.bf16 %v7753_v21, %v7753_v21  ;;  %v7751_v10 = vmax.f32 %v7687_v39, 0.0  ;;  %v7692_v32 = vadd.f32 %v7628_v20, %v6873_v63  ;;  %v7560_v46 = vmul.f32 %v14308_v44, %v14263_v19  ;;  %v14450_v48 = vpop.f32.mrf.mxu0 }
 0x4d4   : > { %6672 = vst.msk [vmem:[#allocation2 + $0x78] sm:$0xff] %vm2409_vm2, %v8847_v37  ;;  %v6803_v2 = vmul.f32 %v14319_v36, %v6732_v17  ;;  %v6871_v35 = vadd.f32 %v14334_v47, %v6800_v60  ;;  %v6453_v27 = vpop.f32.mrf.mxu1  ;;  %v7565_v19 = vmul.f32 %v14265_v1, %v14308_v44  ;;  %v7563_v1 = vmul.f32 %v14308_v44, %v14267_v52 }
 0x4d5   : > { %v6730_v30 = vld [vmem:[#allocation2 + $0x48] sm:$0xff]  ;;  %8074 = vst.msk [vmem:[%s14367_s27 + $0x1c] sm:$0xf] %vm8066_vm3, %v8410_v57  ;;  %v8408_v31 = vpack.c.bf16 %v7751_v10, %v7751_v10  ;;  %v7756_v25 = vmax.f32 %v7692_v32, 0.0  ;;  %v7633_v32 = vadd.f32 %v14324_v56, %v7562_v5  ;;  %v7566_v52 = vmul.f32 %v14269_v13, %v14308_v44 }
 0x4d6   : > { %v6874_v4 = vadd.f32 %v14334_v47, %v6803_v2  ;;  %6670 = vst.msk [vmem:[#allocation2 + $0x68] sm:$0xff] %vm2409_vm2, %v6453_v27  ;;  %v6801_v8 = vmul.f32 %v14319_v36, %v6730_v30  ;;  %v7690_v22 = vadd.f32 %v7626_v41, %v6871_v35  ;;  %v8850_v62 = vpop.f32.mrf.mxu1  ;;  %v7631_v27 = vadd.f32 %v14324_v56, %v7560_v46  ;;  %v14468_v30 = vpop.f32.mrf.mxu0 }
 0x4d7   : > { %v6735_v20 = vld [vmem:[#allocation2 + $0x70] sm:$0xff]  ;;  %8072 = vst.msk [vmem:[%s14367_s27 + $0x14] sm:$0xf] %vm8066_vm3, %v8408_v31  ;;  %v8413_v59 = vpack.c.bf16 %v7756_v25, %v7756_v25 }
 0x4d8   : > { %v7693_v51 = vadd.f32 %v7629_v58, %v6874_v4  ;;  %v6872_v16 = vadd.f32 %v14334_v47, %v6801_v8  ;;  %6675 = vst.msk [vmem:[#allocation2 + $0x90] sm:$0xff] %vm2409_vm2, %v8850_v62  ;;  %v6806_v28 = vmul.f32 %v14319_v36, %v6735_v20  ;;  %v7754_v24 = vmax.f32 %v7690_v22, 0.0  ;;  %v6466_v12 = vpop.f32.mrf.mxu1  ;;  %v6733_v7 = vld [vmem:[#allocation2 + $0x60] sm:$0xff] }
 0x4d9   : > { %8077 = vst.msk [vmem:[%s14367_s27 + $0x28] sm:$0xf] %vm8066_vm3, %v8413_v59  ;;  %v6804_v60 = vmul.f32 %v14319_v36, %v6733_v7  ;;  %v7636_v62 = vadd.f32 %v14324_v56, %v7565_v19  ;;  %v14484_v7 = vpop.f32.mrf.mxu0 }
 0x4da   : > { %v7757_v21 = vmax.f32 %v7693_v51, 0.0  ;;  %v7691_v39 = vadd.f32 %v7627_v55, %v6872_v16  ;;  %v6877_v63 = vadd.f32 %v14334_v47, %v6806_v28  ;;  %6673 = vst.msk [vmem:[#allocation2 + $0x80] sm:$0xff] %vm2409_vm2, %v6466_v12  ;;  %v8411_v41 = vpack.c.bf16 %v7754_v24, %v7754_v24  ;;  %v8851_v37 = vpop.f32.mrf.mxu1 }
 0x4db   : > { %v6736_v14 = vld [vmem:[#allocation2 + $0x78] sm:$0xff]  ;;  %v6875_v57 = vadd.f32 %v14334_v47, %v6804_v60  ;;  %6676 = vst.msk [vmem:[#allocation2 + $0x98] sm:$0xff] %vm2409_vm2, %v8851_v37  ;;  %v7634_v12 = vadd.f32 %v14324_v56, %v7563_v1  ;;  %v7637_v60 = vadd.f32 %v14324_v56, %v7566_v52  ;;  %v7569_v37 = vmul.f32 %v14276_v29, %v14308_v44 }
 0x4dc   : > { %v8414_v17 = vpack.c.bf16 %v7757_v21, %v7757_v21  ;;  %v7755_v58 = vmax.f32 %v7691_v39, 0.0  ;;  %v7696_v3 = vadd.f32 %v7632_v11, %v6877_v63  ;;  %8075 = vst.msk [vmem:[%s14367_s27 + $0x20] sm:$0xf] %vm8066_vm3, %v8411_v41  ;;  %v6807_v10 = vmul.f32 %v14319_v36, %v6736_v14  ;;  %v6469_v2 = vpop.f32.mrf.mxu1 }
 0x4dd   : > { %v6734_v35 = vld [vmem:[#allocation2 + $0x68] sm:$0xff]  ;;  %v7694_v31 = vadd.f32 %v7630_v15, %v6875_v57  ;;  %6674 = vst.msk [vmem:[#allocation2 + $0x88] sm:$0xff] %vm2409_vm2, %v6469_v2  ;;  %v7564_v41 = vmul.f32 %v14308_v44, %v14271_v54  ;;  %v7567_v54 = vmul.f32 %v14308_v44, %v14278_v9  ;;  %v7570_v9 = vmul.f32 %v14286_v23, %v14308_v44 }
 0x4de   : > { %8078 = vst.msk [vmem:[%s14367_s27 + $0x2c] sm:$0xf] %vm8066_vm3, %v8414_v17  ;;  %v8412_v55 = vpack.c.bf16 %v7755_v58, %v7755_v58  ;;  %v7760_v45 = vmax.f32 %v7696_v3, 0.0  ;;  %v6805_v25 = vmul.f32 %v14319_v36, %v6734_v35  ;;  %v6878_v4 = vadd.f32 %v14334_v47, %v6807_v10  ;;  %v8854_v8 = vpop.f32.mrf.mxu1 }
 0x4df   : > { %v6739_v22 = vld [vmem:[#allocation2 + $0x90] sm:$0xff]  ;;  %v7758_v11 = vmax.f32 %v7694_v31, 0.0  ;;  %6679 = vst.msk [vmem:[#allocation2 + $0xb0] sm:$0xff] %vm2409_vm2, %v8854_v8  ;;  %v7640_v31 = vadd.f32 %v14324_v56, %v7569_v37 }
 0x4e0   : > { %8076 = vst.msk [vmem:[%s14367_s27 + $0x24] sm:$0xf] %vm8066_vm3, %v8412_v55  ;;  %v8417_v20 = vpack.c.bf16 %v7760_v45, %v7760_v45  ;;  %v6876_v59 = vadd.f32 %v14334_v47, %v6805_v25  ;;  %v6810_v51 = vmul.f32 %v14319_v36, %v6739_v22  ;;  %v7697_v16 = vadd.f32 %v7633_v32, %v6878_v4  ;;  %v6482_v28 = vpop.f32.mrf.mxu1  ;;  %v14503_v32 = vpop.f32.mrf.mxu0 }
 0x4e1   : > { %v6737_v24 = vld [vmem:[#allocation2 + $0x80] sm:$0xff]  ;;  %v8415_v13 = vpack.c.bf16 %v7758_v11, %v7758_v11  ;;  %6677 = vst.msk [vmem:[#allocation2 + $0xa0] sm:$0xff] %vm2409_vm2, %v6482_v28  ;;  %v7635_v55 = vadd.f32 %v14324_v56, %v7564_v41  ;;  %v7638_v11 = vadd.f32 %v14324_v56, %v7567_v54 }
 0x4e2   : > { %8081 = vst.msk [vmem:[%s14367_s27 + $0x38] sm:$0xf] %vm8066_vm3, %v8417_v20  ;;  %v7695_v15 = vadd.f32 %v7631_v27, %v6876_v59  ;;  %v6881_v5 = vadd.f32 %v14334_v47, %v6810_v51  ;;  %v6808_v46 = vmul.f32 %v14319_v36, %v6737_v24  ;;  %v7761_v21 = vmax.f32 %v7697_v16, 0.0  ;;  %v8855_v39 = vpop.f32.mrf.mxu1  ;;  %v6740_v63 = vld [vmem:[#allocation2 + $0x98] sm:$0xff]  ;;  %v14522_v23 = vpop.f32.mrf.mxu0 }
 0x4e3   : > { %8079 = vst.msk [vmem:[%s14367_s27 + $0x30] sm:$0xf] %vm8066_vm3, %v8415_v13  ;;  %v6811_v58 = vmul.f32 %v14319_v36, %v6740_v63  ;;  %v7568_v59 = vmul.f32 %v14308_v44, %v14288_v53 }
 0x4e4   : > { %v7759_v14 = vmax.f32 %v7695_v15, 0.0  ;;  %v7700_v19 = vadd.f32 %v7636_v62, %v6881_v5  ;;  %v6879_v17 = vadd.f32 %v14334_v47, %v6808_v46  ;;  %6680 = vst.msk [vmem:[#allocation2 + $0xb8] sm:$0xff] %vm2409_vm2, %v8855_v39  ;;  %v8418_v3 = vpack.c.bf16 %v7761_v21, %v7761_v21  ;;  %v6485_v57 = vpop.f32.mrf.mxu1  ;;  %v6738_v10 = vld [vmem:[#allocation2 + $0x88] sm:$0xff] }
 0x4e5   : > { %v6882_v27 = vadd.f32 %v14334_v47, %v6811_v58  ;;  %6678 = vst.msk [vmem:[#allocation2 + $0xa8] sm:$0xff] %vm2409_vm2, %v6485_v57  ;;  %v6809_v1 = vmul.f32 %v14319_v36, %v6738_v10  ;;  %v7641_v5 = vadd.f32 %v14324_v56, %v7570_v9  ;;  %v7639_v37 = vadd.f32 %v14324_v56, %v7568_v59 }
 0x4e6   : > { %v8416_v29 = vpack.c.bf16 %v7759_v14, %v7759_v14  ;;  %v7764_v2 = vmax.f32 %v7700_v19, 0.0  ;;  %v7698_v35 = vadd.f32 %v7634_v12, %v6879_v17  ;;  %8082 = vst.msk [vmem:[%s14367_s27 + $0x3c] sm:$0xf] %vm8066_vm3, %v8418_v3  ;;  %v6743_v45 = vld [vmem:[#allocation2 + $0xb0] sm:$0xff]  ;;  %v7573_v14 = vmul.f32 %v14292_v38, %v14308_v44  ;;  %v14538_v19 = vpop.f32.mrf.mxu0 }
 0x4e7   : > { %v7701_v8 = vadd.f32 %v7637_v60, %v6882_v27  ;;  %v6814_v22 = vmul.f32 %v14319_v36, %v6743_v45  ;;  %v8858_v62 = vpop.f32.mrf.mxu1  ;;  %v6880_v52 = vadd.f32 %v14334_v47, %v6809_v1  ;;  %v7574_v9 = vmul.f32 %v14298_v26, %v14308_v44 }
 0x4e8   : > { %8080 = vst.msk [vmem:[%s14367_s27 + $0x34] sm:$0xf] %vm8066_vm3, %v8416_v29  ;;  %v8421_v25 = vpack.c.bf16 %v7764_v2, %v7764_v2  ;;  %v7762_v4 = vmax.f32 %v7698_v35, 0.0  ;;  %v6741_v20 = vld [vmem:[#allocation2 + $0xa0] sm:$0xff]  ;;  %v7571_v29 = vmul.f32 %v14308_v44, %v14296_v18  ;;  %v14555_v18 = vpop.f32.mrf.mxu0 }
 0x4e9   : > { %6683 = vst.msk [vmem:[#allocation2 + $0xd0] sm:$0xff] %vm2409_vm2, %v8858_v62  ;;  %v7765_v16 = vmax.f32 %v7701_v8, 0.0  ;;  %v6885_v28 = vadd.f32 %v14334_v47, %v6814_v22  ;;  %v6812_v24 = vmul.f32 %v14319_v36, %v6741_v20  ;;  %v6498_v12 = vpop.f32.mrf.mxu1  ;;  %v7699_v13 = vadd.f32 %v7635_v55, %v6880_v52 }
 0x4ea   : > { %8085 = vst.msk [vmem:[%s14367_s27 + $0x48] sm:$0xf] %vm8066_vm3, %v8421_v25  ;;  %v8419_v51 = vpack.c.bf16 %v7762_v4, %v7762_v4  ;;  %v7572_v52 = vmul.f32 %v14308_v44, %v14300_v49  ;;  %v7642_v26 = vadd.f32 %v14324_v56, %v7571_v29 }
 0x4eb   : > { %6681 = vst.msk [vmem:[#allocation2 + $0xc0] sm:$0xff] %vm2409_vm2, %v6498_v12  ;;  %v6744_v15 = vld [vmem:[#allocation2 + $0xb8] sm:$0xff]  ;;  %v8422_v53 = vpack.c.bf16 %v7765_v16, %v7765_v16  ;;  %v7704_v46 = vadd.f32 %v7640_v31, %v6885_v28  ;;  %v6883_v21 = vadd.f32 %v14334_v47, %v6812_v24  ;;  %v8859_v63 = vpop.f32.mrf.mxu1  ;;  %v7763_v60 = vmax.f32 %v7699_v13, 0.0 }
 0x4ec   : > { %8083 = vst.msk [vmem:[%s14367_s27 + $0x40] sm:$0xf] %vm8066_vm3, %v8419_v51  ;;  %v6815_v39 = vmul.f32 %v14319_v36, %v6744_v15  ;;  %v6742_v41 = vld [vmem:[#allocation2 + $0xa8] sm:$0xff]  ;;  %v7644_v31 = vadd.f32 %v14324_v56, %v7573_v14  ;;  %v7645_v13 = vadd.f32 %v14324_v56, %v7574_v9  ;;  %v14571_v15 = vpop.f32.mrf.mxu0 }
 0x4ed   : > { %6684 = vst.msk [vmem:[#allocation2 + $0xd8] sm:$0xff] %vm2409_vm2, %v8859_v63  ;;  %v7768_v17 = vmax.f32 %v7704_v46, 0.0  ;;  %v7702_v58 = vadd.f32 %v7638_v11, %v6883_v21  ;;  %v6813_v57 = vmul.f32 %v14319_v36, %v6742_v41  ;;  %v6501_v10 = vpop.f32.mrf.mxu1  ;;  %v8420_v54 = vpack.c.bf16 %v7763_v60, %v7763_v60 }
 0x4ee   : > { %8086 = vst.msk [vmem:[%s14367_s27 + $0x4c] sm:$0xf] %vm8066_vm3, %v8422_v53  ;;  %v6886_v3 = vadd.f32 %v14334_v47, %v6815_v39  ;;  %v7643_v21 = vadd.f32 %v14324_v56, %v7572_v52  ;;  %v7577_v39 = vmul.f32 %v14302_v33, %v14308_v44  ;;  %v7575_v63 = vmul.f32 %v14308_v44, %v14310_v34 }
 0x4ef   : > { %6682 = vst.msk [vmem:[#allocation2 + $0xc8] sm:$0xff] %vm2409_vm2, %v6501_v10  ;;  %v8425_v38 = vpack.c.bf16 %v7768_v17, %v7768_v17  ;;  %v7766_v2 = vmax.f32 %v7702_v58, 0.0  ;;  %v6884_v27 = vadd.f32 %v14334_v47, %v6813_v57  ;;  %v8862_v1 = vpop.f32.mrf.mxu1  ;;  %v7578_v58 = vmul.f32 %v14326_v43, %v14308_v44  ;;  %v14588_v10 = vpop.f32.mrf.mxu0 }
 0x4f0   : > { %v7705_v35 = vadd.f32 %v7641_v5, %v6886_v3  ;;  %v6747_v55 = vld [vmem:[#allocation2 + $0xd0] sm:$0xff]  ;;  %8084 = vst.msk [vmem:[%s14367_s27 + $0x44] sm:$0xf] %vm8066_vm3, %v8420_v54 }
 0x4f1   : > { %6687 = vst.msk [vmem:[#allocation2 + $0xf0] sm:$0xff] %vm2409_vm2, %v8862_v1  ;;  %v6818_v45 = vmul.f32 %v14319_v36, %v6747_v55  ;;  %v8423_v25 = vpack.c.bf16 %v7766_v2, %v7766_v2  ;;  %v7703_v8 = vadd.f32 %v7639_v37, %v6884_v27  ;;  %v6514_v22 = vpop.f32.mrf.mxu1  ;;  %v7576_v27 = vmul.f32 %v14308_v44, %v14343_v50  ;;  %v14606_v52 = vpop.f32.mrf.mxu0 }
 0x4f2   : > { %8089 = vst.msk [vmem:[%s14367_s27 + $0x58] sm:$0xf] %vm8066_vm3, %v8425_v38  ;;  %v7769_v4 = vmax.f32 %v7705_v35, 0.0  ;;  %v6745_v62 = vld [vmem:[#allocation2 + $0xc0] sm:$0xff]  ;;  %v7648_v38 = vadd.f32 %v14324_v56, %v7577_v39  ;;  %v7646_v35 = vadd.f32 %v14324_v56, %v7575_v63 }
 0x4f3   : > { %v6889_v20 = vadd.f32 %v14334_v47, %v6818_v45  ;;  %6685 = vst.msk [vmem:[#allocation2 + $0xe0] sm:$0xff] %vm2409_vm2, %v6514_v22  ;;  %v6816_v11 = vmul.f32 %v14319_v36, %v6745_v62  ;;  %v7767_v51 = vmax.f32 %v7703_v8, 0.0  ;;  %v8863_v16 = vpop.f32.mrf.mxu1 }
 0x4f4   : > { %8087 = vst.msk [vmem:[%s14367_s27 + $0x50] sm:$0xf] %vm8066_vm3, %v8423_v25  ;;  %v8426_v59 = vpack.c.bf16 %v7769_v4, %v7769_v4  ;;  %v6748_v28 = vld [vmem:[#allocation2 + $0xd8] sm:$0xff]  ;;  %v7649_v4 = vadd.f32 %v14324_v56, %v7578_v58 }
 0x4f5   : > { %v7708_v24 = vadd.f32 %v7644_v31, %v6889_v20  ;;  %v6887_v12 = vadd.f32 %v14334_v47, %v6816_v11  ;;  %6688 = vst.msk [vmem:[#allocation2 + $0xf8] sm:$0xff] %vm2409_vm2, %v8863_v16  ;;  %v6819_v49 = vmul.f32 %v14319_v36, %v6748_v28  ;;  %v8424_v5 = vpack.c.bf16 %v7767_v51, %v7767_v51  ;;  %v6517_v53 = vpop.f32.mrf.mxu1 }
 0x4f6   : > { %8090 = vst.msk [vmem:[%s14367_s27 + $0x5c] sm:$0xf] %vm8066_vm3, %v8426_v59  ;;  %v6746_v46 = vld [vmem:[#allocation2 + $0xc8] sm:$0xff]  ;;  %v7647_v59 = vadd.f32 %v14324_v56, %v7576_v27  ;;  %v7581_v51 = vmul.f32 %v14359_v61, %v14308_v44 }
 0x4f7   : > { %v7772_v60 = vmax.f32 %v7708_v24, 0.0  ;;  %v7706_v41 = vadd.f32 %v7642_v26, %v6887_v12  ;;  %v6890_v37 = vadd.f32 %v14334_v47, %v6819_v49  ;;  %6686 = vst.msk [vmem:[#allocation2 + $0xe8] sm:$0xff] %vm2409_vm2, %v6517_v53  ;;  %v6817_v14 = vmul.f32 %v14319_v36, %v6746_v46  ;;  %v8866_v54 = vpop.f32.mrf.mxu1 }
 0x4f8   : > { %8088 = vst.msk [vmem:[%s14367_s27 + $0x54] sm:$0xf] %vm8066_vm3, %v8424_v5  ;;  %v6751_v17 = vld [vmem:[#allocation2 + $0xf0] sm:$0xff]  ;;  %v7579_v5 = vmul.f32 %v14308_v44, %v14378_v6  ;;  %v7582_v6 = vmul.f32 %v14394_v42, %v14308_v44 }
 0x4f9   : > { %v8429_v3 = vpack.c.bf16 %v7772_v60, %v7772_v60  ;;  %v7770_v33 = vmax.f32 %v7706_v41, 0.0  ;;  %v7709_v57 = vadd.f32 %v7645_v13, %v6890_v37  ;;  %v6888_v34 = vadd.f32 %v14334_v47, %v6817_v14  ;;  %6691 = vst.msk [vmem:[#allocation2 + $0x110] sm:$0xff] %vm2409_vm2, %v8866_v54  ;;  %v6530_v9 = vpop.f32.mrf.mxu1 }
 0x4fa   : > { %v6822_v29 = vmul.f32 %v14319_v36, %v6751_v17  ;;  %v6749_v2 = vld [vmem:[#allocation2 + $0xe0] sm:$0xff]  ;;  %6689 = vst.msk [vmem:[#allocation2 + $0x100] sm:$0xff] %vm2409_vm2, %v6530_v9  ;;  %v7652_v41 = vadd.f32 %v14324_v56, %v7581_v51 }
 0x4fb   : > { %8093 = vst.msk [vmem:[%s14367_s27 + $0x68] sm:$0xf] %vm8066_vm3, %v8429_v3  ;;  %v8427_v43 = vpack.c.bf16 %v7770_v33, %v7770_v33  ;;  %v7773_v1 = vmax.f32 %v7709_v57, 0.0  ;;  %v7707_v55 = vadd.f32 %v7643_v21, %v6888_v34  ;;  %v6820_v45 = vmul.f32 %v14319_v36, %v6749_v2  ;;  %v8867_v11 = vpop.f32.mrf.mxu1  ;;  %v14622_v21 = vpop.f32.mrf.mxu0 }
 0x4fc   : > { %v6893_v31 = vadd.f32 %v14334_v47, %v6822_v29  ;;  %v6752_v25 = vld [vmem:[#allocation2 + $0xf8] sm:$0xff]  ;;  %6692 = vst.msk [vmem:[#allocation2 + $0x118] sm:$0xff] %vm2409_vm2, %v8867_v11  ;;  %v7650_v57 = vadd.f32 %v14324_v56, %v7579_v5  ;;  %v7580_v34 = vmul.f32 %v14308_v44, %v14413_v0 }
 0x4fd   : > { %8091 = vst.msk [vmem:[%s14367_s27 + $0x60] sm:$0xf] %vm8066_vm3, %v8427_v43  ;;  %v8430_v8 = vpack.c.bf16 %v7773_v1, %v7773_v1  ;;  %v7771_v50 = vmax.f32 %v7707_v55, 0.0  ;;  %v6891_v22 = vadd.f32 %v14334_v47, %v6820_v45  ;;  %v6823_v62 = vmul.f32 %v14319_v36, %v6752_v25  ;;  %v6533_v13 = vpop.f32.mrf.mxu1  ;;  %v14639_v2 = vpop.f32.mrf.mxu0 }
 0x4fe   : > { %v7712_v20 = vadd.f32 %v7648_v38, %v6893_v31  ;;  %v6750_v26 = vld [vmem:[#allocation2 + $0xe8] sm:$0xff]  ;;  %6690 = vst.msk [vmem:[#allocation2 + $0x108] sm:$0xff] %vm2409_vm2, %v6533_v13  ;;  %v7653_v43 = vadd.f32 %v14324_v56, %v7582_v6  ;;  %v7651_v25 = vadd.f32 %v14324_v56, %v7580_v34 }
 0x4ff   : > { %8094 = vst.msk [vmem:[%s14367_s27 + $0x6c] sm:$0xf] %vm8066_vm3, %v8430_v8  ;;  %v8428_v16 = vpack.c.bf16 %v7771_v50, %v7771_v50  ;;  %v7710_v28 = vadd.f32 %v7646_v35, %v6891_v22  ;;  %v6894_v24 = vadd.f32 %v14334_v47, %v6823_v62  ;;  %v6821_v12 = vmul.f32 %v14319_v36, %v6750_v26  ;;  %v8870_v63 = vpop.f32.mrf.mxu1  ;;  %v14657_v11 = vpop.f32.mrf.mxu0 }
 0x500   : > { %v7776_v49 = vmax.f32 %v7712_v20, 0.0  ;;  %v6755_v60 = vld [vmem:[#allocation2 + $0x110] sm:$0xff]  ;;  %6695 = vst.msk [vmem:[#allocation2 + $0x130] sm:$0xff] %vm2409_vm2, %v8870_v63  ;;  %v7583_v8 = vmul.f32 %v14308_v44, %v14450_v48 }
 0x501   : > { %8092 = vst.msk [vmem:[%s14367_s27 + $0x64] sm:$0xf] %vm8066_vm3, %v8428_v16  ;;  %v7774_v53 = vmax.f32 %v7710_v28, 0.0  ;;  %v7713_v61 = vadd.f32 %v7649_v4, %v6894_v24  ;;  %v6892_v46 = vadd.f32 %v14334_v47, %v6821_v12  ;;  %v6826_v58 = vmul.f32 %v14319_v36, %v6755_v60  ;;  %v6546_v3 = vpop.f32.mrf.mxu1  ;;  %v6753_v33 = vld [vmem:[#allocation2 + $0x100] sm:$0xff]  ;;  %v14672_v63 = vpop.f32.mrf.mxu0 }
 0x502   : > { %v8433_v39 = vpack.c.bf16 %v7776_v49, %v7776_v49  ;;  %6693 = vst.msk [vmem:[#allocation2 + $0x120] sm:$0xff] %vm2409_vm2, %v6546_v3  ;;  %v6824_v38 = vmul.f32 %v14319_v36, %v6753_v33  ;;  %v7585_v4 = vmul.f32 %v14432_v40, %v14308_v44  ;;  %v7586_v40 = vmul.f32 %v14468_v30, %v14308_v44 }
 0x503   : > { %v8431_v37 = vpack.c.bf16 %v7774_v53, %v7774_v53  ;;  %v7777_v14 = vmax.f32 %v7713_v61, 0.0  ;;  %v7711_v17 = vadd.f32 %v7647_v59, %v6892_v46  ;;  %v6897_v29 = vadd.f32 %v14334_v47, %v6826_v58  ;;  %v8871_v35 = vpop.f32.mrf.mxu1  ;;  %v6756_v27 = vld [vmem:[#allocation2 + $0x118] sm:$0xff] }
 0x504   : > { %8097 = vst.msk [vmem:[%s14367_s27 + $0x78] sm:$0xf] %vm8066_vm3, %v8433_v39  ;;  %v6895_v55 = vadd.f32 %v14334_v47, %v6824_v38  ;;  %v6827_v45 = vmul.f32 %v14319_v36, %v6756_v27  ;;  %v7656_v12 = vadd.f32 %v14324_v56, %v7585_v4  ;;  %v7654_v5 = vadd.f32 %v14324_v56, %v7583_v8 }
 0x505   : > { %8095 = vst.msk [vmem:[%s14367_s27 + $0x70] sm:$0xf] %vm8066_vm3, %v8431_v37  ;;  %v8434_v42 = vpack.c.bf16 %v7777_v14, %v7777_v14  ;;  %v7775_v54 = vmax.f32 %v7711_v17, 0.0  ;;  %v7716_v1 = vadd.f32 %v7652_v41, %v6897_v29  ;;  %v6549_v31 = vpop.f32.mrf.mxu1  ;;  %v6754_v9 = vld [vmem:[#allocation2 + $0x108] sm:$0xff]  ;;  %v7584_v53 = vmul.f32 %v14308_v44, %v14484_v7 }
 0x506   : > { %6696 = vst.msk [vmem:[#allocation2 + $0x138] sm:$0xff] %vm2409_vm2, %v8871_v35  ;;  %v7714_v22 = vadd.f32 %v7650_v57, %v6895_v55  ;;  %v6898_v62 = vadd.f32 %v14334_v47, %v6827_v45  ;;  %6694 = vst.msk [vmem:[#allocation2 + $0x128] sm:$0xff] %vm2409_vm2, %v6549_v31  ;;  %v6825_v20 = vmul.f32 %v14319_v36, %v6754_v9  ;;  %v14689_v35 = vpop.f32.mrf.mxu0 }
 0x507   : > { %8098 = vst.msk [vmem:[%s14367_s27 + $0x7c] sm:$0xf] %vm8066_vm3, %v8434_v42  ;;  %v8432_v0 = vpack.c.bf16 %v7775_v54, %v7775_v54  ;;  %v7780_v50 = vmax.f32 %v7716_v1, 0.0  ;;  %v8874_v26 = vpop.f32.mrf.mxu1  ;;  %v6759_v59 = vld [vmem:[#allocation2 + $0x130] sm:$0xff]  ;;  %v7657_v37 = vadd.f32 %v14324_v56, %v7586_v40  ;;  %v7589_v7 = vmul.f32 %v14503_v32, %v14308_v44 }
 0x508   : > { %v7778_v48 = vmax.f32 %v7714_v22, 0.0  ;;  %v7717_v16 = vadd.f32 %v7653_v43, %v6898_v62  ;;  %v6896_v28 = vadd.f32 %v14334_v47, %v6825_v20  ;;  %6699 = vst.msk [vmem:[#allocation2 + $0x150] sm:$0xff] %vm2409_vm2, %v8874_v26  ;;  %v6830_v24 = vmul.f32 %v14319_v36, %v6759_v59  ;;  %v14705_v59 = vpop.f32.mrf.mxu0 }
 0x509   : > { %8096 = vst.msk [vmem:[%s14367_s27 + $0x74] sm:$0xf] %vm8066_vm3, %v8432_v0  ;;  %v8437_v51 = vpack.c.bf16 %v7780_v50, %v7780_v50  ;;  %v6562_v49 = vpop.f32.mrf.mxu1  ;;  %v6757_v13 = vld [vmem:[#allocation2 + $0x120] sm:$0xff]  ;;  %v7655_v42 = vadd.f32 %v14324_v56, %v7584_v53  ;;  %v7660_v1 = vadd.f32 %v14324_v56, %v7589_v7  ;;  %v7587_v55 = vmul.f32 %v14308_v44, %v14522_v23 }
 0x50a   : > { %v8435_v30 = vpack.c.bf16 %v7778_v48, %v7778_v48  ;;  %v7781_v61 = vmax.f32 %v7717_v16, 0.0  ;;  %v7715_v46 = vadd.f32 %v7651_v25, %v6896_v28  ;;  %6697 = vst.msk [vmem:[#allocation2 + $0x140] sm:$0xff] %vm2409_vm2, %v6562_v49  ;;  %v6828_v39 = vmul.f32 %v14319_v36, %v6757_v13 }
 0x50b   : > { %8101 = vst.msk [vmem:[%s14367_s27 + $0x88] sm:$0xf] %vm8066_vm3, %v8437_v51  ;;  %v6901_v60 = vadd.f32 %v14334_v47, %v6830_v24  ;;  %v8875_v41 = vpop.f32.mrf.mxu1  ;;  %v7590_v45 = vmul.f32 %v14538_v19, %v14308_v44  ;;  %v7588_v23 = vmul.f32 %v14308_v44, %v14555_v18  ;;  %v7658_v51 = vadd.f32 %v14324_v56, %v7587_v55 }
 0x50c   : > { %8099 = vst.msk [vmem:[%s14367_s27 + $0x80] sm:$0xf] %vm8066_vm3, %v8435_v30  ;;  %v8438_v14 = vpack.c.bf16 %v7781_v61, %v7781_v61  ;;  %v7779_v17 = vmax.f32 %v7715_v46, 0.0  ;;  %v6899_v58 = vadd.f32 %v14334_v47, %v6828_v39  ;;  %v7593_v28 = vmul.f32 %v14571_v15, %v14308_v44 }
 0x50d   : > { %v6760_v6 = vld [vmem:[#allocation2 + $0x138] sm:$0xff]  ;;  %6700 = vst.msk [vmem:[#allocation2 + $0x158] sm:$0xff] %vm2409_vm2, %v8875_v41  ;;  %v7720_v33 = vadd.f32 %v7656_v12, %v6901_v60  ;;  %v6565_v57 = vpop.f32.mrf.mxu1  ;;  %v6758_v34 = vld [vmem:[#allocation2 + $0x128] sm:$0xff]  ;;  %v7661_v18 = vadd.f32 %v14324_v56, %v7590_v45  ;;  %v7659_v61 = vadd.f32 %v14324_v56, %v7588_v23  ;;  %v7591_v46 = vmul.f32 %v14308_v44, %v14588_v10 }
 0x50e   : > { %v6831_v3 = vmul.f32 %v14319_v36, %v6760_v6  ;;  %8102 = vst.msk [vmem:[%s14367_s27 + $0x8c] sm:$0xf] %vm8066_vm3, %v8438_v14  ;;  %v8436_v54 = vpack.c.bf16 %v7779_v17, %v7779_v17  ;;  %v7718_v32 = vadd.f32 %v7654_v5, %v6899_v58  ;;  %v6829_v38 = vmul.f32 %v14319_v36, %v6758_v34  ;;  %v14727_v6 = vpop.f32.mrf.mxu0 }
 0x50f   : > { %6698 = vst.msk [vmem:[#allocation2 + $0x148] sm:$0xff] %vm2409_vm2, %v6565_v57  ;;  %v7784_v27 = vmax.f32 %v7720_v33, 0.0  ;;  %v8878_v43 = vpop.f32.mrf.mxu1  ;;  %v6763_v0 = vld [vmem:[#allocation2 + $0x150] sm:$0xff]  ;;  %v7664_v17 = vadd.f32 %v14324_v56, %v7593_v28 }
 0x510   : > { %v6902_v29 = vadd.f32 %v14334_v47, %v6831_v3  ;;  %8100 = vst.msk [vmem:[%s14367_s27 + $0x84] sm:$0xf] %vm8066_vm3, %v8436_v54  ;;  %v7782_v31 = vmax.f32 %v7718_v32, 0.0  ;;  %v6900_v25 = vadd.f32 %v14334_v47, %v6829_v38  ;;  %v6834_v4 = vmul.f32 %v14319_v36, %v6763_v0  ;;  %v14744_v54 = vld [vmem:[%s14916_s8] ss:$0 sm:$0xff] }
 0x511   : > { %6703 = vst.msk [vmem:[#allocation2 + $0x170] sm:$0xff] %vm2409_vm2, %v8878_v43  ;;  %v8441_v8 = vpack.c.bf16 %v7784_v27, %v7784_v27  ;;  %v6578_v50 = vpop.f32.mrf.mxu1  ;;  %v6761_v22 = vld [vmem:[#allocation2 + $0x140] sm:$0xff]  ;;  %v14765_v43 = vpop.f32.mrf.mxu0  ;;  %v7597_v45 = vmul.f32 %v14744_v54, %v14639_v2  ;;  %v7595_v2 = vmul.f32 %v14744_v54, %v14657_v11  ;;  %v7598_v11 = vmul.f32 %v14744_v54, %v14672_v63 }
 0x512   : > { %v7721_v9 = vadd.f32 %v7657_v37, %v6902_v29  ;;  %v8439_v62 = vpack.c.bf16 %v7782_v31, %v7782_v31  ;;  %v7719_v20 = vadd.f32 %v7655_v42, %v6900_v25  ;;  %v6905_v26 = vadd.f32 %v14334_v47, %v6834_v4  ;;  %6701 = vst.msk [vmem:[#allocation2 + $0x160] sm:$0xff] %vm2409_vm2, %v6578_v50  ;;  %v14738_v42 = vld [vmem:[%s14917_s9] ss:$0 sm:$0xff] }
 0x513   : > { %8105 = vst.msk [vmem:[%s14367_s27 + $0x98] sm:$0xf] %vm8066_vm3, %v8441_v8  ;;  %v6832_v40 = vmul.f32 %v14319_v36, %v6761_v22  ;;  %v8879_v48 = vpop.f32.mrf.mxu1  ;;  %v7662_v56 = vadd.f32 %v14738_v42, %v7591_v46  ;;  %v14755_v38 = vld [vmem:[%s14914_s6] ss:$0 sm:$0xff]  ;;  %v7668_v28 = vadd.f32 %v14738_v42, %v7597_v45 }
 0x514   : > { %v7785_v19 = vmax.f32 %v7721_v9, 0.0  ;;  %v6764_v16 = vld [vmem:[#allocation2 + $0x158] sm:$0xff]  ;;  %8103 = vst.msk [vmem:[%s14367_s27 + $0x90] sm:$0xf] %vm8066_vm3, %v8439_v62  ;;  %v7783_v12 = vmax.f32 %v7719_v20, 0.0  ;;  %v7724_v49 = vadd.f32 %v7660_v1, %v6905_v26 }
 0x515   : > { %6704 = vst.msk [vmem:[#allocation2 + $0x178] sm:$0xff] %vm2409_vm2, %v8879_v48  ;;  %v6835_v13 = vmul.f32 %v14319_v36, %v6764_v16  ;;  %v6903_v5 = vadd.f32 %v14334_v47, %v6832_v40  ;;  %v6581_v53 = vpop.f32.mrf.mxu1 }
 0x516   : > { %v8442_v24 = vpack.c.bf16 %v7785_v19, %v7785_v19  ;;  %v6762_v30 = vld [vmem:[#allocation2 + $0x148] sm:$0xff]  ;;  %v8440_v15 = vpack.c.bf16 %v7783_v12, %v7783_v12  ;;  %v7788_v39 = vmax.f32 %v7724_v49, 0.0  ;;  %6702 = vst.msk [vmem:[#allocation2 + $0x168] sm:$0xff] %vm2409_vm2, %v6581_v53 }
 0x517   : > { %v6906_v60 = vadd.f32 %v14334_v47, %v6835_v13  ;;  %v6833_v41 = vmul.f32 %v14319_v36, %v6762_v30  ;;  %v7722_v37 = vadd.f32 %v7658_v51, %v6903_v5  ;;  %v8882_v7 = vpop.f32.mrf.mxu1  ;;  %v7496_v51 = vpop.f32.mrf.mxu0 }
 0x518   : > { %8106 = vst.msk [vmem:[%s14367_s27 + $0x9c] sm:$0xf] %vm8066_vm3, %v8442_v24  ;;  %v6767_v14 = vld [vmem:[#allocation2 + $0x170] sm:$0xff]  ;;  %8104 = vst.msk [vmem:[%s14367_s27 + $0x94] sm:$0xf] %vm8066_vm3, %v8440_v15  ;;  %v8445_v44 = vpack.c.bf16 %v7788_v39, %v7788_v39 }
 0x519   : > { %v7725_v10 = vadd.f32 %v7661_v18, %v6906_v60  ;;  %v6904_v58 = vadd.f32 %v14334_v47, %v6833_v41  ;;  %6707 = vst.msk [vmem:[#allocation2 + $0x190] sm:$0xff] %vm2409_vm2, %v8882_v7  ;;  %v6838_v3 = vmul.f32 %v14319_v36, %v6767_v14  ;;  %v7786_v33 = vmax.f32 %v7722_v37, 0.0  ;;  %v6594_v57 = vpop.f32.mrf.mxu1  ;;  %v6765_v34 = vld [vmem:[#allocation2 + $0x160] sm:$0xff]  ;;  %v8956_v60 = vpop.f32.mrf.mxu0 }
 0x51a   : > { %v7594_v47 = vmul.f32 %v14744_v54, %v14606_v52  ;;  %v7592_v36 = vmul.f32 %v14744_v54, %v14622_v21  ;;  %8109 = vst.msk [vmem:[%s14367_s27 + $0xa8] sm:$0xf] %vm8066_vm3, %v8445_v44  ;;  %v14762_v52 = vld [vmem:[%s14913_s5] ss:$0 sm:$0xff]  ;;  %v7669_v14 = vadd.f32 %v14738_v42, %v7598_v11  ;;  %v7601_v44 = vmul.f32 %v14744_v54, %v14705_v59 }
 0x51b   : > { %v7789_v32 = vmax.f32 %v7725_v10, 0.0  ;;  %v7723_v29 = vadd.f32 %v7659_v61, %v6904_v58  ;;  %v6909_v27 = vadd.f32 %v14755_v38, %v6838_v3  ;;  %6705 = vst.msk [vmem:[#allocation2 + $0x180] sm:$0xff] %vm2409_vm2, %v6594_v57  ;;  %v6836_v21 = vmul.f32 %v14762_v52, %v6765_v34  ;;  %v8883_v1 = vpop.f32.mrf.mxu1 }
 0x51c   : > { %v8443_v0 = vpack.c.bf16 %v7786_v33, %v7786_v33  ;;  %v6768_v55 = vld [vmem:[#allocation2 + $0x178] sm:$0xff]  ;;  %6708 = vst.msk [vmem:[#allocation2 + $0x198] sm:$0xff] %vm2409_vm2, %v8883_v1  ;;  %v7665_v50 = vadd.f32 %v14738_v42, %v7594_v47  ;;  %v7663_v62 = vadd.f32 %v14738_v42, %v7592_v36  ;;  %v7666_v61 = vadd.f32 %v14738_v42, %v7595_v2 }
 0x51d   : > { %v8446_v31 = vpack.c.bf16 %v7789_v32, %v7789_v32  ;;  %v7787_v9 = vmax.f32 %v7723_v29, 0.0  ;;  %v7728_v25 = vadd.f32 %v7664_v17, %v6909_v27  ;;  %v6907_v4 = vadd.f32 %v14755_v38, %v6836_v21  ;;  %v6597_v22 = vpop.f32.mrf.mxu1  ;;  %v6766_v23 = vld [vmem:[#allocation2 + $0x168] sm:$0xff]  ;;  %v7509_v29 = vpop.f32.mrf.mxu0 }
 0x51e   : > { %8107 = vst.msk [vmem:[%s14367_s27 + $0xa0] sm:$0xf] %vm8066_vm3, %v8443_v0  ;;  %v6839_v8 = vmul.f32 %v14762_v52, %v6768_v55  ;;  %v6837_v40 = vmul.f32 %v14762_v52, %v6766_v23  ;;  %v7596_v17 = vmul.f32 %v14744_v54, %v14689_v35  ;;  %v7599_v35 = vmul.f32 %v14744_v54, %v14727_v6 }
 0x51f   : > { %8110 = vst.msk [vmem:[%s14367_s27 + $0xac] sm:$0xf] %vm8066_vm3, %v8446_v31  ;;  %v8444_v19 = vpack.c.bf16 %v7787_v9, %v7787_v9  ;;  %v7792_v20 = vmax.f32 %v7728_v25, 0.0  ;;  %v7726_v26 = vadd.f32 %v7662_v56, %v6907_v4  ;;  %v8886_v16 = vpop.f32.mrf.mxu1  ;;  %v7672_v55 = vadd.f32 %v14738_v42, %v7601_v44 }
 0x520   : > { %6706 = vst.msk [vmem:[#allocation2 + $0x188] sm:$0xff] %vm2409_vm2, %v6597_v22  ;;  %v6910_v48 = vadd.f32 %v14755_v38, %v6839_v8  ;;  %v6771_v18 = vld [vmem:[#allocation2 + $0x190] sm:$0xff]  ;;  %v6908_v49 = vadd.f32 %v14755_v38, %v6837_v40  ;;  %6711 = vst.msk [vmem:[#allocation2 + $0x1b0] sm:$0xff] %vm2409_vm2, %v8886_v16  ;;  %v7667_v21 = vadd.f32 %v14738_v42, %v7596_v17 }
 0x521   : > { %8108 = vst.msk [vmem:[%s14367_s27 + $0xa4] sm:$0xf] %vm8066_vm3, %v8444_v19  ;;  %v8449_v24 = vpack.c.bf16 %v7792_v20, %v7792_v20  ;;  %v7790_v12 = vmax.f32 %v7726_v26, 0.0  ;;  %v6842_v13 = vmul.f32 %v14762_v52, %v6771_v18  ;;  %v6610_v53 = vpop.f32.mrf.mxu1  ;;  %v7602_v6 = vmul.f32 %v14744_v54, %v14765_v43  ;;  %v8957_v20 = vpop.f32.mrf.mxu0 }
 0x522   : > { %v7729_v5 = vadd.f32 %v7665_v50, %v6910_v48  ;;  %v6769_v30 = vld [vmem:[#allocation2 + $0x180] sm:$0xff]  ;;  %v7727_v63 = vadd.f32 %v7663_v62, %v6908_v49  ;;  %6709 = vst.msk [vmem:[#allocation2 + $0x1a0] sm:$0xff] %vm2409_vm2, %v6610_v53  ;;  %v7670_v22 = vadd.f32 %v14738_v42, %v7599_v35  ;;  %v7600_v23 = vmul.f32 %v14744_v54, %v7496_v51 }
 0x523   : > { %8113 = vst.msk [vmem:[%s14367_s27 + $0xb8] sm:$0xf] %vm8066_vm3, %v8449_v24  ;;  %v8447_v46 = vpack.c.bf16 %v7790_v12, %v7790_v12  ;;  %v6913_v15 = vadd.f32 %v14755_v38, %v6842_v13  ;;  %v6840_v39 = vmul.f32 %v14762_v52, %v6769_v30  ;;  %v8887_v37 = vpop.f32.mrf.mxu1  ;;  %v6772_v7 = vld [vmem:[#allocation2 + $0x198] sm:$0xff]  ;;  %v7673_v16 = vadd.f32 %v14738_v42, %v7602_v6 }
 0x524   : > { %v7793_v41 = vmax.f32 %v7729_v5, 0.0  ;;  %v7791_v10 = vmax.f32 %v7727_v63, 0.0  ;;  %6712 = vst.msk [vmem:[#allocation2 + $0x1b8] sm:$0xff] %vm2409_vm2, %v8887_v37  ;;  %v6843_v33 = vmul.f32 %v14762_v52, %v6772_v7  ;;  %v7671_v13 = vadd.f32 %v14738_v42, %v7600_v23 }
 0x525   : > { %8111 = vst.msk [vmem:[%s14367_s27 + $0xb0] sm:$0xf] %vm8066_vm3, %v8447_v46  ;;  %v7732_v58 = vadd.f32 %v7668_v28, %v6913_v15  ;;  %v6911_v3 = vadd.f32 %v14755_v38, %v6840_v39  ;;  %v6613_v34 = vpop.f32.mrf.mxu1  ;;  %v7605_v5 = vmul.f32 %v14744_v54, %v8956_v60  ;;  %v7603_v53 = vmul.f32 %v14744_v54, %v7509_v29  ;;  %v7512_v15 = vpop.f32.mrf.mxu0 }
 0x526   : > { %v8450_v57 = vpack.c.bf16 %v7793_v41, %v7793_v41  ;;  %v8448_v47 = vpack.c.bf16 %v7791_v10, %v7791_v10  ;;  %v6914_v32 = vadd.f32 %v14755_v38, %v6843_v33  ;;  %6710 = vst.msk [vmem:[#allocation2 + $0x1a8] sm:$0xff] %vm2409_vm2, %v6613_v34  ;;  %v7606_v37 = vmul.f32 %v14744_v54, %v8957_v20 }
 0x527   : > { %v6770_v56 = vld [vmem:[#allocation2 + $0x188] sm:$0xff]  ;;  %v7796_v59 = vmax.f32 %v7732_v58, 0.0  ;;  %v7730_v36 = vadd.f32 %v7666_v61, %v6911_v3  ;;  %v8890_v0 = vpop.f32.mrf.mxu1  ;;  %v6775_v1 = vld [vmem:[#allocation2 + $0x1b0] sm:$0xff]  ;;  %v7676_v10 = vadd.f32 %v14738_v42, %v7605_v5  ;;  %v7674_v3 = vadd.f32 %v14738_v42, %v7603_v53 }
 0x528   : > { %8114 = vst.msk [vmem:[%s14367_s27 + $0xbc] sm:$0xf] %vm8066_vm3, %v8450_v57  ;;  %v6841_v27 = vmul.f32 %v14762_v52, %v6770_v56  ;;  %8112 = vst.msk [vmem:[%s14367_s27 + $0xb4] sm:$0xf] %vm8066_vm3, %v8448_v47  ;;  %v7733_v9 = vadd.f32 %v7669_v14, %v6914_v32  ;;  %v6846_v25 = vmul.f32 %v14762_v52, %v6775_v1 }
 0x529   : > { %v8453_v45 = vpack.c.bf16 %v7796_v59, %v7796_v59  ;;  %v7794_v31 = vmax.f32 %v7730_v36, 0.0  ;;  %6715 = vst.msk [vmem:[#allocation2 + $0x1d0] sm:$0xff] %vm2409_vm2, %v8890_v0  ;;  %v6626_v8 = vpop.f32.mrf.mxu1  ;;  %v6773_v50 = vld [vmem:[#allocation2 + $0x1a0] sm:$0xff]  ;;  %v7604_v33 = vmul.f32 %v14744_v54, %v7512_v15  ;;  %v7677_v36 = vadd.f32 %v14738_v42, %v7606_v37 }
 0x52a   : > { %v6912_v4 = vadd.f32 %v14755_v38, %v6841_v27  ;;  %v7797_v62 = vmax.f32 %v7733_v9, 0.0  ;;  %v6917_v2 = vadd.f32 %v14755_v38, %v6846_v25  ;;  %6713 = vst.msk [vmem:[#allocation2 + $0x1c0] sm:$0xff] %vm2409_vm2, %v6626_v8  ;;  %v6844_v19 = vmul.f32 %v14762_v52, %v6773_v50 }
 0x52b   : > { %8117 = vst.msk [vmem:[%s14367_s27 + $0xc8] sm:$0xf] %vm8066_vm3, %v8453_v45  ;;  %v8451_v43 = vpack.c.bf16 %v7794_v31, %v7794_v31  ;;  %v8891_v40 = vpop.f32.mrf.mxu1  ;;  %v6776_v48 = vld [vmem:[#allocation2 + $0x1b8] sm:$0xff] }
 0x52c   : > { %v7731_v26 = vadd.f32 %v7667_v21, %v6912_v4  ;;  %v8454_v51 = vpack.c.bf16 %v7797_v62, %v7797_v62  ;;  %v7736_v18 = vadd.f32 %v7672_v55, %v6917_v2  ;;  %v6915_v28 = vadd.f32 %v14755_v38, %v6844_v19  ;;  %6716 = vst.msk [vmem:[#allocation2 + $0x1d8] sm:$0xff] %vm2409_vm2, %v8891_v40 }
 0x52d   : > { %8115 = vst.msk [vmem:[%s14367_s27 + $0xc0] sm:$0xf] %vm8066_vm3, %v8451_v43  ;;  %v6847_v11 = vmul.f32 %v14762_v52, %v6776_v48  ;;  %v6629_v12 = vpop.f32.mrf.mxu1  ;;  %v6774_v49 = vld [vmem:[#allocation2 + $0x1a8] sm:$0xff]  ;;  %v7675_v55 = vadd.f32 %v14738_v42, %v7604_v33 }
 0x52e   : > { %v7795_v24 = vmax.f32 %v7731_v26, 0.0  ;;  %8118 = vst.msk [vmem:[%s14367_s27 + $0xcc] sm:$0xf] %vm8066_vm3, %v8454_v51  ;;  %v7800_v30 = vmax.f32 %v7736_v18, 0.0  ;;  %v7734_v61 = vadd.f32 %v7670_v22, %v6915_v28  ;;  %v6845_v63 = vmul.f32 %v14762_v52, %v6774_v49  ;;  %v8960_v26 = vpop.f32.mrf.mxu0 }
 0x52f   : > { %v6918_v46 = vadd.f32 %v14755_v38, %v6847_v11  ;;  %6714 = vst.msk [vmem:[#allocation2 + $0x1c8] sm:$0xff] %vm2409_vm2, %v6629_v12  ;;  %v7609_v18 = vmul.f32 %v14744_v54, %v8960_v26 }
 0x530   : > { %v8452_v39 = vpack.c.bf16 %v7795_v24, %v7795_v24  ;;  %v6779_v41 = vld [vmem:[#allocation2 + $0x1d0] sm:$0xff]  ;;  %v8457_v60 = vpack.c.bf16 %v7800_v30, %v7800_v30  ;;  %v7798_v7 = vmax.f32 %v7734_v61, 0.0  ;;  %v6916_v17 = vadd.f32 %v14755_v38, %v6845_v63  ;;  %v7525_v48 = vpop.f32.mrf.mxu0 }
 0x531   : > { %v7737_v14 = vadd.f32 %v7673_v16, %v6918_v46  ;;  %v6850_v44 = vmul.f32 %v14762_v52, %v6779_v41  ;;  %v6777_v58 = vld [vmem:[#allocation2 + $0x1c0] sm:$0xff]  ;;  %v7680_v49 = vadd.f32 %v14738_v42, %v7609_v18 }
 0x532   : > { %8116 = vst.msk [vmem:[%s14367_s27 + $0xc4] sm:$0xf] %vm8066_vm3, %v8452_v39  ;;  %8121 = vst.msk [vmem:[%s14367_s27 + $0xd8] sm:$0xf] %vm8066_vm3, %v8457_v60  ;;  %v8455_v57 = vpack.c.bf16 %v7798_v7, %v7798_v7  ;;  %v7735_v56 = vadd.f32 %v7671_v13, %v6916_v17  ;;  %v6848_v35 = vmul.f32 %v14762_v52, %v6777_v58  ;;  %v8961_v28 = vpop.f32.mrf.mxu0 }
 0x533   : > { %v7801_v34 = vmax.f32 %v7737_v14, 0.0  ;;  %v6921_v47 = vadd.f32 %v14755_v38, %v6850_v44  ;;  %v6780_v59 = vld [vmem:[#allocation2 + $0x1d8] sm:$0xff]  ;;  %v7607_v13 = vmul.f32 %v14744_v54, %v7525_v48  ;;  %v7610_v30 = vmul.f32 %v14744_v54, %v8961_v28 }
 0x534   : > { %8119 = vst.msk [vmem:[%s14367_s27 + $0xd0] sm:$0xf] %vm8066_vm3, %v8455_v57  ;;  %v7799_v29 = vmax.f32 %v7735_v56, 0.0  ;;  %v6919_v27 = vadd.f32 %v14755_v38, %v6848_v35  ;;  %v6851_v21 = vmul.f32 %v14762_v52, %v6780_v59  ;;  %v7528_v5 = vpop.f32.mrf.mxu0 }
 0x535   : > { %v8458_v32 = vpack.c.bf16 %v7801_v34, %v7801_v34  ;;  %v7740_v0 = vadd.f32 %v7676_v10, %v6921_v47  ;;  %v7608_v15 = vmul.f32 %v14744_v54, %v7528_v5  ;;  %v7678_v37 = vadd.f32 %v14738_v42, %v7607_v13 }
 0x536   : > { %v6778_v1 = vld [vmem:[#allocation2 + $0x1c8] sm:$0xff]  ;;  %v8456_v6 = vpack.c.bf16 %v7799_v29, %v7799_v29  ;;  %v7738_v45 = vadd.f32 %v7674_v3, %v6919_v27  ;;  %v6922_v31 = vadd.f32 %v14755_v38, %v6851_v21  ;;  %v7681_v7 = vadd.f32 %v14738_v42, %v7610_v30 }
 0x537   : > { %8122 = vst.msk [vmem:[%s14367_s27 + $0xdc] sm:$0xf] %vm8066_vm3, %v8458_v32  ;;  %v6849_v9 = vmul.f32 %v14762_v52, %v6778_v1  ;;  %v7804_v25 = vmax.f32 %v7740_v0, 0.0  ;;  %v7679_v58 = vadd.f32 %v14738_v42, %v7608_v15 }
 0x538   : > { %8120 = vst.msk [vmem:[%s14367_s27 + $0xd4] sm:$0xf] %vm8066_vm3, %v8456_v6  ;;  %v7802_v4 = vmax.f32 %v7738_v45, 0.0  ;;  %v7741_v8 = vadd.f32 %v7677_v36, %v6922_v31 }
 0x539   : > { %v6920_v50 = vadd.f32 %v14755_v38, %v6849_v9  ;;  %v8461_v22 = vpack.c.bf16 %v7804_v25, %v7804_v25 }
 0x53a   : > { %v8459_v23 = vpack.c.bf16 %v7802_v4, %v7802_v4  ;;  %v7805_v43 = vmax.f32 %v7741_v8, 0.0 }
 0x53b   : > { %v7739_v62 = vadd.f32 %v7675_v55, %v6920_v50  ;;  %8125 = vst.msk [vmem:[%s14367_s27 + $0xe8] sm:$0xf] %vm8066_vm3, %v8461_v22 }
 0x53c   : > { %8123 = vst.msk [vmem:[%s14367_s27 + $0xe0] sm:$0xf] %vm8066_vm3, %v8459_v23  ;;  %v8462_v2 = vpack.c.bf16 %v7805_v43, %v7805_v43 }
 0x53d   : > { %v7803_v19 = vmax.f32 %v7739_v62, 0.0 }
 0x53e   : > { %8126 = vst.msk [vmem:[%s14367_s27 + $0xec] sm:$0xf] %vm8066_vm3, %v8462_v2 }
 0x53f   : > { %v8460_v20 = vpack.c.bf16 %v7803_v19, %v7803_v19 }
 0x541   : > { %8124 = vst.msk [vmem:[%s14367_s27 + $0xe4] sm:$0xf] %vm8066_vm3, %v8460_v20 }
 0x567   : > { %v8894_v40 = vpop.f32.mrf.mxu1 }
 0x568   : > { %6719 = vst.msk [vmem:[#allocation2 + $0x1f0] sm:$0xff] %vm2409_vm2, %v8894_v40 }
 0x569   : > { %v6642_v16 = vpop.f32.mrf.mxu1 }
 0x56a   : > { %6717 = vst.msk [vmem:[#allocation2 + $0x1e0] sm:$0xff] %vm2409_vm2, %v6642_v16 }
 0x56b   : > { %v8895_v51 = vpop.f32.mrf.mxu1 }
 0x56c   : > { %6720 = vst.msk [vmem:[#allocation2 + $0x1f8] sm:$0xff] %vm2409_vm2, %v8895_v51 }
 0x56d   : > { %v6645_v11 = vpop.f32.mrf.mxu1 }
 0x56e   : > { %6718 = vst.msk [vmem:[#allocation2 + $0x1e8] sm:$0xff] %vm2409_vm2, %v6645_v11 }
 0x56f   : > { %v6783_v24 = vld [vmem:[#allocation2 + $0x1f0] sm:$0xff] }
 0x570   : > { %v6854_v12 = vmul.f32 %v14762_v52, %v6783_v24 }
 0x571   : > { %v6781_v53 = vld [vmem:[#allocation2 + $0x1e0] sm:$0xff] }
 0x572   : > { %v6925_v61 = vadd.f32 %v14755_v38, %v6854_v12  ;;  %v6852_v46 = vmul.f32 %v14762_v52, %v6781_v53 }
 0x573   : > { %v6784_v63 = vld [vmem:[#allocation2 + $0x1f8] sm:$0xff] }
 0x574   : > { %v7744_v39 = vadd.f32 %v7680_v49, %v6925_v61  ;;  %v6923_v41 = vadd.f32 %v14755_v38, %v6852_v46  ;;  %v6855_v60 = vmul.f32 %v14762_v52, %v6784_v63 }
 0x575   : > { %v6782_v14 = vld [vmem:[#allocation2 + $0x1e8] sm:$0xff] }
 0x576   : > { %v7808_v17 = vmax.f32 %v7744_v39, 0.0  ;;  %v7742_v44 = vadd.f32 %v7678_v37, %v6923_v41  ;;  %v6926_v10 = vadd.f32 %v14755_v38, %v6855_v60  ;;  %v6853_v54 = vmul.f32 %v14762_v52, %v6782_v14 }
 0x578   : > { %v8465_v3 = vpack.c.bf16 %v7808_v17, %v7808_v17  ;;  %v7806_v33 = vmax.f32 %v7742_v44, 0.0  ;;  %v7745_v57 = vadd.f32 %v7681_v7, %v6926_v10  ;;  %v6924_v34 = vadd.f32 %v14755_v38, %v6853_v54 }
 0x57a   : > { %8129 = vst.msk [vmem:[%s14367_s27 + $0xf8] sm:$0xf] %vm8066_vm3, %v8465_v3  ;;  %v8463_v56 = vpack.c.bf16 %v7806_v33, %v7806_v33  ;;  %v7809_v35 = vmax.f32 %v7745_v57, 0.0  ;;  %v7743_v47 = vadd.f32 %v7679_v58, %v6924_v34 }
 0x57c   : > { %8127 = vst.msk [vmem:[%s14367_s27 + $0xf0] sm:$0xf] %vm8066_vm3, %v8463_v56  ;;  %v8466_v59 = vpack.c.bf16 %v7809_v35, %v7809_v35  ;;  %v7807_v36 = vmax.f32 %v7743_v47, 0.0 }
 0x57e   : > { %8130 = vst.msk [vmem:[%s14367_s27 + $0xfc] sm:$0xf] %vm8066_vm3, %v8466_v59  ;;  %v8464_v32 = vpack.c.bf16 %v7807_v36, %v7807_v36 }
 0x580   : > { %8128 = vst.msk [vmem:[%s14367_s27 + $0xf4] sm:$0xf] %vm8066_vm3, %v8464_v32 }
 0x581 PF: > { %s20_s13 = sadd.s32 1, %s10452_s13  }
 0x582   : > { %p17_p4 = scmp.ge.s32.totalorder %s20_s13, 4  }
 0x584   :  { %19 = sbr.rel (!%p17_p4) target bundleno = 1 (0x1), region = 90 }

</bundles_post_ra>
